<compile_context>
chip_gen: v7x
topology: tpu7x:2x2x1
jax: 0.10.0
libtpu: 0.0.40
codegen_flags: <defaults>
</compile_context>

<pallas_src>
import functools

import jax
import jax.numpy as jnp
from jax.experimental import pallas as pl
from jax.experimental.pallas import tpu as pltpu


def _round_up(a, b):
    return (a + b - 1) // b * b


# ---------------------------------------------------------------------------
# Geometry of the row-flattened zero-padded volume + row-tile choice
# ---------------------------------------------------------------------------
def conv_geom(D, H, W):
    S1 = W + 2
    S2 = (H + 2) * (W + 2)
    P = (D + 2) * S2                       # rows of the zero-padded flat volume
    q0 = S2 + S1 + 1                       # first interior row of the padded volume
    Mspan = P - 2 * q0                     # contiguous span covering all interior rows

    # Row-tile size (multiple of 16 for bf16 sublane packing).
    if Mspan >= 2048:
        TM = 512
    elif Mspan >= 512:
        TM = 256
    else:
        TM = _round_up(Mspan, 16)
    ntiles = -(-Mspan // TM)
    Mtile = ntiles * TM                    # rows the kernel produces (>= Mspan)
    P_pad = Mtile + 2 * q0                 # rows the kernel may read (max tap off 2*q0)

    offsets = tuple(kd * S2 + kh * S1 + kw
                    for kd in range(3) for kh in range(3) for kw in range(3))

    # 1.0 at real interior output rows, 0.0 at padded-border / tail rows.  Masking the
    # span output lets it double as the next conv's zero-padded flattened input.
    i = jnp.arange(Mtile, dtype=jnp.int32)
    q = q0 + i
    dd = q // S2
    r = q - dd * S2
    hh = r // S1
    ww = r - hh * S1
    interior = ((dd >= 1) & (dd <= D) & (hh >= 1) & (hh <= H)
                & (ww >= 1) & (ww <= W) & (i < Mspan))
    mask = interior.astype(jnp.float32).reshape(Mtile, 1)

    return dict(D=D, H=H, W=W, S1=S1, S2=S2, P=P, P_pad=P_pad, q0=q0,
                Mspan=Mspan, Mtile=Mtile, TM=TM, ntiles=ntiles,
                offsets=offsets, mask=mask)


# ---------------------------------------------------------------------------
# Pallas kernels: pack 27 shifted windows into (TM, 27*Cin), one MXU matmul,
# + folded-BN bias (+ residual) + ReLU + interior mask, bf16 store.
# ---------------------------------------------------------------------------
def _pack_taps(x_ref, pk_ref, *, offsets, cin, tm):
    base = pl.multiple_of(pl.program_id(1) * tm, 16)
    for t, off in enumerate(offsets):            # static unrolled: 27 window copies
        pk_ref[:, t * cin:(t + 1) * cin] = (
            x_ref[0, pl.ds(base + off, tm), :].astype(jnp.bfloat16))


def _conv_kernel(x_ref, w_ref, b_ref, m_ref, o_ref, pk_ref, *, offsets, cin, tm, relu):
    _pack_taps(x_ref, pk_ref, offsets=offsets, cin=cin, tm=tm)
    y = jnp.dot(pk_ref[...], w_ref[...], preferred_element_type=jnp.float32)
    y = y + b_ref[...]
    if relu:
        y = jnp.maximum(y, 0.0)
    o_ref[0, :, :] = (y * m_ref[...]).astype(o_ref.dtype)


def _conv_res_kernel(x_ref, w_ref, b_ref, m_ref, r_ref, o_ref, pk_ref, *,
                     offsets, cin, tm, relu):
    _pack_taps(x_ref, pk_ref, offsets=offsets, cin=cin, tm=tm)
    y = jnp.dot(pk_ref[...], w_ref[...], preferred_element_type=jnp.float32)
    y = y + b_ref[...] + r_ref[0, :, :].astype(jnp.float32)
    if relu:
        y = jnp.maximum(y, 0.0)
    o_ref[0, :, :] = (y * m_ref[...]).astype(o_ref.dtype)


def conv3x3x3_fused(xflat, w, bias, geom, *, residual=None, relu=True):
    """Fused 3x3x3 conv (pad=1) + folded-BN + [residual add] + ReLU.

    xflat    : (B, P_pad, Cin)   f32  zero-padded, row-flattened activation
    w        : (27*Cin, Np)      bf16 BN scale folded, Cout zero-padded to Np=128
    bias     : (1, Np)           f32
    residual : (B, Mtile, Np)    bf16 or None (span-frame, already masked)
    returns  : (B, Mtile, Np)    bf16 span-frame output (zero outside interior rows)
    """
    B, P_pad, Cin = xflat.shape
    Kt, Np = w.shape
    assert Kt == 27 * Cin and P_pad == geom["P_pad"]
    TM, ntiles, Mtile = geom["TM"], geom["ntiles"], geom["Mtile"]

    in_specs = [
        pl.BlockSpec((1, P_pad, Cin), lambda b, j: (b, 0, 0)),   # padded-flat activation
        pl.BlockSpec((Kt, Np), lambda b, j: (0, 0)),             # K-packed bf16 weights
        pl.BlockSpec((1, Np), lambda b, j: (0, 0)),              # folded bias
        pl.BlockSpec((TM, 1), lambda b, j: (j, 0)),              # interior-row mask tile
    ]
    args = [xflat, w, bias, geom["mask"]]
    if residual is None:
        kernel = functools.partial(_conv_kernel, offsets=geom["offsets"],
                                   cin=Cin, tm=TM, relu=relu)
    else:
        in_specs.append(pl.BlockSpec((1, TM, Np), lambda b, j: (b, j, 0)))
        args.append(residual)
        kernel = functools.partial(_conv_res_kernel, offsets=geom["offsets"],
                                   cin=Cin, tm=TM, relu=relu)

    flops = 2 * B * Mtile * Kt * Np
    bytes_accessed = (xflat.size * 4 + w.size * 2 + bias.size * 4
                      + geom["mask"].size * 4 + B * Mtile * Np * 2
                      + (0 if residual is None else residual.size * 2))

    return pl.pallas_call(
        kernel,
        out_shape=jax.ShapeDtypeStruct((B, Mtile, Np), jnp.bfloat16),
        grid=(B, ntiles),
        in_specs=in_specs,
        out_specs=pl.BlockSpec((1, TM, Np), lambda b, j: (b, j, 0)),
        scratch_shapes=[pltpu.VMEM((TM, Kt), jnp.bfloat16)],     # packed tap windows
        compiler_params=pltpu.CompilerParams(
            dimension_semantics=("parallel", "parallel"),
            vmem_limit_bytes=32 * 1024 * 1024),
        cost_estimate=pl.CostEstimate(flops=int(flops), transcendentals=0,
                                      bytes_accessed=int(bytes_accessed)),
    )(*args)


# ---------------------------------------------------------------------------
# Layout helpers (cheap XLA glue over the NARROW channel count only)
# ---------------------------------------------------------------------------
def ndhwc_to_padded_flat(x, geom):
    B, D, H, W, C = x.shape
    xp = jnp.pad(x, ((0, 0), (1, 1), (1, 1), (1, 1), (0, 0)))
    xf = xp.reshape(B, geom["P"], C)
    extra = geom["P_pad"] - geom["P"]
    if extra:
        xf = jnp.pad(xf, ((0, 0), (0, extra), (0, 0)))
    return xf.astype(jnp.float32)


def span_to_padded_flat(y_span, cout, geom):
    # masked span output -> next conv's zero-padded flattened input (narrow channels)
    y = y_span[:, :geom["Mspan"], :cout].astype(jnp.float32)
    extra = geom["P_pad"] - geom["P"]
    return jnp.pad(y, ((0, 0), (geom["q0"], geom["q0"] + extra), (0, 0)))


def span_to_ndhwc(y_span, cout, geom):
    B = y_span.shape[0]
    D, H, W = geom["D"], geom["H"], geom["W"]
    y = y_span[:, :geom["Mspan"], :cout].astype(jnp.float32)
    y = jnp.pad(y, ((0, 0), (geom["q0"], geom["q0"]), (0, 0)))
    y = y.reshape(B, D + 2, H + 2, W + 2, cout)
    return y[:, 1:-1, 1:-1, 1:-1, :]


# ---------------------------------------------------------------------------
# Glue ops: AvgPool3d(2), AddCoords(rank=3, with_r=False)
# ---------------------------------------------------------------------------
def avg_pool2(x):
    B, D, H, W, C = x.shape
    x = x.reshape(B, D // 2, 2, H // 2, 2, W // 2, 2, C)
    return x.mean(axis=(2, 4, 6))


def add_coords(x):
    # TODO(synk): coordinate channel order / normalization assumed (zz, yy, xx in [-1,1]).
    B, D, H, W, C = x.shape

    def lin(n):
        return (jnp.arange(n, dtype=jnp.float32) / max(n - 1, 1)) * 2.0 - 1.0

    zz = jnp.broadcast_to(lin(D)[:, None, None], (D, H, W))
    yy = jnp.broadcast_to(lin(H)[None, :, None], (D, H, W))
    xx = jnp.broadcast_to(lin(W)[None, None, :], (D, H, W))
    coords = jnp.stack([zz, yy, xx], axis=-1)
    coords = jnp.broadcast_to(coords[None], (B, D, H, W, 3))
    return jnp.concatenate([x, coords], axis=-1)


# ---------------------------------------------------------------------------
# ExtResNetBlock + ResidualUNet3DEncoder
# ---------------------------------------------------------------------------
def ext_resnet_block(x, p, cout):
    # x: (B, D, H, W, Cin) f32
    B, D, H, W, _ = x.shape
    g = conv_geom(D, H, W)
    xf = ndhwc_to_padded_flat(x, g)
    # conv1 + BN + ReLU
    y1 = conv3x3x3_fused(xf, p["w1"], p["b1"], g, relu=True)
    # conv2 + BN + ReLU
    y2 = conv3x3x3_fused(span_to_padded_flat(y1, cout, g), p["w2"], p["b2"], g, relu=True)
    # conv3 + BN, += residual(y1), ReLU  -- all fused in one kernel
    y3 = conv3x3x3_fused(span_to_padded_flat(y2, cout, g), p["w3"], p["b3"], g,
                         residual=y1, relu=True)
    return span_to_ndhwc(y3, cout, g)


def residual_unet3d_encoder(x_ncdhw, params, f_maps):
    # NCDHW -> NDHWC
    x = jnp.transpose(x_ncdhw, (0, 2, 3, 4, 1)).astype(jnp.float32)

    # image pyramid of the raw input (use_IP=True)
    pyramid = []
    img_d = x
    for _ in range(len(f_maps) - 1):
        img_d = avg_pool2(img_d)
        pyramid.append(img_d)

    feats = []
    cur = x
    for i in range(len(f_maps)):
        if i == 0:
            h = add_coords(cur)                                   # use_coord
        else:
            h = avg_pool2(cur)                                    # AvgPool3d(2)
            h = jnp.concatenate([h, pyramid[i - 1]], axis=-1)     # use_IP concat
            h = add_coords(h)                                     # use_coord concat
        cur = ext_resnet_block(h, params[i], f_maps[i])
        feats.insert(0, cur)

    feats = [jnp.transpose(f, (0, 4, 1, 2, 3)) for f in feats]    # back to NCDHW
    return None, feats


# ---------------------------------------------------------------------------
# Deterministic parameter init (BN eval-mode stats folded into weights / bias)
# ---------------------------------------------------------------------------
def init_block_params(key, cin, cout):
    k1, k2, k3 = jax.random.split(key, 3)
    eps = 1e-5
    n_pad = max(128, _round_up(cout, 128))

    def bn_fold():
        gamma = jnp.ones((cout,), jnp.float32)
        beta = jnp.zeros((cout,), jnp.float32)
        mean = jnp.zeros((cout,), jnp.float32)
        var = jnp.ones((cout,), jnp.float32)
        scale = gamma / jnp.sqrt(var + eps)
        bias = beta - mean * scale
        return scale, bias

    def conv(k, ci):
        fan_in = ci * 27
        w = (jax.random.normal(k, (3, 3, 3, ci, cout), jnp.float32)
             * (2.0 / fan_in) ** 0.5)
        scale, bias = bn_fold()
        wf = w * scale                                            # fold BN scale
        wf = jnp.pad(wf, ((0, 0), (0, 0), (0, 0), (0, 0), (0, n_pad - cout)))
        # K-packed layout: row index = (kd*9 + kh*3 + kw)*Cin + c  (matches _pack_taps)
        wf = wf.reshape(27 * ci, n_pad).astype(jnp.bfloat16)
        bp = jnp.pad(bias, (0, n_pad - cout)).reshape(1, n_pad).astype(jnp.float32)
        return wf, bp, w, scale, bias

    w1, b1, w1_raw, s1, b1_raw = conv(k1, cin)
    w2, b2, _, _, _ = conv(k2, cout)
    w3, b3, _, _, _ = conv(k3, cout)
    return dict(w1=w1, b1=b1, w1_raw=w1_raw, s1=s1, b1_raw=b1_raw,
                w2=w2, b2=b2, w3=w3, b3=b3)


# ---------------------------------------------------------------------------
if __name__ == "__main__":
    key = jax.random.PRNGKey(0)
    B, C, D, H, W = 2, 1, 16, 16, 16            # small synthetic shapes
    f_maps = (8, 16, 32, 64)                    # scaled-down f_maps
    in_channels = C

    kx, *kps = jax.random.split(key, 1 + len(f_maps))
    x = jax.random.normal(kx, (B, C, D, H, W), jnp.float32)

    params = []
    for i, cout in enumerate(f_maps):
        if i == 0:
            cin = in_channels + 3                        # input + coord channels
        else:
            cin = f_maps[i - 1] + in_channels + 3        # prev feats + pyramid + coords
        params.append(init_block_params(kps[i], cin, cout))

    # --- correctness check of the fused conv kernel against XLA conv ----------
    xc = add_coords(jnp.transpose(x, (0, 2, 3, 4, 1)).astype(jnp.float32))
    g0 = conv_geom(D, H, W)
    p0 = params[0]
    y1 = conv3x3x3_fused(ndhwc_to_padded_flat(xc, g0), p0["w1"], p0["b1"], g0, relu=True)
    got = span_to_ndhwc(y1, f_maps[0], g0)
    w_ref = (p0["w1_raw"] * p0["s1"]).astype(jnp.bfloat16)        # same folding as kernel
    ref = jax.lax.conv_general_dilated(
        xc.astype(jnp.bfloat16), w_ref, window_strides=(1, 1, 1), padding="SAME",
        dimension_numbers=("NDHWC", "DHWIO", "NDHWC"),
        preferred_element_type=jnp.float32)
    ref = jnp.maximum(ref + p0["b1_raw"], 0.0)
    ref = ref.astype(jnp.bfloat16).astype(jnp.float32)            # kernel stores bf16
    err = float(jnp.max(jnp.abs(got - ref)))
    assert err < 6e-2, f"conv kernel mismatch: {err}"

    # --- full encoder ----------------------------------------------------------
    encoder = jax.jit(residual_unet3d_encoder, static_argnums=(2,))
    _, feats = encoder(x, params, f_maps)
    for f in feats:
        jax.block_until_ready(f)

    expected = [(B, f_maps[i], D // 2 ** i, H // 2 ** i, W // 2 ** i)
                for i in range(len(f_maps))][::-1]
    assert [tuple(f.shape) for f in feats] == expected, [f.shape for f in feats]

    print("KERNEL_OK")
</pallas_src>

<mosaic_0001>
module attributes {stable_mosaic.version = 11 : i64} {
  func.func @_conv_kernel(%arg0: i32, %arg1: i32, %arg2: memref<1x6318x4xf32, #tpu.memory_space<vmem>>, %arg3: memref<108x128xbf16, #tpu.memory_space<vmem>>, %arg4: memref<1x128xf32, #tpu.memory_space<vmem>>, %arg5: memref<512x1xf32, #tpu.memory_space<vmem>>, %arg6: memref<1x512x128xbf16, #tpu.memory_space<vmem>>, %arg7: memref<512x108xbf16, #tpu.memory_space<vmem>>) attributes {dimension_semantics = [#tpu.dimension_semantics<parallel>, #tpu.dimension_semantics<parallel>], iteration_bounds = array<i64: 2, 11>, scalar_prefetch = 0 : i64, scratch_operands = 1 : i64, tpu.core_type = #tpu.core_type<tc>, window_params = [{transform_indices = @transform_0, window_bounds = array<i64: 1, 6318, 4>}, {pipeline_mode = #tpu.pipeline_mode<synchronous>, transform_indices = @transform_1, window_bounds = array<i64: 108, 128>}, {pipeline_mode = #tpu.pipeline_mode<synchronous>, transform_indices = @transform_2, window_bounds = array<i64: 1, 128>}, {transform_indices = @transform_3, window_bounds = array<i64: 512, 1>}, {transform_indices = @transform_4, window_bounds = array<i64: 1, 512, 128>}]} {
    %c512_i32 = arith.constant 512 : i32
    %0 = arith.muli %arg1, %c512_i32 : i32
    %1 = tpu.assume_multiple %0, 16 : i32
    %c0_i32 = arith.constant 0 : i32
    %2 = arith.addi %1, %c0_i32 : i32
    %c0 = arith.constant 0 : index
    %3 = arith.index_cast %2 : i32 to index
    %c0_0 = arith.constant 0 : index
    %4 = vector.load %arg2[%c0, %3, %c0_0] : memref<1x6318x4xf32, #tpu.memory_space<vmem>>, vector<1x512x4xf32>
    %5 = vector.shape_cast %4 : vector<1x512x4xf32> to vector<512x4xf32>
    %6 = arith.truncf %5 : vector<512x4xf32> to vector<512x4xbf16>
    %c0_1 = arith.constant 0 : index
    %c0_2 = arith.constant 0 : index
    %7 = vector.load %arg7[%c0_1, %c0_2] : memref<512x108xbf16, #tpu.memory_space<vmem>>, vector<512x4xbf16>
    tpu.vector_store %arg7[%c0_1, %c0_2], %6 {strides = array<i32>} : memref<512x108xbf16, #tpu.memory_space<vmem>>, vector<512x4xbf16>,
    %c1_i32 = arith.constant 1 : i32
    %8 = arith.addi %1, %c1_i32 : i32
    %c0_3 = arith.constant 0 : index
    %9 = arith.index_cast %8 : i32 to index
    %c0_4 = arith.constant 0 : index
    %10 = vector.load %arg2[%c0_3, %9, %c0_4] : memref<1x6318x4xf32, #tpu.memory_space<vmem>>, vector<1x512x4xf32>
    %11 = vector.shape_cast %10 : vector<1x512x4xf32> to vector<512x4xf32>
    %12 = arith.truncf %11 : vector<512x4xf32> to vector<512x4xbf16>
    %c0_5 = arith.constant 0 : index
    %c4 = arith.constant 4 : index
    %13 = vector.load %arg7[%c0_5, %c4] : memref<512x108xbf16, #tpu.memory_space<vmem>>, vector<512x4xbf16>
    tpu.vector_store %arg7[%c0_5, %c4], %12 {strides = array<i32>} : memref<512x108xbf16, #tpu.memory_space<vmem>>, vector<512x4xbf16>,
    %c2_i32 = arith.constant 2 : i32
    %14 = arith.addi %1, %c2_i32 : i32
    %c0_6 = arith.constant 0 : index
    %15 = arith.index_cast %14 : i32 to index
    %c0_7 = arith.constant 0 : index
    %16 = vector.load %arg2[%c0_6, %15, %c0_7] : memref<1x6318x4xf32, #tpu.memory_space<vmem>>, vector<1x512x4xf32>
    %17 = vector.shape_cast %16 : vector<1x512x4xf32> to vector<512x4xf32>
    %18 = arith.truncf %17 : vector<512x4xf32> to vector<512x4xbf16>
    %c0_8 = arith.constant 0 : index
    %c8 = arith.constant 8 : index
    %19 = vector.load %arg7[%c0_8, %c8] : memref<512x108xbf16, #tpu.memory_space<vmem>>, vector<512x4xbf16>
    tpu.vector_store %arg7[%c0_8, %c8], %18 {strides = array<i32>} : memref<512x108xbf16, #tpu.memory_space<vmem>>, vector<512x4xbf16>,
    %c18_i32 = arith.constant 18 : i32
    %20 = arith.addi %1, %c18_i32 : i32
    %c0_9 = arith.constant 0 : index
    %21 = arith.index_cast %20 : i32 to index
    %c0_10 = arith.constant 0 : index
    %22 = vector.load %arg2[%c0_9, %21, %c0_10] : memref<1x6318x4xf32, #tpu.memory_space<vmem>>, vector<1x512x4xf32>
    %23 = vector.shape_cast %22 : vector<1x512x4xf32> to vector<512x4xf32>
    %24 = arith.truncf %23 : vector<512x4xf32> to vector<512x4xbf16>
    %c0_11 = arith.constant 0 : index
    %c12 = arith.constant 12 : index
    %25 = vector.load %arg7[%c0_11, %c12] : memref<512x108xbf16, #tpu.memory_space<vmem>>, vector<512x4xbf16>
    tpu.vector_store %arg7[%c0_11, %c12], %24 {strides = array<i32>} : memref<512x108xbf16, #tpu.memory_space<vmem>>, vector<512x4xbf16>,
    %c19_i32 = arith.constant 19 : i32
    %26 = arith.addi %1, %c19_i32 : i32
    %c0_12 = arith.constant 0 : index
    %27 = arith.index_cast %26 : i32 to index
    %c0_13 = arith.constant 0 : index
    %28 = vector.load %arg2[%c0_12, %27, %c0_13] : memref<1x6318x4xf32, #tpu.memory_space<vmem>>, vector<1x512x4xf32>
    %29 = vector.shape_cast %28 : vector<1x512x4xf32> to vector<512x4xf32>
    %30 = arith.truncf %29 : vector<512x4xf32> to vector<512x4xbf16>
    %c0_14 = arith.constant 0 : index
    %c16 = arith.constant 16 : index
    %31 = vector.load %arg7[%c0_14, %c16] : memref<512x108xbf16, #tpu.memory_space<vmem>>, vector<512x4xbf16>
    tpu.vector_store %arg7[%c0_14, %c16], %30 {strides = array<i32>} : memref<512x108xbf16, #tpu.memory_space<vmem>>, vector<512x4xbf16>,
    %c20_i32 = arith.constant 20 : i32
    %32 = arith.addi %1, %c20_i32 : i32
    %c0_15 = arith.constant 0 : index
    %33 = arith.index_cast %32 : i32 to index
    %c0_16 = arith.constant 0 : index
    %34 = vector.load %arg2[%c0_15, %33, %c0_16] : memref<1x6318x4xf32, #tpu.memory_space<vmem>>, vector<1x512x4xf32>
    %35 = vector.shape_cast %34 : vector<1x512x4xf32> to vector<512x4xf32>
    %36 = arith.truncf %35 : vector<512x4xf32> to vector<512x4xbf16>
    %c0_17 = arith.constant 0 : index
    %c20 = arith.constant 20 : index
    %37 = vector.load %arg7[%c0_17, %c20] : memref<512x108xbf16, #tpu.memory_space<vmem>>, vector<512x4xbf16>
    tpu.vector_store %arg7[%c0_17, %c20], %36 {strides = array<i32>} : memref<512x108xbf16, #tpu.memory_space<vmem>>, vector<512x4xbf16>,
    %c36_i32 = arith.constant 36 : i32
    %38 = arith.addi %1, %c36_i32 : i32
    %c0_18 = arith.constant 0 : index
    %39 = arith.index_cast %38 : i32 to index
    %c0_19 = arith.constant 0 : index
    %40 = vector.load %arg2[%c0_18, %39, %c0_19] : memref<1x6318x4xf32, #tpu.memory_space<vmem>>, vector<1x512x4xf32>
    %41 = vector.shape_cast %40 : vector<1x512x4xf32> to vector<512x4xf32>
    %42 = arith.truncf %41 : vector<512x4xf32> to vector<512x4xbf16>
    %c0_20 = arith.constant 0 : index
    %c24 = arith.constant 24 : index
    %43 = vector.load %arg7[%c0_20, %c24] : memref<512x108xbf16, #tpu.memory_space<vmem>>, vector<512x4xbf16>
    tpu.vector_store %arg7[%c0_20, %c24], %42 {strides = array<i32>} : memref<512x108xbf16, #tpu.memory_space<vmem>>, vector<512x4xbf16>,
    %c37_i32 = arith.constant 37 : i32
    %44 = arith.addi %1, %c37_i32 : i32
    %c0_21 = arith.constant 0 : index
    %45 = arith.index_cast %44 : i32 to index
    %c0_22 = arith.constant 0 : index
    %46 = vector.load %arg2[%c0_21, %45, %c0_22] : memref<1x6318x4xf32, #tpu.memory_space<vmem>>, vector<1x512x4xf32>
    %47 = vector.shape_cast %46 : vector<1x512x4xf32> to vector<512x4xf32>
    %48 = arith.truncf %47 : vector<512x4xf32> to vector<512x4xbf16>
    %c0_23 = arith.constant 0 : index
    %c28 = arith.constant 28 : index
    %49 = vector.load %arg7[%c0_23, %c28] : memref<512x108xbf16, #tpu.memory_space<vmem>>, vector<512x4xbf16>
    tpu.vector_store %arg7[%c0_23, %c28], %48 {strides = array<i32>} : memref<512x108xbf16, #tpu.memory_space<vmem>>, vector<512x4xbf16>,
    %c38_i32 = arith.constant 38 : i32
    %50 = arith.addi %1, %c38_i32 : i32
    %c0_24 = arith.constant 0 : index
    %51 = arith.index_cast %50 : i32 to index
    %c0_25 = arith.constant 0 : index
    %52 = vector.load %arg2[%c0_24, %51, %c0_25] : memref<1x6318x4xf32, #tpu.memory_space<vmem>>, vector<1x512x4xf32>
    %53 = vector.shape_cast %52 : vector<1x512x4xf32> to vector<512x4xf32>
    %54 = arith.truncf %53 : vector<512x4xf32> to vector<512x4xbf16>
    %c0_26 = arith.constant 0 : index
    %c32 = arith.constant 32 : index
    %55 = vector.load %arg7[%c0_26, %c32] : memref<512x108xbf16, #tpu.memory_space<vmem>>, vector<512x4xbf16>
    tpu.vector_store %arg7[%c0_26, %c32], %54 {strides = array<i32>} : memref<512x108xbf16, #tpu.memory_space<vmem>>, vector<512x4xbf16>,
    %c324_i32 = arith.constant 324 : i32
    %56 = arith.addi %1, %c324_i32 : i32
    %c0_27 = arith.constant 0 : index
    %57 = arith.index_cast %56 : i32 to index
    %c0_28 = arith.constant 0 : index
    %58 = vector.load %arg2[%c0_27, %57, %c0_28] : memref<1x6318x4xf32, #tpu.memory_space<vmem>>, vector<1x512x4xf32>
    %59 = vector.shape_cast %58 : vector<1x512x4xf32> to vector<512x4xf32>
    %60 = arith.truncf %59 : vector<512x4xf32> to vector<512x4xbf16>
    %c0_29 = arith.constant 0 : index
    %c36 = arith.constant 36 : index
    %61 = vector.load %arg7[%c0_29, %c36] : memref<512x108xbf16, #tpu.memory_space<vmem>>, vector<512x4xbf16>
    tpu.vector_store %arg7[%c0_29, %c36], %60 {strides = array<i32>} : memref<512x108xbf16, #tpu.memory_space<vmem>>, vector<512x4xbf16>,
    %c325_i32 = arith.constant 325 : i32
    %62 = arith.addi %1, %c325_i32 : i32
    %c0_30 = arith.constant 0 : index
    %63 = arith.index_cast %62 : i32 to index
    %c0_31 = arith.constant 0 : index
    %64 = vector.load %arg2[%c0_30, %63, %c0_31] : memref<1x6318x4xf32, #tpu.memory_space<vmem>>, vector<1x512x4xf32>
    %65 = vector.shape_cast %64 : vector<1x512x4xf32> to vector<512x4xf32>
    %66 = arith.truncf %65 : vector<512x4xf32> to vector<512x4xbf16>
    %c0_32 = arith.constant 0 : index
    %c40 = arith.constant 40 : index
    %67 = vector.load %arg7[%c0_32, %c40] : memref<512x108xbf16, #tpu.memory_space<vmem>>, vector<512x4xbf16>
    tpu.vector_store %arg7[%c0_32, %c40], %66 {strides = array<i32>} : memref<512x108xbf16, #tpu.memory_space<vmem>>, vector<512x4xbf16>,
    %c326_i32 = arith.constant 326 : i32
    %68 = arith.addi %1, %c326_i32 : i32
    %c0_33 = arith.constant 0 : index
    %69 = arith.index_cast %68 : i32 to index
    %c0_34 = arith.constant 0 : index
    %70 = vector.load %arg2[%c0_33, %69, %c0_34] : memref<1x6318x4xf32, #tpu.memory_space<vmem>>, vector<1x512x4xf32>
    %71 = vector.shape_cast %70 : vector<1x512x4xf32> to vector<512x4xf32>
    %72 = arith.truncf %71 : vector<512x4xf32> to vector<512x4xbf16>
    %c0_35 = arith.constant 0 : index
    %c44 = arith.constant 44 : index
    %73 = vector.load %arg7[%c0_35, %c44] : memref<512x108xbf16, #tpu.memory_space<vmem>>, vector<512x4xbf16>
    tpu.vector_store %arg7[%c0_35, %c44], %72 {strides = array<i32>} : memref<512x108xbf16, #tpu.memory_space<vmem>>, vector<512x4xbf16>,
    %c342_i32 = arith.constant 342 : i32
    %74 = arith.addi %1, %c342_i32 : i32
    %c0_36 = arith.constant 0 : index
    %75 = arith.index_cast %74 : i32 to index
    %c0_37 = arith.constant 0 : index
    %76 = vector.load %arg2[%c0_36, %75, %c0_37] : memref<1x6318x4xf32, #tpu.memory_space<vmem>>, vector<1x512x4xf32>
    %77 = vector.shape_cast %76 : vector<1x512x4xf32> to vector<512x4xf32>
    %78 = arith.truncf %77 : vector<512x4xf32> to vector<512x4xbf16>
    %c0_38 = arith.constant 0 : index
    %c48 = arith.constant 48 : index
    %79 = vector.load %arg7[%c0_38, %c48] : memref<512x108xbf16, #tpu.memory_space<vmem>>, vector<512x4xbf16>
    tpu.vector_store %arg7[%c0_38, %c48], %78 {strides = array<i32>} : memref<512x108xbf16, #tpu.memory_space<vmem>>, vector<512x4xbf16>,
    %c343_i32 = arith.constant 343 : i32
    %80 = arith.addi %1, %c343_i32 : i32
    %c0_39 = arith.constant 0 : index
    %81 = arith.index_cast %80 : i32 to index
    %c0_40 = arith.constant 0 : index
    %82 = vector.load %arg2[%c0_39, %81, %c0_40] : memref<1x6318x4xf32, #tpu.memory_space<vmem>>, vector<1x512x4xf32>
    %83 = vector.shape_cast %82 : vector<1x512x4xf32> to vector<512x4xf32>
    %84 = arith.truncf %83 : vector<512x4xf32> to vector<512x4xbf16>
    %c0_41 = arith.constant 0 : index
    %c52 = arith.constant 52 : index
    %85 = vector.load %arg7[%c0_41, %c52] : memref<512x108xbf16, #tpu.memory_space<vmem>>, vector<512x4xbf16>
    tpu.vector_store %arg7[%c0_41, %c52], %84 {strides = array<i32>} : memref<512x108xbf16, #tpu.memory_space<vmem>>, vector<512x4xbf16>,
    %c344_i32 = arith.constant 344 : i32
    %86 = arith.addi %1, %c344_i32 : i32
    %c0_42 = arith.constant 0 : index
    %87 = arith.index_cast %86 : i32 to index
    %c0_43 = arith.constant 0 : index
    %88 = vector.load %arg2[%c0_42, %87, %c0_43] : memref<1x6318x4xf32, #tpu.memory_space<vmem>>, vector<1x512x4xf32>
    %89 = vector.shape_cast %88 : vector<1x512x4xf32> to vector<512x4xf32>
    %90 = arith.truncf %89 : vector<512x4xf32> to vector<512x4xbf16>
    %c0_44 = arith.constant 0 : index
    %c56 = arith.constant 56 : index
    %91 = vector.load %arg7[%c0_44, %c56] : memref<512x108xbf16, #tpu.memory_space<vmem>>, vector<512x4xbf16>
    tpu.vector_store %arg7[%c0_44, %c56], %90 {strides = array<i32>} : memref<512x108xbf16, #tpu.memory_space<vmem>>, vector<512x4xbf16>,
    %c360_i32 = arith.constant 360 : i32
    %92 = arith.addi %1, %c360_i32 : i32
    %c0_45 = arith.constant 0 : index
    %93 = arith.index_cast %92 : i32 to index
    %c0_46 = arith.constant 0 : index
    %94 = vector.load %arg2[%c0_45, %93, %c0_46] : memref<1x6318x4xf32, #tpu.memory_space<vmem>>, vector<1x512x4xf32>
    %95 = vector.shape_cast %94 : vector<1x512x4xf32> to vector<512x4xf32>
    %96 = arith.truncf %95 : vector<512x4xf32> to vector<512x4xbf16>
    %c0_47 = arith.constant 0 : index
    %c60 = arith.constant 60 : index
    %97 = vector.load %arg7[%c0_47, %c60] : memref<512x108xbf16, #tpu.memory_space<vmem>>, vector<512x4xbf16>
    tpu.vector_store %arg7[%c0_47, %c60], %96 {strides = array<i32>} : memref<512x108xbf16, #tpu.memory_space<vmem>>, vector<512x4xbf16>,
    %c361_i32 = arith.constant 361 : i32
    %98 = arith.addi %1, %c361_i32 : i32
    %c0_48 = arith.constant 0 : index
    %99 = arith.index_cast %98 : i32 to index
    %c0_49 = arith.constant 0 : index
    %100 = vector.load %arg2[%c0_48, %99, %c0_49] : memref<1x6318x4xf32, #tpu.memory_space<vmem>>, vector<1x512x4xf32>
    %101 = vector.shape_cast %100 : vector<1x512x4xf32> to vector<512x4xf32>
    %102 = arith.truncf %101 : vector<512x4xf32> to vector<512x4xbf16>
    %c0_50 = arith.constant 0 : index
    %c64 = arith.constant 64 : index
    %103 = vector.load %arg7[%c0_50, %c64] : memref<512x108xbf16, #tpu.memory_space<vmem>>, vector<512x4xbf16>
    tpu.vector_store %arg7[%c0_50, %c64], %102 {strides = array<i32>} : memref<512x108xbf16, #tpu.memory_space<vmem>>, vector<512x4xbf16>,
    %c362_i32 = arith.constant 362 : i32
    %104 = arith.addi %1, %c362_i32 : i32
    %c0_51 = arith.constant 0 : index
    %105 = arith.index_cast %104 : i32 to index
    %c0_52 = arith.constant 0 : index
    %106 = vector.load %arg2[%c0_51, %105, %c0_52] : memref<1x6318x4xf32, #tpu.memory_space<vmem>>, vector<1x512x4xf32>
    %107 = vector.shape_cast %106 : vector<1x512x4xf32> to vector<512x4xf32>
    %108 = arith.truncf %107 : vector<512x4xf32> to vector<512x4xbf16>
    %c0_53 = arith.constant 0 : index
    %c68 = arith.constant 68 : index
    %109 = vector.load %arg7[%c0_53, %c68] : memref<512x108xbf16, #tpu.memory_space<vmem>>, vector<512x4xbf16>
    tpu.vector_store %arg7[%c0_53, %c68], %108 {strides = array<i32>} : memref<512x108xbf16, #tpu.memory_space<vmem>>, vector<512x4xbf16>,
    %c648_i32 = arith.constant 648 : i32
    %110 = arith.addi %1, %c648_i32 : i32
    %c0_54 = arith.constant 0 : index
    %111 = arith.index_cast %110 : i32 to index
    %c0_55 = arith.constant 0 : index
    %112 = vector.load %arg2[%c0_54, %111, %c0_55] : memref<1x6318x4xf32, #tpu.memory_space<vmem>>, vector<1x512x4xf32>
    %113 = vector.shape_cast %112 : vector<1x512x4xf32> to vector<512x4xf32>
    %114 = arith.truncf %113 : vector<512x4xf32> to vector<512x4xbf16>
    %c0_56 = arith.constant 0 : index
    %c72 = arith.constant 72 : index
    %115 = vector.load %arg7[%c0_56, %c72] : memref<512x108xbf16, #tpu.memory_space<vmem>>, vector<512x4xbf16>
    tpu.vector_store %arg7[%c0_56, %c72], %114 {strides = array<i32>} : memref<512x108xbf16, #tpu.memory_space<vmem>>, vector<512x4xbf16>,
    %c649_i32 = arith.constant 649 : i32
    %116 = arith.addi %1, %c649_i32 : i32
    %c0_57 = arith.constant 0 : index
    %117 = arith.index_cast %116 : i32 to index
    %c0_58 = arith.constant 0 : index
    %118 = vector.load %arg2[%c0_57, %117, %c0_58] : memref<1x6318x4xf32, #tpu.memory_space<vmem>>, vector<1x512x4xf32>
    %119 = vector.shape_cast %118 : vector<1x512x4xf32> to vector<512x4xf32>
    %120 = arith.truncf %119 : vector<512x4xf32> to vector<512x4xbf16>
    %c0_59 = arith.constant 0 : index
    %c76 = arith.constant 76 : index
    %121 = vector.load %arg7[%c0_59, %c76] : memref<512x108xbf16, #tpu.memory_space<vmem>>, vector<512x4xbf16>
    tpu.vector_store %arg7[%c0_59, %c76], %120 {strides = array<i32>} : memref<512x108xbf16, #tpu.memory_space<vmem>>, vector<512x4xbf16>,
    %c650_i32 = arith.constant 650 : i32
    %122 = arith.addi %1, %c650_i32 : i32
    %c0_60 = arith.constant 0 : index
    %123 = arith.index_cast %122 : i32 to index
    %c0_61 = arith.constant 0 : index
    %124 = vector.load %arg2[%c0_60, %123, %c0_61] : memref<1x6318x4xf32, #tpu.memory_space<vmem>>, vector<1x512x4xf32>
    %125 = vector.shape_cast %124 : vector<1x512x4xf32> to vector<512x4xf32>
    %126 = arith.truncf %125 : vector<512x4xf32> to vector<512x4xbf16>
    %c0_62 = arith.constant 0 : index
    %c80 = arith.constant 80 : index
    %127 = vector.load %arg7[%c0_62, %c80] : memref<512x108xbf16, #tpu.memory_space<vmem>>, vector<512x4xbf16>
    tpu.vector_store %arg7[%c0_62, %c80], %126 {strides = array<i32>} : memref<512x108xbf16, #tpu.memory_space<vmem>>, vector<512x4xbf16>,
    %c666_i32 = arith.constant 666 : i32
    %128 = arith.addi %1, %c666_i32 : i32
    %c0_63 = arith.constant 0 : index
    %129 = arith.index_cast %128 : i32 to index
    %c0_64 = arith.constant 0 : index
    %130 = vector.load %arg2[%c0_63, %129, %c0_64] : memref<1x6318x4xf32, #tpu.memory_space<vmem>>, vector<1x512x4xf32>
    %131 = vector.shape_cast %130 : vector<1x512x4xf32> to vector<512x4xf32>
    %132 = arith.truncf %131 : vector<512x4xf32> to vector<512x4xbf16>
    %c0_65 = arith.constant 0 : index
    %c84 = arith.constant 84 : index
    %133 = vector.load %arg7[%c0_65, %c84] : memref<512x108xbf16, #tpu.memory_space<vmem>>, vector<512x4xbf16>
    tpu.vector_store %arg7[%c0_65, %c84], %132 {strides = array<i32>} : memref<512x108xbf16, #tpu.memory_space<vmem>>, vector<512x4xbf16>,
    %c667_i32 = arith.constant 667 : i32
    %134 = arith.addi %1, %c667_i32 : i32
    %c0_66 = arith.constant 0 : index
    %135 = arith.index_cast %134 : i32 to index
    %c0_67 = arith.constant 0 : index
    %136 = vector.load %arg2[%c0_66, %135, %c0_67] : memref<1x6318x4xf32, #tpu.memory_space<vmem>>, vector<1x512x4xf32>
    %137 = vector.shape_cast %136 : vector<1x512x4xf32> to vector<512x4xf32>
    %138 = arith.truncf %137 : vector<512x4xf32> to vector<512x4xbf16>
    %c0_68 = arith.constant 0 : index
    %c88 = arith.constant 88 : index
    %139 = vector.load %arg7[%c0_68, %c88] : memref<512x108xbf16, #tpu.memory_space<vmem>>, vector<512x4xbf16>
    tpu.vector_store %arg7[%c0_68, %c88], %138 {strides = array<i32>} : memref<512x108xbf16, #tpu.memory_space<vmem>>, vector<512x4xbf16>,
    %c668_i32 = arith.constant 668 : i32
    %140 = arith.addi %1, %c668_i32 : i32
    %c0_69 = arith.constant 0 : index
    %141 = arith.index_cast %140 : i32 to index
    %c0_70 = arith.constant 0 : index
    %142 = vector.load %arg2[%c0_69, %141, %c0_70] : memref<1x6318x4xf32, #tpu.memory_space<vmem>>, vector<1x512x4xf32>
    %143 = vector.shape_cast %142 : vector<1x512x4xf32> to vector<512x4xf32>
    %144 = arith.truncf %143 : vector<512x4xf32> to vector<512x4xbf16>
    %c0_71 = arith.constant 0 : index
    %c92 = arith.constant 92 : index
    %145 = vector.load %arg7[%c0_71, %c92] : memref<512x108xbf16, #tpu.memory_space<vmem>>, vector<512x4xbf16>
    tpu.vector_store %arg7[%c0_71, %c92], %144 {strides = array<i32>} : memref<512x108xbf16, #tpu.memory_space<vmem>>, vector<512x4xbf16>,
    %c684_i32 = arith.constant 684 : i32
    %146 = arith.addi %1, %c684_i32 : i32
    %c0_72 = arith.constant 0 : index
    %147 = arith.index_cast %146 : i32 to index
    %c0_73 = arith.constant 0 : index
    %148 = vector.load %arg2[%c0_72, %147, %c0_73] : memref<1x6318x4xf32, #tpu.memory_space<vmem>>, vector<1x512x4xf32>
    %149 = vector.shape_cast %148 : vector<1x512x4xf32> to vector<512x4xf32>
    %150 = arith.truncf %149 : vector<512x4xf32> to vector<512x4xbf16>
    %c0_74 = arith.constant 0 : index
    %c96 = arith.constant 96 : index
    %151 = vector.load %arg7[%c0_74, %c96] : memref<512x108xbf16, #tpu.memory_space<vmem>>, vector<512x4xbf16>
    tpu.vector_store %arg7[%c0_74, %c96], %150 {strides = array<i32>} : memref<512x108xbf16, #tpu.memory_space<vmem>>, vector<512x4xbf16>,
    %c685_i32 = arith.constant 685 : i32
    %152 = arith.addi %1, %c685_i32 : i32
    %c0_75 = arith.constant 0 : index
    %153 = arith.index_cast %152 : i32 to index
    %c0_76 = arith.constant 0 : index
    %154 = vector.load %arg2[%c0_75, %153, %c0_76] : memref<1x6318x4xf32, #tpu.memory_space<vmem>>, vector<1x512x4xf32>
    %155 = vector.shape_cast %154 : vector<1x512x4xf32> to vector<512x4xf32>
    %156 = arith.truncf %155 : vector<512x4xf32> to vector<512x4xbf16>
    %c0_77 = arith.constant 0 : index
    %c100 = arith.constant 100 : index
    %157 = vector.load %arg7[%c0_77, %c100] : memref<512x108xbf16, #tpu.memory_space<vmem>>, vector<512x4xbf16>
    tpu.vector_store %arg7[%c0_77, %c100], %156 {strides = array<i32>} : memref<512x108xbf16, #tpu.memory_space<vmem>>, vector<512x4xbf16>,
    %c686_i32 = arith.constant 686 : i32
    %158 = arith.addi %1, %c686_i32 : i32
    %c0_78 = arith.constant 0 : index
    %159 = arith.index_cast %158 : i32 to index
    %c0_79 = arith.constant 0 : index
    %160 = vector.load %arg2[%c0_78, %159, %c0_79] : memref<1x6318x4xf32, #tpu.memory_space<vmem>>, vector<1x512x4xf32>
    %161 = vector.shape_cast %160 : vector<1x512x4xf32> to vector<512x4xf32>
    %162 = arith.truncf %161 : vector<512x4xf32> to vector<512x4xbf16>
    %c0_80 = arith.constant 0 : index
    %c104 = arith.constant 104 : index
    %163 = vector.load %arg7[%c0_80, %c104] : memref<512x108xbf16, #tpu.memory_space<vmem>>, vector<512x4xbf16>
    tpu.vector_store %arg7[%c0_80, %c104], %162 {strides = array<i32>} : memref<512x108xbf16, #tpu.memory_space<vmem>>, vector<512x4xbf16>,
    %c0_81 = arith.constant 0 : index
    %c0_82 = arith.constant 0 : index
    %164 = vector.load %arg7[%c0_81, %c0_82] : memref<512x108xbf16, #tpu.memory_space<vmem>>, vector<512x108xbf16>
    %c0_83 = arith.constant 0 : index
    %c0_84 = arith.constant 0 : index
    %165 = vector.load %arg3[%c0_83, %c0_84] : memref<108x128xbf16, #tpu.memory_space<vmem>>, vector<108x128xbf16>
    %cst = arith.constant dense<0.000000e+00> : vector<512x128xf32>
    %166 = tpu.matmul %164, %165, %cst {dimension_numbers = #tpu.dot_dimension_numbers<[1], [0], [0], [1], [0, 0, 1, 1], [], []>} : vector<512x108xbf16>, vector<108x128xbf16>, vector<512x128xf32> -> vector<512x128xf32>
    %c0_85 = arith.constant 0 : index
    %c0_86 = arith.constant 0 : index
    %167 = vector.load %arg4[%c0_85, %c0_86] : memref<1x128xf32, #tpu.memory_space<vmem>>, vector<1x128xf32>
    %168 = vector.broadcast %167 : vector<1x128xf32> to vector<512x128xf32>
    %169 = arith.addf %166, %168 : vector<512x128xf32>
    %cst_87 = arith.constant 0.000000e+00 : f32
    %170 = vector.broadcast %cst_87 : f32 to vector<512x128xf32>
    %171 = arith.maximumf %169, %170 : vector<512x128xf32>
    %c0_88 = arith.constant 0 : index
    %c0_89 = arith.constant 0 : index
    %172 = vector.load %arg5[%c0_88, %c0_89] : memref<512x1xf32, #tpu.memory_space<vmem>>, vector<512x1xf32>
    %173 = vector.broadcast %172 : vector<512x1xf32> to vector<512x128xf32>
    %174 = arith.mulf %171, %173 : vector<512x128xf32>
    %175 = arith.truncf %174 : vector<512x128xf32> to vector<512x128xbf16>
    %c0_90 = arith.constant 0 : index
    %c0_91 = arith.constant 0 : index
    %c0_92 = arith.constant 0 : index
    %176 = vector.load %arg6[%c0_90, %c0_91, %c0_92] : memref<1x512x128xbf16, #tpu.memory_space<vmem>>, vector<1x512x128xbf16>
    %177 = vector.shape_cast %176 : vector<1x512x128xbf16> to vector<512x128xbf16>
    %178 = vector.shape_cast %175 : vector<512x128xbf16> to vector<1x512x128xbf16>
    tpu.vector_store %arg6[%c0_90, %c0_91, %c0_92], %178 {strides = array<i32>} : memref<1x512x128xbf16, #tpu.memory_space<vmem>>, vector<1x512x128xbf16>,
    return
  }
  func.func @transform_0(%arg0: i32, %arg1: i32) -> (i32, i32, i32) {
    %c0_i32 = arith.constant 0 : i32
    %c0_i32_0 = arith.constant 0 : i32
    %c0_i32_1 = arith.constant 0 : i32
    return %arg0, %c0_i32, %c0_i32_0 : i32, i32, i32
  }
  func.func @transform_1(%arg0: i32, %arg1: i32) -> (i32, i32) {
    %c0_i32 = arith.constant 0 : i32
    %c0_i32_0 = arith.constant 0 : i32
    %c0_i32_1 = arith.constant 0 : i32
    return %c0_i32, %c0_i32_0 : i32, i32
  }
  func.func @transform_2(%arg0: i32, %arg1: i32) -> (i32, i32) {
    %c0_i32 = arith.constant 0 : i32
    %c0_i32_0 = arith.constant 0 : i32
    %c0_i32_1 = arith.constant 0 : i32
    return %c0_i32, %c0_i32_0 : i32, i32
  }
  func.func @transform_3(%arg0: i32, %arg1: i32) -> (i32, i32) {
    %c0_i32 = arith.constant 0 : i32
    %c0_i32_0 = arith.constant 0 : i32
    return %arg1, %c0_i32 : i32, i32
  }
  func.func @transform_4(%arg0: i32, %arg1: i32) -> (i32, i32, i32) {
    %c0_i32 = arith.constant 0 : i32
    %c0_i32_0 = arith.constant 0 : i32
    return %arg0, %arg1, %c0_i32 : i32, i32, i32
  }
}

</mosaic_0001>

<bundles_post_ra>
// kernel: tpu_custom_call.1
= control target key start
LH: loop header
LB: loop body
LE: loop exit
PB: predicated region body
PF: predicated region fallthrough
CT: control target
= control target key end

     0   :  { %9 = vsyncpa [#allocation4], 0  ;;  %s15415_s0 = inlined_call_operand.vmem [shape: f32[2,6318,4], index: 0, kind: input, shape index: {}]   ;;  %s15416_s1 = inlined_call_operand.vmem [shape: bf16[108,128], index: 1, kind: input, shape index: {}]   ;;  %s15417_s2 = inlined_call_operand.vmem [shape: f32[1,128], index: 2, kind: input, shape index: {}]   ;;  %s15418_s3 = inlined_call_operand.vmem [shape: f32[5632,1], index: 3, kind: input, shape index: {}]   ;;  %s15419_s4 = inlined_call_operand.hbm [shape: bf16[2,5632,128], index: 4, kind: output, shape index: {}]  }
   0x1   :  { %11 = vsyncpa [#allocation4 + $0x1], 0  ;;  %s11054_s15 = smov 0   ;;  %s11056_s16 = smov 0  }
   0x2   :  { %s11058_s17 = smov 0   ;;  %s11060_s18 = smov 0  }
   0x3   :  { %s11062_s19 = smov 0   ;;  %s11064_s20 = smov 0  }
   0x4   :  { %s11066_s21 = smov 0   ;;  %s11068_s22 = smov 0  }
   0x5 LB: > { %s8599_s23 = sadd.s32 4294967295, %s10999_s22   ;;  %s8600_s24 = sadd.s32 4294967294, %s10999_s22   ;;  %s10999_s22 = sphi %s11068_s22, %s17_s22   ;;  %s10995_s21 = sphi %s11066_s21, %s15428_s21   ;;  %s10991_s20 = sphi %s11064_s20, %s15427_s20   ;;  %s10987_s19 = sphi %s11062_s19, %s15426_s19   ;;  %s10983_s18 = sphi %s11060_s18, %s15425_s18   ;;  %s10979_s17 = sphi %s11058_s17, %s15424_s17   ;;  %s10975_s16 = sphi %s11056_s16, %s15423_s16   ;;  %s10971_s15 = sphi %s11054_s15, %s15422_s15  }
   0x6   : > { %s26_s25 = sadd.s32 1, %s10991_s20  ;;  %s29_s26 = sadd.s32 1, %s10995_s21 }
   0x7   : > { %p27_p0 = scmp.ge.s32.totalorder %s26_s25, 11  ;;  %p142_p1 = scmp.ne.s32.totalorder %s10979_s17, %s10975_s16 }
   0x8   : > { %p143_p2 = scmp.eq.s32.totalorder %s8599_s23, 21  ;;  %p148_p5 = scmp.ne.s32.totalorder %s10975_s16, %s10971_s15 }
   0x9   : > { %s15430_s25 = smov (%p27_p0, %s26_s25), 0  ;;  %s15432_s26 = smov (!%p27_p0, %s29_s26), %s10995_s21 }
   0xa   : > { %s128_s27 = ssub.s32 %s10991_s20, %s15430_s25  ;;  %p11105_p3 = por %p143_p2, %p142_p1 }
   0xb   : > { %p31_p4 = scmp.ge.s32.totalorder %s15432_s26, 2  ;;  %p149_p6 = scmp.eq.s32.totalorder %s8600_s24, 21 }
   0xc   : > { %p8603_p7 = scmp.ge.s32.totalorder %s10999_s22, 1  ;;  %p190_p9 = scmp.lt.s32.totalorder %s10999_s22, 23 }
   0xd   : > { %s15434_s26 = smov (%p31_p4, %s15432_s26), 0  ;;  %p11114_p8 = por %p149_p6, %p148_p5 }
   0xe   : > { %s127_s30 = ssub.s32 %s10995_s21, %s15434_s26  ;;  %s132_s5 = sadd.s32 1, %s10979_s17 }
   0xf   : > { %s129_s6 = sor.u32 %s128_s27, %s127_s30  ;;  %p191_p10 = pnand %p8603_p7, %p190_p9 }
  0x10   : > { %p130_p11 = scmp.eq.s32.totalorder %s129_s6, 0  ;;  %p221_p12 = scmp.lt.s32.totalorder (!%p191_p10), %s10987_s19, 1  ;;  %vm332_vm0 = vcmask (!%p191_p10), 31744   ;;  %vm591_vm1 = vcmask (!%p191_p10), 64544   ;;  %vm850_vm2 = vcmask (!%p191_p10), 97344   ;;  %vm1109_vm3 = vcmask (!%p191_p10), 130144  }
  0x11   : > { %194 = sbr.rel (%p191_p10) target bundleno = 2054 (0x806), region = 36  ;;  %s8608_s10 = sshll.u32 (!%p191_p10), %s10983_s18, 9  ;;  %vm1368_vm4 = vcmask (!%p191_p10), 162944   ;;  %vm1627_vm5 = vcmask (!%p191_p10), 195744   ;;  %vm1886_vm6 = vcmask (!%p191_p10), 228544   ;;  %vm2145_vm7 = vcmask (!%p191_p10), 261344  }
  0x12   : > { %s11123_s7 = scalar_select %p130_p11, %s10979_s17, %s132_s5  }
  0x13   : > { %s11001_s23 = smov (!%p191_p10), 4   ;;  %s11002_s24 = smov (!%p191_p10), 8   ;;  %vm2404_vm8 = vcmask (!%p191_p10), 294144   ;;  %vm2663_vm9 = vcmask (!%p191_p10), 326944   ;;  %vm2922_vm10 = vcmask (!%p191_p10), 359744   ;;  %vm3181_vm11 = vcmask (!%p191_p10), 392544  }
  0x14   : > { %s11003_s27 = smov (!%p191_p10), 12   ;;  %s11004_s30 = smov (!%p191_p10), 16   ;;  %vm3440_vm12 = vcmask (!%p191_p10), 425344   ;;  %vm3699_vm13 = vcmask (!%p191_p10), 458144   ;;  %vm3958_vm14 = vcmask (!%p191_p10), 490944   ;;  %vm4217_vm15 = vcmask (!%p191_p10), 523744  }
  0x15   : > { %s11005_s5 = smov (!%p191_p10), 20   ;;  %s11006_s6 = smov (!%p191_p10), 24  }
  0x16   : > { %s11010_s11 = smov (!%p191_p10), 40   ;;  %s11011_s12 = smov (!%p191_p10), 44  }
  0x18   : > { %s222_s8 = scalar_select %p221_p12, %s10987_s19, 1 }
  0x1a   : > { %s10796_s9 = smul.u32 6320, %s222_s8  ;;  %s11007_s8 = smov 28  }
  0x1c   : > { %s225_s13 = scalar_lea.vmem %s15415_s0, %s10796_s9  ;;  %s11008_s9 = smov 32  }
  0x1d   : > { %s11131_s14 = scalar_lea.vmem %s225_s13, %s8608_s10  ;;  %s11009_s10 = smov 36  }
  0x1e   : > { %v8614_v0 = vld [vmem:[%s11131_s14 + $0x21] sm:$0xff]  ;;  %v8615_v1 = vld [vmem:[%s11131_s14 + $0x29] sm:$0xff]  ;;  %v8616_v5 = vld [vmem:[%s11131_s14 + $0x31] sm:$0xff]  ;;  %s11012_s13 = smov 48  }
  0x1f   : > { %v8610_v2 = vld [vmem:[%s11131_s14 + $0x1] sm:$0xff]  ;;  %v433_v3 = vpack.c.bf16 %v8615_v1, %v8614_v0  ;;  %v8611_v4 = vld [vmem:[%s11131_s14 + $0x9] sm:$0xff]  ;;  %v8617_v6 = vld [vmem:[%s11131_s14 + $0x39] sm:$0xff] }
  0x20   : > { %v431_v7 = vpack.c.bf16 %v8611_v4, %v8610_v2  ;;  %v8612_v8 = vld [vmem:[%s11131_s14 + $0x11] sm:$0xff]  ;;  %v8613_v9 = vld [vmem:[%s11131_s14 + $0x19] sm:$0xff]  ;;  %v434_v10 = vpack.c.bf16 %v8617_v6, %v8616_v5  ;;  %v8618_v14 = vld [vmem:[%s11131_s14 + $0x41] sm:$0xff] }
  0x21   : > { %499 = vrot.lane.b32.xlu1 %v433_v3, %s11001_s23  ;;  %v432_v11 = vpack.c.bf16 %v8613_v9, %v8612_v8  ;;  %v8620_v12 = vld [vmem:[%s11131_s14 + $0x51] sm:$0xff]  ;;  %v8621_v13 = vld [vmem:[%s11131_s14 + $0x59] sm:$0xff]  ;;  %v8619_v15 = vld [vmem:[%s11131_s14 + $0x49] sm:$0xff] }
  0x22   : > { %495 = vrot.lane.b32.xlu0 %v431_v7, %s11001_s23  ;;  %v436_v16 = vpack.c.bf16 %v8621_v13, %v8620_v12  ;;  %v435_v17 = vpack.c.bf16 %v8619_v15, %v8618_v14  ;;  %v8624_v18 = vld [vmem:[%s11131_s14 + $0x71] sm:$0xff]  ;;  %v8625_v19 = vld [vmem:[%s11131_s14 + $0x79] sm:$0xff]  ;;  %v8622_v20 = vld [vmem:[%s11131_s14 + $0x61] sm:$0xff] }
  0x23   : > { %v8623_v21 = vld [vmem:[%s11131_s14 + $0x69] sm:$0xff]  ;;  %v438_v22 = vpack.c.bf16 %v8625_v19, %v8624_v18  ;;  %v8628_v24 = vld [vmem:[%s11131_s14 + $0x91] sm:$0xff]  ;;  %v8629_v25 = vld [vmem:[%s11131_s14 + $0x99] sm:$0xff] }
  0x24   : > { %v437_v23 = vpack.c.bf16 %v8623_v21, %v8622_v20  ;;  %v8626_v26 = vld [vmem:[%s11131_s14 + $0x81] sm:$0xff]  ;;  %v8627_v27 = vld [vmem:[%s11131_s14 + $0x89] sm:$0xff]  ;;  %v440_v28 = vpack.c.bf16 %v8629_v25, %v8628_v24  ;;  %v8632_v30 = vld [vmem:[%s11131_s14 + $0xb1] sm:$0xff] }
  0x25   : > { %501 = vrot.lane.b32.xlu1 %v434_v10, %s11001_s23  ;;  %v439_v29 = vpack.c.bf16 %v8627_v27, %v8626_v26  ;;  %v8633_v31 = vld [vmem:[%s11131_s14 + $0xb9] sm:$0xff]  ;;  %v8630_v32 = vld [vmem:[%s11131_s14 + $0xa1] sm:$0xff]  ;;  %v8631_v33 = vld [vmem:[%s11131_s14 + $0xa9] sm:$0xff] }
  0x26   : > { %497 = vrot.lane.b32.xlu0 %v432_v11, %s11001_s23  ;;  %v442_v34 = vpack.c.bf16 %v8633_v31, %v8632_v30  ;;  %v441_v35 = vpack.c.bf16 %v8631_v33, %v8630_v32  ;;  %v8636_v36 = vld [vmem:[%s11131_s14 + $0xd1] sm:$0xff]  ;;  %v8637_v37 = vld [vmem:[%s11131_s14 + $0xd9] sm:$0xff]  ;;  %v8634_v38 = vld [vmem:[%s11131_s14 + $0xc1] sm:$0xff] }
  0x27   : > { %v8635_v39 = vld [vmem:[%s11131_s14 + $0xc9] sm:$0xff]  ;;  %v444_v40 = vpack.c.bf16 %v8637_v37, %v8636_v36  ;;  %v8640_v42 = vld [vmem:[%s11131_s14 + $0xf1] sm:$0xff]  ;;  %v8641_v43 = vld [vmem:[%s11131_s14 + $0xf9] sm:$0xff] }
  0x28   : > { %v443_v41 = vpack.c.bf16 %v8635_v39, %v8634_v38  ;;  %v8638_v44 = vld [vmem:[%s11131_s14 + $0xe1] sm:$0xff]  ;;  %v8639_v45 = vld [vmem:[%s11131_s14 + $0xe9] sm:$0xff]  ;;  %v446_v46 = vpack.c.bf16 %v8641_v43, %v8640_v42  ;;  %v8644_v48 = vld [vmem:[%s11131_s14 + $0x111] sm:$0xff] }
  0x29   : > { %505 = vrot.lane.b32.xlu1 %v436_v16, %s11001_s23  ;;  %v445_v47 = vpack.c.bf16 %v8639_v45, %v8638_v44  ;;  %v8645_v49 = vld [vmem:[%s11131_s14 + $0x119] sm:$0xff]  ;;  %v8642_v50 = vld [vmem:[%s11131_s14 + $0x101] sm:$0xff]  ;;  %v8643_v51 = vld [vmem:[%s11131_s14 + $0x109] sm:$0xff] }
  0x2a   : > { %503 = vrot.lane.b32.xlu0 %v435_v17, %s11001_s23  ;;  %v448_v52 = vpack.c.bf16 %v8645_v49, %v8644_v48  ;;  %v447_v53 = vpack.c.bf16 %v8643_v51, %v8642_v50  ;;  %v8648_v54 = vld [vmem:[%s11131_s14 + $0x131] sm:$0xff]  ;;  %v8649_v55 = vld [vmem:[%s11131_s14 + $0x139] sm:$0xff]  ;;  %v8646_v56 = vld [vmem:[%s11131_s14 + $0x121] sm:$0xff] }
  0x2b   : > { %v8647_v57 = vld [vmem:[%s11131_s14 + $0x129] sm:$0xff]  ;;  %v450_v58 = vpack.c.bf16 %v8649_v55, %v8648_v54  ;;  %v8652_v60 = vld [vmem:[%s11131_s14 + $0x151] sm:$0xff]  ;;  %v8653_v61 = vld [vmem:[%s11131_s14 + $0x159] sm:$0xff] }
  0x2c   : > { %v449_v59 = vpack.c.bf16 %v8647_v57, %v8646_v56  ;;  %v8650_v62 = vld [vmem:[%s11131_s14 + $0x141] sm:$0xff]  ;;  %v8651_v63 = vld [vmem:[%s11131_s14 + $0x149] sm:$0xff]  ;;  %v452_v1 = vpack.c.bf16 %v8653_v61, %v8652_v60  ;;  %v8656_v6 = vld [vmem:[%s11131_s14 + $0x171] sm:$0xff] }
  0x2d   : > { %509 = vrot.lane.b32.xlu1 %v438_v22, %s11001_s23  ;;  %v240_v0 = vld [vmem:[%s11131_s14 + $0x20] sm:$0xff]  ;;  %v241_v2 = vld [vmem:[%s11131_s14 + $0x28] sm:$0xff]  ;;  %v451_v5 = vpack.c.bf16 %v8651_v63, %v8650_v62  ;;  %v242_v12 = vld [vmem:[%s11131_s14 + $0x30] sm:$0xff] }
  0x2e   : > { %507 = vrot.lane.b32.xlu0 %v437_v23, %s11001_s23  ;;  %v236_v3 = vld [vmem:[%s11131_s14] sm:$0xff]  ;;  %v237_v4 = vld [vmem:[%s11131_s14 + $0x8] sm:$0xff]  ;;  %v302_v9 = vpack.c.bf16 %v241_v2, %v240_v0  ;;  %v243_v13 = vld [vmem:[%s11131_s14 + $0x38] sm:$0xff] }
  0x2f   : > { %v8657_v7 = vld [vmem:[%s11131_s14 + $0x179] sm:$0xff]  ;;  %v8654_v8 = vld [vmem:[%s11131_s14 + $0x161] sm:$0xff]  ;;  %v300_v10 = vpack.c.bf16 %v237_v4, %v236_v3  ;;  %v8655_v11 = vld [vmem:[%s11131_s14 + $0x169] sm:$0xff]  ;;  %v303_v14 = vpack.c.bf16 %v243_v13, %v242_v12 }
  0x30   : > { %335 = vst.msk [vmem:[#allocation2 + $0x10] sm:$0xff] %vm332_vm0, %v302_v9  ;;  %v238_v15 = vld [vmem:[%s11131_s14 + $0x10] sm:$0xff]  ;;  %v239_v16 = vld [vmem:[%s11131_s14 + $0x18] sm:$0xff]  ;;  %v454_v17 = vpack.c.bf16 %v8657_v7, %v8656_v6  ;;  %v453_v21 = vpack.c.bf16 %v8655_v11, %v8654_v8  ;;  %v244_v24 = vld [vmem:[%s11131_s14 + $0x40] sm:$0xff] }
  0x31   : > { %513 = vrot.lane.b32.xlu1 %v440_v28, %s11001_s23  ;;  %333 = vst.msk [vmem:[#allocation2] sm:$0xff] %vm332_vm0, %v300_v10  ;;  %v8660_v18 = vld [vmem:[%s11131_s14 + $0x191] sm:$0xff]  ;;  %v8661_v19 = vld [vmem:[%s11131_s14 + $0x199] sm:$0xff]  ;;  %v301_v20 = vpack.c.bf16 %v239_v16, %v238_v15  ;;  %336 = vst.msk [vmem:[#allocation2 + $0x18] sm:$0xff] %vm332_vm0, %v303_v14 }
  0x32   : > { %511 = vrot.lane.b32.xlu0 %v439_v29, %s11001_s23  ;;  %v246_v22 = vld [vmem:[%s11131_s14 + $0x50] sm:$0xff]  ;;  %v247_v23 = vld [vmem:[%s11131_s14 + $0x58] sm:$0xff]  ;;  %v8658_v25 = vld [vmem:[%s11131_s14 + $0x181] sm:$0xff]  ;;  %v456_v33 = vpack.c.bf16 %v8661_v19, %v8660_v18 }
  0x33   : > { %v8659_v26 = vld [vmem:[%s11131_s14 + $0x189] sm:$0xff]  ;;  %334 = vst.msk [vmem:[#allocation2 + $0x8] sm:$0xff] %vm332_vm0, %v301_v20  ;;  %v305_v27 = vpack.c.bf16 %v247_v23, %v246_v22  ;;  %v11224_v29 = vld [vmem:[%s11131_s14 + $0x1b1] sm:$0xff]  ;;  %v11227_v30 = vld [vmem:[%s11131_s14 + $0x1b9] sm:$0xff] }
  0x34   : > { %v245_v28 = vld [vmem:[%s11131_s14 + $0x48] sm:$0xff]  ;;  %v250_v32 = vld [vmem:[%s11131_s14 + $0x70] sm:$0xff]  ;;  %v251_v36 = vld [vmem:[%s11131_s14 + $0x78] sm:$0xff]  ;;  %v455_v39 = vpack.c.bf16 %v8659_v26, %v8658_v25  ;;  %v458_v56 = vpack.c.bf16 %v11227_v30, %v11224_v29 }
  0x35   : > { %517 = vrot.lane.b32.xlu1 %v442_v34, %s11001_s23  ;;  %v304_v31 = vpack.c.bf16 %v245_v28, %v244_v24  ;;  %v11232_v34 = vld [vmem:[%s11131_s14 + $0x1a1] sm:$0xff]  ;;  %338 = vst.msk [vmem:[#allocation2 + $0x28] sm:$0xff] %vm332_vm0, %v305_v27  ;;  %v254_v42 = vld [vmem:[%s11131_s14 + $0x90] sm:$0xff]  ;;  %v255_v43 = vld [vmem:[%s11131_s14 + $0x98] sm:$0xff] }
  0x36   : > { %515 = vrot.lane.b32.xlu0 %v441_v35, %s11001_s23  ;;  %v11235_v35 = vld [vmem:[%s11131_s14 + $0x1a9] sm:$0xff]  ;;  %v248_v37 = vld [vmem:[%s11131_s14 + $0x60] sm:$0xff]  ;;  %v309_v45 = vpack.c.bf16 %v255_v43, %v254_v42  ;;  %v259_v48 = vld [vmem:[%s11131_s14 + $0xb8] sm:$0xff] }
  0x37   : > { %v249_v38 = vld [vmem:[%s11131_s14 + $0x68] sm:$0xff]  ;;  %337 = vst.msk [vmem:[#allocation2 + $0x20] sm:$0xff] %vm332_vm0, %v304_v31  ;;  %v252_v44 = vld [vmem:[%s11131_s14 + $0x80] sm:$0xff]  ;;  %v11250_v49 = vld [vmem:[%s11131_s14 + $0x1d1] sm:$0xff]  ;;  %v457_v63 = vpack.c.bf16 %v11235_v35, %v11232_v34 }
  0x38   : > { %v11253_v50 = vld [vmem:[%s11131_s14 + $0x1d9] sm:$0xff]  ;;  %v257_v54 = vld [vmem:[%s11131_s14 + $0xa8] sm:$0xff]  ;;  %v262_v55 = vld [vmem:[%s11131_s14 + $0xd0] sm:$0xff]  ;;  %342 = vst.msk [vmem:[#allocation2 + $0x48] sm:$0xff] %vm332_vm0, %v309_v45 }
  0x39   : > { %521 = vrot.lane.b32.xlu1 %v444_v40, %s11001_s23  ;;  %v307_v40 = vpack.c.bf16 %v251_v36, %v250_v32  ;;  %v11264_v57 = vld [vmem:[%s11131_s14 + $0x1c1] sm:$0xff]  ;;  %v263_v60 = vld [vmem:[%s11131_s14 + $0xd8] sm:$0xff]  ;;  %v266_v2 = vld [vmem:[%s11131_s14 + $0xf0] sm:$0xff]  ;;  %v460_v16 = vpack.c.bf16 %v11253_v50, %v11250_v49 }
  0x3a   : > { %519 = vrot.lane.b32.xlu0 %v443_v41, %s11001_s23  ;;  %v306_v41 = vpack.c.bf16 %v249_v38, %v248_v37  ;;  %v260_v61 = vld [vmem:[%s11131_s14 + $0xc0] sm:$0xff]  ;;  %v261_v62 = vld [vmem:[%s11131_s14 + $0xc8] sm:$0xff]  ;;  %v313_v0 = vpack.c.bf16 %v263_v60, %v262_v55  ;;  %v267_v3 = vld [vmem:[%s11131_s14 + $0xf8] sm:$0xff] }
  0x3b   : > { %340 = vst.msk [vmem:[#allocation2 + $0x38] sm:$0xff] %vm332_vm0, %v307_v40  ;;  %v264_v4 = vld [vmem:[%s11131_s14 + $0xe0] sm:$0xff]  ;;  %v265_v6 = vld [vmem:[%s11131_s14 + $0xe8] sm:$0xff]  ;;  %v270_v7 = vld [vmem:[%s11131_s14 + $0x110] sm:$0xff] }
  0x3c   : > { %339 = vst.msk [vmem:[#allocation2 + $0x30] sm:$0xff] %vm332_vm0, %v306_v41  ;;  %v271_v8 = vld [vmem:[%s11131_s14 + $0x118] sm:$0xff]  ;;  %346 = vst.msk [vmem:[#allocation2 + $0x68] sm:$0xff] %vm332_vm0, %v313_v0  ;;  %v314_v11 = vpack.c.bf16 %v265_v6, %v264_v4  ;;  %v268_v13 = vld [vmem:[%s11131_s14 + $0x100] sm:$0xff] }
  0x3d   : > { %525 = vrot.lane.b32.xlu1 %v446_v46, %s11001_s23  ;;  %v253_v46 = vld [vmem:[%s11131_s14 + $0x88] sm:$0xff]  ;;  %v11286_v9 = vld [vmem:[%s11131_s14 + $0x1f1] sm:$0xff]  ;;  %v11289_v10 = vld [vmem:[%s11131_s14 + $0x1f9] sm:$0xff]  ;;  %v317_v12 = vpack.c.bf16 %v271_v8, %v270_v7 }
  0x3e   : > { %523 = vrot.lane.b32.xlu0 %v445_v47, %s11001_s23  ;;  %v258_v47 = vld [vmem:[%s11131_s14 + $0xb0] sm:$0xff]  ;;  %v308_v51 = vpack.c.bf16 %v253_v46, %v252_v44  ;;  %v269_v14 = vld [vmem:[%s11131_s14 + $0x108] sm:$0xff]  ;;  %v275_v20 = vld [vmem:[%s11131_s14 + $0x138] sm:$0xff]  ;;  %347 = vst.msk [vmem:[#allocation2 + $0x70] sm:$0xff] %vm332_vm0, %v314_v11  ;;  %v462_v40 = vpack.c.bf16 %v11289_v10, %v11286_v9 }
  0x3f   : > { %v274_v15 = vld [vmem:[%s11131_s14 + $0x130] sm:$0xff]  ;;  %v316_v19 = vpack.c.bf16 %v269_v14, %v268_v13  ;;  %v273_v22 = vld [vmem:[%s11131_s14 + $0x128] sm:$0xff]  ;;  %350 = vst.msk [vmem:[#allocation2 + $0x88] sm:$0xff] %vm332_vm0, %v317_v12  ;;  %v279_v27 = vld [vmem:[%s11131_s14 + $0x158] sm:$0xff] }
  0x40   : > { %341 = vst.msk [vmem:[#allocation2 + $0x40] sm:$0xff] %vm332_vm0, %v308_v51  ;;  %v11303_v18 = vld [vmem:[%s11131_s14 + $0x1e9] sm:$0xff]  ;;  %v319_v24 = vpack.c.bf16 %v275_v20, %v274_v15  ;;  %v276_v28 = vld [vmem:[%s11131_s14 + $0x140] sm:$0xff]  ;;  %v283_v32 = vld [vmem:[%s11131_s14 + $0x178] sm:$0xff] }
  0x41   : > { %529 = vrot.lane.b32.xlu1 %v448_v52, %s11001_s23  ;;  %v311_v52 = vpack.c.bf16 %v259_v48, %v258_v47  ;;  %v278_v26 = vld [vmem:[%s11131_s14 + $0x150] sm:$0xff]  ;;  %349 = vst.msk [vmem:[#allocation2 + $0x80] sm:$0xff] %vm332_vm0, %v316_v19  ;;  %v277_v30 = vld [vmem:[%s11131_s14 + $0x148] sm:$0xff]  ;;  %v8678_v34 = vld [vmem:[%s11131_s14 + $0x1a] sm:$0xff] }
  0x42   : > { %527 = vrot.lane.b32.xlu0 %v447_v53, %s11001_s23  ;;  %v256_v53 = vld [vmem:[%s11131_s14 + $0xa0] sm:$0xff]  ;;  %v321_v29 = vpack.c.bf16 %v279_v27, %v278_v26  ;;  %v282_v31 = vld [vmem:[%s11131_s14 + $0x170] sm:$0xff]  ;;  %352 = vst.msk [vmem:[#allocation2 + $0x98] sm:$0xff] %vm332_vm0, %v319_v24  ;;  %v320_v35 = vpack.c.bf16 %v277_v30, %v276_v28  ;;  %v281_v38 = vld [vmem:[%s11131_s14 + $0x168] sm:$0xff] }
  0x43   : > { %344 = vst.msk [vmem:[#allocation2 + $0x58] sm:$0xff] %vm332_vm0, %v311_v52  ;;  %v323_v36 = vpack.c.bf16 %v283_v32, %v282_v31  ;;  %v280_v37 = vld [vmem:[%s11131_s14 + $0x160] sm:$0xff]  ;;  %v8676_v42 = vld [vmem:[%s11131_s14 + $0xa] sm:$0xff]  ;;  %v287_v44 = vld [vmem:[%s11131_s14 + $0x198] sm:$0xff] }
  0x44   : > { %v8675_v41 = vld [vmem:[%s11131_s14 + $0x2] sm:$0xff]  ;;  %354 = vst.msk [vmem:[#allocation2 + $0xa8] sm:$0xff] %vm332_vm0, %v321_v29  ;;  %v322_v43 = vpack.c.bf16 %v281_v38, %v280_v37  ;;  %353 = vst.msk [vmem:[#allocation2 + $0xa0] sm:$0xff] %vm332_vm0, %v320_v35  ;;  %v290_v50 = vld [vmem:[%s11131_s14 + $0x1b0] sm:$0xff] }
  0x45   : > { %533 = vrot.lane.b32.xlu1 %v450_v58, %s11001_s23  ;;  %v11267_v58 = vld [vmem:[%s11131_s14 + $0x1c9] sm:$0xff]  ;;  %v284_v45 = vld [vmem:[%s11131_s14 + $0x180] sm:$0xff]  ;;  %356 = vst.msk [vmem:[#allocation2 + $0xb8] sm:$0xff] %vm332_vm0, %v323_v36  ;;  %v291_v51 = vld [vmem:[%s11131_s14 + $0x1b8] sm:$0xff] }
  0x46   : > { %531 = vrot.lane.b32.xlu0 %v449_v59, %s11001_s23  ;;  %v310_v59 = vpack.c.bf16 %v257_v54, %v256_v53  ;;  %v459_v23 = vpack.c.bf16 %v11267_v58, %v11264_v57  ;;  %v285_v46 = vld [vmem:[%s11131_s14 + $0x188] sm:$0xff]  ;;  %v288_v52 = vld [vmem:[%s11131_s14 + $0x1a0] sm:$0xff]  ;;  %355 = vst.msk [vmem:[#allocation2 + $0xb0] sm:$0xff] %vm332_vm0, %v322_v43  ;;  %v327_v53 = vpack.c.bf16 %v291_v51, %v290_v50  ;;  %v294_v55 = vld [vmem:[%s11131_s14 + $0x1d0] sm:$0xff] }
  0x47   : > { %v324_v49 = vpack.c.bf16 %v285_v46, %v284_v45  ;;  %v289_v54 = vld [vmem:[%s11131_s14 + $0x1a8] sm:$0xff]  ;;  %v299_v0 = vld [vmem:[%s11131_s14 + $0x1f8] sm:$0xff] }
  0x48   : > { %343 = vst.msk [vmem:[#allocation2 + $0x50] sm:$0xff] %vm332_vm0, %v310_v59  ;;  %v326_v57 = vpack.c.bf16 %v289_v54, %v288_v52  ;;  %v292_v59 = vld [vmem:[%s11131_s14 + $0x1c0] sm:$0xff]  ;;  %v293_v60 = vld [vmem:[%s11131_s14 + $0x1c8] sm:$0xff]  ;;  %360 = vst.msk [vmem:[#allocation2 + $0xd8] sm:$0xff] %vm332_vm0, %v327_v53 }
  0x49   : > { %537 = vrot.lane.b32.xlu1 %v452_v1, %s11001_s23  ;;  %v312_v1 = vpack.c.bf16 %v261_v62, %v260_v61  ;;  %357 = vst.msk [vmem:[#allocation2 + $0xc0] sm:$0xff] %vm332_vm0, %v324_v49  ;;  %v298_v61 = vld [vmem:[%s11131_s14 + $0x1f0] sm:$0xff]  ;;  %v8679_v8 = vld [vmem:[%s11131_s14 + $0x22] sm:$0xff]  ;;  %v8686_v13 = vld [vmem:[%s11131_s14 + $0x5a] sm:$0xff] }
  0x4a   : > { %535 = vrot.lane.b32.xlu0 %v451_v5, %s11001_s23  ;;  %v315_v5 = vpack.c.bf16 %v267_v3, %v266_v2  ;;  %v297_v2 = vld [vmem:[%s11131_s14 + $0x1e8] sm:$0xff]  ;;  %v690_v3 = vpack.c.bf16 %v8676_v42, %v8675_v41  ;;  %v8681_v4 = vld [vmem:[%s11131_s14 + $0x32] sm:$0xff]  ;;  %359 = vst.msk [vmem:[#allocation2 + $0xd0] sm:$0xff] %vm332_vm0, %v326_v57  ;;  %v331_v6 = vpack.c.bf16 %v299_v0, %v298_v61  ;;  %v8690_v19 = vld [vmem:[%s11131_s14 + $0x7a] sm:$0xff] }
  0x4b   : > { %345 = vst.msk [vmem:[#allocation2 + $0x60] sm:$0xff] %vm332_vm0, %v312_v1  ;;  %v296_v1 = vld [vmem:[%s11131_s14 + $0x1e0] sm:$0xff]  ;;  %v8680_v9 = vld [vmem:[%s11131_s14 + $0x2a] sm:$0xff]  ;;  %v8685_v12 = vld [vmem:[%s11131_s14 + $0x52] sm:$0xff] }
  0x4c   : > { %348 = vst.msk [vmem:[#allocation2 + $0x78] sm:$0xff] %vm332_vm0, %v315_v5  ;;  %v8682_v5 = vld [vmem:[%s11131_s14 + $0x3a] sm:$0xff]  ;;  %v330_v7 = vpack.c.bf16 %v297_v2, %v296_v1  ;;  %364 = vst.msk [vmem:[#allocation2 + $0xf8] sm:$0xff] %vm332_vm0, %v331_v6  ;;  %v11376_v11 = vpack.c.bf16 %v8680_v9, %v8679_v8  ;;  %v8683_v14 = vld [vmem:[%s11131_s14 + $0x42] sm:$0xff] }
  0x4d   : > { %541 = vrot.lane.b32.xlu1 %v454_v17, %s11001_s23  ;;  %v11300_v17 = vld [vmem:[%s11131_s14 + $0x1e1] sm:$0xff]  ;;  %v11373_v10 = vpack.c.bf16 %v8682_v5, %v8681_v4  ;;  %v8684_v15 = vld [vmem:[%s11131_s14 + $0x4a] sm:$0xff]  ;;  %v8693_v24 = vld [vmem:[%s11131_s14 + $0x92] sm:$0xff] }
  0x4e   : > { %539 = vrot.lane.b32.xlu0 %v453_v21, %s11001_s23  ;;  %v272_v21 = vld [vmem:[%s11131_s14 + $0x120] sm:$0xff]  ;;  %v461_v47 = vpack.c.bf16 %v11303_v18, %v11300_v17  ;;  %363 = vst.msk [vmem:[#allocation2 + $0xf0] sm:$0xff] %vm332_vm0, %v330_v7  ;;  %v11388_v17 = vpack.c.bf16 %v8684_v15, %v8683_v14  ;;  %v8689_v18 = vld [vmem:[%s11131_s14 + $0x72] sm:$0xff]  ;;  %v8692_v27 = vld [vmem:[%s11131_s14 + $0x8a] sm:$0xff] }
  0x4f   : > { %v318_v25 = vpack.c.bf16 %v273_v22, %v272_v21  ;;  %v8687_v20 = vld [vmem:[%s11131_s14 + $0x62] sm:$0xff]  ;;  %v8688_v21 = vld [vmem:[%s11131_s14 + $0x6a] sm:$0xff]  ;;  %v11396_v22 = vpack.c.bf16 %v8690_v19, %v8689_v18  ;;  %v8697_v30 = vld [vmem:[%s11131_s14 + $0xb2] sm:$0xff] }
  0x50   : > { %v8691_v26 = vld [vmem:[%s11131_s14 + $0x82] sm:$0xff]  ;;  %v8698_v31 = vld [vmem:[%s11131_s14 + $0xba] sm:$0xff]  ;;  %v8701_v36 = vld [vmem:[%s11131_s14 + $0xd2] sm:$0xff] }
  0x51   : > { %545 = vrot.lane.b32.xlu1 %v456_v33, %s11001_s23  ;;  %v8677_v33 = vld [vmem:[%s11131_s14 + $0x12] sm:$0xff]  ;;  %351 = vst.msk [vmem:[#allocation2 + $0x90] sm:$0xff] %vm332_vm0, %v318_v25  ;;  %v8694_v25 = vld [vmem:[%s11131_s14 + $0x9a] sm:$0xff]  ;;  %v11412_v29 = vpack.c.bf16 %v8692_v27, %v8691_v26  ;;  %v8695_v32 = vld [vmem:[%s11131_s14 + $0xa2] sm:$0xff] }
  0x52   : > { %543 = vrot.lane.b32.xlu0 %v455_v39, %s11001_s23  ;;  %v286_v39 = vld [vmem:[%s11131_s14 + $0x190] sm:$0xff]  ;;  %v11355_v62 = vpack.c.bf16 %v8678_v34, %v8677_v33  ;;  %v11408_v28 = vpack.c.bf16 %v8694_v25, %v8693_v24  ;;  %v11420_v34 = vpack.c.bf16 %v8698_v31, %v8697_v30  ;;  %v8702_v37 = vld [vmem:[%s11131_s14 + $0xda] sm:$0xff]  ;;  %v8699_v38 = vld [vmem:[%s11131_s14 + $0xc2] sm:$0xff] }
  0x53   : > { %v325_v48 = vpack.c.bf16 %v287_v44, %v286_v39  ;;  %v8696_v33 = vld [vmem:[%s11131_s14 + $0xaa] sm:$0xff]  ;;  %v8705_v42 = vld [vmem:[%s11131_s14 + $0xf2] sm:$0xff]  ;;  %v8706_v43 = vld [vmem:[%s11131_s14 + $0xfa] sm:$0xff] }
  0x54   : > { %v11424_v35 = vpack.c.bf16 %v8696_v33, %v8695_v32  ;;  %v8700_v39 = vld [vmem:[%s11131_s14 + $0xca] sm:$0xff]  ;;  %v8703_v44 = vld [vmem:[%s11131_s14 + $0xe2] sm:$0xff]  ;;  %v11444_v46 = vpack.c.bf16 %v8706_v43, %v8705_v42  ;;  %v8710_v49 = vld [vmem:[%s11131_s14 + $0x11a] sm:$0xff] }
  0x55   : > { %549 = vrot.lane.b32.xlu1 %v458_v56, %s11001_s23  ;;  %v295_v56 = vld [vmem:[%s11131_s14 + $0x1d8] sm:$0xff]  ;;  %358 = vst.msk [vmem:[#allocation2 + $0xc8] sm:$0xff] %vm332_vm0, %v325_v48  ;;  %v11436_v41 = vpack.c.bf16 %v8700_v39, %v8699_v38  ;;  %v8704_v45 = vld [vmem:[%s11131_s14 + $0xea] sm:$0xff]  ;;  %v8707_v50 = vld [vmem:[%s11131_s14 + $0x102] sm:$0xff] }
  0x56   : > { %547 = vrot.lane.b32.xlu0 %v457_v63, %s11001_s23  ;;  %v329_v58 = vpack.c.bf16 %v295_v56, %v294_v55  ;;  %v328_v63 = vpack.c.bf16 %v293_v60, %v292_v59  ;;  %v8709_v48 = vld [vmem:[%s11131_s14 + $0x112] sm:$0xff]  ;;  %v8708_v51 = vld [vmem:[%s11131_s14 + $0x10a] sm:$0xff]  ;;  %v8714_v55 = vld [vmem:[%s11131_s14 + $0x13a] sm:$0xff] }
  0x57   : > { %v11456_v52 = vpack.c.bf16 %v8710_v49, %v8709_v48  ;;  %v11460_v53 = vpack.c.bf16 %v8708_v51, %v8707_v50  ;;  %v8713_v54 = vld [vmem:[%s11131_s14 + $0x132] sm:$0xff]  ;;  %v8711_v56 = vld [vmem:[%s11131_s14 + $0x122] sm:$0xff]  ;;  %v8712_v57 = vld [vmem:[%s11131_s14 + $0x12a] sm:$0xff] }
  0x58   : > { %362 = vst.msk [vmem:[#allocation2 + $0xe8] sm:$0xff] %vm332_vm0, %v329_v58  ;;  %361 = vst.msk [vmem:[#allocation2 + $0xe0] sm:$0xff] %vm332_vm0, %v328_v63  ;;  %v11468_v58 = vpack.c.bf16 %v8714_v55, %v8713_v54  ;;  %v11472_v59 = vpack.c.bf16 %v8712_v57, %v8711_v56  ;;  %v8717_v60 = vld [vmem:[%s11131_s14 + $0x152] sm:$0xff]  ;;  %v8718_v61 = vld [vmem:[%s11131_s14 + $0x15a] sm:$0xff]  ;;  %vm4476_vm0 = vcmask 556544  }
  0x59   : > { %553 = vrot.lane.b32.xlu1 %v460_v16, %s11001_s23  ;;  %v11384_v16 = vpack.c.bf16 %v8686_v13, %v8685_v12  ;;  %v8715_v63 = vld [vmem:[%s11131_s14 + $0x142] sm:$0xff]  ;;  %v8716_v0 = vld [vmem:[%s11131_s14 + $0x14a] sm:$0xff]  ;;  %v11480_v1 = vpack.c.bf16 %v8718_v61, %v8717_v60  ;;  %v8722_v4 = vld [vmem:[%s11131_s14 + $0x17a] sm:$0xff] }
  0x5a   : > { %551 = vrot.lane.b32.xlu0 %v459_v23, %s11001_s23  ;;  %v11400_v23 = vpack.c.bf16 %v8688_v21, %v8687_v20  ;;  %v11484_v2 = vpack.c.bf16 %v8716_v0, %v8715_v63  ;;  %v8719_v5 = vld [vmem:[%s11131_s14 + $0x162] sm:$0xff]  ;;  %v8720_v6 = vld [vmem:[%s11131_s14 + $0x16a] sm:$0xff]  ;;  %v8725_v9 = vld [vmem:[%s11131_s14 + $0x192] sm:$0xff] }
  0x5b   : > { %v11496_v8 = vpack.c.bf16 %v8720_v6, %v8719_v5  ;;  %v8726_v12 = vld [vmem:[%s11131_s14 + $0x19a] sm:$0xff]  ;;  %v8723_v13 = vld [vmem:[%s11131_s14 + $0x182] sm:$0xff]  ;;  %v8724_v14 = vld [vmem:[%s11131_s14 + $0x18a] sm:$0xff] }
  0x5c   : > { %v11504_v15 = vpack.c.bf16 %v8726_v12, %v8725_v9  ;;  %v11508_v18 = vpack.c.bf16 %v8724_v14, %v8723_v13  ;;  %v8729_v19 = vld [vmem:[%s11131_s14 + $0x1b2] sm:$0xff]  ;;  %v8730_v20 = vld [vmem:[%s11131_s14 + $0x1ba] sm:$0xff]  ;;  %v8727_v21 = vld [vmem:[%s11131_s14 + $0x1a2] sm:$0xff] }
  0x5d   : > { %557 = vrot.lane.b32.xlu1 %v462_v40, %s11001_s23  ;;  %v11432_v40 = vpack.c.bf16 %v8702_v37, %v8701_v36  ;;  %v8728_v24 = vld [vmem:[%s11131_s14 + $0x1aa] sm:$0xff]  ;;  %v11516_v25 = vpack.c.bf16 %v8730_v20, %v8729_v19  ;;  %v8733_v27 = vld [vmem:[%s11131_s14 + $0x1d2] sm:$0xff]  ;;  %v8734_v30 = vld [vmem:[%s11131_s14 + $0x1da] sm:$0xff] }
  0x5e   : > { %555 = vrot.lane.b32.xlu0 %v461_v47, %s11001_s23  ;;  %v11448_v47 = vpack.c.bf16 %v8704_v45, %v8703_v44  ;;  %v11520_v26 = vpack.c.bf16 %v8728_v24, %v8727_v21  ;;  %v8731_v32 = vld [vmem:[%s11131_s14 + $0x1c2] sm:$0xff]  ;;  %v8732_v33 = vld [vmem:[%s11131_s14 + $0x1ca] sm:$0xff]  ;;  %v11530_v37 = vpack.c.bf16 %v8734_v30, %v8733_v27  ;;  %v8737_v39 = vld [vmem:[%s11131_s14 + $0x1f2] sm:$0xff] }
  0x5f   : > { %v11534_v38 = vpack.c.bf16 %v8732_v33, %v8731_v32  ;;  %v8738_v42 = vld [vmem:[%s11131_s14 + $0x1fa] sm:$0xff]  ;;  %v8735_v44 = vld [vmem:[%s11131_s14 + $0x1e2] sm:$0xff]  ;;  %v8736_v45 = vld [vmem:[%s11131_s14 + $0x1ea] sm:$0xff] }
  0x60   : > { %v11544_v49 = vpack.c.bf16 %v8738_v42, %v8737_v39  ;;  %v11548_v50 = vpack.c.bf16 %v8736_v45, %v8735_v44  ;;  %v8808_v9 = vld [vmem:[%s11131_s14 + $0x2b] sm:$0xff]  ;;  %v8805_v13 = vld [vmem:[%s11131_s14 + $0x13] sm:$0xff]  ;;  %v8806_v14 = vld [vmem:[%s11131_s14 + $0x1b] sm:$0xff] }
  0x61   : > { %756 = vrot.lane.b32.xlu1 %v11355_v62, %s11002_s24  ;;  %v1208_v19 = vpack.c.bf16 %v8806_v14, %v8805_v13  ;;  %v8811_v20 = vld [vmem:[%s11131_s14 + $0x43] sm:$0xff]  ;;  %v8812_v21 = vld [vmem:[%s11131_s14 + $0x4b] sm:$0xff]  ;;  %v8837_v13 = vld [vmem:[%s11131_s14 + $0x113] sm:$0xff] }
  0x62   : > { %754 = vrot.lane.b32.xlu0 %v690_v3, %s11002_s24  ;;  %v8721_v3 = vld [vmem:[%s11131_s14 + $0x172] sm:$0xff]  ;;  %v1211_v30 = vpack.c.bf16 %v8812_v21, %v8811_v20  ;;  %v8815_v32 = vld [vmem:[%s11131_s14 + $0x63] sm:$0xff]  ;;  %v8838_v14 = vld [vmem:[%s11131_s14 + $0x11b] sm:$0xff] }
  0x63   : > { %v11492_v7 = vpack.c.bf16 %v8722_v4, %v8721_v3  ;;  %v8802_v3 = vld [vmem:[%s11131_s14 + $0x202] sm:$0xff]  ;;  %v8803_v4 = vld [vmem:[%s11131_s14 + $0x20a] sm:$0xff] }
  0x64   : > { %v8816_v33 = vld [vmem:[%s11131_s14 + $0x6b] sm:$0xff]  ;;  %v8819_v44 = vld [vmem:[%s11131_s14 + $0x83] sm:$0xff] }
  0x65   : > { %760 = vrot.lane.b32.xlu1 %v11373_v10, %s11002_s24  ;;  %v1213_v42 = vpack.c.bf16 %v8816_v33, %v8815_v32  ;;  %v8820_v45 = vld [vmem:[%s11131_s14 + $0x8b] sm:$0xff]  ;;  %v8843_v20 = vld [vmem:[%s11131_s14 + $0x143] sm:$0xff] }
  0x66   : > { %758 = vrot.lane.b32.xlu0 %v11376_v11, %s11002_s24  ;;  %v8844_v21 = vld [vmem:[%s11131_s14 + $0x14b] sm:$0xff]  ;;  %v8847_v32 = vld [vmem:[%s11131_s14 + $0x163] sm:$0xff] }
  0x67   : > { %v8848_v33 = vld [vmem:[%s11131_s14 + $0x16b] sm:$0xff] }
  0x69   : > { %764 = vrot.lane.b32.xlu1 %v11384_v16, %s11002_s24 }
  0x6a   : > { %762 = vrot.lane.b32.xlu0 %v11388_v17, %s11002_s24 }
  0x6d   : > { %768 = vrot.lane.b32.xlu1 %v11396_v22, %s11002_s24 }
  0x6e   : > { %766 = vrot.lane.b32.xlu0 %v11400_v23, %s11002_s24 }
  0x71   : > { %772 = vrot.lane.b32.xlu1 %v11408_v28, %s11002_s24 }
  0x72   : > { %770 = vrot.lane.b32.xlu0 %v11412_v29, %s11002_s24 }
  0x75   : > { %776 = vrot.lane.b32.xlu1 %v11420_v34, %s11002_s24 }
  0x76   : > { %774 = vrot.lane.b32.xlu0 %v11424_v35, %s11002_s24 }
  0x79   : > { %780 = vrot.lane.b32.xlu1 %v11432_v40, %s11002_s24 }
  0x7a   : > { %778 = vrot.lane.b32.xlu0 %v11436_v41, %s11002_s24 }
  0x7d   : > { %784 = vrot.lane.b32.xlu1 %v11444_v46, %s11002_s24 }
  0x7e   : > { %782 = vrot.lane.b32.xlu0 %v11448_v47, %s11002_s24 }
  0x81   : > { %788 = vrot.lane.b32.xlu1 %v11456_v52, %s11002_s24 }
  0x82   : > { %786 = vrot.lane.b32.xlu0 %v11460_v53, %s11002_s24 }
  0x85   : > { %792 = vrot.lane.b32.xlu1 %v11468_v58, %s11002_s24 }
  0x86   : > { %790 = vrot.lane.b32.xlu0 %v11472_v59, %s11002_s24 }
  0x89   : > { %796 = vrot.lane.b32.xlu1 %v11480_v1, %s11002_s24 }
  0x8a   : > { %794 = vrot.lane.b32.xlu0 %v11484_v2, %s11002_s24 }
  0x8d   : > { %800 = vrot.lane.b32.xlu1 %v11492_v7, %s11002_s24 }
  0x8e   : > { %798 = vrot.lane.b32.xlu0 %v11496_v8, %s11002_s24 }
  0x91   : > { %804 = vrot.lane.b32.xlu1 %v11504_v15, %s11002_s24 }
  0x92   : > { %802 = vrot.lane.b32.xlu0 %v11508_v18, %s11002_s24 }
  0x93   : > { %v500_v31 = vpop.permute.xlu1 %499 }
  0x94   : > { %594 = vst.msk [vmem:[#allocation2 + $0x10] sm:$0xff] %vm591_vm1, %v500_v31  ;;  %v496_v36 = vpop.permute.xlu0 %495 }
  0x95   : > { %592 = vst.msk [vmem:[#allocation2] sm:$0xff] %vm591_vm1, %v496_v36  ;;  %808 = vrot.lane.b32.xlu1 %v11516_v25, %s11002_s24 }
  0x96   : > { %806 = vrot.lane.b32.xlu0 %v11520_v26, %s11002_s24 }
  0x97   : > { %v502_v43 = vpop.permute.xlu1 %501 }
  0x98   : > { %595 = vst.msk [vmem:[#allocation2 + $0x18] sm:$0xff] %vm591_vm1, %v502_v43  ;;  %v498_v48 = vpop.permute.xlu0 %497 }
  0x99   : > { %593 = vst.msk [vmem:[#allocation2 + $0x8] sm:$0xff] %vm591_vm1, %v498_v48  ;;  %812 = vrot.lane.b32.xlu1 %v11530_v37, %s11002_s24 }
  0x9a   : > { %810 = vrot.lane.b32.xlu0 %v11534_v38, %s11002_s24 }
  0x9b   : > { %v506_v51 = vpop.permute.xlu1 %505 }
  0x9c   : > { %597 = vst.msk [vmem:[#allocation2 + $0x28] sm:$0xff] %vm591_vm1, %v506_v51  ;;  %v504_v54 = vpop.permute.xlu0 %503 }
  0x9d   : > { %596 = vst.msk [vmem:[#allocation2 + $0x20] sm:$0xff] %vm591_vm1, %v504_v54  ;;  %816 = vrot.lane.b32.xlu1 %v11544_v49, %s11002_s24  ;;  %v1215_v54 = vpack.c.bf16 %v8820_v45, %v8819_v44  ;;  %v8851_v44 = vld [vmem:[%s11131_s14 + $0x183] sm:$0xff]  ;;  %v8852_v45 = vld [vmem:[%s11131_s14 + $0x18b] sm:$0xff] }
  0x9e   : > { %814 = vrot.lane.b32.xlu0 %v11548_v50, %s11002_s24  ;;  %s11013_s24 = smov 52  }
  0x9f   : > { %v510_v55 = vpop.permute.xlu1 %509 }
  0xa0   : > { %599 = vst.msk [vmem:[#allocation2 + $0x38] sm:$0xff] %vm591_vm1, %v510_v55  ;;  %v508_v56 = vpop.permute.xlu0 %507 }
  0xa1   : > { %598 = vst.msk [vmem:[#allocation2 + $0x30] sm:$0xff] %vm591_vm1, %v508_v56  ;;  %1015 = vrot.lane.b32.xlu1 %v11376_v11, %s11003_s27  ;;  %v8823_v56 = vld [vmem:[%s11131_s14 + $0xa3] sm:$0xff] }
  0xa2   : > { %1013 = vrot.lane.b32.xlu0 %v11355_v62, %s11003_s27 }
  0xa3   : > { %v514_v57 = vpop.permute.xlu1 %513 }
  0xa4   : > { %601 = vst.msk [vmem:[#allocation2 + $0x48] sm:$0xff] %vm591_vm1, %v514_v57  ;;  %v512_v60 = vpop.permute.xlu0 %511  ;;  %v8824_v57 = vld [vmem:[%s11131_s14 + $0xab] sm:$0xff] }
  0xa5   : > { %600 = vst.msk [vmem:[#allocation2 + $0x40] sm:$0xff] %vm591_vm1, %v512_v60  ;;  %1019 = vrot.lane.b32.xlu1 %v11388_v17, %s11003_s27 }
  0xa6   : > { %1017 = vrot.lane.b32.xlu0 %v11373_v10, %s11003_s27 }
  0xa7   : > { %v518_v61 = vpop.permute.xlu1 %517 }
  0xa8   : > { %603 = vst.msk [vmem:[#allocation2 + $0x58] sm:$0xff] %vm591_vm1, %v518_v61  ;;  %v516_v63 = vpop.permute.xlu0 %515  ;;  %v8821_v61 = vld [vmem:[%s11131_s14 + $0x93] sm:$0xff] }
  0xa9   : > { %602 = vst.msk [vmem:[#allocation2 + $0x50] sm:$0xff] %vm591_vm1, %v516_v63  ;;  %1023 = vrot.lane.b32.xlu1 %v11400_v23, %s11003_s27  ;;  %v8822_v63 = vld [vmem:[%s11131_s14 + $0x9b] sm:$0xff] }
  0xaa   : > { %1021 = vrot.lane.b32.xlu0 %v11384_v16, %s11003_s27 }
  0xab   : > { %v522_v62 = vpop.permute.xlu1 %521 }
  0xac   : > { %605 = vst.msk [vmem:[#allocation2 + $0x68] sm:$0xff] %vm591_vm1, %v522_v62  ;;  %v520_v11 = vpop.permute.xlu0 %519 }
  0xad   : > { %604 = vst.msk [vmem:[#allocation2 + $0x60] sm:$0xff] %vm591_vm1, %v520_v11  ;;  %1027 = vrot.lane.b32.xlu1 %v11412_v29, %s11003_s27  ;;  %v1217_v11 = vpack.c.bf16 %v8824_v57, %v8823_v56  ;;  %v8855_v56 = vld [vmem:[%s11131_s14 + $0x1a3] sm:$0xff]  ;;  %v8856_v57 = vld [vmem:[%s11131_s14 + $0x1ab] sm:$0xff] }
  0xae   : > { %1025 = vrot.lane.b32.xlu0 %v11396_v22, %s11003_s27 }
  0xaf   : > { %v526_v10 = vpop.permute.xlu1 %525 }
  0xb0   : > { %607 = vst.msk [vmem:[#allocation2 + $0x78] sm:$0xff] %vm591_vm1, %v526_v10  ;;  %v524_v17 = vpop.permute.xlu0 %523  ;;  %v1216_v10 = vpack.c.bf16 %v8822_v63, %v8821_v61  ;;  %v8853_v61 = vld [vmem:[%s11131_s14 + $0x193] sm:$0xff]  ;;  %v8854_v63 = vld [vmem:[%s11131_s14 + $0x19b] sm:$0xff] }
  0xb1   : > { %606 = vst.msk [vmem:[#allocation2 + $0x70] sm:$0xff] %vm591_vm1, %v524_v17  ;;  %1031 = vrot.lane.b32.xlu1 %v11424_v35, %s11003_s27  ;;  %v8827_v17 = vld [vmem:[%s11131_s14 + $0xc3] sm:$0xff] }
  0xb2   : > { %1029 = vrot.lane.b32.xlu0 %v11408_v28, %s11003_s27 }
  0xb3   : > { %v530_v16 = vpop.permute.xlu1 %529 }
  0xb4   : > { %609 = vst.msk [vmem:[#allocation2 + $0x88] sm:$0xff] %vm591_vm1, %v530_v16  ;;  %v528_v23 = vpop.permute.xlu0 %527  ;;  %v8828_v16 = vld [vmem:[%s11131_s14 + $0xcb] sm:$0xff] }
  0xb5   : > { %608 = vst.msk [vmem:[#allocation2 + $0x80] sm:$0xff] %vm591_vm1, %v528_v23  ;;  %1035 = vrot.lane.b32.xlu1 %v11436_v41, %s11003_s27 }
  0xb6   : > { %1033 = vrot.lane.b32.xlu0 %v11420_v34, %s11003_s27 }
  0xb7   : > { %v534_v22 = vpop.permute.xlu1 %533 }
  0xb8   : > { %611 = vst.msk [vmem:[#allocation2 + $0x98] sm:$0xff] %vm591_vm1, %v534_v22  ;;  %v532_v29 = vpop.permute.xlu0 %531  ;;  %v8825_v22 = vld [vmem:[%s11131_s14 + $0xb3] sm:$0xff] }
  0xb9   : > { %610 = vst.msk [vmem:[#allocation2 + $0x90] sm:$0xff] %vm591_vm1, %v532_v29  ;;  %1039 = vrot.lane.b32.xlu1 %v11448_v47, %s11003_s27  ;;  %v8826_v29 = vld [vmem:[%s11131_s14 + $0xbb] sm:$0xff] }
  0xba   : > { %1037 = vrot.lane.b32.xlu0 %v11432_v40, %s11003_s27 }
  0xbb   : > { %v538_v28 = vpop.permute.xlu1 %537 }
  0xbc   : > { %613 = vst.msk [vmem:[#allocation2 + $0xa8] sm:$0xff] %vm591_vm1, %v538_v28  ;;  %v536_v35 = vpop.permute.xlu0 %535 }
  0xbd   : > { %612 = vst.msk [vmem:[#allocation2 + $0xa0] sm:$0xff] %vm591_vm1, %v536_v35  ;;  %1043 = vrot.lane.b32.xlu1 %v11460_v53, %s11003_s27  ;;  %v1219_v35 = vpack.c.bf16 %v8828_v16, %v8827_v17  ;;  %v8859_v17 = vld [vmem:[%s11131_s14 + $0x1c3] sm:$0xff]  ;;  %v8860_v16 = vld [vmem:[%s11131_s14 + $0x1cb] sm:$0xff] }
  0xbe   : > { %1041 = vrot.lane.b32.xlu0 %v11444_v46, %s11003_s27 }
  0xbf   : > { %v542_v34 = vpop.permute.xlu1 %541 }
  0xc0   : > { %615 = vst.msk [vmem:[#allocation2 + $0xb8] sm:$0xff] %vm591_vm1, %v542_v34  ;;  %v540_v41 = vpop.permute.xlu0 %539  ;;  %v1218_v34 = vpack.c.bf16 %v8826_v29, %v8825_v22  ;;  %v8857_v22 = vld [vmem:[%s11131_s14 + $0x1b3] sm:$0xff]  ;;  %v8858_v29 = vld [vmem:[%s11131_s14 + $0x1bb] sm:$0xff] }
  0xc1   : > { %614 = vst.msk [vmem:[#allocation2 + $0xb0] sm:$0xff] %vm591_vm1, %v540_v41  ;;  %1047 = vrot.lane.b32.xlu1 %v11472_v59, %s11003_s27  ;;  %v8831_v41 = vld [vmem:[%s11131_s14 + $0xe3] sm:$0xff] }
  0xc2   : > { %1045 = vrot.lane.b32.xlu0 %v11456_v52, %s11003_s27 }
  0xc3   : > { %v546_v40 = vpop.permute.xlu1 %545 }
  0xc4   : > { %617 = vst.msk [vmem:[#allocation2 + $0xc8] sm:$0xff] %vm591_vm1, %v546_v40  ;;  %v544_v47 = vpop.permute.xlu0 %543  ;;  %v8832_v40 = vld [vmem:[%s11131_s14 + $0xeb] sm:$0xff] }
  0xc5   : > { %616 = vst.msk [vmem:[#allocation2 + $0xc0] sm:$0xff] %vm591_vm1, %v544_v47  ;;  %1051 = vrot.lane.b32.xlu1 %v11484_v2, %s11003_s27 }
  0xc6   : > { %1049 = vrot.lane.b32.xlu0 %v11468_v58, %s11003_s27 }
  0xc7   : > { %v550_v46 = vpop.permute.xlu1 %549 }
  0xc8   : > { %619 = vst.msk [vmem:[#allocation2 + $0xd8] sm:$0xff] %vm591_vm1, %v550_v46  ;;  %v548_v53 = vpop.permute.xlu0 %547  ;;  %v8829_v46 = vld [vmem:[%s11131_s14 + $0xd3] sm:$0xff] }
  0xc9   : > { %618 = vst.msk [vmem:[#allocation2 + $0xd0] sm:$0xff] %vm591_vm1, %v548_v53  ;;  %1055 = vrot.lane.b32.xlu1 %v11496_v8, %s11003_s27  ;;  %v8807_v8 = vld [vmem:[%s11131_s14 + $0x23] sm:$0xff]  ;;  %v8830_v53 = vld [vmem:[%s11131_s14 + $0xdb] sm:$0xff] }
  0xca   : > { %1053 = vrot.lane.b32.xlu0 %v11480_v1, %s11003_s27 }
  0xcb   : > { %v554_v52 = vpop.permute.xlu1 %553 }
  0xcc   : > { %621 = vst.msk [vmem:[#allocation2 + $0xe8] sm:$0xff] %vm591_vm1, %v554_v52  ;;  %v552_v59 = vpop.permute.xlu0 %551 }
  0xcd   : > { %620 = vst.msk [vmem:[#allocation2 + $0xe0] sm:$0xff] %vm591_vm1, %v552_v59  ;;  %1059 = vrot.lane.b32.xlu1 %v11508_v18, %s11003_s27  ;;  %v1209_v18 = vpack.c.bf16 %v8808_v9, %v8807_v8  ;;  %v1221_v59 = vpack.c.bf16 %v8832_v40, %v8831_v41  ;;  %v8839_v8 = vld [vmem:[%s11131_s14 + $0x123] sm:$0xff]  ;;  %v8840_v9 = vld [vmem:[%s11131_s14 + $0x12b] sm:$0xff] }
  0xce   : > { %1057 = vrot.lane.b32.xlu0 %v11492_v7, %s11003_s27  ;;  %v980_v7 = vpack.c.bf16 %v8803_v4, %v8802_v3  ;;  %v8833_v3 = vld [vmem:[%s11131_s14 + $0xf3] sm:$0xff]  ;;  %v8834_v4 = vld [vmem:[%s11131_s14 + $0xfb] sm:$0xff]  ;;  %v8863_v41 = vld [vmem:[%s11131_s14 + $0x1e3] sm:$0xff] }
  0xcf   : > { %v558_v58 = vpop.permute.xlu1 %557  ;;  %v8864_v40 = vld [vmem:[%s11131_s14 + $0x1eb] sm:$0xff] }
  0xd0   : > { %623 = vst.msk [vmem:[#allocation2 + $0xf8] sm:$0xff] %vm591_vm1, %v558_v58  ;;  %v556_v0 = vpop.permute.xlu0 %555  ;;  %v1220_v58 = vpack.c.bf16 %v8830_v53, %v8829_v46  ;;  %v8861_v46 = vld [vmem:[%s11131_s14 + $0x1d3] sm:$0xff]  ;;  %v8862_v53 = vld [vmem:[%s11131_s14 + $0x1db] sm:$0xff] }
  0xd1   : > { %622 = vst.msk [vmem:[#allocation2 + $0xf0] sm:$0xff] %vm591_vm1, %v556_v0  ;;  %1063 = vrot.lane.b32.xlu1 %v11520_v26, %s11003_s27  ;;  %v8810_v26 = vld [vmem:[%s11131_s14 + $0x3b] sm:$0xff]  ;;  %v8835_v0 = vld [vmem:[%s11131_s14 + $0x103] sm:$0xff]  ;;  %vm4735_vm1 = vcmask 589344  }
  0xd2   : > { %1061 = vrot.lane.b32.xlu0 %v11504_v15, %s11003_s27 }
  0xd3   : > { %v757_v1 = vpop.permute.xlu1 %756 }
  0xd4   : > { %852 = vst.msk [vmem:[#allocation2 + $0x8] sm:$0xff] %vm850_vm2, %v757_v1  ;;  %v755_v2 = vpop.permute.xlu0 %754  ;;  %v8836_v1 = vld [vmem:[%s11131_s14 + $0x10b] sm:$0xff] }
  0xd5   : > { %851 = vst.msk [vmem:[#allocation2] sm:$0xff] %vm850_vm2, %v755_v2  ;;  %1067 = vrot.lane.b32.xlu1 %v11534_v38, %s11003_s27  ;;  %v8814_v38 = vld [vmem:[%s11131_s14 + $0x5b] sm:$0xff] }
  0xd6   : > { %1065 = vrot.lane.b32.xlu0 %v11516_v25, %s11003_s27  ;;  %v8809_v25 = vld [vmem:[%s11131_s14 + $0x33] sm:$0xff] }
  0xd7   : > { %v761_v5 = vpop.permute.xlu1 %760  ;;  %v1210_v31 = vpack.c.bf16 %v8810_v26, %v8809_v25  ;;  %v8841_v25 = vld [vmem:[%s11131_s14 + $0x133] sm:$0xff]  ;;  %v8842_v26 = vld [vmem:[%s11131_s14 + $0x13b] sm:$0xff] }
  0xd8   : > { %854 = vst.msk [vmem:[#allocation2 + $0x18] sm:$0xff] %vm850_vm2, %v761_v5  ;;  %v759_v6 = vpop.permute.xlu0 %758 }
  0xd9   : > { %853 = vst.msk [vmem:[#allocation2 + $0x10] sm:$0xff] %vm850_vm2, %v759_v6  ;;  %1071 = vrot.lane.b32.xlu1 %v11548_v50, %s11003_s27  ;;  %v8818_v50 = vld [vmem:[%s11131_s14 + $0x7b] sm:$0xff]  ;;  %v1223_v6 = vpack.c.bf16 %v8836_v1, %v8835_v0  ;;  %v8867_v0 = vld [vmem:[%s11131_s14 + $0x203] sm:$0xff]  ;;  %v8868_v1 = vld [vmem:[%s11131_s14 + $0x20b] sm:$0xff] }
  0xda   : > { %1069 = vrot.lane.b32.xlu0 %v11530_v37, %s11003_s27  ;;  %v8813_v37 = vld [vmem:[%s11131_s14 + $0x53] sm:$0xff] }
  0xdb   : > { %v765_v12 = vpop.permute.xlu1 %764  ;;  %v1212_v43 = vpack.c.bf16 %v8814_v38, %v8813_v37  ;;  %v8845_v37 = vld [vmem:[%s11131_s14 + $0x153] sm:$0xff]  ;;  %v8846_v38 = vld [vmem:[%s11131_s14 + $0x15b] sm:$0xff] }
  0xdc   : > { %856 = vst.msk [vmem:[#allocation2 + $0x28] sm:$0xff] %vm850_vm2, %v765_v12  ;;  %v763_v15 = vpop.permute.xlu0 %762 }
  0xdd   : > { %855 = vst.msk [vmem:[#allocation2 + $0x20] sm:$0xff] %vm850_vm2, %v763_v15  ;;  %1075 = vrot.lane.b32.xlu1 %v980_v7, %s11003_s27  ;;  %v1222_v7 = vpack.c.bf16 %v8834_v4, %v8833_v3  ;;  %v8865_v3 = vld [vmem:[%s11131_s14 + $0x1f3] sm:$0xff]  ;;  %v8866_v4 = vld [vmem:[%s11131_s14 + $0x1fb] sm:$0xff] }
  0xde   : > { %1073 = vrot.lane.b32.xlu0 %v11544_v49, %s11003_s27  ;;  %v8817_v49 = vld [vmem:[%s11131_s14 + $0x73] sm:$0xff]  ;;  %s11014_s27 = smov 56  }
  0xdf   : > { %v769_v24 = vpop.permute.xlu1 %768  ;;  %v1214_v55 = vpack.c.bf16 %v8818_v50, %v8817_v49  ;;  %v8849_v49 = vld [vmem:[%s11131_s14 + $0x173] sm:$0xff]  ;;  %v8850_v50 = vld [vmem:[%s11131_s14 + $0x17b] sm:$0xff] }
  0xe0   : > { %858 = vst.msk [vmem:[#allocation2 + $0x38] sm:$0xff] %vm850_vm2, %v769_v24  ;;  %v767_v27 = vpop.permute.xlu0 %766 }
  0xe1   : > { %857 = vst.msk [vmem:[#allocation2 + $0x30] sm:$0xff] %vm850_vm2, %v767_v27  ;;  %1274 = vrot.lane.b32.xlu1 %v1209_v18, %s11004_s30  ;;  %v1225_v18 = vpack.c.bf16 %v8840_v9, %v8839_v8  ;;  %v8872_v8 = vld [vmem:[%s11131_s14 + $0x24] sm:$0xff]  ;;  %v8873_v9 = vld [vmem:[%s11131_s14 + $0x2c] sm:$0xff] }
  0xe2   : > { %1272 = vrot.lane.b32.xlu0 %v1208_v19, %s11004_s30  ;;  %v1224_v19 = vpack.c.bf16 %v8838_v14, %v8837_v13  ;;  %v8870_v13 = vld [vmem:[%s11131_s14 + $0x14] sm:$0xff]  ;;  %v8871_v14 = vld [vmem:[%s11131_s14 + $0x1c] sm:$0xff] }
  0xe3   : > { %v773_v36 = vpop.permute.xlu1 %772 }
  0xe4   : > { %860 = vst.msk [vmem:[#allocation2 + $0x48] sm:$0xff] %vm850_vm2, %v773_v36  ;;  %v771_v39 = vpop.permute.xlu0 %770 }
  0xe5   : > { %859 = vst.msk [vmem:[#allocation2 + $0x40] sm:$0xff] %vm850_vm2, %v771_v39  ;;  %1278 = vrot.lane.b32.xlu1 %v1211_v30, %s11004_s30  ;;  %v1227_v30 = vpack.c.bf16 %v8844_v21, %v8843_v20  ;;  %v8876_v20 = vld [vmem:[%s11131_s14 + $0x44] sm:$0xff]  ;;  %v8877_v21 = vld [vmem:[%s11131_s14 + $0x4c] sm:$0xff] }
  0xe6   : > { %1276 = vrot.lane.b32.xlu0 %v1210_v31, %s11004_s30  ;;  %v1226_v31 = vpack.c.bf16 %v8842_v26, %v8841_v25  ;;  %v8874_v25 = vld [vmem:[%s11131_s14 + $0x34] sm:$0xff]  ;;  %v8875_v26 = vld [vmem:[%s11131_s14 + $0x3c] sm:$0xff] }
  0xe7   : > { %v777_v48 = vpop.permute.xlu1 %776 }
  0xe8   : > { %862 = vst.msk [vmem:[#allocation2 + $0x58] sm:$0xff] %vm850_vm2, %v777_v48  ;;  %v775_v51 = vpop.permute.xlu0 %774 }
  0xe9   : > { %861 = vst.msk [vmem:[#allocation2 + $0x50] sm:$0xff] %vm850_vm2, %v775_v51  ;;  %1282 = vrot.lane.b32.xlu1 %v1213_v42, %s11004_s30  ;;  %v1229_v42 = vpack.c.bf16 %v8848_v33, %v8847_v32  ;;  %v8880_v32 = vld [vmem:[%s11131_s14 + $0x64] sm:$0xff]  ;;  %v8881_v33 = vld [vmem:[%s11131_s14 + $0x6c] sm:$0xff] }
  0xea   : > { %1280 = vrot.lane.b32.xlu0 %v1212_v43, %s11004_s30  ;;  %v1228_v43 = vpack.c.bf16 %v8846_v38, %v8845_v37  ;;  %v8878_v37 = vld [vmem:[%s11131_s14 + $0x54] sm:$0xff]  ;;  %v8879_v38 = vld [vmem:[%s11131_s14 + $0x5c] sm:$0xff] }
  0xeb   : > { %v781_v60 = vpop.permute.xlu1 %780 }
  0xec   : > { %864 = vst.msk [vmem:[#allocation2 + $0x68] sm:$0xff] %vm850_vm2, %v781_v60  ;;  %v779_v62 = vpop.permute.xlu0 %778 }
  0xed   : > { %863 = vst.msk [vmem:[#allocation2 + $0x60] sm:$0xff] %vm850_vm2, %v779_v62  ;;  %1286 = vrot.lane.b32.xlu1 %v1215_v54, %s11004_s30  ;;  %v1231_v54 = vpack.c.bf16 %v8852_v45, %v8851_v44  ;;  %v8884_v44 = vld [vmem:[%s11131_s14 + $0x84] sm:$0xff]  ;;  %v8885_v45 = vld [vmem:[%s11131_s14 + $0x8c] sm:$0xff] }
  0xee   : > { %1284 = vrot.lane.b32.xlu0 %v1214_v55, %s11004_s30  ;;  %v1230_v55 = vpack.c.bf16 %v8850_v50, %v8849_v49  ;;  %v8882_v49 = vld [vmem:[%s11131_s14 + $0x74] sm:$0xff]  ;;  %v8883_v50 = vld [vmem:[%s11131_s14 + $0x7c] sm:$0xff] }
  0xef   : > { %v785_v23 = vpop.permute.xlu1 %784 }
  0xf0   : > { %866 = vst.msk [vmem:[#allocation2 + $0x78] sm:$0xff] %vm850_vm2, %v785_v23  ;;  %v783_v28 = vpop.permute.xlu0 %782 }
  0xf1   : > { %865 = vst.msk [vmem:[#allocation2 + $0x70] sm:$0xff] %vm850_vm2, %v783_v28  ;;  %1290 = vrot.lane.b32.xlu1 %v1217_v11, %s11004_s30  ;;  %v1233_v11 = vpack.c.bf16 %v8856_v57, %v8855_v56  ;;  %v8888_v56 = vld [vmem:[%s11131_s14 + $0xa4] sm:$0xff]  ;;  %v8889_v57 = vld [vmem:[%s11131_s14 + $0xac] sm:$0xff] }
  0xf2   : > { %1288 = vrot.lane.b32.xlu0 %v1216_v10, %s11004_s30  ;;  %v1232_v10 = vpack.c.bf16 %v8854_v63, %v8853_v61  ;;  %v8886_v61 = vld [vmem:[%s11131_s14 + $0x94] sm:$0xff]  ;;  %v8887_v63 = vld [vmem:[%s11131_s14 + $0x9c] sm:$0xff] }
  0xf3   : > { %v789_v47 = vpop.permute.xlu1 %788 }
  0xf4   : > { %868 = vst.msk [vmem:[#allocation2 + $0x88] sm:$0xff] %vm850_vm2, %v789_v47  ;;  %v787_v52 = vpop.permute.xlu0 %786 }
  0xf5   : > { %867 = vst.msk [vmem:[#allocation2 + $0x80] sm:$0xff] %vm850_vm2, %v787_v52  ;;  %1294 = vrot.lane.b32.xlu1 %v1219_v35, %s11004_s30  ;;  %v1235_v35 = vpack.c.bf16 %v8860_v16, %v8859_v17  ;;  %v8892_v17 = vld [vmem:[%s11131_s14 + $0xc4] sm:$0xff]  ;;  %v8893_v16 = vld [vmem:[%s11131_s14 + $0xcc] sm:$0xff] }
  0xf6   : > { %1292 = vrot.lane.b32.xlu0 %v1218_v34, %s11004_s30  ;;  %v1234_v34 = vpack.c.bf16 %v8858_v29, %v8857_v22  ;;  %v8890_v22 = vld [vmem:[%s11131_s14 + $0xb4] sm:$0xff]  ;;  %v8891_v29 = vld [vmem:[%s11131_s14 + $0xbc] sm:$0xff] }
  0xf7   : > { %v793_v2 = vpop.permute.xlu1 %792 }
  0xf8   : > { %870 = vst.msk [vmem:[#allocation2 + $0x98] sm:$0xff] %vm850_vm2, %v793_v2  ;;  %v791_v5 = vpop.permute.xlu0 %790 }
  0xf9   : > { %869 = vst.msk [vmem:[#allocation2 + $0x90] sm:$0xff] %vm850_vm2, %v791_v5  ;;  %1298 = vrot.lane.b32.xlu1 %v1221_v59, %s11004_s30  ;;  %v1237_v59 = vpack.c.bf16 %v8864_v40, %v8863_v41  ;;  %v8896_v41 = vld [vmem:[%s11131_s14 + $0xe4] sm:$0xff]  ;;  %v8897_v40 = vld [vmem:[%s11131_s14 + $0xec] sm:$0xff] }
  0xfa   : > { %1296 = vrot.lane.b32.xlu0 %v1220_v58, %s11004_s30  ;;  %v1236_v58 = vpack.c.bf16 %v8862_v53, %v8861_v46  ;;  %v8894_v46 = vld [vmem:[%s11131_s14 + $0xd4] sm:$0xff]  ;;  %v8895_v53 = vld [vmem:[%s11131_s14 + $0xdc] sm:$0xff] }
  0xfb   : > { %v797_v12 = vpop.permute.xlu1 %796 }
  0xfc   : > { %872 = vst.msk [vmem:[#allocation2 + $0xa8] sm:$0xff] %vm850_vm2, %v797_v12  ;;  %v795_v15 = vpop.permute.xlu0 %794 }
  0xfd   : > { %871 = vst.msk [vmem:[#allocation2 + $0xa0] sm:$0xff] %vm850_vm2, %v795_v15  ;;  %1302 = vrot.lane.b32.xlu1 %v1223_v6, %s11004_s30  ;;  %v1239_v6 = vpack.c.bf16 %v8868_v1, %v8867_v0  ;;  %v8900_v0 = vld [vmem:[%s11131_s14 + $0x104] sm:$0xff]  ;;  %v8901_v1 = vld [vmem:[%s11131_s14 + $0x10c] sm:$0xff] }
  0xfe   : > { %1300 = vrot.lane.b32.xlu0 %v1222_v7, %s11004_s30  ;;  %v1238_v7 = vpack.c.bf16 %v8866_v4, %v8865_v3  ;;  %v8898_v3 = vld [vmem:[%s11131_s14 + $0xf4] sm:$0xff]  ;;  %v8899_v4 = vld [vmem:[%s11131_s14 + $0xfc] sm:$0xff] }
  0xff   : > { %v801_v24 = vpop.permute.xlu1 %800 }
 0x100   : > { %874 = vst.msk [vmem:[#allocation2 + $0xb8] sm:$0xff] %vm850_vm2, %v801_v24  ;;  %v799_v27 = vpop.permute.xlu0 %798 }
 0x101   : > { %873 = vst.msk [vmem:[#allocation2 + $0xb0] sm:$0xff] %vm850_vm2, %v799_v27  ;;  %1306 = vrot.lane.b32.xlu1 %v1225_v18, %s11004_s30  ;;  %v11784_v18 = vpack.c.bf16 %v8873_v9, %v8872_v8  ;;  %v8904_v8 = vld [vmem:[%s11131_s14 + $0x124] sm:$0xff]  ;;  %v8905_v9 = vld [vmem:[%s11131_s14 + $0x12c] sm:$0xff] }
 0x102   : > { %1304 = vrot.lane.b32.xlu0 %v1224_v19, %s11004_s30  ;;  %v1467_v19 = vpack.c.bf16 %v8871_v14, %v8870_v13  ;;  %v8902_v13 = vld [vmem:[%s11131_s14 + $0x114] sm:$0xff]  ;;  %v8903_v14 = vld [vmem:[%s11131_s14 + $0x11c] sm:$0xff] }
 0x103   : > { %v805_v36 = vpop.permute.xlu1 %804 }
 0x104   : > { %876 = vst.msk [vmem:[#allocation2 + $0xc8] sm:$0xff] %vm850_vm2, %v805_v36  ;;  %v803_v39 = vpop.permute.xlu0 %802 }
 0x105   : > { %875 = vst.msk [vmem:[#allocation2 + $0xc0] sm:$0xff] %vm850_vm2, %v803_v39  ;;  %1310 = vrot.lane.b32.xlu1 %v1227_v30, %s11004_s30  ;;  %v11795_v30 = vpack.c.bf16 %v8877_v21, %v8876_v20  ;;  %v11896_v20 = vpack.c.bf16 %v8903_v14, %v8902_v13  ;;  %v8908_v21 = vld [vmem:[%s11131_s14 + $0x144] sm:$0xff]  ;;  %v8927_v13 = vld [vmem:[%s11131_s14 + $0x1dc] sm:$0xff] }
 0x106   : > { %1308 = vrot.lane.b32.xlu0 %v1226_v31, %s11004_s30  ;;  %v11798_v31 = vpack.c.bf16 %v8875_v26, %v8874_v25  ;;  %v8906_v26 = vld [vmem:[%s11131_s14 + $0x134] sm:$0xff] }
 0x107   : > { %v809_v48 = vpop.permute.xlu1 %808 }
 0x108   : > { %878 = vst.msk [vmem:[#allocation2 + $0xd8] sm:$0xff] %vm850_vm2, %v809_v48  ;;  %v807_v51 = vpop.permute.xlu0 %806 }
 0x109   : > { %877 = vst.msk [vmem:[#allocation2 + $0xd0] sm:$0xff] %vm850_vm2, %v807_v51  ;;  %1314 = vrot.lane.b32.xlu1 %v1229_v42, %s11004_s30  ;;  %v11808_v42 = vpack.c.bf16 %v8881_v33, %v8880_v32 }
 0x10a   : > { %1312 = vrot.lane.b32.xlu0 %v1228_v43, %s11004_s30  ;;  %v11812_v43 = vpack.c.bf16 %v8879_v38, %v8878_v37  ;;  %v8912_v37 = vld [vmem:[%s11131_s14 + $0x164] sm:$0xff]  ;;  %v8913_v38 = vld [vmem:[%s11131_s14 + $0x16c] sm:$0xff] }
 0x10b   : > { %v813_v60 = vpop.permute.xlu1 %812 }
 0x10c   : > { %880 = vst.msk [vmem:[#allocation2 + $0xe8] sm:$0xff] %vm850_vm2, %v813_v60  ;;  %v811_v62 = vpop.permute.xlu0 %810 }
 0x10d   : > { %879 = vst.msk [vmem:[#allocation2 + $0xe0] sm:$0xff] %vm850_vm2, %v811_v62  ;;  %1318 = vrot.lane.b32.xlu1 %v1231_v54, %s11004_s30  ;;  %v11822_v54 = vpack.c.bf16 %v8885_v45, %v8884_v44  ;;  %v8910_v44 = vld [vmem:[%s11131_s14 + $0x154] sm:$0xff]  ;;  %v8911_v45 = vld [vmem:[%s11131_s14 + $0x15c] sm:$0xff] }
 0x10e   : > { %1316 = vrot.lane.b32.xlu0 %v1230_v55, %s11004_s30  ;;  %v11826_v55 = vpack.c.bf16 %v8883_v50, %v8882_v49  ;;  %v11920_v49 = vpack.c.bf16 %v8913_v38, %v8912_v37  ;;  %v11924_v50 = vpack.c.bf16 %v8911_v45, %v8910_v44 }
 0x10f   : > { %v817_v23 = vpop.permute.xlu1 %816 }
 0x110   : > { %882 = vst.msk [vmem:[#allocation2 + $0xf8] sm:$0xff] %vm850_vm2, %v817_v23  ;;  %v815_v28 = vpop.permute.xlu0 %814 }
 0x111   : > { %881 = vst.msk [vmem:[#allocation2 + $0xf0] sm:$0xff] %vm850_vm2, %v815_v28  ;;  %1322 = vrot.lane.b32.xlu1 %v1233_v11, %s11004_s30  ;;  %v11836_v11 = vpack.c.bf16 %v8889_v57, %v8888_v56  ;;  %v8917_v56 = vld [vmem:[%s11131_s14 + $0x18c] sm:$0xff]  ;;  %vm4994_vm2 = vcmask 622144  }
 0x112   : > { %1320 = vrot.lane.b32.xlu0 %v1232_v10, %s11004_s30  ;;  %v11840_v10 = vpack.c.bf16 %v8887_v63, %v8886_v61  ;;  %v8915_v61 = vld [vmem:[%s11131_s14 + $0x17c] sm:$0xff] }
 0x113   : > { %v1016_v47 = vpop.permute.xlu1 %1015 }
 0x114   : > { %1111 = vst.msk [vmem:[#allocation2 + $0x8] sm:$0xff] %vm1109_vm3, %v1016_v47  ;;  %v1014_v52 = vpop.permute.xlu0 %1013 }
 0x115   : > { %1110 = vst.msk [vmem:[#allocation2] sm:$0xff] %vm1109_vm3, %v1014_v52  ;;  %1326 = vrot.lane.b32.xlu1 %v1235_v35, %s11004_s30  ;;  %v11850_v35 = vpack.c.bf16 %v8893_v16, %v8892_v17  ;;  %v8920_v16 = vld [vmem:[%s11131_s14 + $0x1a4] sm:$0xff] }
 0x116   : > { %1324 = vrot.lane.b32.xlu0 %v1234_v34, %s11004_s30  ;;  %v11854_v34 = vpack.c.bf16 %v8891_v29, %v8890_v22  ;;  %v8918_v29 = vld [vmem:[%s11131_s14 + $0x194] sm:$0xff] }
 0x117   : > { %v1020_v2 = vpop.permute.xlu1 %1019 }
 0x118   : > { %1113 = vst.msk [vmem:[#allocation2 + $0x18] sm:$0xff] %vm1109_vm3, %v1020_v2  ;;  %v1018_v5 = vpop.permute.xlu0 %1017 }
 0x119   : > { %1112 = vst.msk [vmem:[#allocation2 + $0x10] sm:$0xff] %vm1109_vm3, %v1018_v5  ;;  %1330 = vrot.lane.b32.xlu1 %v1237_v59, %s11004_s30  ;;  %v11864_v59 = vpack.c.bf16 %v8897_v40, %v8896_v41 }
 0x11a   : > { %1328 = vrot.lane.b32.xlu0 %v1236_v58, %s11004_s30  ;;  %v11868_v58 = vpack.c.bf16 %v8895_v53, %v8894_v46  ;;  %v8924_v46 = vld [vmem:[%s11131_s14 + $0x1c4] sm:$0xff]  ;;  %v8925_v53 = vld [vmem:[%s11131_s14 + $0x1cc] sm:$0xff] }
 0x11b   : > { %v1024_v12 = vpop.permute.xlu1 %1023 }
 0x11c   : > { %1115 = vst.msk [vmem:[#allocation2 + $0x28] sm:$0xff] %vm1109_vm3, %v1024_v12  ;;  %v1022_v15 = vpop.permute.xlu0 %1021 }
 0x11d   : > { %1114 = vst.msk [vmem:[#allocation2 + $0x20] sm:$0xff] %vm1109_vm3, %v1022_v15  ;;  %1334 = vrot.lane.b32.xlu1 %v1239_v6, %s11004_s30  ;;  %v11878_v6 = vpack.c.bf16 %v8901_v1, %v8900_v0  ;;  %v8922_v0 = vld [vmem:[%s11131_s14 + $0x1b4] sm:$0xff]  ;;  %v8923_v1 = vld [vmem:[%s11131_s14 + $0x1bc] sm:$0xff] }
 0x11e   : > { %1332 = vrot.lane.b32.xlu0 %v1238_v7, %s11004_s30  ;;  %v11882_v7 = vpack.c.bf16 %v8899_v4, %v8898_v3  ;;  %v11962_v3 = vpack.c.bf16 %v8925_v53, %v8924_v46  ;;  %v11966_v4 = vpack.c.bf16 %v8923_v1, %v8922_v0  ;;  %v9006_v0 = vld [vmem:[%s11131_s14 + $0x55] sm:$0xff]  ;;  %v9007_v1 = vld [vmem:[%s11131_s14 + $0x5d] sm:$0xff]  ;;  %s11015_s30 = smov 60  }
 0x11f   : > { %v1028_v24 = vpop.permute.xlu1 %1027 }
 0x120   : > { %1117 = vst.msk [vmem:[#allocation2 + $0x38] sm:$0xff] %vm1109_vm3, %v1028_v24  ;;  %v1026_v27 = vpop.permute.xlu0 %1025  ;;  %v8909_v24 = vld [vmem:[%s11131_s14 + $0x14c] sm:$0xff] }
 0x121   : > { %1116 = vst.msk [vmem:[#allocation2 + $0x30] sm:$0xff] %vm1109_vm3, %v1026_v27  ;;  %1533 = vrot.lane.b32.xlu1 %v11784_v18, %s11005_s5  ;;  %v8907_v27 = vld [vmem:[%s11131_s14 + $0x13c] sm:$0xff]  ;;  %v11906_v33 = vpack.c.bf16 %v8909_v24, %v8908_v21  ;;  %v8932_v24 = vld [vmem:[%s11131_s14 + $0x204] sm:$0xff] }
 0x122   : > { %1531 = vrot.lane.b32.xlu0 %v1467_v19, %s11005_s5  ;;  %v11892_v19 = vpack.c.bf16 %v8905_v9, %v8904_v8  ;;  %v8929_v8 = vld [vmem:[%s11131_s14 + $0x1ec] sm:$0xff] }
 0x123   : > { %v1032_v36 = vpop.permute.xlu1 %1031 }
 0x124   : > { %1119 = vst.msk [vmem:[#allocation2 + $0x48] sm:$0xff] %vm1109_vm3, %v1032_v36  ;;  %v1030_v39 = vpop.permute.xlu0 %1029  ;;  %v11910_v36 = vpack.c.bf16 %v8907_v27, %v8906_v26  ;;  %v8930_v27 = vld [vmem:[%s11131_s14 + $0x1f4] sm:$0xff] }
 0x125   : > { %1118 = vst.msk [vmem:[#allocation2 + $0x40] sm:$0xff] %vm1109_vm3, %v1030_v39  ;;  %1537 = vrot.lane.b32.xlu1 %v11795_v30, %s11005_s5 }
 0x126   : > { %1535 = vrot.lane.b32.xlu0 %v11798_v31, %s11005_s5 }
 0x127   : > { %v1036_v48 = vpop.permute.xlu1 %1035 }
 0x128   : > { %1121 = vst.msk [vmem:[#allocation2 + $0x58] sm:$0xff] %vm1109_vm3, %v1036_v48  ;;  %v1034_v51 = vpop.permute.xlu0 %1033 }
 0x129   : > { %1120 = vst.msk [vmem:[#allocation2 + $0x50] sm:$0xff] %vm1109_vm3, %v1034_v51  ;;  %1541 = vrot.lane.b32.xlu1 %v11808_v42, %s11005_s5  ;;  %v8916_v51 = vld [vmem:[%s11131_s14 + $0x184] sm:$0xff] }
 0x12a   : > { %1539 = vrot.lane.b32.xlu0 %v11812_v43, %s11005_s5 }
 0x12b   : > { %v1040_v60 = vpop.permute.xlu1 %1039 }
 0x12c   : > { %1123 = vst.msk [vmem:[#allocation2 + $0x68] sm:$0xff] %vm1109_vm3, %v1040_v60  ;;  %v1038_v62 = vpop.permute.xlu0 %1037  ;;  %v8914_v60 = vld [vmem:[%s11131_s14 + $0x174] sm:$0xff] }
 0x12d   : > { %1122 = vst.msk [vmem:[#allocation2 + $0x60] sm:$0xff] %vm1109_vm3, %v1038_v62  ;;  %1545 = vrot.lane.b32.xlu1 %v11822_v54, %s11005_s5  ;;  %v11934_v62 = vpack.c.bf16 %v8917_v56, %v8916_v51  ;;  %v11938_v17 = vpack.c.bf16 %v8915_v61, %v8914_v60 }
 0x12e   : > { %1543 = vrot.lane.b32.xlu0 %v11826_v55, %s11005_s5 }
 0x12f   : > { %v1044_v23 = vpop.permute.xlu1 %1043 }
 0x130   : > { %1125 = vst.msk [vmem:[#allocation2 + $0x78] sm:$0xff] %vm1109_vm3, %v1044_v23  ;;  %v1042_v28 = vpop.permute.xlu0 %1041  ;;  %v8921_v23 = vld [vmem:[%s11131_s14 + $0x1ac] sm:$0xff] }
 0x131   : > { %1124 = vst.msk [vmem:[#allocation2 + $0x70] sm:$0xff] %vm1109_vm3, %v1042_v28  ;;  %1549 = vrot.lane.b32.xlu1 %v11836_v11, %s11005_s5  ;;  %v8919_v28 = vld [vmem:[%s11131_s14 + $0x19c] sm:$0xff]  ;;  %v11948_v40 = vpack.c.bf16 %v8921_v23, %v8920_v16 }
 0x132   : > { %1547 = vrot.lane.b32.xlu0 %v11840_v10, %s11005_s5 }
 0x133   : > { %v1048_v47 = vpop.permute.xlu1 %1047 }
 0x134   : > { %1127 = vst.msk [vmem:[#allocation2 + $0x88] sm:$0xff] %vm1109_vm3, %v1048_v47  ;;  %v1046_v52 = vpop.permute.xlu0 %1045  ;;  %v11952_v47 = vpack.c.bf16 %v8919_v28, %v8918_v29  ;;  %v9002_v29 = vld [vmem:[%s11131_s14 + $0x35] sm:$0xff]  ;;  %v9003_v28 = vld [vmem:[%s11131_s14 + $0x3d] sm:$0xff] }
 0x135   : > { %1126 = vst.msk [vmem:[#allocation2 + $0x80] sm:$0xff] %vm1109_vm3, %v1046_v52  ;;  %1553 = vrot.lane.b32.xlu1 %v11850_v35, %s11005_s5  ;;  %v1986_v53 = vpack.c.bf16 %v9003_v28, %v9002_v29  ;;  %v9034_v28 = vld [vmem:[%s11131_s14 + $0x135] sm:$0xff] }
 0x136   : > { %1551 = vrot.lane.b32.xlu0 %v11854_v34, %s11005_s5 }
 0x137   : > { %v1052_v2 = vpop.permute.xlu1 %1051 }
 0x138   : > { %1129 = vst.msk [vmem:[#allocation2 + $0x98] sm:$0xff] %vm1109_vm3, %v1052_v2  ;;  %v1050_v5 = vpop.permute.xlu0 %1049 }
 0x139   : > { %1128 = vst.msk [vmem:[#allocation2 + $0x90] sm:$0xff] %vm1109_vm3, %v1050_v5  ;;  %1557 = vrot.lane.b32.xlu1 %v11864_v59, %s11005_s5  ;;  %v8928_v5 = vld [vmem:[%s11131_s14 + $0x1e4] sm:$0xff] }
 0x13a   : > { %1555 = vrot.lane.b32.xlu0 %v11868_v58, %s11005_s5 }
 0x13b   : > { %v1056_v12 = vpop.permute.xlu1 %1055 }
 0x13c   : > { %1131 = vst.msk [vmem:[#allocation2 + $0xa8] sm:$0xff] %vm1109_vm3, %v1056_v12  ;;  %v1054_v15 = vpop.permute.xlu0 %1053  ;;  %v8926_v12 = vld [vmem:[%s11131_s14 + $0x1d4] sm:$0xff] }
 0x13d   : > { %1130 = vst.msk [vmem:[#allocation2 + $0xa0] sm:$0xff] %vm1109_vm3, %v1054_v15  ;;  %1561 = vrot.lane.b32.xlu1 %v11878_v6, %s11005_s5  ;;  %v11976_v15 = vpack.c.bf16 %v8929_v8, %v8928_v5  ;;  %v11980_v21 = vpack.c.bf16 %v8927_v13, %v8926_v12  ;;  %v1988_v8 = vpack.c.bf16 %v9007_v1, %v9006_v0  ;;  %v9010_v12 = vld [vmem:[%s11131_s14 + $0x75] sm:$0xff]  ;;  %v9011_v13 = vld [vmem:[%s11131_s14 + $0x7d] sm:$0xff] }
 0x13e   : > { %1559 = vrot.lane.b32.xlu0 %v11882_v7, %s11005_s5  ;;  %v9038_v1 = vld [vmem:[%s11131_s14 + $0x155] sm:$0xff] }
 0x13f   : > { %v1060_v25 = vpop.permute.xlu1 %1059 }
 0x140   : > { %1133 = vst.msk [vmem:[#allocation2 + $0xb8] sm:$0xff] %vm1109_vm3, %v1060_v25  ;;  %v1058_v32 = vpop.permute.xlu0 %1057  ;;  %v8933_v25 = vld [vmem:[%s11131_s14 + $0x20c] sm:$0xff] }
 0x141   : > { %1132 = vst.msk [vmem:[#allocation2 + $0xb0] sm:$0xff] %vm1109_vm3, %v1058_v32  ;;  %1565 = vrot.lane.b32.xlu1 %v11892_v19, %s11005_s5  ;;  %v8931_v32 = vld [vmem:[%s11131_s14 + $0x1fc] sm:$0xff]  ;;  %v11990_v38 = vpack.c.bf16 %v8933_v25, %v8932_v24  ;;  %v1990_v25 = vpack.c.bf16 %v9011_v13, %v9010_v12 }
 0x142   : > { %1563 = vrot.lane.b32.xlu0 %v11896_v20, %s11005_s5  ;;  %v9042_v13 = vld [vmem:[%s11131_s14 + $0x175] sm:$0xff] }
 0x143   : > { %v1064_v39 = vpop.permute.xlu1 %1063 }
 0x144   : > { %1135 = vst.msk [vmem:[#allocation2 + $0xc8] sm:$0xff] %vm1109_vm3, %v1064_v39  ;;  %v1062_v48 = vpop.permute.xlu0 %1061  ;;  %v11994_v39 = vpack.c.bf16 %v8931_v32, %v8930_v27  ;;  %v9014_v27 = vld [vmem:[%s11131_s14 + $0x95] sm:$0xff]  ;;  %v9015_v32 = vld [vmem:[%s11131_s14 + $0x9d] sm:$0xff] }
 0x145   : > { %1134 = vst.msk [vmem:[#allocation2 + $0xc0] sm:$0xff] %vm1109_vm3, %v1062_v48  ;;  %1569 = vrot.lane.b32.xlu1 %v11906_v33, %s11005_s5 }
 0x146   : > { %1567 = vrot.lane.b32.xlu0 %v11910_v36, %s11005_s5 }
 0x147   : > { %v1068_v57 = vpop.permute.xlu1 %1067 }
 0x148   : > { %1137 = vst.msk [vmem:[#allocation2 + $0xd8] sm:$0xff] %vm1109_vm3, %v1068_v57  ;;  %v1066_v63 = vpop.permute.xlu0 %1065 }
 0x149   : > { %1136 = vst.msk [vmem:[#allocation2 + $0xd0] sm:$0xff] %vm1109_vm3, %v1066_v63  ;;  %1573 = vrot.lane.b32.xlu1 %v11920_v49, %s11005_s5 }
 0x14a   : > { %1571 = vrot.lane.b32.xlu0 %v11924_v50, %s11005_s5 }
 0x14b   : > { %v1072_v22 = vpop.permute.xlu1 %1071 }
 0x14c   : > { %1139 = vst.msk [vmem:[#allocation2 + $0xe8] sm:$0xff] %vm1109_vm3, %v1072_v22  ;;  %v1070_v41 = vpop.permute.xlu0 %1069 }
 0x14d   : > { %1138 = vst.msk [vmem:[#allocation2 + $0xe0] sm:$0xff] %vm1109_vm3, %v1070_v41  ;;  %1577 = vrot.lane.b32.xlu1 %v11934_v62, %s11005_s5 }
 0x14e   : > { %1575 = vrot.lane.b32.xlu0 %v11938_v17, %s11005_s5 }
 0x14f   : > { %v1076_v52 = vpop.permute.xlu1 %1075 }
 0x150   : > { %1141 = vst.msk [vmem:[#allocation2 + $0xf8] sm:$0xff] %vm1109_vm3, %v1076_v52  ;;  %v1074_v2 = vpop.permute.xlu0 %1073 }
 0x151   : > { %1140 = vst.msk [vmem:[#allocation2 + $0xf0] sm:$0xff] %vm1109_vm3, %v1074_v2  ;;  %1581 = vrot.lane.b32.xlu1 %v11948_v40, %s11005_s5  ;;  %vm5253_vm3 = vcmask 654944  }
 0x152   : > { %1579 = vrot.lane.b32.xlu0 %v11952_v47, %s11005_s5 }
 0x153   : > { %v1275_v9 = vpop.permute.xlu1 %1274 }
 0x154   : > { %1370 = vst.msk [vmem:[#allocation2 + $0x8] sm:$0xff] %vm1368_vm4, %v1275_v9  ;;  %v1273_v14 = vpop.permute.xlu0 %1272 }
 0x155   : > { %1369 = vst.msk [vmem:[#allocation2] sm:$0xff] %vm1368_vm4, %v1273_v14  ;;  %1585 = vrot.lane.b32.xlu1 %v11962_v3, %s11005_s5 }
 0x156   : > { %1583 = vrot.lane.b32.xlu0 %v11966_v4, %s11005_s5 }
 0x157   : > { %v1279_v26 = vpop.permute.xlu1 %1278 }
 0x158   : > { %1372 = vst.msk [vmem:[#allocation2 + $0x18] sm:$0xff] %vm1368_vm4, %v1279_v26  ;;  %v1277_v37 = vpop.permute.xlu0 %1276 }
 0x159   : > { %1371 = vst.msk [vmem:[#allocation2 + $0x10] sm:$0xff] %vm1368_vm4, %v1277_v37  ;;  %1589 = vrot.lane.b32.xlu1 %v11976_v15, %s11005_s5 }
 0x15a   : > { %1587 = vrot.lane.b32.xlu0 %v11980_v21, %s11005_s5 }
 0x15b   : > { %v1283_v44 = vpop.permute.xlu1 %1282 }
 0x15c   : > { %1374 = vst.msk [vmem:[#allocation2 + $0x28] sm:$0xff] %vm1368_vm4, %v1283_v44  ;;  %v1281_v45 = vpop.permute.xlu0 %1280 }
 0x15d   : > { %1373 = vst.msk [vmem:[#allocation2 + $0x20] sm:$0xff] %vm1368_vm4, %v1281_v45  ;;  %1593 = vrot.lane.b32.xlu1 %v11990_v38, %s11005_s5  ;;  %v1992_v45 = vpack.c.bf16 %v9015_v32, %v9014_v27  ;;  %v9046_v32 = vld [vmem:[%s11131_s14 + $0x195] sm:$0xff] }
 0x15e   : > { %1591 = vrot.lane.b32.xlu0 %v11994_v39, %s11005_s5  ;;  %s11016_s5 = smov 64  }
 0x15f   : > { %v1287_v48 = vpop.permute.xlu1 %1286 }
 0x160   : > { %1376 = vst.msk [vmem:[#allocation2 + $0x38] sm:$0xff] %vm1368_vm4, %v1287_v48  ;;  %v1285_v51 = vpop.permute.xlu0 %1284 }
 0x161   : > { %1375 = vst.msk [vmem:[#allocation2 + $0x30] sm:$0xff] %vm1368_vm4, %v1285_v51  ;;  %1792 = vrot.lane.b32.xlu1 %v11798_v31, %s11006_s6  ;;  %v9018_v51 = vld [vmem:[%s11131_s14 + $0xb5] sm:$0xff] }
 0x162   : > { %1790 = vrot.lane.b32.xlu0 %v11784_v18, %s11006_s6 }
 0x163   : > { %v1291_v56 = vpop.permute.xlu1 %1290 }
 0x164   : > { %1378 = vst.msk [vmem:[#allocation2 + $0x48] sm:$0xff] %vm1368_vm4, %v1291_v56  ;;  %v1289_v57 = vpop.permute.xlu0 %1288  ;;  %v9019_v56 = vld [vmem:[%s11131_s14 + $0xbd] sm:$0xff] }
 0x165   : > { %1377 = vst.msk [vmem:[#allocation2 + $0x40] sm:$0xff] %vm1368_vm4, %v1289_v57  ;;  %1796 = vrot.lane.b32.xlu1 %v11812_v43, %s11006_s6 }
 0x166   : > { %1794 = vrot.lane.b32.xlu0 %v11795_v30, %s11006_s6 }
 0x167   : > { %v1295_v60 = vpop.permute.xlu1 %1294 }
 0x168   : > { %1380 = vst.msk [vmem:[#allocation2 + $0x58] sm:$0xff] %vm1368_vm4, %v1295_v60  ;;  %v1293_v61 = vpop.permute.xlu0 %1292  ;;  %v9016_v60 = vld [vmem:[%s11131_s14 + $0xa5] sm:$0xff] }
 0x169   : > { %1379 = vst.msk [vmem:[#allocation2 + $0x50] sm:$0xff] %vm1368_vm4, %v1293_v61  ;;  %1800 = vrot.lane.b32.xlu1 %v11826_v55, %s11006_s6  ;;  %v9017_v61 = vld [vmem:[%s11131_s14 + $0xad] sm:$0xff] }
 0x16a   : > { %1798 = vrot.lane.b32.xlu0 %v11808_v42, %s11006_s6 }
 0x16b   : > { %v1299_v18 = vpop.permute.xlu1 %1298 }
 0x16c   : > { %1382 = vst.msk [vmem:[#allocation2 + $0x68] sm:$0xff] %vm1368_vm4, %v1299_v18  ;;  %v1297_v31 = vpop.permute.xlu0 %1296 }
 0x16d   : > { %1381 = vst.msk [vmem:[#allocation2 + $0x60] sm:$0xff] %vm1368_vm4, %v1297_v31  ;;  %1804 = vrot.lane.b32.xlu1 %v11840_v10, %s11006_s6  ;;  %v1994_v31 = vpack.c.bf16 %v9019_v56, %v9018_v51  ;;  %v9050_v56 = vld [vmem:[%s11131_s14 + $0x1b5] sm:$0xff] }
 0x16e   : > { %1802 = vrot.lane.b32.xlu0 %v11822_v54, %s11006_s6 }
 0x16f   : > { %v1303_v30 = vpop.permute.xlu1 %1302 }
 0x170   : > { %1384 = vst.msk [vmem:[#allocation2 + $0x78] sm:$0xff] %vm1368_vm4, %v1303_v30  ;;  %v1301_v43 = vpop.permute.xlu0 %1300  ;;  %v1993_v30 = vpack.c.bf16 %v9017_v61, %v9016_v60  ;;  %v9048_v61 = vld [vmem:[%s11131_s14 + $0x1a5] sm:$0xff] }
 0x171   : > { %1383 = vst.msk [vmem:[#allocation2 + $0x70] sm:$0xff] %vm1368_vm4, %v1301_v43  ;;  %1808 = vrot.lane.b32.xlu1 %v11854_v34, %s11006_s6  ;;  %v9022_v43 = vld [vmem:[%s11131_s14 + $0xd5] sm:$0xff] }
 0x172   : > { %1806 = vrot.lane.b32.xlu0 %v11836_v11, %s11006_s6 }
 0x173   : > { %v1307_v42 = vpop.permute.xlu1 %1306 }
 0x174   : > { %1386 = vst.msk [vmem:[#allocation2 + $0x88] sm:$0xff] %vm1368_vm4, %v1307_v42  ;;  %v1305_v55 = vpop.permute.xlu0 %1304  ;;  %v9023_v42 = vld [vmem:[%s11131_s14 + $0xdd] sm:$0xff] }
 0x175   : > { %1385 = vst.msk [vmem:[#allocation2 + $0x80] sm:$0xff] %vm1368_vm4, %v1305_v55  ;;  %1812 = vrot.lane.b32.xlu1 %v11868_v58, %s11006_s6 }
 0x176   : > { %1810 = vrot.lane.b32.xlu0 %v11850_v35, %s11006_s6 }
 0x177   : > { %v1311_v54 = vpop.permute.xlu1 %1310 }
 0x178   : > { %1388 = vst.msk [vmem:[#allocation2 + $0x98] sm:$0xff] %vm1368_vm4, %v1311_v54  ;;  %v1309_v10 = vpop.permute.xlu0 %1308  ;;  %v9020_v54 = vld [vmem:[%s11131_s14 + $0xc5] sm:$0xff] }
 0x179   : > { %1387 = vst.msk [vmem:[#allocation2 + $0x90] sm:$0xff] %vm1368_vm4, %v1309_v10  ;;  %1816 = vrot.lane.b32.xlu1 %v11882_v7, %s11006_s6  ;;  %v9021_v10 = vld [vmem:[%s11131_s14 + $0xcd] sm:$0xff] }
 0x17a   : > { %1814 = vrot.lane.b32.xlu0 %v11864_v59, %s11006_s6 }
 0x17b   : > { %v1315_v11 = vpop.permute.xlu1 %1314 }
 0x17c   : > { %1390 = vst.msk [vmem:[#allocation2 + $0xa8] sm:$0xff] %vm1368_vm4, %v1315_v11  ;;  %v1313_v34 = vpop.permute.xlu0 %1312 }
 0x17d   : > { %1389 = vst.msk [vmem:[#allocation2 + $0xa0] sm:$0xff] %vm1368_vm4, %v1313_v34  ;;  %1820 = vrot.lane.b32.xlu1 %v11896_v20, %s11006_s6  ;;  %v1996_v34 = vpack.c.bf16 %v9023_v42, %v9022_v43  ;;  %v9054_v42 = vld [vmem:[%s11131_s14 + $0x1d5] sm:$0xff] }
 0x17e   : > { %1818 = vrot.lane.b32.xlu0 %v11878_v6, %s11006_s6 }
 0x17f   : > { %v1319_v35 = vpop.permute.xlu1 %1318 }
 0x180   : > { %1392 = vst.msk [vmem:[#allocation2 + $0xb8] sm:$0xff] %vm1368_vm4, %v1319_v35  ;;  %v1317_v58 = vpop.permute.xlu0 %1316  ;;  %v1995_v35 = vpack.c.bf16 %v9021_v10, %v9020_v54  ;;  %v9052_v10 = vld [vmem:[%s11131_s14 + $0x1c5] sm:$0xff] }
 0x181   : > { %1391 = vst.msk [vmem:[#allocation2 + $0xb0] sm:$0xff] %vm1368_vm4, %v1317_v58  ;;  %1824 = vrot.lane.b32.xlu1 %v11910_v36, %s11006_s6  ;;  %v9026_v58 = vld [vmem:[%s11131_s14 + $0xf5] sm:$0xff] }
 0x182   : > { %1822 = vrot.lane.b32.xlu0 %v11892_v19, %s11006_s6 }
 0x183   : > { %v1323_v59 = vpop.permute.xlu1 %1322 }
 0x184   : > { %1394 = vst.msk [vmem:[#allocation2 + $0xc8] sm:$0xff] %vm1368_vm4, %v1323_v59  ;;  %v1321_v7 = vpop.permute.xlu0 %1320  ;;  %v9027_v59 = vld [vmem:[%s11131_s14 + $0xfd] sm:$0xff] }
 0x185   : > { %1393 = vst.msk [vmem:[#allocation2 + $0xc0] sm:$0xff] %vm1368_vm4, %v1321_v7  ;;  %1828 = vrot.lane.b32.xlu1 %v11924_v50, %s11006_s6 }
 0x186   : > { %1826 = vrot.lane.b32.xlu0 %v11906_v33, %s11006_s6 }
 0x187   : > { %v1327_v6 = vpop.permute.xlu1 %1326 }
 0x188   : > { %1396 = vst.msk [vmem:[#allocation2 + $0xd8] sm:$0xff] %vm1368_vm4, %v1327_v6  ;;  %v1325_v20 = vpop.permute.xlu0 %1324  ;;  %v9024_v6 = vld [vmem:[%s11131_s14 + $0xe5] sm:$0xff] }
 0x189   : > { %1395 = vst.msk [vmem:[#allocation2 + $0xd0] sm:$0xff] %vm1368_vm4, %v1325_v20  ;;  %1832 = vrot.lane.b32.xlu1 %v11938_v17, %s11006_s6  ;;  %v8998_v17 = vld [vmem:[%s11131_s14 + $0x21c] sm:$0xff]  ;;  %v9025_v20 = vld [vmem:[%s11131_s14 + $0xed] sm:$0xff] }
 0x18a   : > { %1830 = vrot.lane.b32.xlu0 %v11920_v49, %s11006_s6 }
 0x18b   : > { %v1331_v19 = vpop.permute.xlu1 %1330 }
 0x18c   : > { %1398 = vst.msk [vmem:[#allocation2 + $0xe8] sm:$0xff] %vm1368_vm4, %v1331_v19  ;;  %v1329_v36 = vpop.permute.xlu0 %1328 }
 0x18d   : > { %1397 = vst.msk [vmem:[#allocation2 + $0xe0] sm:$0xff] %vm1368_vm4, %v1329_v36  ;;  %1836 = vrot.lane.b32.xlu1 %v11952_v47, %s11006_s6  ;;  %v9001_v47 = vld [vmem:[%s11131_s14 + $0x2d] sm:$0xff]  ;;  %v1998_v36 = vpack.c.bf16 %v9027_v59, %v9026_v58  ;;  %v9058_v59 = vld [vmem:[%s11131_s14 + $0x1f5] sm:$0xff] }
 0x18e   : > { %1834 = vrot.lane.b32.xlu0 %v11934_v62, %s11006_s6  ;;  %v8997_v62 = vld [vmem:[%s11131_s14 + $0x214] sm:$0xff] }
 0x18f   : > { %v1335_v33 = vpop.permute.xlu1 %1334  ;;  %v12092_v22 = vpack.c.bf16 %v8998_v17, %v8997_v62  ;;  %v9028_v62 = vld [vmem:[%s11131_s14 + $0x105] sm:$0xff]  ;;  %v9029_v17 = vld [vmem:[%s11131_s14 + $0x10d] sm:$0xff] }
 0x190   : > { %1400 = vst.msk [vmem:[#allocation2 + $0xf8] sm:$0xff] %vm1368_vm4, %v1335_v33  ;;  %v1333_v50 = vpop.permute.xlu0 %1332  ;;  %v1997_v33 = vpack.c.bf16 %v9025_v20, %v9024_v6  ;;  %v1999_v29 = vpack.c.bf16 %v9029_v17, %v9028_v62  ;;  %v9056_v20 = vld [vmem:[%s11131_s14 + $0x1e5] sm:$0xff] }
 0x191   : > { %1399 = vst.msk [vmem:[#allocation2 + $0xf0] sm:$0xff] %vm1368_vm4, %v1333_v50  ;;  %1840 = vrot.lane.b32.xlu1 %v11966_v4, %s11006_s6  ;;  %v9005_v4 = vld [vmem:[%s11131_s14 + $0x4d] sm:$0xff]  ;;  %v9030_v50 = vld [vmem:[%s11131_s14 + $0x115] sm:$0xff]  ;;  %v9060_v17 = vld [vmem:[%s11131_s14 + $0x205] sm:$0xff]  ;;  %vm5512_vm4 = vcmask 687744  }
 0x192   : > { %1838 = vrot.lane.b32.xlu0 %v11948_v40, %s11006_s6  ;;  %v9000_v40 = vld [vmem:[%s11131_s14 + $0x25] sm:$0xff] }
 0x193   : > { %v1534_v49 = vpop.permute.xlu1 %1533  ;;  %v1985_v52 = vpack.c.bf16 %v9001_v47, %v9000_v40  ;;  %v9032_v47 = vld [vmem:[%s11131_s14 + $0x125] sm:$0xff] }
 0x194   : > { %1629 = vst.msk [vmem:[#allocation2 + $0x8] sm:$0xff] %vm1627_vm5, %v1534_v49  ;;  %v1532_v63 = vpop.permute.xlu0 %1531  ;;  %v9031_v49 = vld [vmem:[%s11131_s14 + $0x11d] sm:$0xff] }
 0x195   : > { %1628 = vst.msk [vmem:[#allocation2] sm:$0xff] %vm1627_vm5, %v1532_v63  ;;  %1844 = vrot.lane.b32.xlu1 %v11980_v21, %s11006_s6  ;;  %v9009_v21 = vld [vmem:[%s11131_s14 + $0x6d] sm:$0xff] }
 0x196   : > { %1842 = vrot.lane.b32.xlu0 %v11962_v3, %s11006_s6  ;;  %v9004_v3 = vld [vmem:[%s11131_s14 + $0x45] sm:$0xff] }
 0x197   : > { %v1538_v16 = vpop.permute.xlu1 %1537  ;;  %v1987_v9 = vpack.c.bf16 %v9005_v4, %v9004_v3  ;;  %v9036_v4 = vld [vmem:[%s11131_s14 + $0x145] sm:$0xff] }
 0x198   : > { %1631 = vst.msk [vmem:[#allocation2 + $0x18] sm:$0xff] %vm1627_vm5, %v1538_v16  ;;  %v1536_v23 = vpop.permute.xlu0 %1535 }
 0x199   : > { %1630 = vst.msk [vmem:[#allocation2 + $0x10] sm:$0xff] %vm1627_vm5, %v1536_v23  ;;  %1848 = vrot.lane.b32.xlu1 %v11994_v39, %s11006_s6  ;;  %v9013_v39 = vld [vmem:[%s11131_s14 + $0x8d] sm:$0xff]  ;;  %v2000_v23 = vpack.c.bf16 %v9031_v49, %v9030_v50  ;;  %v9062_v49 = vld [vmem:[%s11131_s14 + $0x215] sm:$0xff] }
 0x19a   : > { %1846 = vrot.lane.b32.xlu0 %v11976_v15, %s11006_s6  ;;  %v9008_v15 = vld [vmem:[%s11131_s14 + $0x65] sm:$0xff] }
 0x19b   : > { %v1542_v41 = vpop.permute.xlu1 %1541  ;;  %v1989_v26 = vpack.c.bf16 %v9009_v21, %v9008_v15  ;;  %v9040_v21 = vld [vmem:[%s11131_s14 + $0x165] sm:$0xff] }
 0x19c   : > { %1633 = vst.msk [vmem:[#allocation2 + $0x28] sm:$0xff] %vm1627_vm5, %v1542_v41  ;;  %v1540_v46 = vpop.permute.xlu0 %1539  ;;  %v9035_v41 = vld [vmem:[%s11131_s14 + $0x13d] sm:$0xff] }
 0x19d   : > { %1632 = vst.msk [vmem:[#allocation2 + $0x20] sm:$0xff] %vm1627_vm5, %v1540_v46  ;;  %1852 = vrot.lane.b32.xlu1 %v12092_v22, %s11006_s6  ;;  %v9033_v46 = vld [vmem:[%s11131_s14 + $0x12d] sm:$0xff] }
 0x19e   : > { %1850 = vrot.lane.b32.xlu0 %v11990_v38, %s11006_s6  ;;  %v9012_v38 = vld [vmem:[%s11131_s14 + $0x85] sm:$0xff]  ;;  %v2001_v0 = vpack.c.bf16 %v9033_v46, %v9032_v47  ;;  %s11017_s6 = smov 68  }
 0x19f   : > { %v1546_v2 = vpop.permute.xlu1 %1545  ;;  %v1991_v48 = vpack.c.bf16 %v9013_v39, %v9012_v38  ;;  %v9044_v39 = vld [vmem:[%s11131_s14 + $0x185] sm:$0xff] }
 0x1a0   : > { %1635 = vst.msk [vmem:[#allocation2 + $0x38] sm:$0xff] %vm1627_vm5, %v1546_v2  ;;  %v1544_v5 = vpop.permute.xlu0 %1543  ;;  %v9039_v2 = vld [vmem:[%s11131_s14 + $0x15d] sm:$0xff]  ;;  %v9065_v46 = vld [vmem:[%s11131_s14 + $0x26] sm:$0xff] }
 0x1a1   : > { %1634 = vst.msk [vmem:[#allocation2 + $0x30] sm:$0xff] %vm1627_vm5, %v1544_v5  ;;  %2051 = vrot.lane.b32.xlu1 %v1986_v53, %s11007_s8  ;;  %v9037_v5 = vld [vmem:[%s11131_s14 + $0x14d] sm:$0xff] }
 0x1a2   : > { %2049 = vrot.lane.b32.xlu0 %v1985_v52, %s11007_s8  ;;  %v2002_v52 = vpack.c.bf16 %v9035_v41, %v9034_v28  ;;  %v12180_v12 = vpack.c.bf16 %v9037_v5, %v9036_v4  ;;  %v9067_v41 = vld [vmem:[%s11131_s14 + $0x36] sm:$0xff]  ;;  %v9069_v5 = vld [vmem:[%s11131_s14 + $0x46] sm:$0xff] }
 0x1a3   : > { %v1550_v14 = vpop.permute.xlu1 %1549 }
 0x1a4   : > { %1637 = vst.msk [vmem:[#allocation2 + $0x48] sm:$0xff] %vm1627_vm5, %v1550_v14  ;;  %v1548_v24 = vpop.permute.xlu0 %1547  ;;  %v9043_v14 = vld [vmem:[%s11131_s14 + $0x17d] sm:$0xff] }
 0x1a5   : > { %1636 = vst.msk [vmem:[#allocation2 + $0x40] sm:$0xff] %vm1627_vm5, %v1548_v24  ;;  %2055 = vrot.lane.b32.xlu1 %v1988_v8, %s11007_s8  ;;  %v9041_v24 = vld [vmem:[%s11131_s14 + $0x16d] sm:$0xff] }
 0x1a6   : > { %2053 = vrot.lane.b32.xlu0 %v1987_v9, %s11007_s8  ;;  %v12177_v9 = vpack.c.bf16 %v9039_v2, %v9038_v1  ;;  %v12194_v27 = vpack.c.bf16 %v9041_v24, %v9040_v21  ;;  %v9071_v2 = vld [vmem:[%s11131_s14 + $0x56] sm:$0xff]  ;;  %v9076_v24 = vld [vmem:[%s11131_s14 + $0x7e] sm:$0xff] }
 0x1a7   : > { %v1554_v37 = vpop.permute.xlu1 %1553  ;;  %v9075_v21 = vld [vmem:[%s11131_s14 + $0x76] sm:$0xff] }
 0x1a8   : > { %1639 = vst.msk [vmem:[#allocation2 + $0x58] sm:$0xff] %vm1627_vm5, %v1554_v37  ;;  %v1552_v44 = vpop.permute.xlu0 %1551  ;;  %v9047_v37 = vld [vmem:[%s11131_s14 + $0x19d] sm:$0xff] }
 0x1a9   : > { %1638 = vst.msk [vmem:[#allocation2 + $0x50] sm:$0xff] %vm1627_vm5, %v1552_v44  ;;  %2059 = vrot.lane.b32.xlu1 %v1990_v25, %s11007_s8  ;;  %v9045_v44 = vld [vmem:[%s11131_s14 + $0x18d] sm:$0xff] }
 0x1aa   : > { %2057 = vrot.lane.b32.xlu0 %v1989_v26, %s11007_s8  ;;  %v12190_v26 = vpack.c.bf16 %v9043_v14, %v9042_v13  ;;  %v12208_v51 = vpack.c.bf16 %v9045_v44, %v9044_v39  ;;  %v2249_v39 = vpack.c.bf16 %v9076_v24, %v9075_v21  ;;  %v9100_v21 = vld [vmem:[%s11131_s14 + $0x13e] sm:$0xff] }
 0x1ab   : > { %v1558_v57 = vpop.permute.xlu1 %1557 }
 0x1ac   : > { %1641 = vst.msk [vmem:[#allocation2 + $0x68] sm:$0xff] %vm1627_vm5, %v1558_v57  ;;  %v1556_v18 = vpop.permute.xlu0 %1555  ;;  %v9051_v57 = vld [vmem:[%s11131_s14 + $0x1bd] sm:$0xff] }
 0x1ad   : > { %1640 = vst.msk [vmem:[#allocation2 + $0x60] sm:$0xff] %vm1627_vm5, %v1556_v18  ;;  %2063 = vrot.lane.b32.xlu1 %v1992_v45, %s11007_s8  ;;  %v9049_v18 = vld [vmem:[%s11131_s14 + $0x1ad] sm:$0xff] }
 0x1ae   : > { %2061 = vrot.lane.b32.xlu0 %v1991_v48, %s11007_s8  ;;  %v12204_v48 = vpack.c.bf16 %v9047_v37, %v9046_v32  ;;  %v12222_v43 = vpack.c.bf16 %v9049_v18, %v9048_v61  ;;  %v9073_v32 = vld [vmem:[%s11131_s14 + $0x66] sm:$0xff]  ;;  %v9074_v37 = vld [vmem:[%s11131_s14 + $0x6e] sm:$0xff] }
 0x1af   : > { %v1562_v55 = vpop.permute.xlu1 %1561  ;;  %v2248_v44 = vpack.c.bf16 %v9074_v37, %v9073_v32  ;;  %v9078_v61 = vld [vmem:[%s11131_s14 + $0x8e] sm:$0xff] }
 0x1b0   : > { %1643 = vst.msk [vmem:[#allocation2 + $0x78] sm:$0xff] %vm1627_vm5, %v1562_v55  ;;  %v1560_v11 = vpop.permute.xlu0 %1559  ;;  %v9055_v55 = vld [vmem:[%s11131_s14 + $0x1dd] sm:$0xff]  ;;  %v9098_v32 = vld [vmem:[%s11131_s14 + $0x12e] sm:$0xff] }
 0x1b1   : > { %1642 = vst.msk [vmem:[#allocation2 + $0x70] sm:$0xff] %vm1627_vm5, %v1560_v11  ;;  %2067 = vrot.lane.b32.xlu1 %v1994_v31, %s11007_s8  ;;  %v9053_v11 = vld [vmem:[%s11131_s14 + $0x1cd] sm:$0xff] }
 0x1b2   : > { %2065 = vrot.lane.b32.xlu0 %v1993_v30, %s11007_s8  ;;  %v12218_v30 = vpack.c.bf16 %v9051_v57, %v9050_v56  ;;  %v12236_v58 = vpack.c.bf16 %v9053_v11, %v9052_v10  ;;  %v9080_v56 = vld [vmem:[%s11131_s14 + $0x9e] sm:$0xff]  ;;  %v9081_v11 = vld [vmem:[%s11131_s14 + $0xa6] sm:$0xff] }
 0x1b3   : > { %v1566_v7 = vpop.permute.xlu1 %1565 }
 0x1b4   : > { %1645 = vst.msk [vmem:[#allocation2 + $0x88] sm:$0xff] %vm1627_vm5, %v1566_v7  ;;  %v1564_v19 = vpop.permute.xlu0 %1563  ;;  %v9059_v7 = vld [vmem:[%s11131_s14 + $0x1fd] sm:$0xff] }
 0x1b5   : > { %1644 = vst.msk [vmem:[#allocation2 + $0x80] sm:$0xff] %vm1627_vm5, %v1564_v19  ;;  %2071 = vrot.lane.b32.xlu1 %v1996_v34, %s11007_s8  ;;  %v9057_v19 = vld [vmem:[%s11131_s14 + $0x1ed] sm:$0xff] }
 0x1b6   : > { %2069 = vrot.lane.b32.xlu0 %v1995_v35, %s11007_s8  ;;  %v12232_v35 = vpack.c.bf16 %v9055_v55, %v9054_v42  ;;  %v12250_v50 = vpack.c.bf16 %v9057_v19, %v9056_v20  ;;  %v9083_v55 = vld [vmem:[%s11131_s14 + $0xb6] sm:$0xff]  ;;  %v9088_v19 = vld [vmem:[%s11131_s14 + $0xde] sm:$0xff] }
 0x1b7   : > { %v1570_v63 = vpop.permute.xlu1 %1569  ;;  %v9087_v20 = vld [vmem:[%s11131_s14 + $0xd6] sm:$0xff] }
 0x1b8   : > { %1647 = vst.msk [vmem:[#allocation2 + $0x98] sm:$0xff] %vm1627_vm5, %v1570_v63  ;;  %v1568_v16 = vpop.permute.xlu0 %1567  ;;  %v9063_v63 = vld [vmem:[%s11131_s14 + $0x21d] sm:$0xff] }
 0x1b9   : > { %1646 = vst.msk [vmem:[#allocation2 + $0x90] sm:$0xff] %vm1627_vm5, %v1568_v16  ;;  %2075 = vrot.lane.b32.xlu1 %v1998_v36, %s11007_s8  ;;  %v9061_v16 = vld [vmem:[%s11131_s14 + $0x20d] sm:$0xff] }
 0x1ba   : > { %2073 = vrot.lane.b32.xlu0 %v1997_v33, %s11007_s8  ;;  %v12246_v33 = vpack.c.bf16 %v9059_v7, %v9058_v59  ;;  %v12264_v28 = vpack.c.bf16 %v9061_v16, %v9060_v17  ;;  %v2255_v17 = vpack.c.bf16 %v9088_v19, %v9087_v20  ;;  %v9112_v20 = vld [vmem:[%s11131_s14 + $0x19e] sm:$0xff] }
 0x1bb   : > { %v1574_v40 = vpop.permute.xlu1 %1573 }
 0x1bc   : > { %1649 = vst.msk [vmem:[#allocation2 + $0xa8] sm:$0xff] %vm1627_vm5, %v1574_v40  ;;  %v1572_v53 = vpop.permute.xlu0 %1571  ;;  %v9068_v40 = vld [vmem:[%s11131_s14 + $0x3e] sm:$0xff] }
 0x1bd   : > { %1648 = vst.msk [vmem:[#allocation2 + $0xa0] sm:$0xff] %vm1627_vm5, %v1572_v53  ;;  %2079 = vrot.lane.b32.xlu1 %v2000_v23, %s11007_s8  ;;  %v9066_v53 = vld [vmem:[%s11131_s14 + $0x2e] sm:$0xff] }
 0x1be   : > { %2077 = vrot.lane.b32.xlu0 %v1999_v29, %s11007_s8  ;;  %v12260_v29 = vpack.c.bf16 %v9063_v63, %v9062_v49  ;;  %v2244_v1 = vpack.c.bf16 %v9066_v53, %v9065_v46  ;;  %v9085_v49 = vld [vmem:[%s11131_s14 + $0xc6] sm:$0xff]  ;;  %v9086_v63 = vld [vmem:[%s11131_s14 + $0xce] sm:$0xff] }
 0x1bf   : > { %v1578_v3 = vpop.permute.xlu1 %1577  ;;  %v2254_v16 = vpack.c.bf16 %v9086_v63, %v9085_v49  ;;  %v9090_v46 = vld [vmem:[%s11131_s14 + $0xee] sm:$0xff] }
 0x1c0   : > { %1651 = vst.msk [vmem:[#allocation2 + $0xb8] sm:$0xff] %vm1627_vm5, %v1578_v3  ;;  %v1576_v8 = vpop.permute.xlu0 %1575  ;;  %v9072_v3 = vld [vmem:[%s11131_s14 + $0x5e] sm:$0xff]  ;;  %v9110_v49 = vld [vmem:[%s11131_s14 + $0x18e] sm:$0xff] }
 0x1c1   : > { %1650 = vst.msk [vmem:[#allocation2 + $0xb0] sm:$0xff] %vm1627_vm5, %v1576_v8  ;;  %2083 = vrot.lane.b32.xlu1 %v2002_v52, %s11007_s8  ;;  %v9070_v8 = vld [vmem:[%s11131_s14 + $0x4e] sm:$0xff]  ;;  %v2247_v14 = vpack.c.bf16 %v9072_v3, %v9071_v2  ;;  %v9096_v2 = vld [vmem:[%s11131_s14 + $0x11e] sm:$0xff] }
 0x1c2   : > { %2081 = vrot.lane.b32.xlu0 %v2001_v0, %s11007_s8  ;;  %v2245_v0 = vpack.c.bf16 %v9068_v40, %v9067_v41  ;;  %v9092_v41 = vld [vmem:[%s11131_s14 + $0xfe] sm:$0xff] }
 0x1c3   : > { %v1582_v15 = vpop.permute.xlu1 %1581 }
 0x1c4   : > { %1653 = vst.msk [vmem:[#allocation2 + $0xc8] sm:$0xff] %vm1627_vm5, %v1582_v15  ;;  %v1580_v25 = vpop.permute.xlu0 %1579  ;;  %v2246_v15 = vpack.c.bf16 %v9070_v8, %v9069_v5  ;;  %v9094_v5 = vld [vmem:[%s11131_s14 + $0x10e] sm:$0xff] }
 0x1c5   : > { %1652 = vst.msk [vmem:[#allocation2 + $0xc0] sm:$0xff] %vm1627_vm5, %v1580_v25  ;;  %2087 = vrot.lane.b32.xlu1 %v12177_v9, %s11007_s8 }
 0x1c6   : > { %2085 = vrot.lane.b32.xlu0 %v12180_v12, %s11007_s8 }
 0x1c7   : > { %v1586_v38 = vpop.permute.xlu1 %1585 }
 0x1c8   : > { %1655 = vst.msk [vmem:[#allocation2 + $0xd8] sm:$0xff] %vm1627_vm5, %v1586_v38  ;;  %v1584_v45 = vpop.permute.xlu0 %1583 }
 0x1c9   : > { %1654 = vst.msk [vmem:[#allocation2 + $0xd0] sm:$0xff] %vm1627_vm5, %v1584_v45  ;;  %2091 = vrot.lane.b32.xlu1 %v12190_v26, %s11007_s8  ;;  %v9079_v45 = vld [vmem:[%s11131_s14 + $0x96] sm:$0xff] }
 0x1ca   : > { %2089 = vrot.lane.b32.xlu0 %v12194_v27, %s11007_s8 }
 0x1cb   : > { %v1590_v60 = vpop.permute.xlu1 %1589 }
 0x1cc   : > { %1657 = vst.msk [vmem:[#allocation2 + $0xe8] sm:$0xff] %vm1627_vm5, %v1590_v60  ;;  %v1588_v31 = vpop.permute.xlu0 %1587  ;;  %v9077_v60 = vld [vmem:[%s11131_s14 + $0x86] sm:$0xff] }
 0x1cd   : > { %1656 = vst.msk [vmem:[#allocation2 + $0xe0] sm:$0xff] %vm1627_vm5, %v1588_v31  ;;  %2095 = vrot.lane.b32.xlu1 %v12204_v48, %s11007_s8  ;;  %v2251_v31 = vpack.c.bf16 %v9080_v56, %v9079_v45  ;;  %v2250_v42 = vpack.c.bf16 %v9078_v61, %v9077_v60  ;;  %v9104_v45 = vld [vmem:[%s11131_s14 + $0x15e] sm:$0xff]  ;;  %v9102_v60 = vld [vmem:[%s11131_s14 + $0x14e] sm:$0xff] }
 0x1ce   : > { %2093 = vrot.lane.b32.xlu0 %v12208_v51, %s11007_s8 }
 0x1cf   : > { %v1594_v54 = vpop.permute.xlu1 %1593 }
 0x1d0   : > { %1659 = vst.msk [vmem:[#allocation2 + $0xf8] sm:$0xff] %vm1627_vm5, %v1594_v54  ;;  %v1592_v34 = vpop.permute.xlu0 %1591  ;;  %v9084_v54 = vld [vmem:[%s11131_s14 + $0xbe] sm:$0xff] }
 0x1d1   : > { %1658 = vst.msk [vmem:[#allocation2 + $0xf0] sm:$0xff] %vm1627_vm5, %v1592_v34  ;;  %2099 = vrot.lane.b32.xlu1 %v12218_v30, %s11007_s8  ;;  %v9082_v34 = vld [vmem:[%s11131_s14 + $0xae] sm:$0xff]  ;;  %v2253_v7 = vpack.c.bf16 %v9084_v54, %v9083_v55  ;;  %v9108_v55 = vld [vmem:[%s11131_s14 + $0x17e] sm:$0xff]  ;;  %vm5771_vm5 = vcmask 720544  }
 0x1d2   : > { %2097 = vrot.lane.b32.xlu0 %v12222_v43, %s11007_s8 }
 0x1d3   : > { %v1793_v6 = vpop.permute.xlu1 %1792 }
 0x1d4   : > { %1888 = vst.msk [vmem:[#allocation2 + $0x8] sm:$0xff] %vm1886_vm6, %v1793_v6  ;;  %v1791_v36 = vpop.permute.xlu0 %1790  ;;  %v2252_v6 = vpack.c.bf16 %v9082_v34, %v9081_v11  ;;  %v9106_v11 = vld [vmem:[%s11131_s14 + $0x16e] sm:$0xff] }
 0x1d5   : > { %1887 = vst.msk [vmem:[#allocation2] sm:$0xff] %vm1886_vm6, %v1791_v36  ;;  %2103 = vrot.lane.b32.xlu1 %v12232_v35, %s11007_s8 }
 0x1d6   : > { %2101 = vrot.lane.b32.xlu0 %v12236_v58, %s11007_s8 }
 0x1d7   : > { %v1797_v62 = vpop.permute.xlu1 %1796 }
 0x1d8   : > { %1890 = vst.msk [vmem:[#allocation2 + $0x18] sm:$0xff] %vm1886_vm6, %v1797_v62  ;;  %v1795_v23 = vpop.permute.xlu0 %1794 }
 0x1d9   : > { %1889 = vst.msk [vmem:[#allocation2 + $0x10] sm:$0xff] %vm1886_vm6, %v1795_v23  ;;  %2107 = vrot.lane.b32.xlu1 %v12246_v33, %s11007_s8  ;;  %v9091_v23 = vld [vmem:[%s11131_s14 + $0xf6] sm:$0xff] }
 0x1da   : > { %2105 = vrot.lane.b32.xlu0 %v12250_v50, %s11007_s8 }
 0x1db   : > { %v1801_v47 = vpop.permute.xlu1 %1800 }
 0x1dc   : > { %1892 = vst.msk [vmem:[#allocation2 + $0x28] sm:$0xff] %vm1886_vm6, %v1801_v47  ;;  %v1799_v52 = vpop.permute.xlu0 %1798  ;;  %v9089_v47 = vld [vmem:[%s11131_s14 + $0xe6] sm:$0xff] }
 0x1dd   : > { %1891 = vst.msk [vmem:[#allocation2 + $0x20] sm:$0xff] %vm1886_vm6, %v1799_v52  ;;  %2111 = vrot.lane.b32.xlu1 %v12260_v29, %s11007_s8  ;;  %v2257_v52 = vpack.c.bf16 %v9092_v41, %v9091_v23  ;;  %v9116_v23 = vld [vmem:[%s11131_s14 + $0x1be] sm:$0xff] }
 0x1de   : > { %2109 = vrot.lane.b32.xlu0 %v12264_v28, %s11007_s8  ;;  %s11018_s8 = smov 72  }
 0x1df   : > { %v1805_v4 = vpop.permute.xlu1 %1804 }
 0x1e0   : > { %1894 = vst.msk [vmem:[#allocation2 + $0x38] sm:$0xff] %vm1886_vm6, %v1805_v4  ;;  %v1803_v13 = vpop.permute.xlu0 %1802  ;;  %v9093_v4 = vld [vmem:[%s11131_s14 + $0x106] sm:$0xff] }
 0x1e1   : > { %1893 = vst.msk [vmem:[#allocation2 + $0x30] sm:$0xff] %vm1886_vm6, %v1803_v13  ;;  %2310 = vrot.lane.b32.xlu1 %v2245_v0, %s11008_s9  ;;  %v2256_v0 = vpack.c.bf16 %v9090_v46, %v9089_v47  ;;  %v9114_v47 = vld [vmem:[%s11131_s14 + $0x1ae] sm:$0xff] }
 0x1e2   : > { %2308 = vrot.lane.b32.xlu0 %v2244_v1, %s11008_s9  ;;  %v9095_v1 = vld [vmem:[%s11131_s14 + $0x116] sm:$0xff] }
 0x1e3   : > { %v1809_v25 = vpop.permute.xlu1 %1808  ;;  %v2259_v13 = vpack.c.bf16 %v9096_v2, %v9095_v1  ;;  %v9120_v1 = vld [vmem:[%s11131_s14 + $0x1de] sm:$0xff] }
 0x1e4   : > { %1896 = vst.msk [vmem:[#allocation2 + $0x48] sm:$0xff] %vm1886_vm6, %v1809_v25  ;;  %v1807_v38 = vpop.permute.xlu0 %1806  ;;  %v9097_v25 = vld [vmem:[%s11131_s14 + $0x126] sm:$0xff] }
 0x1e5   : > { %1895 = vst.msk [vmem:[#allocation2 + $0x40] sm:$0xff] %vm1886_vm6, %v1807_v38  ;;  %2314 = vrot.lane.b32.xlu1 %v2247_v14, %s11008_s9  ;;  %v2258_v14 = vpack.c.bf16 %v9094_v5, %v9093_v4  ;;  %v9118_v4 = vld [vmem:[%s11131_s14 + $0x1ce] sm:$0xff] }
 0x1e6   : > { %2312 = vrot.lane.b32.xlu0 %v2246_v15, %s11008_s9  ;;  %v9099_v15 = vld [vmem:[%s11131_s14 + $0x136] sm:$0xff] }
 0x1e7   : > { %v1813_v57 = vpop.permute.xlu1 %1812  ;;  %v2261_v38 = vpack.c.bf16 %v9100_v21, %v9099_v15  ;;  %v9124_v15 = vld [vmem:[%s11131_s14 + $0x1fe] sm:$0xff] }
 0x1e8   : > { %1898 = vst.msk [vmem:[#allocation2 + $0x58] sm:$0xff] %vm1886_vm6, %v1813_v57  ;;  %v1811_v18 = vpop.permute.xlu0 %1810  ;;  %v9101_v57 = vld [vmem:[%s11131_s14 + $0x146] sm:$0xff] }
 0x1e9   : > { %1897 = vst.msk [vmem:[#allocation2 + $0x50] sm:$0xff] %vm1886_vm6, %v1811_v18  ;;  %2318 = vrot.lane.b32.xlu1 %v2249_v39, %s11008_s9  ;;  %v2260_v39 = vpack.c.bf16 %v9098_v32, %v9097_v25  ;;  %v9122_v25 = vld [vmem:[%s11131_s14 + $0x1ee] sm:$0xff] }
 0x1ea   : > { %2316 = vrot.lane.b32.xlu0 %v2248_v44, %s11008_s9  ;;  %v9103_v44 = vld [vmem:[%s11131_s14 + $0x156] sm:$0xff] }
 0x1eb   : > { %v1817_v10 = vpop.permute.xlu1 %1816  ;;  %v12347_v18 = vpack.c.bf16 %v9104_v45, %v9103_v44  ;;  %v9128_v44 = vld [vmem:[%s11131_s14 + $0x21e] sm:$0xff] }
 0x1ec   : > { %1900 = vst.msk [vmem:[#allocation2 + $0x68] sm:$0xff] %vm1886_vm6, %v1817_v10  ;;  %v1815_v59 = vpop.permute.xlu0 %1814  ;;  %v9105_v10 = vld [vmem:[%s11131_s14 + $0x166] sm:$0xff] }
 0x1ed   : > { %1899 = vst.msk [vmem:[#allocation2 + $0x60] sm:$0xff] %vm1886_vm6, %v1815_v59  ;;  %2322 = vrot.lane.b32.xlu1 %v2251_v31, %s11008_s9  ;;  %v12350_v31 = vpack.c.bf16 %v9102_v60, %v9101_v57  ;;  %v9126_v57 = vld [vmem:[%s11131_s14 + $0x20e] sm:$0xff] }
 0x1ee   : > { %2320 = vrot.lane.b32.xlu0 %v2250_v42, %s11008_s9  ;;  %v9107_v42 = vld [vmem:[%s11131_s14 + $0x176] sm:$0xff] }
 0x1ef   : > { %v1821_v36 = vpop.permute.xlu1 %1820  ;;  %v12360_v59 = vpack.c.bf16 %v9108_v55, %v9107_v42  ;;  %v9132_v55 = vld [vmem:[%s11131_s14 + $0x154] sm:$0xff] }
 0x1f0   : > { %1902 = vst.msk [vmem:[#allocation2 + $0x78] sm:$0xff] %vm1886_vm6, %v1821_v36  ;;  %v1819_v62 = vpop.permute.xlu0 %1818  ;;  %v9109_v36 = vld [vmem:[%s11131_s14 + $0x186] sm:$0xff] }
 0x1f1   : > { %1901 = vst.msk [vmem:[#allocation2 + $0x70] sm:$0xff] %vm1886_vm6, %v1819_v62  ;;  %2326 = vrot.lane.b32.xlu1 %v2253_v7, %s11008_s9  ;;  %v12364_v7 = vpack.c.bf16 %v9106_v11, %v9105_v10  ;;  %v9130_v11 = vld [vmem:[%s11131_s14 + $0x144] sm:$0xff] }
 0x1f2   : > { %2324 = vrot.lane.b32.xlu0 %v2252_v6, %s11008_s9  ;;  %v9111_v6 = vld [vmem:[%s11131_s14 + $0x196] sm:$0xff] }
 0x1f3   : > { %v1825_v40 = vpop.permute.xlu1 %1824  ;;  %v12374_v62 = vpack.c.bf16 %v9112_v20, %v9111_v6 }
 0x1f4   : > { %1904 = vst.msk [vmem:[#allocation2 + $0x88] sm:$0xff] %vm1886_vm6, %v1825_v40  ;;  %v1823_v53 = vpop.permute.xlu0 %1822  ;;  %v9113_v40 = vld [vmem:[%s11131_s14 + $0x1a6] sm:$0xff] }
 0x1f5   : > { %1903 = vst.msk [vmem:[#allocation2 + $0x80] sm:$0xff] %vm1886_vm6, %v1823_v53  ;;  %2330 = vrot.lane.b32.xlu1 %v2255_v17, %s11008_s9  ;;  %v12378_v17 = vpack.c.bf16 %v9110_v49, %v9109_v36  ;;  %v9136_v36 = vld [vmem:[%s11131_s14 + $0x174] sm:$0xff]  ;;  %v9137_v49 = vld [vmem:[%s11131_s14 + $0x17c] sm:$0xff] }
 0x1f6   : > { %2328 = vrot.lane.b32.xlu0 %v2254_v16, %s11008_s9  ;;  %v9115_v16 = vld [vmem:[%s11131_s14 + $0x1b6] sm:$0xff] }
 0x1f7   : > { %v1829_v3 = vpop.permute.xlu1 %1828  ;;  %v12388_v53 = vpack.c.bf16 %v9116_v23, %v9115_v16  ;;  %v9134_v16 = vld [vmem:[%s11131_s14 + $0x164] sm:$0xff]  ;;  %v9135_v23 = vld [vmem:[%s11131_s14 + $0x16c] sm:$0xff] }
 0x1f8   : > { %1906 = vst.msk [vmem:[#allocation2 + $0x98] sm:$0xff] %vm1886_vm6, %v1829_v3  ;;  %v1827_v8 = vpop.permute.xlu0 %1826  ;;  %v9117_v3 = vld [vmem:[%s11131_s14 + $0x1c6] sm:$0xff] }
 0x1f9   : > { %1905 = vst.msk [vmem:[#allocation2 + $0x90] sm:$0xff] %vm1886_vm6, %v1827_v8  ;;  %2334 = vrot.lane.b32.xlu1 %v2257_v52, %s11008_s9  ;;  %v12392_v52 = vpack.c.bf16 %v9114_v47, %v9113_v40  ;;  %v2506_v40 = vpack.c.bf16 %v9137_v49, %v9136_v36  ;;  %v2505_v47 = vpack.c.bf16 %v9135_v23, %v9134_v16  ;;  %v9150_v36 = vld [vmem:[%s11131_s14 + $0x1e4] sm:$0xff]  ;;  %v9151_v49 = vld [vmem:[%s11131_s14 + $0x1ec] sm:$0xff] }
 0x1fa   : > { %2332 = vrot.lane.b32.xlu0 %v2256_v0, %s11008_s9  ;;  %v9119_v0 = vld [vmem:[%s11131_s14 + $0x1d6] sm:$0xff]  ;;  %v2513_v23 = vpack.c.bf16 %v9151_v49, %v9150_v36  ;;  %v9170_v49 = vld [vmem:[%s11131_s14 + $0x284] sm:$0xff] }
 0x1fb   : > { %v1833_v24 = vpop.permute.xlu1 %1832  ;;  %v12402_v8 = vpack.c.bf16 %v9120_v1, %v9119_v0  ;;  %v9141_v0 = vld [vmem:[%s11131_s14 + $0x19c] sm:$0xff] }
 0x1fc   : > { %1908 = vst.msk [vmem:[#allocation2 + $0xa8] sm:$0xff] %vm1886_vm6, %v1833_v24  ;;  %v1831_v37 = vpop.permute.xlu0 %1830  ;;  %v9121_v24 = vld [vmem:[%s11131_s14 + $0x1e6] sm:$0xff] }
 0x1fd   : > { %1907 = vst.msk [vmem:[#allocation2 + $0xa0] sm:$0xff] %vm1886_vm6, %v1831_v37  ;;  %2338 = vrot.lane.b32.xlu1 %v2259_v13, %s11008_s9  ;;  %v12406_v13 = vpack.c.bf16 %v9118_v4, %v9117_v3  ;;  %v9139_v3 = vld [vmem:[%s11131_s14 + $0x18c] sm:$0xff] }
 0x1fe   : > { %2336 = vrot.lane.b32.xlu0 %v2258_v14, %s11008_s9  ;;  %v9123_v14 = vld [vmem:[%s11131_s14 + $0x1f6] sm:$0xff] }
 0x1ff   : > { %v1837_v56 = vpop.permute.xlu1 %1836  ;;  %v12416_v37 = vpack.c.bf16 %v9124_v15, %v9123_v14  ;;  %v9144_v15 = vld [vmem:[%s11131_s14 + $0x1b4] sm:$0xff] }
 0x200   : > { %1910 = vst.msk [vmem:[#allocation2 + $0xb8] sm:$0xff] %vm1886_vm6, %v1837_v56  ;;  %v1835_v61 = vpop.permute.xlu0 %1834  ;;  %v9125_v56 = vld [vmem:[%s11131_s14 + $0x206] sm:$0xff] }
 0x201   : > { %1909 = vst.msk [vmem:[#allocation2 + $0xb0] sm:$0xff] %vm1886_vm6, %v1835_v61  ;;  %2342 = vrot.lane.b32.xlu1 %v2261_v38, %s11008_s9  ;;  %v12420_v38 = vpack.c.bf16 %v9122_v25, %v9121_v24  ;;  %v12434_v42 = vpack.c.bf16 %v9126_v57, %v9125_v56  ;;  %v9142_v25 = vld [vmem:[%s11131_s14 + $0x1a4] sm:$0xff]  ;;  %v9148_v56 = vld [vmem:[%s11131_s14 + $0x1d4] sm:$0xff]  ;;  %v9149_v57 = vld [vmem:[%s11131_s14 + $0x1dc] sm:$0xff] }
 0x202   : > { %2340 = vrot.lane.b32.xlu0 %v2260_v39, %s11008_s9  ;;  %v9127_v39 = vld [vmem:[%s11131_s14 + $0x216] sm:$0xff] }
 0x203   : > { %v1841_v54 = vpop.permute.xlu1 %1840  ;;  %v12430_v61 = vpack.c.bf16 %v9128_v44, %v9127_v39 }
 0x204   : > { %1912 = vst.msk [vmem:[#allocation2 + $0xc8] sm:$0xff] %vm1886_vm6, %v1841_v54  ;;  %v1839_v34 = vpop.permute.xlu0 %1838  ;;  %v9133_v54 = vld [vmem:[%s11131_s14 + $0x15c] sm:$0xff] }
 0x205   : > { %1911 = vst.msk [vmem:[#allocation2 + $0xc0] sm:$0xff] %vm1886_vm6, %v1839_v34  ;;  %2346 = vrot.lane.b32.xlu1 %v12347_v18, %s11008_s9  ;;  %v9131_v34 = vld [vmem:[%s11131_s14 + $0x14c] sm:$0xff]  ;;  %v2504_v20 = vpack.c.bf16 %v9133_v54, %v9132_v55  ;;  %v9146_v55 = vld [vmem:[%s11131_s14 + $0x1c4] sm:$0xff] }
 0x206   : > { %2344 = vrot.lane.b32.xlu0 %v12350_v31, %s11008_s9  ;;  %v9147_v54 = vld [vmem:[%s11131_s14 + $0x1cc] sm:$0xff] }
 0x207   : > { %v1845_v19 = vpop.permute.xlu1 %1844 }
 0x208   : > { %1914 = vst.msk [vmem:[#allocation2 + $0xd8] sm:$0xff] %vm1886_vm6, %v1845_v19  ;;  %v1843_v63 = vpop.permute.xlu0 %1842  ;;  %v2503_v19 = vpack.c.bf16 %v9131_v34, %v9130_v11  ;;  %v2512_v11 = vpack.c.bf16 %v9149_v57, %v9148_v56  ;;  %v2511_v34 = vpack.c.bf16 %v9147_v54, %v9146_v55  ;;  %v9168_v57 = vld [vmem:[%s11131_s14 + $0x274] sm:$0xff]  ;;  %v9166_v54 = vld [vmem:[%s11131_s14 + $0x264] sm:$0xff] }
 0x209   : > { %1913 = vst.msk [vmem:[#allocation2 + $0xd0] sm:$0xff] %vm1886_vm6, %v1843_v63  ;;  %2350 = vrot.lane.b32.xlu1 %v12360_v59, %s11008_s9 }
 0x20a   : > { %2348 = vrot.lane.b32.xlu0 %v12364_v7, %s11008_s9 }
 0x20b   : > { %v1849_v41 = vpop.permute.xlu1 %1848 }
 0x20c   : > { %1916 = vst.msk [vmem:[#allocation2 + $0xe8] sm:$0xff] %vm1886_vm6, %v1849_v41  ;;  %v1847_v46 = vpop.permute.xlu0 %1846 }
 0x20d   : > { %1915 = vst.msk [vmem:[#allocation2 + $0xe0] sm:$0xff] %vm1886_vm6, %v1847_v46  ;;  %2354 = vrot.lane.b32.xlu1 %v12374_v62, %s11008_s9  ;;  %v9140_v46 = vld [vmem:[%s11131_s14 + $0x194] sm:$0xff] }
 0x20e   : > { %2352 = vrot.lane.b32.xlu0 %v12378_v17, %s11008_s9 }
 0x20f   : > { %v1853_v2 = vpop.permute.xlu1 %1852 }
 0x210   : > { %1918 = vst.msk [vmem:[#allocation2 + $0xf8] sm:$0xff] %vm1886_vm6, %v1853_v2  ;;  %v1851_v5 = vpop.permute.xlu0 %1850  ;;  %v9138_v2 = vld [vmem:[%s11131_s14 + $0x184] sm:$0xff] }
 0x211   : > { %1917 = vst.msk [vmem:[#allocation2 + $0xf0] sm:$0xff] %vm1886_vm6, %v1851_v5  ;;  %2358 = vrot.lane.b32.xlu1 %v12388_v53, %s11008_s9  ;;  %v2508_v5 = vpack.c.bf16 %v9141_v0, %v9140_v46  ;;  %v2507_v14 = vpack.c.bf16 %v9139_v3, %v9138_v2  ;;  %v9161_v2 = vld [vmem:[%s11131_s14 + $0x23c] sm:$0xff]  ;;  %vm6030_vm6 = vcmask 753344  }
 0x212   : > { %2356 = vrot.lane.b32.xlu0 %v12392_v52, %s11008_s9 }
 0x213   : > { %v2052_v21 = vpop.permute.xlu1 %2051 }
 0x214   : > { %2147 = vst.msk [vmem:[#allocation2 + $0x8] sm:$0xff] %vm2145_vm7, %v2052_v21  ;;  %v2050_v32 = vpop.permute.xlu0 %2049  ;;  %v9145_v21 = vld [vmem:[%s11131_s14 + $0x1bc] sm:$0xff] }
 0x215   : > { %2146 = vst.msk [vmem:[#allocation2] sm:$0xff] %vm2145_vm7, %v2050_v32  ;;  %2362 = vrot.lane.b32.xlu1 %v12402_v8, %s11008_s9  ;;  %v9143_v32 = vld [vmem:[%s11131_s14 + $0x1ac] sm:$0xff]  ;;  %v2510_v44 = vpack.c.bf16 %v9145_v21, %v9144_v15 }
 0x216   : > { %2360 = vrot.lane.b32.xlu0 %v12406_v13, %s11008_s9 }
 0x217   : > { %v2056_v45 = vpop.permute.xlu1 %2055 }
 0x218   : > { %2149 = vst.msk [vmem:[#allocation2 + $0x18] sm:$0xff] %vm2145_vm7, %v2056_v45  ;;  %v2054_v60 = vpop.permute.xlu0 %2053  ;;  %v2509_v45 = vpack.c.bf16 %v9143_v32, %v9142_v25  ;;  %v9165_v25 = vld [vmem:[%s11131_s14 + $0x25c] sm:$0xff] }
 0x219   : > { %2148 = vst.msk [vmem:[#allocation2 + $0x10] sm:$0xff] %vm2145_vm7, %v2054_v60  ;;  %2366 = vrot.lane.b32.xlu1 %v12416_v37, %s11008_s9 }
 0x21a   : > { %2364 = vrot.lane.b32.xlu0 %v12420_v38, %s11008_s9 }
 0x21b   : > { %v2060_v10 = vpop.permute.xlu1 %2059 }
 0x21c   : > { %2151 = vst.msk [vmem:[#allocation2 + $0x28] sm:$0xff] %vm2145_vm7, %v2060_v10  ;;  %v2058_v6 = vpop.permute.xlu0 %2057 }
 0x21d   : > { %2150 = vst.msk [vmem:[#allocation2 + $0x20] sm:$0xff] %vm2145_vm7, %v2058_v6  ;;  %2370 = vrot.lane.b32.xlu1 %v12430_v61, %s11008_s9  ;;  %v9152_v6 = vld [vmem:[%s11131_s14 + $0x1f4] sm:$0xff] }
 0x21e   : > { %2368 = vrot.lane.b32.xlu0 %v12434_v42, %s11008_s9  ;;  %s11019_s9 = smov 76  }
 0x21f   : > { %v2064_v63 = vpop.permute.xlu1 %2063 }
 0x220   : > { %2153 = vst.msk [vmem:[#allocation2 + $0x38] sm:$0xff] %vm2145_vm7, %v2064_v63  ;;  %v2062_v41 = vpop.permute.xlu0 %2061 }
 0x221   : > { %2152 = vst.msk [vmem:[#allocation2 + $0x30] sm:$0xff] %vm2145_vm7, %v2062_v41  ;;  %2569 = vrot.lane.b32.xlu1 %v2504_v20, %s11009_s10  ;;  %v9153_v20 = vld [vmem:[%s11131_s14 + $0x1fc] sm:$0xff] }
 0x222   : > { %2567 = vrot.lane.b32.xlu0 %v2503_v19, %s11009_s10  ;;  %v2514_v16 = vpack.c.bf16 %v9153_v20, %v9152_v6  ;;  %v9172_v20 = vld [vmem:[%s11131_s14 + $0x294] sm:$0xff] }
 0x223   : > { %v2068_v1 = vpop.permute.xlu1 %2067 }
 0x224   : > { %2155 = vst.msk [vmem:[#allocation2 + $0x48] sm:$0xff] %vm2145_vm7, %v2068_v1  ;;  %v2066_v4 = vpop.permute.xlu0 %2065  ;;  %v9160_v1 = vld [vmem:[%s11131_s14 + $0x234] sm:$0xff] }
 0x225   : > { %2154 = vst.msk [vmem:[#allocation2 + $0x40] sm:$0xff] %vm2145_vm7, %v2066_v4  ;;  %2573 = vrot.lane.b32.xlu1 %v2506_v40, %s11009_s10  ;;  %v9154_v40 = vld [vmem:[%s11131_s14 + $0x204] sm:$0xff]  ;;  %v2518_v15 = vpack.c.bf16 %v9161_v2, %v9160_v1  ;;  %v9175_v1 = vld [vmem:[%s11131_s14 + $0x2ac] sm:$0xff] }
 0x226   : > { %2571 = vrot.lane.b32.xlu0 %v2505_v47, %s11009_s10  ;;  %v9155_v47 = vld [vmem:[%s11131_s14 + $0x20c] sm:$0xff]  ;;  %v9158_v4 = vld [vmem:[%s11131_s14 + $0x224] sm:$0xff] }
 0x227   : > { %v2072_v24 = vpop.permute.xlu1 %2071  ;;  %v2515_v0 = vpack.c.bf16 %v9155_v47, %v9154_v40  ;;  %v9176_v40 = vld [vmem:[%s11131_s14 + $0x2b4] sm:$0xff]  ;;  %v9177_v47 = vld [vmem:[%s11131_s14 + $0x2bc] sm:$0xff] }
 0x228   : > { %2157 = vst.msk [vmem:[#allocation2 + $0x58] sm:$0xff] %vm2145_vm7, %v2072_v24  ;;  %v2070_v39 = vpop.permute.xlu0 %2069  ;;  %v9164_v24 = vld [vmem:[%s11131_s14 + $0x254] sm:$0xff] }
 0x229   : > { %2156 = vst.msk [vmem:[#allocation2 + $0x50] sm:$0xff] %vm2145_vm7, %v2070_v39  ;;  %2577 = vrot.lane.b32.xlu1 %v2508_v5, %s11009_s10  ;;  %v9159_v5 = vld [vmem:[%s11131_s14 + $0x22c] sm:$0xff]  ;;  %v9162_v39 = vld [vmem:[%s11131_s14 + $0x244] sm:$0xff] }
 0x22a   : > { %2575 = vrot.lane.b32.xlu0 %v2507_v14, %s11009_s10  ;;  %v2517_v21 = vpack.c.bf16 %v9159_v5, %v9158_v4  ;;  %v9180_v5 = vld [vmem:[%s11131_s14 + $0x2d4] sm:$0xff] }
 0x22b   : > { %v2076_v60 = vpop.permute.xlu1 %2075 }
 0x22c   : > { %2159 = vst.msk [vmem:[#allocation2 + $0x68] sm:$0xff] %vm2145_vm7, %v2076_v60  ;;  %v2074_v10 = vpop.permute.xlu0 %2073  ;;  %v9169_v60 = vld [vmem:[%s11131_s14 + $0x27c] sm:$0xff] }
 0x22d   : > { %2158 = vst.msk [vmem:[#allocation2 + $0x60] sm:$0xff] %vm2145_vm7, %v2074_v10  ;;  %2581 = vrot.lane.b32.xlu1 %v2510_v44, %s11009_s10  ;;  %v9163_v44 = vld [vmem:[%s11131_s14 + $0x24c] sm:$0xff] }
 0x22e   : > { %2579 = vrot.lane.b32.xlu0 %v2509_v45, %s11009_s10  ;;  %v2519_v56 = vpack.c.bf16 %v9163_v44, %v9162_v39  ;;  %v9167_v10 = vld [vmem:[%s11131_s14 + $0x26c] sm:$0xff]  ;;  %v9184_v44 = vld [vmem:[%s11131_s14 + $0x2f4] sm:$0xff] }
 0x22f   : > { %v2080_v19 = vpop.permute.xlu1 %2079  ;;  %v2521_v6 = vpack.c.bf16 %v9167_v10, %v9166_v54  ;;  %v9188_v10 = vld [vmem:[%s11131_s14 + $0x314] sm:$0xff] }
 0x230   : > { %2161 = vst.msk [vmem:[#allocation2 + $0x78] sm:$0xff] %vm2145_vm7, %v2080_v19  ;;  %v2078_v63 = vpop.permute.xlu0 %2077  ;;  %v9173_v19 = vld [vmem:[%s11131_s14 + $0x29c] sm:$0xff] }
 0x231   : > { %2160 = vst.msk [vmem:[#allocation2 + $0x70] sm:$0xff] %vm2145_vm7, %v2078_v63  ;;  %2585 = vrot.lane.b32.xlu1 %v2512_v11, %s11009_s10  ;;  %v9171_v63 = vld [vmem:[%s11131_s14 + $0x28c] sm:$0xff] }
 0x232   : > { %2583 = vrot.lane.b32.xlu0 %v2511_v34, %s11009_s10  ;;  %v2522_v34 = vpack.c.bf16 %v9169_v60, %v9168_v57  ;;  %v9183_v57 = vld [vmem:[%s11131_s14 + $0x2ec] sm:$0xff] }
 0x233   : > { %v2084_v41 = vpop.permute.xlu1 %2083 }
 0x234   : > { %2163 = vst.msk [vmem:[#allocation2 + $0x88] sm:$0xff] %vm2145_vm7, %v2084_v41  ;;  %v2082_v46 = vpop.permute.xlu0 %2081  ;;  %v2523_v41 = vpack.c.bf16 %v9171_v63, %v9170_v49  ;;  %v9192_v63 = vld [vmem:[%s11131_s14 + $0x334] sm:$0xff] }
 0x235   : > { %2162 = vst.msk [vmem:[#allocation2 + $0x80] sm:$0xff] %vm2145_vm7, %v2082_v46  ;;  %2589 = vrot.lane.b32.xlu1 %v2514_v16, %s11009_s10 }
 0x236   : > { %2587 = vrot.lane.b32.xlu0 %v2513_v23, %s11009_s10  ;;  %v2524_v23 = vpack.c.bf16 %v9173_v19, %v9172_v20  ;;  %v9187_v20 = vld [vmem:[%s11131_s14 + $0x30c] sm:$0xff] }
 0x237   : > { %v2088_v3 = vpop.permute.xlu1 %2087 }
 0x238   : > { %2165 = vst.msk [vmem:[#allocation2 + $0x98] sm:$0xff] %vm2145_vm7, %v2088_v3  ;;  %v2086_v14 = vpop.permute.xlu0 %2085  ;;  %v2526_v3 = vpack.c.bf16 %v9177_v47, %v9176_v40  ;;  %v9191_v40 = vld [vmem:[%s11131_s14 + $0x32c] sm:$0xff] }
 0x239   : > { %2164 = vst.msk [vmem:[#allocation2 + $0x90] sm:$0xff] %vm2145_vm7, %v2086_v14  ;;  %2593 = vrot.lane.b32.xlu1 %v12092_v22, %s11009_s10  ;;  %v2520_v22 = vpack.c.bf16 %v9165_v25, %v9164_v24  ;;  %v9181_v14 = vld [vmem:[%s11131_s14 + $0x2dc] sm:$0xff]  ;;  %v9179_v24 = vld [vmem:[%s11131_s14 + $0x2cc] sm:$0xff] }
 0x23a   : > { %2591 = vrot.lane.b32.xlu0 %v2515_v0, %s11009_s10  ;;  %v9174_v0 = vld [vmem:[%s11131_s14 + $0x2a4] sm:$0xff] }
 0x23b   : > { %v2092_v32 = vpop.permute.xlu1 %2091  ;;  %v2525_v4 = vpack.c.bf16 %v9175_v1, %v9174_v0 }
 0x23c   : > { %2167 = vst.msk [vmem:[#allocation2 + $0xa8] sm:$0xff] %vm2145_vm7, %v2092_v32  ;;  %v2090_v45 = vpop.permute.xlu0 %2089  ;;  %v2528_v32 = vpack.c.bf16 %v9181_v14, %v9180_v5 }
 0x23d   : > { %2166 = vst.msk [vmem:[#allocation2 + $0xa0] sm:$0xff] %vm2145_vm7, %v2090_v45  ;;  %2597 = vrot.lane.b32.xlu1 %v2518_v15, %s11009_s10  ;;  %v9185_v45 = vld [vmem:[%s11131_s14 + $0x2fc] sm:$0xff] }
 0x23e   : > { %2595 = vrot.lane.b32.xlu0 %v2517_v21, %s11009_s10  ;;  %v9178_v21 = vld [vmem:[%s11131_s14 + $0x2c4] sm:$0xff] }
 0x23f   : > { %v2096_v55 = vpop.permute.xlu1 %2095  ;;  %v2527_v39 = vpack.c.bf16 %v9179_v24, %v9178_v21  ;;  %v9224_v24 = vld [vmem:[%s11131_s14 + $0x22d] sm:$0xff] }
 0x240   : > { %2169 = vst.msk [vmem:[#allocation2 + $0xb8] sm:$0xff] %vm2145_vm7, %v2096_v55  ;;  %v2094_v11 = vpop.permute.xlu0 %2093  ;;  %v2530_v55 = vpack.c.bf16 %v9185_v45, %v9184_v44  ;;  %v9227_v45 = vld [vmem:[%s11131_s14 + $0x245] sm:$0xff] }
 0x241   : > { %2168 = vst.msk [vmem:[#allocation2 + $0xb0] sm:$0xff] %vm2145_vm7, %v2094_v11  ;;  %2601 = vrot.lane.b32.xlu1 %v2520_v22, %s11009_s10  ;;  %v9189_v11 = vld [vmem:[%s11131_s14 + $0x31c] sm:$0xff] }
 0x242   : > { %2599 = vrot.lane.b32.xlu0 %v2519_v56, %s11009_s10  ;;  %v9182_v56 = vld [vmem:[%s11131_s14 + $0x2e4] sm:$0xff] }
 0x243   : > { %v2100_v36 = vpop.permute.xlu1 %2099  ;;  %v2529_v54 = vpack.c.bf16 %v9183_v57, %v9182_v56  ;;  %v9233_v57 = vld [vmem:[%s11131_s14 + $0x275] sm:$0xff] }
 0x244   : > { %2171 = vst.msk [vmem:[#allocation2 + $0xc8] sm:$0xff] %vm2145_vm7, %v2100_v36  ;;  %v2098_v16 = vpop.permute.xlu0 %2097  ;;  %v2532_v36 = vpack.c.bf16 %v9189_v11, %v9188_v10  ;;  %v9232_v10 = vld [vmem:[%s11131_s14 + $0x26d] sm:$0xff] }
 0x245   : > { %2170 = vst.msk [vmem:[#allocation2 + $0xc0] sm:$0xff] %vm2145_vm7, %v2098_v16  ;;  %2605 = vrot.lane.b32.xlu1 %v2522_v34, %s11009_s10  ;;  %v9193_v16 = vld [vmem:[%s11131_s14 + $0x33c] sm:$0xff] }
 0x246   : > { %2603 = vrot.lane.b32.xlu0 %v2521_v6, %s11009_s10  ;;  %v9186_v6 = vld [vmem:[%s11131_s14 + $0x304] sm:$0xff] }
 0x247   : > { %v2104_v46 = vpop.permute.xlu1 %2103  ;;  %v2531_v49 = vpack.c.bf16 %v9187_v20, %v9186_v6  ;;  %v9237_v20 = vld [vmem:[%s11131_s14 + $0x295] sm:$0xff] }
 0x248   : > { %2173 = vst.msk [vmem:[#allocation2 + $0xd8] sm:$0xff] %vm2145_vm7, %v2104_v46  ;;  %v2102_v2 = vpop.permute.xlu0 %2101  ;;  %v2534_v46 = vpack.c.bf16 %v9193_v16, %v9192_v63  ;;  %v9236_v63 = vld [vmem:[%s11131_s14 + $0x28d] sm:$0xff] }
 0x249   : > { %2172 = vst.msk [vmem:[#allocation2 + $0xd0] sm:$0xff] %vm2145_vm7, %v2102_v2  ;;  %2609 = vrot.lane.b32.xlu1 %v2524_v23, %s11009_s10 }
 0x24a   : > { %2607 = vrot.lane.b32.xlu0 %v2523_v41, %s11009_s10  ;;  %v9190_v41 = vld [vmem:[%s11131_s14 + $0x324] sm:$0xff] }
 0x24b   : > { %v2108_v15 = vpop.permute.xlu1 %2107  ;;  %v2533_v0 = vpack.c.bf16 %v9191_v40, %v9190_v41  ;;  %v9241_v40 = vld [vmem:[%s11131_s14 + $0x2b5] sm:$0xff] }
 0x24c   : > { %2175 = vst.msk [vmem:[#allocation2 + $0xe8] sm:$0xff] %vm2145_vm7, %v2108_v15  ;;  %v2106_v25 = vpop.permute.xlu0 %2105 }
 0x24d   : > { %2174 = vst.msk [vmem:[#allocation2 + $0xe0] sm:$0xff] %vm2145_vm7, %v2106_v25  ;;  %2613 = vrot.lane.b32.xlu1 %v2526_v3, %s11009_s10 }
 0x24e   : > { %2611 = vrot.lane.b32.xlu0 %v2525_v4, %s11009_s10 }
 0x24f   : > { %v2112_v22 = vpop.permute.xlu1 %2111 }
 0x250   : > { %2177 = vst.msk [vmem:[#allocation2 + $0xf8] sm:$0xff] %vm2145_vm7, %v2112_v22  ;;  %v2110_v60 = vpop.permute.xlu0 %2109  ;;  %v9228_v22 = vld [vmem:[%s11131_s14 + $0x24d] sm:$0xff] }
 0x251   : > { %2176 = vst.msk [vmem:[#allocation2 + $0xf0] sm:$0xff] %vm2145_vm7, %v2110_v60  ;;  %2617 = vrot.lane.b32.xlu1 %v2528_v32, %s11009_s10  ;;  %v9229_v32 = vld [vmem:[%s11131_s14 + $0x255] sm:$0xff]  ;;  %v9234_v60 = vld [vmem:[%s11131_s14 + $0x27d] sm:$0xff]  ;;  %vm6289_vm7 = vcmask 786144  }
 0x252   : > { %2615 = vrot.lane.b32.xlu0 %v2527_v39, %s11009_s10  ;;  %v9230_v39 = vld [vmem:[%s11131_s14 + $0x25d] sm:$0xff] }
 0x253   : > { %v2311_v34 = vpop.permute.xlu1 %2310 }
 0x254   : > { %2406 = vst.msk [vmem:[#allocation2 + $0x8] sm:$0xff] %vm2404_vm8, %v2311_v34  ;;  %v2309_v19 = vpop.permute.xlu0 %2308  ;;  %v2781_v34 = vpack.c.bf16 %v9234_v60, %v9233_v57  ;;  %v9255_v60 = vld [vmem:[%s11131_s14 + $0x325] sm:$0xff] }
 0x255   : > { %2405 = vst.msk [vmem:[#allocation2] sm:$0xff] %vm2404_vm8, %v2309_v19  ;;  %2621 = vrot.lane.b32.xlu1 %v2530_v55, %s11009_s10  ;;  %v9238_v19 = vld [vmem:[%s11131_s14 + $0x29d] sm:$0xff] }
 0x256   : > { %2619 = vrot.lane.b32.xlu0 %v2529_v54, %s11009_s10  ;;  %v9231_v54 = vld [vmem:[%s11131_s14 + $0x265] sm:$0xff] }
 0x257   : > { %v2315_v23 = vpop.permute.xlu1 %2314  ;;  %v2780_v6 = vpack.c.bf16 %v9232_v10, %v9231_v54 }
 0x258   : > { %2408 = vst.msk [vmem:[#allocation2 + $0x18] sm:$0xff] %vm2404_vm8, %v2315_v23  ;;  %v2313_v47 = vpop.permute.xlu0 %2312  ;;  %v2783_v23 = vpack.c.bf16 %v9238_v19, %v9237_v20 }
 0x259   : > { %2407 = vst.msk [vmem:[#allocation2 + $0x10] sm:$0xff] %vm2404_vm8, %v2313_v47  ;;  %2625 = vrot.lane.b32.xlu1 %v2532_v36, %s11009_s10  ;;  %v9242_v47 = vld [vmem:[%s11131_s14 + $0x2bd] sm:$0xff] }
 0x25a   : > { %2623 = vrot.lane.b32.xlu0 %v2531_v49, %s11009_s10  ;;  %v9235_v49 = vld [vmem:[%s11131_s14 + $0x285] sm:$0xff] }
 0x25b   : > { %v2319_v1 = vpop.permute.xlu1 %2318  ;;  %v2782_v41 = vpack.c.bf16 %v9236_v63, %v9235_v49 }
 0x25c   : > { %2410 = vst.msk [vmem:[#allocation2 + $0x28] sm:$0xff] %vm2404_vm8, %v2319_v1  ;;  %v2317_v2 = vpop.permute.xlu0 %2316  ;;  %v9240_v1 = vld [vmem:[%s11131_s14 + $0x2ad] sm:$0xff] }
 0x25d   : > { %2409 = vst.msk [vmem:[#allocation2 + $0x20] sm:$0xff] %vm2404_vm8, %v2317_v2  ;;  %2629 = vrot.lane.b32.xlu1 %v2534_v46, %s11009_s10 }
 0x25e   : > { %2627 = vrot.lane.b32.xlu0 %v2533_v0, %s11009_s10  ;;  %v9239_v0 = vld [vmem:[%s11131_s14 + $0x2a5] sm:$0xff]  ;;  %s11020_s10 = smov 80  }
 0x25f   : > { %v2323_v3 = vpop.permute.xlu1 %2322 }
 0x260   : > { %2412 = vst.msk [vmem:[#allocation2 + $0x38] sm:$0xff] %vm2404_vm8, %v2323_v3  ;;  %v2321_v4 = vpop.permute.xlu0 %2320  ;;  %v2785_v3 = vpack.c.bf16 %v9242_v47, %v9241_v40  ;;  %v9294_v40 = vld [vmem:[%s11131_s14 + $0x256] sm:$0xff]  ;;  %v9295_v47 = vld [vmem:[%s11131_s14 + $0x25e] sm:$0xff] }
 0x261   : > { %2411 = vst.msk [vmem:[#allocation2 + $0x30] sm:$0xff] %vm2404_vm8, %v2321_v4  ;;  %2828 = vrot.lane.b32.xlu1 %v12177_v9, %s11010_s11  ;;  %v2784_v4 = vpack.c.bf16 %v9240_v1, %v9239_v0  ;;  %v9292_v0 = vld [vmem:[%s11131_s14 + $0x246] sm:$0xff]  ;;  %v9293_v1 = vld [vmem:[%s11131_s14 + $0x24e] sm:$0xff] }
 0x262   : > { %2826 = vrot.lane.b32.xlu0 %v12180_v12, %s11010_s11 }
 0x263   : > { %v2327_v5 = vpop.permute.xlu1 %2326 }
 0x264   : > { %2414 = vst.msk [vmem:[#allocation2 + $0x48] sm:$0xff] %vm2404_vm8, %v2327_v5  ;;  %v2325_v14 = vpop.permute.xlu0 %2324  ;;  %v9245_v5 = vld [vmem:[%s11131_s14 + $0x2d5] sm:$0xff] }
 0x265   : > { %2413 = vst.msk [vmem:[#allocation2 + $0x40] sm:$0xff] %vm2404_vm8, %v2325_v14  ;;  %2832 = vrot.lane.b32.xlu1 %v12190_v26, %s11010_s11  ;;  %v9246_v14 = vld [vmem:[%s11131_s14 + $0x2dd] sm:$0xff] }
 0x266   : > { %2830 = vrot.lane.b32.xlu0 %v12194_v27, %s11010_s11 }
 0x267   : > { %v2331_v15 = vpop.permute.xlu1 %2330 }
 0x268   : > { %2416 = vst.msk [vmem:[#allocation2 + $0x58] sm:$0xff] %vm2404_vm8, %v2331_v15  ;;  %v2329_v21 = vpop.permute.xlu0 %2328 }
 0x269   : > { %2415 = vst.msk [vmem:[#allocation2 + $0x50] sm:$0xff] %vm2404_vm8, %v2329_v21  ;;  %2836 = vrot.lane.b32.xlu1 %v12204_v48, %s11010_s11  ;;  %v9243_v21 = vld [vmem:[%s11131_s14 + $0x2c5] sm:$0xff] }
 0x26a   : > { %2834 = vrot.lane.b32.xlu0 %v12208_v51, %s11010_s11 }
 0x26b   : > { %v2335_v9 = vpop.permute.xlu1 %2334 }
 0x26c   : > { %2418 = vst.msk [vmem:[#allocation2 + $0x68] sm:$0xff] %vm2404_vm8, %v2335_v9  ;;  %v2333_v12 = vpop.permute.xlu0 %2332  ;;  %v9244_v9 = vld [vmem:[%s11131_s14 + $0x2cd] sm:$0xff] }
 0x26d   : > { %2417 = vst.msk [vmem:[#allocation2 + $0x60] sm:$0xff] %vm2404_vm8, %v2333_v12  ;;  %2840 = vrot.lane.b32.xlu1 %v12218_v30, %s11010_s11  ;;  %v9225_v30 = vld [vmem:[%s11131_s14 + $0x235] sm:$0xff] }
 0x26e   : > { %2838 = vrot.lane.b32.xlu0 %v12222_v43, %s11010_s11  ;;  %v9226_v43 = vld [vmem:[%s11131_s14 + $0x23d] sm:$0xff] }
 0x26f   : > { %v2339_v26 = vpop.permute.xlu1 %2338 }
 0x270   : > { %2420 = vst.msk [vmem:[#allocation2 + $0x78] sm:$0xff] %vm2404_vm8, %v2339_v26  ;;  %v2337_v27 = vpop.permute.xlu0 %2336  ;;  %v2787_v26 = vpack.c.bf16 %v9246_v14, %v9245_v5  ;;  %v9296_v14 = vld [vmem:[%s11131_s14 + $0x266] sm:$0xff] }
 0x271   : > { %2419 = vst.msk [vmem:[#allocation2 + $0x70] sm:$0xff] %vm2404_vm8, %v2337_v27  ;;  %2844 = vrot.lane.b32.xlu1 %v12232_v35, %s11010_s11  ;;  %v2786_v27 = vpack.c.bf16 %v9244_v9, %v9243_v21 }
 0x272   : > { %2842 = vrot.lane.b32.xlu0 %v12236_v58, %s11010_s11  ;;  %v9223_v58 = vld [vmem:[%s11131_s14 + $0x225] sm:$0xff] }
 0x273   : > { %v2343_v48 = vpop.permute.xlu1 %2342 }
 0x274   : > { %2422 = vst.msk [vmem:[#allocation2 + $0x88] sm:$0xff] %vm2404_vm8, %v2343_v48  ;;  %v2341_v51 = vpop.permute.xlu0 %2340  ;;  %v9249_v48 = vld [vmem:[%s11131_s14 + $0x2f5] sm:$0xff] }
 0x275   : > { %2421 = vst.msk [vmem:[#allocation2 + $0x80] sm:$0xff] %vm2404_vm8, %v2341_v51  ;;  %2848 = vrot.lane.b32.xlu1 %v12246_v33, %s11010_s11  ;;  %v2777_v33 = vpack.c.bf16 %v9226_v43, %v9225_v30  ;;  %v9250_v51 = vld [vmem:[%s11131_s14 + $0x2fd] sm:$0xff]  ;;  %v9247_v43 = vld [vmem:[%s11131_s14 + $0x2e5] sm:$0xff] }
 0x276   : > { %2846 = vrot.lane.b32.xlu0 %v12250_v50, %s11010_s11  ;;  %v2776_v50 = vpack.c.bf16 %v9224_v24, %v9223_v58  ;;  %v2789_v24 = vpack.c.bf16 %v9250_v51, %v9249_v48  ;;  %v9300_v51 = vld [vmem:[%s11131_s14 + $0x286] sm:$0xff] }
 0x277   : > { %v2347_v35 = vpop.permute.xlu1 %2346 }
 0x278   : > { %2424 = vst.msk [vmem:[#allocation2 + $0x98] sm:$0xff] %vm2404_vm8, %v2347_v35  ;;  %v2345_v25 = vpop.permute.xlu0 %2344  ;;  %v9248_v35 = vld [vmem:[%s11131_s14 + $0x2ed] sm:$0xff] }
 0x279   : > { %2423 = vst.msk [vmem:[#allocation2 + $0x90] sm:$0xff] %vm2404_vm8, %v2345_v25  ;;  %2852 = vrot.lane.b32.xlu1 %v12260_v29, %s11010_s11  ;;  %v2779_v29 = vpack.c.bf16 %v9230_v39, %v9229_v32  ;;  %v2788_v25 = vpack.c.bf16 %v9248_v35, %v9247_v43  ;;  %v9251_v39 = vld [vmem:[%s11131_s14 + $0x305] sm:$0xff] }
 0x27a   : > { %2850 = vrot.lane.b32.xlu0 %v12264_v28, %s11010_s11  ;;  %v2778_v28 = vpack.c.bf16 %v9228_v22, %v9227_v45 }
 0x27b   : > { %v2351_v44 = vpop.permute.xlu1 %2350 }
 0x27c   : > { %2426 = vst.msk [vmem:[#allocation2 + $0xa8] sm:$0xff] %vm2404_vm8, %v2351_v44  ;;  %v2349_v56 = vpop.permute.xlu0 %2348  ;;  %v9252_v44 = vld [vmem:[%s11131_s14 + $0x30d] sm:$0xff] }
 0x27d   : > { %2425 = vst.msk [vmem:[#allocation2 + $0xa0] sm:$0xff] %vm2404_vm8, %v2349_v56  ;;  %2856 = vrot.lane.b32.xlu1 %v2777_v33, %s11010_s11  ;;  %v9253_v33 = vld [vmem:[%s11131_s14 + $0x315] sm:$0xff]  ;;  %v2790_v56 = vpack.c.bf16 %v9252_v44, %v9251_v39 }
 0x27e   : > { %2854 = vrot.lane.b32.xlu0 %v2776_v50, %s11010_s11  ;;  %v9254_v50 = vld [vmem:[%s11131_s14 + $0x31d] sm:$0xff] }
 0x27f   : > { %v2355_v55 = vpop.permute.xlu1 %2354  ;;  %v2791_v22 = vpack.c.bf16 %v9254_v50, %v9253_v33  ;;  %v9304_v50 = vld [vmem:[%s11131_s14 + $0x2a6] sm:$0xff] }
 0x280   : > { %2428 = vst.msk [vmem:[#allocation2 + $0xb8] sm:$0xff] %vm2404_vm8, %v2355_v55  ;;  %v2353_v11 = vpop.permute.xlu0 %2352  ;;  %v9256_v55 = vld [vmem:[%s11131_s14 + $0x32d] sm:$0xff] }
 0x281   : > { %2427 = vst.msk [vmem:[#allocation2 + $0xb0] sm:$0xff] %vm2404_vm8, %v2353_v11  ;;  %2860 = vrot.lane.b32.xlu1 %v2779_v29, %s11010_s11  ;;  %v9257_v29 = vld [vmem:[%s11131_s14 + $0x335] sm:$0xff]  ;;  %v2792_v11 = vpack.c.bf16 %v9256_v55, %v9255_v60 }
 0x282   : > { %2858 = vrot.lane.b32.xlu0 %v2778_v28, %s11010_s11  ;;  %v9258_v28 = vld [vmem:[%s11131_s14 + $0x33d] sm:$0xff] }
 0x283   : > { %v2359_v36 = vpop.permute.xlu1 %2358  ;;  %v2793_v10 = vpack.c.bf16 %v9258_v28, %v9257_v29  ;;  %v9308_v28 = vld [vmem:[%s11131_s14 + $0x2c6] sm:$0xff] }
 0x284   : > { %2430 = vst.msk [vmem:[#allocation2 + $0xc8] sm:$0xff] %vm2404_vm8, %v2359_v36  ;;  %v2357_v16 = vpop.permute.xlu0 %2356 }
 0x285   : > { %2429 = vst.msk [vmem:[#allocation2 + $0xc0] sm:$0xff] %vm2404_vm8, %v2357_v16  ;;  %2864 = vrot.lane.b32.xlu1 %v2781_v34, %s11010_s11 }
 0x286   : > { %2862 = vrot.lane.b32.xlu0 %v2780_v6, %s11010_s11 }
 0x287   : > { %v2363_v46 = vpop.permute.xlu1 %2362 }
 0x288   : > { %2432 = vst.msk [vmem:[#allocation2 + $0xd8] sm:$0xff] %vm2404_vm8, %v2363_v46  ;;  %v2361_v2 = vpop.permute.xlu0 %2360 }
 0x289   : > { %2431 = vst.msk [vmem:[#allocation2 + $0xd0] sm:$0xff] %vm2404_vm8, %v2361_v2  ;;  %2868 = vrot.lane.b32.xlu1 %v2783_v23, %s11010_s11  ;;  %v9289_v23 = vld [vmem:[%s11131_s14 + $0x22e] sm:$0xff] }
 0x28a   : > { %2866 = vrot.lane.b32.xlu0 %v2782_v41, %s11010_s11 }
 0x28b   : > { %v2367_v15 = vpop.permute.xlu1 %2366 }
 0x28c   : > { %2434 = vst.msk [vmem:[#allocation2 + $0xe8] sm:$0xff] %vm2404_vm8, %v2367_v15  ;;  %v2365_v12 = vpop.permute.xlu0 %2364  ;;  %v9297_v15 = vld [vmem:[%s11131_s14 + $0x26e] sm:$0xff] }
 0x28d   : > { %2433 = vst.msk [vmem:[#allocation2 + $0xe0] sm:$0xff] %vm2404_vm8, %v2365_v12  ;;  %2872 = vrot.lane.b32.xlu1 %v2785_v3, %s11010_s11  ;;  %v9298_v3 = vld [vmem:[%s11131_s14 + $0x276] sm:$0xff]  ;;  %v12759_v12 = vpack.c.bf16 %v9297_v15, %v9296_v14  ;;  %v9331_v15 = vld [vmem:[%s11131_s14 + $0x186] sm:$0xff] }
 0x28e   : > { %2870 = vrot.lane.b32.xlu0 %v2784_v4, %s11010_s11  ;;  %v9299_v4 = vld [vmem:[%s11131_s14 + $0x27e] sm:$0xff] }
 0x28f   : > { %v2371_v30 = vpop.permute.xlu1 %2370  ;;  %v12755_v9 = vpack.c.bf16 %v9299_v4, %v9298_v3  ;;  %v9326_v3 = vld [vmem:[%s11131_s14 + $0x15e] sm:$0xff] }
 0x290   : > { %2436 = vst.msk [vmem:[#allocation2 + $0xf8] sm:$0xff] %vm2404_vm8, %v2371_v30  ;;  %v2369_v58 = vpop.permute.xlu0 %2368  ;;  %v9301_v30 = vld [vmem:[%s11131_s14 + $0x28e] sm:$0xff] }
 0x291   : > { %2435 = vst.msk [vmem:[#allocation2 + $0xf0] sm:$0xff] %vm2404_vm8, %v2369_v58  ;;  %2876 = vrot.lane.b32.xlu1 %v2787_v26, %s11010_s11  ;;  %v9302_v26 = vld [vmem:[%s11131_s14 + $0x296] sm:$0xff]  ;;  %v12773_v58 = vpack.c.bf16 %v9301_v30, %v9300_v51  ;;  %vm7290_vm8 = vcmask 1045504  }
 0x292   : > { %2874 = vrot.lane.b32.xlu0 %v2786_v27, %s11010_s11  ;;  %v9303_v27 = vld [vmem:[%s11131_s14 + $0x29e] sm:$0xff] }
 0x293   : > { %v2570_v32 = vpop.permute.xlu1 %2569  ;;  %v12769_v35 = vpack.c.bf16 %v9303_v27, %v9302_v26  ;;  %v9329_v27 = vld [vmem:[%s11131_s14 + $0x176] sm:$0xff] }
 0x294   : > { %2665 = vst.msk [vmem:[#allocation2 + $0x8] sm:$0xff] %vm2663_vm9, %v2570_v32  ;;  %v2568_v45 = vpop.permute.xlu0 %2567  ;;  %v9305_v32 = vld [vmem:[%s11131_s14 + $0x2ae] sm:$0xff] }
 0x295   : > { %2664 = vst.msk [vmem:[#allocation2] sm:$0xff] %vm2663_vm9, %v2568_v45  ;;  %2880 = vrot.lane.b32.xlu1 %v2789_v24, %s11010_s11  ;;  %v9306_v24 = vld [vmem:[%s11131_s14 + $0x2b6] sm:$0xff]  ;;  %v12787_v45 = vpack.c.bf16 %v9305_v32, %v9304_v50  ;;  %v9334_v32 = vld [vmem:[%s11131_s14 + $0x19e] sm:$0xff] }
 0x296   : > { %2878 = vrot.lane.b32.xlu0 %v2788_v25, %s11010_s11  ;;  %v9307_v25 = vld [vmem:[%s11131_s14 + $0x2be] sm:$0xff]  ;;  %v9333_v50 = vld [vmem:[%s11131_s14 + $0x196] sm:$0xff] }
 0x297   : > { %v2574_v57 = vpop.permute.xlu1 %2573  ;;  %v12783_v44 = vpack.c.bf16 %v9307_v25, %v9306_v24  ;;  %v9335_v24 = vld [vmem:[%s11131_s14 + $0x1a6] sm:$0xff]  ;;  %v9336_v25 = vld [vmem:[%s11131_s14 + $0x1ae] sm:$0xff] }
 0x298   : > { %2667 = vst.msk [vmem:[#allocation2 + $0x18] sm:$0xff] %vm2663_vm9, %v2574_v57  ;;  %v2572_v54 = vpop.permute.xlu0 %2571  ;;  %v9309_v57 = vld [vmem:[%s11131_s14 + $0x2ce] sm:$0xff] }
 0x299   : > { %2666 = vst.msk [vmem:[#allocation2 + $0x10] sm:$0xff] %vm2663_vm9, %v2572_v54  ;;  %2884 = vrot.lane.b32.xlu1 %v2791_v22, %s11010_s11  ;;  %v9310_v22 = vld [vmem:[%s11131_s14 + $0x2d6] sm:$0xff]  ;;  %v12801_v54 = vpack.c.bf16 %v9309_v57, %v9308_v28  ;;  %v9340_v28 = vld [vmem:[%s11131_s14 + $0x1ce] sm:$0xff] }
 0x29a   : > { %2882 = vrot.lane.b32.xlu0 %v2790_v56, %s11010_s11  ;;  %v9311_v56 = vld [vmem:[%s11131_s14 + $0x2de] sm:$0xff] }
 0x29b   : > { %v2578_v34 = vpop.permute.xlu1 %2577  ;;  %v12797_v55 = vpack.c.bf16 %v9311_v56, %v9310_v22  ;;  %v3285_v22 = vpack.c.bf16 %v9336_v25, %v9335_v24  ;;  %v3284_v56 = vpack.c.bf16 %v9334_v32, %v9333_v50  ;;  %v9390_v24 = vld [vmem:[%s11131_s14 + $0x157] sm:$0xff]  ;;  %v9391_v25 = vld [vmem:[%s11131_s14 + $0x15f] sm:$0xff]  ;;  %v9396_v50 = vld [vmem:[%s11131_s14 + $0x187] sm:$0xff] }
 0x29c   : > { %2669 = vst.msk [vmem:[#allocation2 + $0x28] sm:$0xff] %vm2663_vm9, %v2578_v34  ;;  %v2576_v6 = vpop.permute.xlu0 %2575  ;;  %v9397_v32 = vld [vmem:[%s11131_s14 + $0x18f] sm:$0xff] }
 0x29d   : > { %2668 = vst.msk [vmem:[#allocation2 + $0x20] sm:$0xff] %vm2663_vm9, %v2576_v6  ;;  %2888 = vrot.lane.b32.xlu1 %v2793_v10, %s11010_s11  ;;  %v9314_v10 = vld [vmem:[%s11131_s14 + $0x2f6] sm:$0xff]  ;;  %v9312_v6 = vld [vmem:[%s11131_s14 + $0x2e6] sm:$0xff] }
 0x29e   : > { %2886 = vrot.lane.b32.xlu0 %v2792_v11, %s11010_s11  ;;  %v9315_v11 = vld [vmem:[%s11131_s14 + $0x2fe] sm:$0xff]  ;;  %s11021_s11 = smov 84  }
 0x29f   : > { %v2582_v20 = vpop.permute.xlu1 %2581 }
 0x2a0   : > { %2671 = vst.msk [vmem:[#allocation2 + $0x38] sm:$0xff] %vm2663_vm9, %v2582_v20  ;;  %v2580_v19 = vpop.permute.xlu0 %2579  ;;  %v9313_v20 = vld [vmem:[%s11131_s14 + $0x2ee] sm:$0xff] }
 0x2a1   : > { %2670 = vst.msk [vmem:[#allocation2 + $0x30] sm:$0xff] %vm2663_vm9, %v2580_v19  ;;  %3087 = vrot.lane.b32.xlu1 %v12347_v18, %s11011_s12 }
 0x2a2   : > { %3085 = vrot.lane.b32.xlu0 %v12350_v31, %s11011_s12 }
 0x2a3   : > { %v2586_v36 = vpop.permute.xlu1 %2585 }
 0x2a4   : > { %2673 = vst.msk [vmem:[#allocation2 + $0x48] sm:$0xff] %vm2663_vm9, %v2586_v36  ;;  %v2584_v49 = vpop.permute.xlu0 %2583  ;;  %v12811_v36 = vpack.c.bf16 %v9315_v11, %v9314_v10  ;;  %v9338_v10 = vld [vmem:[%s11131_s14 + $0x1be] sm:$0xff] }
 0x2a5   : > { %2672 = vst.msk [vmem:[#allocation2 + $0x40] sm:$0xff] %vm2663_vm9, %v2584_v49  ;;  %3091 = vrot.lane.b32.xlu1 %v12360_v59, %s11011_s12  ;;  %v12815_v49 = vpack.c.bf16 %v9313_v20, %v9312_v6  ;;  %v9343_v20 = vld [vmem:[%s11131_s14 + $0x1e6] sm:$0xff] }
 0x2a6   : > { %3089 = vrot.lane.b32.xlu0 %v12364_v7, %s11011_s12 }
 0x2a7   : > { %v2590_v63 = vpop.permute.xlu1 %2589 }
 0x2a8   : > { %2675 = vst.msk [vmem:[#allocation2 + $0x58] sm:$0xff] %vm2663_vm9, %v2590_v63  ;;  %v2588_v16 = vpop.permute.xlu0 %2587  ;;  %v9318_v63 = vld [vmem:[%s11131_s14 + $0x316] sm:$0xff] }
 0x2a9   : > { %2674 = vst.msk [vmem:[#allocation2 + $0x50] sm:$0xff] %vm2663_vm9, %v2588_v16  ;;  %3095 = vrot.lane.b32.xlu1 %v12374_v62, %s11011_s12  ;;  %v9319_v16 = vld [vmem:[%s11131_s14 + $0x31e] sm:$0xff] }
 0x2aa   : > { %3093 = vrot.lane.b32.xlu0 %v12378_v17, %s11011_s12 }
 0x2ab   : > { %v2594_v18 = vpop.permute.xlu1 %2593 }
 0x2ac   : > { %2677 = vst.msk [vmem:[#allocation2 + $0x68] sm:$0xff] %vm2663_vm9, %v2594_v18  ;;  %v2592_v31 = vpop.permute.xlu0 %2591 }
 0x2ad   : > { %2676 = vst.msk [vmem:[#allocation2 + $0x60] sm:$0xff] %vm2663_vm9, %v2592_v31  ;;  %3099 = vrot.lane.b32.xlu1 %v12388_v53, %s11011_s12  ;;  %v9290_v53 = vld [vmem:[%s11131_s14 + $0x236] sm:$0xff]  ;;  %v9316_v31 = vld [vmem:[%s11131_s14 + $0x306] sm:$0xff] }
 0x2ae   : > { %3097 = vrot.lane.b32.xlu0 %v12392_v52, %s11011_s12  ;;  %v9291_v52 = vld [vmem:[%s11131_s14 + $0x23e] sm:$0xff] }
 0x2af   : > { %v2598_v59 = vpop.permute.xlu1 %2597 }
 0x2b0   : > { %2679 = vst.msk [vmem:[#allocation2 + $0x78] sm:$0xff] %vm2663_vm9, %v2598_v59  ;;  %v2596_v7 = vpop.permute.xlu0 %2595  ;;  %v9317_v59 = vld [vmem:[%s11131_s14 + $0x30e] sm:$0xff] }
 0x2b1   : > { %2678 = vst.msk [vmem:[#allocation2 + $0x70] sm:$0xff] %vm2663_vm9, %v2596_v7  ;;  %3103 = vrot.lane.b32.xlu1 %v12402_v8, %s11011_s12 }
 0x2b2   : > { %3101 = vrot.lane.b32.xlu0 %v12406_v13, %s11011_s12  ;;  %v9288_v13 = vld [vmem:[%s11131_s14 + $0x226] sm:$0xff] }
 0x2b3   : > { %v2602_v62 = vpop.permute.xlu1 %2601 }
 0x2b4   : > { %2681 = vst.msk [vmem:[#allocation2 + $0x88] sm:$0xff] %vm2663_vm9, %v2602_v62  ;;  %v2600_v17 = vpop.permute.xlu0 %2599  ;;  %v12825_v62 = vpack.c.bf16 %v9319_v16, %v9318_v63  ;;  %v9341_v16 = vld [vmem:[%s11131_s14 + $0x1d6] sm:$0xff] }
 0x2b5   : > { %2680 = vst.msk [vmem:[#allocation2 + $0x80] sm:$0xff] %vm2663_vm9, %v2600_v17  ;;  %3107 = vrot.lane.b32.xlu1 %v12416_v37, %s11011_s12  ;;  %v12727_v37 = vpack.c.bf16 %v9291_v52, %v9290_v53  ;;  %v12829_v17 = vpack.c.bf16 %v9317_v59, %v9316_v31  ;;  %v9322_v53 = vld [vmem:[%s11131_s14 + $0x336] sm:$0xff]  ;;  %v9323_v52 = vld [vmem:[%s11131_s14 + $0x33e] sm:$0xff] }
 0x2b6   : > { %3105 = vrot.lane.b32.xlu0 %v12420_v38, %s11011_s12  ;;  %v12731_v38 = vpack.c.bf16 %v9289_v23, %v9288_v13  ;;  %v9320_v13 = vld [vmem:[%s11131_s14 + $0x326] sm:$0xff]  ;;  %v9321_v23 = vld [vmem:[%s11131_s14 + $0x32e] sm:$0xff] }
 0x2b7   : > { %v2606_v8 = vpop.permute.xlu1 %2605 }
 0x2b8   : > { %2683 = vst.msk [vmem:[#allocation2 + $0x98] sm:$0xff] %vm2663_vm9, %v2606_v8  ;;  %v2604_v41 = vpop.permute.xlu0 %2603 }
 0x2b9   : > { %2682 = vst.msk [vmem:[#allocation2 + $0x90] sm:$0xff] %vm2663_vm9, %v2604_v41  ;;  %3111 = vrot.lane.b32.xlu1 %v12430_v61, %s11011_s12  ;;  %v12741_v61 = vpack.c.bf16 %v9295_v47, %v9294_v40  ;;  %v12839_v40 = vpack.c.bf16 %v9323_v52, %v9322_v53  ;;  %v12843_v47 = vpack.c.bf16 %v9321_v23, %v9320_v13  ;;  %v9347_v53 = vld [vmem:[%s11131_s14 + $0x206] sm:$0xff]  ;;  %v9348_v52 = vld [vmem:[%s11131_s14 + $0x20e] sm:$0xff]  ;;  %v9345_v13 = vld [vmem:[%s11131_s14 + $0x1f6] sm:$0xff] }
 0x2ba   : > { %3109 = vrot.lane.b32.xlu0 %v12434_v42, %s11011_s12  ;;  %v12745_v42 = vpack.c.bf16 %v9293_v1, %v9292_v0  ;;  %v9328_v0 = vld [vmem:[%s11131_s14 + $0x16e] sm:$0xff]  ;;  %v9346_v23 = vld [vmem:[%s11131_s14 + $0x1fe] sm:$0xff] }
 0x2bb   : > { %v2610_v46 = vpop.permute.xlu1 %2609 }
 0x2bc   : > { %2685 = vst.msk [vmem:[#allocation2 + $0xa8] sm:$0xff] %vm2663_vm9, %v2610_v46  ;;  %v2608_v2 = vpop.permute.xlu0 %2607  ;;  %v9327_v46 = vld [vmem:[%s11131_s14 + $0x166] sm:$0xff] }
 0x2bd   : > { %2684 = vst.msk [vmem:[#allocation2 + $0xa0] sm:$0xff] %vm2663_vm9, %v2608_v2  ;;  %3115 = vrot.lane.b32.xlu1 %v12727_v37, %s11011_s12  ;;  %v9325_v2 = vld [vmem:[%s11131_s14 + $0x156] sm:$0xff] }
 0x2be   : > { %3113 = vrot.lane.b32.xlu0 %v12731_v38, %s11011_s12  ;;  %v3280_v14 = vpack.c.bf16 %v9326_v3, %v9325_v2  ;;  %v9349_v2 = vld [vmem:[%s11131_s14 + $0x216] sm:$0xff]  ;;  %v9350_v3 = vld [vmem:[%s11131_s14 + $0x21e] sm:$0xff] }
 0x2bf   : > { %v2614_v5 = vpop.permute.xlu1 %2613 }
 0x2c0   : > { %2687 = vst.msk [vmem:[#allocation2 + $0xb8] sm:$0xff] %vm2663_vm9, %v2614_v5  ;;  %v2612_v21 = vpop.permute.xlu0 %2611  ;;  %v3281_v5 = vpack.c.bf16 %v9328_v0, %v9327_v46  ;;  %v3291_v46 = vpack.c.bf16 %v9348_v52, %v9347_v53  ;;  %v3290_v0 = vpack.c.bf16 %v9346_v23, %v9345_v13  ;;  %v9409_v13 = vld [vmem:[%s11131_s14 + $0x1ef] sm:$0xff] }
 0x2c1   : > { %2686 = vst.msk [vmem:[#allocation2 + $0xb0] sm:$0xff] %vm2663_vm9, %v2612_v21  ;;  %3119 = vrot.lane.b32.xlu1 %v12741_v61, %s11011_s12  ;;  %v9332_v21 = vld [vmem:[%s11131_s14 + $0x18e] sm:$0xff] }
 0x2c2   : > { %3117 = vrot.lane.b32.xlu0 %v12745_v42, %s11011_s12  ;;  %v3283_v30 = vpack.c.bf16 %v9332_v21, %v9331_v15 }
 0x2c3   : > { %v2618_v48 = vpop.permute.xlu1 %2617 }
 0x2c4   : > { %2689 = vst.msk [vmem:[#allocation2 + $0xc8] sm:$0xff] %vm2663_vm9, %v2618_v48  ;;  %v2616_v43 = vpop.permute.xlu0 %2615  ;;  %v9330_v48 = vld [vmem:[%s11131_s14 + $0x17e] sm:$0xff] }
 0x2c5   : > { %2688 = vst.msk [vmem:[#allocation2 + $0xc0] sm:$0xff] %vm2663_vm9, %v2616_v43  ;;  %3123 = vrot.lane.b32.xlu1 %v12755_v9, %s11011_s12  ;;  %v3282_v43 = vpack.c.bf16 %v9330_v48, %v9329_v27 }
 0x2c6   : > { %3121 = vrot.lane.b32.xlu0 %v12759_v12, %s11011_s12 }
 0x2c7   : > { %v2622_v33 = vpop.permute.xlu1 %2621 }
 0x2c8   : > { %2691 = vst.msk [vmem:[#allocation2 + $0xd8] sm:$0xff] %vm2663_vm9, %v2622_v33  ;;  %v2620_v39 = vpop.permute.xlu0 %2619 }
 0x2c9   : > { %2690 = vst.msk [vmem:[#allocation2 + $0xd0] sm:$0xff] %vm2663_vm9, %v2620_v39  ;;  %3127 = vrot.lane.b32.xlu1 %v12769_v35, %s11011_s12 }
 0x2ca   : > { %3125 = vrot.lane.b32.xlu0 %v12773_v58, %s11011_s12 }
 0x2cb   : > { %v2626_v29 = vpop.permute.xlu1 %2625 }
 0x2cc   : > { %2693 = vst.msk [vmem:[#allocation2 + $0xe8] sm:$0xff] %vm2663_vm9, %v2626_v29  ;;  %v2624_v60 = vpop.permute.xlu0 %2623  ;;  %v9339_v29 = vld [vmem:[%s11131_s14 + $0x1c6] sm:$0xff] }
 0x2cd   : > { %2692 = vst.msk [vmem:[#allocation2 + $0xe0] sm:$0xff] %vm2663_vm9, %v2624_v60  ;;  %3131 = vrot.lane.b32.xlu1 %v12783_v44, %s11011_s12  ;;  %v9337_v60 = vld [vmem:[%s11131_s14 + $0x1b6] sm:$0xff] }
 0x2ce   : > { %3129 = vrot.lane.b32.xlu0 %v12787_v45, %s11011_s12  ;;  %v3286_v6 = vpack.c.bf16 %v9338_v10, %v9337_v60  ;;  %v9401_v60 = vld [vmem:[%s11131_s14 + $0x1af] sm:$0xff] }
 0x2cf   : > { %v2630_v34 = vpop.permute.xlu1 %2629 }
 0x2d0   : > { %2695 = vst.msk [vmem:[#allocation2 + $0xf8] sm:$0xff] %vm2663_vm9, %v2630_v34  ;;  %v2628_v19 = vpop.permute.xlu0 %2627  ;;  %v3287_v34 = vpack.c.bf16 %v9340_v28, %v9339_v29  ;;  %v3542_v28 = vpack.c.bf16 %v9397_v32, %v9396_v50  ;;  %v9428_v50 = vld [vmem:[%s11131_s14 + $0x287] sm:$0xff]  ;;  %v9429_v32 = vld [vmem:[%s11131_s14 + $0x28f] sm:$0xff] }
 0x2d1   : > { %2694 = vst.msk [vmem:[#allocation2 + $0xf0] sm:$0xff] %vm2663_vm9, %v2628_v19  ;;  %3135 = vrot.lane.b32.xlu1 %v12797_v55, %s11011_s12  ;;  %v9344_v19 = vld [vmem:[%s11131_s14 + $0x1ee] sm:$0xff]  ;;  %vm6548_vm9 = vcmask 818944  }
 0x2d2   : > { %3133 = vrot.lane.b32.xlu0 %v12801_v54, %s11011_s12  ;;  %v3289_v59 = vpack.c.bf16 %v9344_v19, %v9343_v20 }
 0x2d3   : > { %v2829_v18 = vpop.permute.xlu1 %2828 }
 0x2d4   : > { %2924 = vst.msk [vmem:[#allocation2 + $0x8] sm:$0xff] %vm2922_vm10, %v2829_v18  ;;  %v2827_v7 = vpop.permute.xlu0 %2826  ;;  %v9342_v18 = vld [vmem:[%s11131_s14 + $0x1de] sm:$0xff] }
 0x2d5   : > { %2923 = vst.msk [vmem:[#allocation2] sm:$0xff] %vm2922_vm10, %v2827_v7  ;;  %3139 = vrot.lane.b32.xlu1 %v12811_v36, %s11011_s12  ;;  %v3288_v7 = vpack.c.bf16 %v9342_v18, %v9341_v16  ;;  %v9405_v16 = vld [vmem:[%s11131_s14 + $0x1cf] sm:$0xff] }
 0x2d6   : > { %3137 = vrot.lane.b32.xlu0 %v12815_v49, %s11011_s12 }
 0x2d7   : > { %v2833_v8 = vpop.permute.xlu1 %2832 }
 0x2d8   : > { %2926 = vst.msk [vmem:[#allocation2 + $0x18] sm:$0xff] %vm2922_vm10, %v2833_v8  ;;  %v2831_v41 = vpop.permute.xlu0 %2830 }
 0x2d9   : > { %2925 = vst.msk [vmem:[#allocation2 + $0x10] sm:$0xff] %vm2922_vm10, %v2831_v41  ;;  %3143 = vrot.lane.b32.xlu1 %v12825_v62, %s11011_s12 }
 0x2da   : > { %3141 = vrot.lane.b32.xlu0 %v12829_v17, %s11011_s12 }
 0x2db   : > { %v2837_v1 = vpop.permute.xlu1 %2836 }
 0x2dc   : > { %2928 = vst.msk [vmem:[#allocation2 + $0x28] sm:$0xff] %vm2922_vm10, %v2837_v1  ;;  %v2835_v4 = vpop.permute.xlu0 %2834 }
 0x2dd   : > { %2927 = vst.msk [vmem:[#allocation2 + $0x20] sm:$0xff] %vm2922_vm10, %v2835_v4  ;;  %3147 = vrot.lane.b32.xlu1 %v12839_v40, %s11011_s12 }
 0x2de   : > { %3145 = vrot.lane.b32.xlu0 %v12843_v47, %s11011_s12  ;;  %s11022_s12 = smov 88  }
 0x2df   : > { %v2841_v26 = vpop.permute.xlu1 %2840 }
 0x2e0   : > { %2930 = vst.msk [vmem:[#allocation2 + $0x38] sm:$0xff] %vm2922_vm10, %v2841_v26  ;;  %v2839_v51 = vpop.permute.xlu0 %2838 }
 0x2e1   : > { %2929 = vst.msk [vmem:[#allocation2 + $0x30] sm:$0xff] %vm2922_vm10, %v2839_v51  ;;  %3346 = vrot.lane.b32.xlu1 %v3281_v5, %s11012_s13  ;;  %v3292_v5 = vpack.c.bf16 %v9350_v3, %v9349_v2  ;;  %v9412_v3 = vld [vmem:[%s11131_s14 + $0x207] sm:$0xff] }
 0x2e2   : > { %3344 = vrot.lane.b32.xlu0 %v3280_v14, %s11012_s13 }
 0x2e3   : > { %v2845_v33 = vpop.permute.xlu1 %2844 }
 0x2e4   : > { %2932 = vst.msk [vmem:[#allocation2 + $0x48] sm:$0xff] %vm2922_vm10, %v2845_v33  ;;  %v2843_v39 = vpop.permute.xlu0 %2842 }
 0x2e5   : > { %2931 = vst.msk [vmem:[#allocation2 + $0x40] sm:$0xff] %vm2922_vm10, %v2843_v39  ;;  %3350 = vrot.lane.b32.xlu1 %v3283_v30, %s11012_s13 }
 0x2e6   : > { %3348 = vrot.lane.b32.xlu0 %v3282_v43, %s11012_s13 }
 0x2e7   : > { %v2849_v57 = vpop.permute.xlu1 %2848 }
 0x2e8   : > { %2934 = vst.msk [vmem:[#allocation2 + $0x58] sm:$0xff] %vm2922_vm10, %v2849_v57  ;;  %v2847_v11 = vpop.permute.xlu0 %2846  ;;  %v9400_v57 = vld [vmem:[%s11131_s14 + $0x1a7] sm:$0xff] }
 0x2e9   : > { %2933 = vst.msk [vmem:[#allocation2 + $0x50] sm:$0xff] %vm2922_vm10, %v2847_v11  ;;  %3354 = vrot.lane.b32.xlu1 %v3285_v22, %s11012_s13  ;;  %v9394_v22 = vld [vmem:[%s11131_s14 + $0x177] sm:$0xff]  ;;  %v3544_v20 = vpack.c.bf16 %v9401_v60, %v9400_v57  ;;  %v9432_v57 = vld [vmem:[%s11131_s14 + $0x2a7] sm:$0xff]  ;;  %v9433_v60 = vld [vmem:[%s11131_s14 + $0x2af] sm:$0xff] }
 0x2ea   : > { %3352 = vrot.lane.b32.xlu0 %v3284_v56, %s11012_s13  ;;  %v9395_v56 = vld [vmem:[%s11131_s14 + $0x17f] sm:$0xff]  ;;  %v9398_v11 = vld [vmem:[%s11131_s14 + $0x197] sm:$0xff] }
 0x2eb   : > { %v2853_v63 = vpop.permute.xlu1 %2852 }
 0x2ec   : > { %2936 = vst.msk [vmem:[#allocation2 + $0x68] sm:$0xff] %vm2922_vm10, %v2853_v63  ;;  %v2851_v31 = vpop.permute.xlu0 %2850  ;;  %v9404_v63 = vld [vmem:[%s11131_s14 + $0x1c7] sm:$0xff] }
 0x2ed   : > { %2935 = vst.msk [vmem:[#allocation2 + $0x60] sm:$0xff] %vm2922_vm10, %v2851_v31  ;;  %3358 = vrot.lane.b32.xlu1 %v3287_v34, %s11012_s13  ;;  %v9399_v34 = vld [vmem:[%s11131_s14 + $0x19f] sm:$0xff]  ;;  %v9402_v31 = vld [vmem:[%s11131_s14 + $0x1b7] sm:$0xff]  ;;  %v3546_v53 = vpack.c.bf16 %v9405_v16, %v9404_v63  ;;  %v9436_v63 = vld [vmem:[%s11131_s14 + $0x2c7] sm:$0xff] }
 0x2ee   : > { %3356 = vrot.lane.b32.xlu0 %v3286_v6, %s11012_s13  ;;  %v3543_v19 = vpack.c.bf16 %v9399_v34, %v9398_v11  ;;  %v9430_v11 = vld [vmem:[%s11131_s14 + $0x297] sm:$0xff]  ;;  %v9431_v34 = vld [vmem:[%s11131_s14 + $0x29f] sm:$0xff]  ;;  %v9437_v16 = vld [vmem:[%s11131_s14 + $0x2cf] sm:$0xff] }
 0x2ef   : > { %v2857_v8 = vpop.permute.xlu1 %2856 }
 0x2f0   : > { %2938 = vst.msk [vmem:[#allocation2 + $0x78] sm:$0xff] %vm2922_vm10, %v2857_v8  ;;  %v2855_v41 = vpop.permute.xlu0 %2854  ;;  %v9408_v8 = vld [vmem:[%s11131_s14 + $0x1e7] sm:$0xff] }
 0x2f1   : > { %2937 = vst.msk [vmem:[#allocation2 + $0x70] sm:$0xff] %vm2922_vm10, %v2855_v41  ;;  %3362 = vrot.lane.b32.xlu1 %v3289_v59, %s11012_s13  ;;  %v9403_v59 = vld [vmem:[%s11131_s14 + $0x1bf] sm:$0xff]  ;;  %v9406_v41 = vld [vmem:[%s11131_s14 + $0x1d7] sm:$0xff] }
 0x2f2   : > { %3360 = vrot.lane.b32.xlu0 %v3288_v7, %s11012_s13  ;;  %v3545_v52 = vpack.c.bf16 %v9403_v59, %v9402_v31  ;;  %v9434_v31 = vld [vmem:[%s11131_s14 + $0x2b7] sm:$0xff]  ;;  %v9435_v59 = vld [vmem:[%s11131_s14 + $0x2bf] sm:$0xff] }
 0x2f3   : > { %v2861_v1 = vpop.permute.xlu1 %2860 }
 0x2f4   : > { %2940 = vst.msk [vmem:[#allocation2 + $0x88] sm:$0xff] %vm2922_vm10, %v2861_v1  ;;  %v2859_v4 = vpop.permute.xlu0 %2858  ;;  %v3548_v1 = vpack.c.bf16 %v9409_v13, %v9408_v8  ;;  %v9440_v8 = vld [vmem:[%s11131_s14 + $0x2e7] sm:$0xff]  ;;  %v9441_v13 = vld [vmem:[%s11131_s14 + $0x2ef] sm:$0xff] }
 0x2f5   : > { %2939 = vst.msk [vmem:[#allocation2 + $0x80] sm:$0xff] %vm2922_vm10, %v2859_v4  ;;  %3366 = vrot.lane.b32.xlu1 %v3291_v46, %s11012_s13  ;;  %v9407_v46 = vld [vmem:[%s11131_s14 + $0x1df] sm:$0xff]  ;;  %v9413_v4 = vld [vmem:[%s11131_s14 + $0x20f] sm:$0xff] }
 0x2f6   : > { %3364 = vrot.lane.b32.xlu0 %v3290_v0, %s11012_s13  ;;  %v3547_v2 = vpack.c.bf16 %v9407_v46, %v9406_v41  ;;  %v9438_v41 = vld [vmem:[%s11131_s14 + $0x2d7] sm:$0xff]  ;;  %v9439_v46 = vld [vmem:[%s11131_s14 + $0x2df] sm:$0xff] }
 0x2f7   : > { %v2865_v14 = vpop.permute.xlu1 %2864 }
 0x2f8   : > { %2942 = vst.msk [vmem:[#allocation2 + $0x98] sm:$0xff] %vm2922_vm10, %v2865_v14  ;;  %v2863_v15 = vpop.permute.xlu0 %2862  ;;  %v9410_v14 = vld [vmem:[%s11131_s14 + $0x1f7] sm:$0xff] }
 0x2f9   : > { %2941 = vst.msk [vmem:[#allocation2 + $0x90] sm:$0xff] %vm2922_vm10, %v2863_v15  ;;  %3370 = vrot.lane.b32.xlu1 %v12731_v38, %s11012_s13  ;;  %v9411_v15 = vld [vmem:[%s11131_s14 + $0x1ff] sm:$0xff] }
 0x2fa   : > { %3368 = vrot.lane.b32.xlu0 %v3292_v5, %s11012_s13 }
 0x2fb   : > { %v2869_v21 = vpop.permute.xlu1 %2868 }
 0x2fc   : > { %2944 = vst.msk [vmem:[#allocation2 + $0xa8] sm:$0xff] %vm2922_vm10, %v2869_v21  ;;  %v2867_v26 = vpop.permute.xlu0 %2866 }
 0x2fd   : > { %2943 = vst.msk [vmem:[#allocation2 + $0xa0] sm:$0xff] %vm2922_vm10, %v2867_v26  ;;  %3374 = vrot.lane.b32.xlu1 %v12745_v42, %s11012_s13  ;;  %v3550_v26 = vpack.c.bf16 %v9413_v4, %v9412_v3  ;;  %v9444_v3 = vld [vmem:[%s11131_s14 + $0x307] sm:$0xff]  ;;  %v9445_v4 = vld [vmem:[%s11131_s14 + $0x30f] sm:$0xff] }
 0x2fe   : > { %3372 = vrot.lane.b32.xlu0 %v12727_v37, %s11012_s13 }
 0x2ff   : > { %v2873_v27 = vpop.permute.xlu1 %2872 }
 0x300   : > { %2946 = vst.msk [vmem:[#allocation2 + $0xb8] sm:$0xff] %vm2922_vm10, %v2873_v27  ;;  %v2871_v48 = vpop.permute.xlu0 %2870  ;;  %v3549_v27 = vpack.c.bf16 %v9411_v15, %v9410_v14  ;;  %v9442_v14 = vld [vmem:[%s11131_s14 + $0x2f7] sm:$0xff]  ;;  %v9443_v15 = vld [vmem:[%s11131_s14 + $0x2ff] sm:$0xff] }
 0x301   : > { %2945 = vst.msk [vmem:[#allocation2 + $0xb0] sm:$0xff] %vm2922_vm10, %v2871_v48  ;;  %3378 = vrot.lane.b32.xlu1 %v12759_v12, %s11012_s13  ;;  %v9416_v48 = vld [vmem:[%s11131_s14 + $0x227] sm:$0xff] }
 0x302   : > { %3376 = vrot.lane.b32.xlu0 %v12741_v61, %s11012_s13 }
 0x303   : > { %v2877_v38 = vpop.permute.xlu1 %2876 }
 0x304   : > { %2948 = vst.msk [vmem:[#allocation2 + $0xc8] sm:$0xff] %vm2922_vm10, %v2877_v38  ;;  %v2875_v51 = vpop.permute.xlu0 %2874  ;;  %v9417_v38 = vld [vmem:[%s11131_s14 + $0x22f] sm:$0xff] }
 0x305   : > { %2947 = vst.msk [vmem:[#allocation2 + $0xc0] sm:$0xff] %vm2922_vm10, %v2875_v51  ;;  %3382 = vrot.lane.b32.xlu1 %v12773_v58, %s11012_s13 }
 0x306   : > { %3380 = vrot.lane.b32.xlu0 %v12755_v9, %s11012_s13 }
 0x307   : > { %v2881_v37 = vpop.permute.xlu1 %2880 }
 0x308   : > { %2950 = vst.msk [vmem:[#allocation2 + $0xd8] sm:$0xff] %vm2922_vm10, %v2881_v37  ;;  %v2879_v42 = vpop.permute.xlu0 %2878  ;;  %v9414_v37 = vld [vmem:[%s11131_s14 + $0x217] sm:$0xff] }
 0x309   : > { %2949 = vst.msk [vmem:[#allocation2 + $0xd0] sm:$0xff] %vm2922_vm10, %v2879_v42  ;;  %3386 = vrot.lane.b32.xlu1 %v12787_v45, %s11012_s13  ;;  %v9415_v42 = vld [vmem:[%s11131_s14 + $0x21f] sm:$0xff] }
 0x30a   : > { %3384 = vrot.lane.b32.xlu0 %v12769_v35, %s11012_s13 }
 0x30b   : > { %v2885_v61 = vpop.permute.xlu1 %2884 }
 0x30c   : > { %2952 = vst.msk [vmem:[#allocation2 + $0xe8] sm:$0xff] %vm2922_vm10, %v2885_v61  ;;  %v2883_v12 = vpop.permute.xlu0 %2882 }
 0x30d   : > { %2951 = vst.msk [vmem:[#allocation2 + $0xe0] sm:$0xff] %vm2922_vm10, %v2883_v12  ;;  %3390 = vrot.lane.b32.xlu1 %v12801_v54, %s11012_s13  ;;  %v9388_v54 = vld [vmem:[%s11131_s14 + $0x34e] sm:$0xff]  ;;  %v3552_v12 = vpack.c.bf16 %v9417_v38, %v9416_v48 }
 0x30e   : > { %3388 = vrot.lane.b32.xlu0 %v12783_v44, %s11012_s13  ;;  %v9387_v44 = vld [vmem:[%s11131_s14 + $0x346] sm:$0xff]  ;;  %v9449_v38 = vld [vmem:[%s11131_s14 + $0x32f] sm:$0xff] }
 0x30f   : > { %v2889_v9 = vpop.permute.xlu1 %2888  ;;  %v3311_v30 = vpack.c.bf16 %v9388_v54, %v9387_v44  ;;  %v9418_v44 = vld [vmem:[%s11131_s14 + $0x237] sm:$0xff]  ;;  %v9419_v54 = vld [vmem:[%s11131_s14 + $0x23f] sm:$0xff]  ;;  %v9448_v48 = vld [vmem:[%s11131_s14 + $0x327] sm:$0xff] }
 0x310   : > { %2954 = vst.msk [vmem:[#allocation2 + $0xf8] sm:$0xff] %vm2922_vm10, %v2889_v9  ;;  %v2887_v58 = vpop.permute.xlu0 %2886  ;;  %v3551_v9 = vpack.c.bf16 %v9415_v42, %v9414_v37  ;;  %v9446_v37 = vld [vmem:[%s11131_s14 + $0x317] sm:$0xff]  ;;  %v9447_v42 = vld [vmem:[%s11131_s14 + $0x31f] sm:$0xff] }
 0x311   : > { %2953 = vst.msk [vmem:[#allocation2 + $0xf0] sm:$0xff] %vm2922_vm10, %v2887_v58  ;;  %3394 = vrot.lane.b32.xlu1 %v12815_v49, %s11012_s13  ;;  %v9420_v58 = vld [vmem:[%s11131_s14 + $0x247] sm:$0xff]  ;;  %vm6807_vm10 = vcmask 851744  }
 0x312   : > { %3392 = vrot.lane.b32.xlu0 %v12797_v55, %s11012_s13 }
 0x313   : > { %v3088_v35 = vpop.permute.xlu1 %3087 }
 0x314   : > { %3183 = vst.msk [vmem:[#allocation2 + $0x8] sm:$0xff] %vm3181_vm11, %v3088_v35  ;;  %v3086_v45 = vpop.permute.xlu0 %3085  ;;  %v9421_v35 = vld [vmem:[%s11131_s14 + $0x24f] sm:$0xff] }
 0x315   : > { %3182 = vst.msk [vmem:[#allocation2] sm:$0xff] %vm3181_vm11, %v3086_v45  ;;  %3398 = vrot.lane.b32.xlu1 %v12829_v17, %s11012_s13  ;;  %v9392_v17 = vld [vmem:[%s11131_s14 + $0x167] sm:$0xff] }
 0x316   : > { %3396 = vrot.lane.b32.xlu0 %v12811_v36, %s11012_s13  ;;  %v9393_v36 = vld [vmem:[%s11131_s14 + $0x16f] sm:$0xff] }
 0x317   : > { %v3092_v49 = vpop.permute.xlu1 %3091 }
 0x318   : > { %3185 = vst.msk [vmem:[#allocation2 + $0x18] sm:$0xff] %vm3181_vm11, %v3092_v49  ;;  %v3090_v55 = vpop.permute.xlu0 %3089 }
 0x319   : > { %3184 = vst.msk [vmem:[#allocation2 + $0x10] sm:$0xff] %vm3181_vm11, %v3090_v55  ;;  %3402 = vrot.lane.b32.xlu1 %v12843_v47, %s11012_s13  ;;  %v3540_v47 = vpack.c.bf16 %v9393_v36, %v9392_v17  ;;  %v3554_v55 = vpack.c.bf16 %v9421_v35, %v9420_v58  ;;  %v9424_v17 = vld [vmem:[%s11131_s14 + $0x267] sm:$0xff]  ;;  %v9425_v36 = vld [vmem:[%s11131_s14 + $0x26f] sm:$0xff] }
 0x31a   : > { %3400 = vrot.lane.b32.xlu0 %v12825_v62, %s11012_s13  ;;  %v3539_v62 = vpack.c.bf16 %v9391_v25, %v9390_v24  ;;  %v9422_v24 = vld [vmem:[%s11131_s14 + $0x257] sm:$0xff]  ;;  %v9423_v25 = vld [vmem:[%s11131_s14 + $0x25f] sm:$0xff]  ;;  %v9452_v58 = vld [vmem:[%s11131_s14 + $0x347] sm:$0xff] }
 0x31b   : > { %v3096_v43 = vpop.permute.xlu1 %3095  ;;  %v9453_v35 = vld [vmem:[%s11131_s14 + $0x34f] sm:$0xff] }
 0x31c   : > { %3187 = vst.msk [vmem:[#allocation2 + $0x28] sm:$0xff] %vm3181_vm11, %v3096_v43  ;;  %v3094_v33 = vpop.permute.xlu0 %3093 }
 0x31d   : > { %3186 = vst.msk [vmem:[#allocation2 + $0x20] sm:$0xff] %vm3181_vm11, %v3094_v33  ;;  %3406 = vrot.lane.b32.xlu1 %v3311_v30, %s11012_s13  ;;  %v3553_v30 = vpack.c.bf16 %v9419_v54, %v9418_v44  ;;  %v9450_v44 = vld [vmem:[%s11131_s14 + $0x337] sm:$0xff]  ;;  %v9451_v54 = vld [vmem:[%s11131_s14 + $0x33f] sm:$0xff] }
 0x31e   : > { %3404 = vrot.lane.b32.xlu0 %v12839_v40, %s11012_s13  ;;  %v3541_v40 = vpack.c.bf16 %v9395_v56, %v9394_v22  ;;  %v9426_v22 = vld [vmem:[%s11131_s14 + $0x277] sm:$0xff]  ;;  %v9427_v56 = vld [vmem:[%s11131_s14 + $0x27f] sm:$0xff]  ;;  %s11023_s13 = smov 92  }
 0x31f   : > { %v3100_v39 = vpop.permute.xlu1 %3099 }
 0x320   : > { %3189 = vst.msk [vmem:[#allocation2 + $0x38] sm:$0xff] %vm3181_vm11, %v3100_v39  ;;  %v3098_v29 = vpop.permute.xlu0 %3097 }
 0x321   : > { %3188 = vst.msk [vmem:[#allocation2 + $0x30] sm:$0xff] %vm3181_vm11, %v3098_v29  ;;  %3605 = vrot.lane.b32.xlu1 %v3540_v47, %s11013_s24  ;;  %v3556_v47 = vpack.c.bf16 %v9425_v36, %v9424_v17  ;;  %v9457_v17 = vld [vmem:[%s11131_s14 + $0x168] sm:$0xff]  ;;  %v9458_v36 = vld [vmem:[%s11131_s14 + $0x170] sm:$0xff] }
 0x322   : > { %3603 = vrot.lane.b32.xlu0 %v3539_v62, %s11013_s24  ;;  %v3555_v62 = vpack.c.bf16 %v9423_v25, %v9422_v24  ;;  %v9455_v24 = vld [vmem:[%s11131_s14 + $0x158] sm:$0xff]  ;;  %v9456_v25 = vld [vmem:[%s11131_s14 + $0x160] sm:$0xff] }
 0x323   : > { %v3104_v10 = vpop.permute.xlu1 %3103 }
 0x324   : > { %3191 = vst.msk [vmem:[#allocation2 + $0x48] sm:$0xff] %vm3181_vm11, %v3104_v10  ;;  %v3102_v6 = vpop.permute.xlu0 %3101 }
 0x325   : > { %3190 = vst.msk [vmem:[#allocation2 + $0x40] sm:$0xff] %vm3181_vm11, %v3102_v6  ;;  %3609 = vrot.lane.b32.xlu1 %v3542_v28, %s11013_s24  ;;  %v3558_v28 = vpack.c.bf16 %v9429_v32, %v9428_v50  ;;  %v9461_v50 = vld [vmem:[%s11131_s14 + $0x188] sm:$0xff]  ;;  %v9462_v32 = vld [vmem:[%s11131_s14 + $0x190] sm:$0xff] }
 0x326   : > { %3607 = vrot.lane.b32.xlu0 %v3541_v40, %s11013_s24  ;;  %v3557_v40 = vpack.c.bf16 %v9427_v56, %v9426_v22  ;;  %v9459_v22 = vld [vmem:[%s11131_s14 + $0x178] sm:$0xff]  ;;  %v9460_v56 = vld [vmem:[%s11131_s14 + $0x180] sm:$0xff] }
 0x327   : > { %v3108_v18 = vpop.permute.xlu1 %3107 }
 0x328   : > { %3193 = vst.msk [vmem:[#allocation2 + $0x58] sm:$0xff] %vm3181_vm11, %v3108_v18  ;;  %v3106_v7 = vpop.permute.xlu0 %3105 }
 0x329   : > { %3192 = vst.msk [vmem:[#allocation2 + $0x50] sm:$0xff] %vm3181_vm11, %v3106_v7  ;;  %3613 = vrot.lane.b32.xlu1 %v3544_v20, %s11013_s24  ;;  %v3560_v20 = vpack.c.bf16 %v9433_v60, %v9432_v57  ;;  %v9465_v57 = vld [vmem:[%s11131_s14 + $0x1a8] sm:$0xff]  ;;  %v9466_v60 = vld [vmem:[%s11131_s14 + $0x1b0] sm:$0xff] }
 0x32a   : > { %3611 = vrot.lane.b32.xlu0 %v3543_v19, %s11013_s24  ;;  %v3559_v19 = vpack.c.bf16 %v9431_v34, %v9430_v11  ;;  %v9463_v11 = vld [vmem:[%s11131_s14 + $0x198] sm:$0xff]  ;;  %v9464_v34 = vld [vmem:[%s11131_s14 + $0x1a0] sm:$0xff] }
 0x32b   : > { %v3112_v23 = vpop.permute.xlu1 %3111 }
 0x32c   : > { %3195 = vst.msk [vmem:[#allocation2 + $0x68] sm:$0xff] %vm3181_vm11, %v3112_v23  ;;  %v3110_v0 = vpop.permute.xlu0 %3109 }
 0x32d   : > { %3194 = vst.msk [vmem:[#allocation2 + $0x60] sm:$0xff] %vm3181_vm11, %v3110_v0  ;;  %3617 = vrot.lane.b32.xlu1 %v3546_v53, %s11013_s24  ;;  %v3562_v53 = vpack.c.bf16 %v9437_v16, %v9436_v63  ;;  %v9469_v63 = vld [vmem:[%s11131_s14 + $0x1c8] sm:$0xff]  ;;  %v9470_v16 = vld [vmem:[%s11131_s14 + $0x1d0] sm:$0xff] }
 0x32e   : > { %3615 = vrot.lane.b32.xlu0 %v3545_v52, %s11013_s24  ;;  %v3561_v52 = vpack.c.bf16 %v9435_v59, %v9434_v31  ;;  %v9467_v31 = vld [vmem:[%s11131_s14 + $0x1b8] sm:$0xff]  ;;  %v9468_v59 = vld [vmem:[%s11131_s14 + $0x1c0] sm:$0xff] }
 0x32f   : > { %v3116_v5 = vpop.permute.xlu1 %3115 }
 0x330   : > { %3197 = vst.msk [vmem:[#allocation2 + $0x78] sm:$0xff] %vm3181_vm11, %v3116_v5  ;;  %v3114_v21 = vpop.permute.xlu0 %3113 }
 0x331   : > { %3196 = vst.msk [vmem:[#allocation2 + $0x70] sm:$0xff] %vm3181_vm11, %v3114_v21  ;;  %3621 = vrot.lane.b32.xlu1 %v3548_v1, %s11013_s24  ;;  %v3564_v1 = vpack.c.bf16 %v9441_v13, %v9440_v8  ;;  %v9473_v8 = vld [vmem:[%s11131_s14 + $0x1e8] sm:$0xff]  ;;  %v9474_v13 = vld [vmem:[%s11131_s14 + $0x1f0] sm:$0xff] }
 0x332   : > { %3619 = vrot.lane.b32.xlu0 %v3547_v2, %s11013_s24  ;;  %v3563_v2 = vpack.c.bf16 %v9439_v46, %v9438_v41  ;;  %v9471_v41 = vld [vmem:[%s11131_s14 + $0x1d8] sm:$0xff]  ;;  %v9472_v46 = vld [vmem:[%s11131_s14 + $0x1e0] sm:$0xff] }
 0x333   : > { %v3120_v51 = vpop.permute.xlu1 %3119 }
 0x334   : > { %3199 = vst.msk [vmem:[#allocation2 + $0x88] sm:$0xff] %vm3181_vm11, %v3120_v51  ;;  %v3118_v61 = vpop.permute.xlu0 %3117 }
 0x335   : > { %3198 = vst.msk [vmem:[#allocation2 + $0x80] sm:$0xff] %vm3181_vm11, %v3118_v61  ;;  %3625 = vrot.lane.b32.xlu1 %v3550_v26, %s11013_s24  ;;  %v3566_v26 = vpack.c.bf16 %v9445_v4, %v9444_v3  ;;  %v9477_v3 = vld [vmem:[%s11131_s14 + $0x208] sm:$0xff]  ;;  %v9478_v4 = vld [vmem:[%s11131_s14 + $0x210] sm:$0xff] }
 0x336   : > { %3623 = vrot.lane.b32.xlu0 %v3549_v27, %s11013_s24  ;;  %v3565_v27 = vpack.c.bf16 %v9443_v15, %v9442_v14  ;;  %v9475_v14 = vld [vmem:[%s11131_s14 + $0x1f8] sm:$0xff]  ;;  %v9476_v15 = vld [vmem:[%s11131_s14 + $0x200] sm:$0xff] }
 0x337   : > { %v3124_v45 = vpop.permute.xlu1 %3123 }
 0x338   : > { %3201 = vst.msk [vmem:[#allocation2 + $0x98] sm:$0xff] %vm3181_vm11, %v3124_v45  ;;  %v3122_v49 = vpop.permute.xlu0 %3121 }
 0x339   : > { %3200 = vst.msk [vmem:[#allocation2 + $0x90] sm:$0xff] %vm3181_vm11, %v3122_v49  ;;  %3629 = vrot.lane.b32.xlu1 %v3552_v12, %s11013_s24  ;;  %v3568_v12 = vpack.c.bf16 %v9449_v38, %v9448_v48  ;;  %v9481_v48 = vld [vmem:[%s11131_s14 + $0x228] sm:$0xff]  ;;  %v9482_v38 = vld [vmem:[%s11131_s14 + $0x230] sm:$0xff] }
 0x33a   : > { %3627 = vrot.lane.b32.xlu0 %v3551_v9, %s11013_s24  ;;  %v3567_v9 = vpack.c.bf16 %v9447_v42, %v9446_v37  ;;  %v9479_v37 = vld [vmem:[%s11131_s14 + $0x218] sm:$0xff]  ;;  %v9480_v42 = vld [vmem:[%s11131_s14 + $0x220] sm:$0xff] }
 0x33b   : > { %v3128_v43 = vpop.permute.xlu1 %3127 }
 0x33c   : > { %3203 = vst.msk [vmem:[#allocation2 + $0xa8] sm:$0xff] %vm3181_vm11, %v3128_v43  ;;  %v3126_v33 = vpop.permute.xlu0 %3125 }
 0x33d   : > { %3202 = vst.msk [vmem:[#allocation2 + $0xa0] sm:$0xff] %vm3181_vm11, %v3126_v33  ;;  %3633 = vrot.lane.b32.xlu1 %v3554_v55, %s11013_s24  ;;  %v3570_v55 = vpack.c.bf16 %v9453_v35, %v9452_v58  ;;  %v9485_v58 = vld [vmem:[%s11131_s14 + $0x248] sm:$0xff]  ;;  %v9486_v35 = vld [vmem:[%s11131_s14 + $0x250] sm:$0xff] }
 0x33e   : > { %3631 = vrot.lane.b32.xlu0 %v3553_v30, %s11013_s24  ;;  %v3569_v30 = vpack.c.bf16 %v9451_v54, %v9450_v44  ;;  %v9483_v44 = vld [vmem:[%s11131_s14 + $0x238] sm:$0xff]  ;;  %v9484_v54 = vld [vmem:[%s11131_s14 + $0x240] sm:$0xff] }
 0x33f   : > { %v3132_v39 = vpop.permute.xlu1 %3131 }
 0x340   : > { %3205 = vst.msk [vmem:[#allocation2 + $0xb8] sm:$0xff] %vm3181_vm11, %v3132_v39  ;;  %v3130_v29 = vpop.permute.xlu0 %3129 }
 0x341   : > { %3204 = vst.msk [vmem:[#allocation2 + $0xb0] sm:$0xff] %vm3181_vm11, %v3130_v29  ;;  %3637 = vrot.lane.b32.xlu1 %v3556_v47, %s11013_s24  ;;  %v13092_v47 = vpack.c.bf16 %v9458_v36, %v9457_v17  ;;  %v9489_v17 = vld [vmem:[%s11131_s14 + $0x268] sm:$0xff]  ;;  %v9490_v36 = vld [vmem:[%s11131_s14 + $0x270] sm:$0xff] }
 0x342   : > { %3635 = vrot.lane.b32.xlu0 %v3555_v62, %s11013_s24  ;;  %v3798_v62 = vpack.c.bf16 %v9456_v25, %v9455_v24  ;;  %v9487_v24 = vld [vmem:[%s11131_s14 + $0x258] sm:$0xff]  ;;  %v9488_v25 = vld [vmem:[%s11131_s14 + $0x260] sm:$0xff] }
 0x343   : > { %v3136_v10 = vpop.permute.xlu1 %3135 }
 0x344   : > { %3207 = vst.msk [vmem:[#allocation2 + $0xc8] sm:$0xff] %vm3181_vm11, %v3136_v10  ;;  %v3134_v6 = vpop.permute.xlu0 %3133 }
 0x345   : > { %3206 = vst.msk [vmem:[#allocation2 + $0xc0] sm:$0xff] %vm3181_vm11, %v3134_v6  ;;  %3641 = vrot.lane.b32.xlu1 %v3558_v28, %s11013_s24  ;;  %v13103_v28 = vpack.c.bf16 %v9462_v32, %v9461_v50  ;;  %v13204_v50 = vpack.c.bf16 %v9488_v25, %v9487_v24  ;;  %v9493_v32 = vld [vmem:[%s11131_s14 + $0x288] sm:$0xff]  ;;  %v9512_v24 = vld [vmem:[%s11131_s14 + $0x320] sm:$0xff] }
 0x346   : > { %3639 = vrot.lane.b32.xlu0 %v3557_v40, %s11013_s24  ;;  %v13106_v40 = vpack.c.bf16 %v9460_v56, %v9459_v22  ;;  %v9491_v56 = vld [vmem:[%s11131_s14 + $0x278] sm:$0xff] }
 0x347   : > { %v3140_v18 = vpop.permute.xlu1 %3139 }
 0x348   : > { %3209 = vst.msk [vmem:[#allocation2 + $0xd8] sm:$0xff] %vm3181_vm11, %v3140_v18  ;;  %v3138_v7 = vpop.permute.xlu0 %3137 }
 0x349   : > { %3208 = vst.msk [vmem:[#allocation2 + $0xd0] sm:$0xff] %vm3181_vm11, %v3138_v7  ;;  %3645 = vrot.lane.b32.xlu1 %v3560_v20, %s11013_s24  ;;  %v13116_v20 = vpack.c.bf16 %v9466_v60, %v9465_v57 }
 0x34a   : > { %3643 = vrot.lane.b32.xlu0 %v3559_v19, %s11013_s24  ;;  %v13120_v19 = vpack.c.bf16 %v9464_v34, %v9463_v11  ;;  %v9497_v11 = vld [vmem:[%s11131_s14 + $0x2a8] sm:$0xff]  ;;  %v9498_v34 = vld [vmem:[%s11131_s14 + $0x2b0] sm:$0xff] }
 0x34b   : > { %v3144_v23 = vpop.permute.xlu1 %3143 }
 0x34c   : > { %3211 = vst.msk [vmem:[#allocation2 + $0xe8] sm:$0xff] %vm3181_vm11, %v3144_v23  ;;  %v3142_v0 = vpop.permute.xlu0 %3141 }
 0x34d   : > { %3210 = vst.msk [vmem:[#allocation2 + $0xe0] sm:$0xff] %vm3181_vm11, %v3142_v0  ;;  %3649 = vrot.lane.b32.xlu1 %v3562_v53, %s11013_s24  ;;  %v13130_v53 = vpack.c.bf16 %v9470_v16, %v9469_v63  ;;  %v9495_v63 = vld [vmem:[%s11131_s14 + $0x298] sm:$0xff]  ;;  %v9496_v16 = vld [vmem:[%s11131_s14 + $0x2a0] sm:$0xff] }
 0x34e   : > { %3647 = vrot.lane.b32.xlu0 %v3561_v52, %s11013_s24  ;;  %v13134_v52 = vpack.c.bf16 %v9468_v59, %v9467_v31  ;;  %v13228_v31 = vpack.c.bf16 %v9498_v34, %v9497_v11  ;;  %v13232_v59 = vpack.c.bf16 %v9496_v16, %v9495_v63 }
 0x34f   : > { %v3148_v5 = vpop.permute.xlu1 %3147 }
 0x350   : > { %3213 = vst.msk [vmem:[#allocation2 + $0xf8] sm:$0xff] %vm3181_vm11, %v3148_v5  ;;  %v3146_v21 = vpop.permute.xlu0 %3145 }
 0x351   : > { %3212 = vst.msk [vmem:[#allocation2 + $0xf0] sm:$0xff] %vm3181_vm11, %v3146_v21  ;;  %3653 = vrot.lane.b32.xlu1 %v3564_v1, %s11013_s24  ;;  %v13144_v1 = vpack.c.bf16 %v9474_v13, %v9473_v8  ;;  %v9502_v8 = vld [vmem:[%s11131_s14 + $0x2d0] sm:$0xff]  ;;  %vm7066_vm11 = vcmask 884544  }
 0x352   : > { %3651 = vrot.lane.b32.xlu0 %v3563_v2, %s11013_s24  ;;  %v13148_v2 = vpack.c.bf16 %v9472_v46, %v9471_v41  ;;  %v9500_v41 = vld [vmem:[%s11131_s14 + $0x2c0] sm:$0xff] }
 0x353   : > { %v3347_v51 = vpop.permute.xlu1 %3346 }
 0x354   : > { %3442 = vst.msk [vmem:[#allocation2 + $0x8] sm:$0xff] %vm3440_vm12, %v3347_v51  ;;  %v3345_v61 = vpop.permute.xlu0 %3344 }
 0x355   : > { %3441 = vst.msk [vmem:[#allocation2] sm:$0xff] %vm3440_vm12, %v3345_v61  ;;  %3657 = vrot.lane.b32.xlu1 %v3566_v26, %s11013_s24  ;;  %v13158_v26 = vpack.c.bf16 %v9478_v4, %v9477_v3  ;;  %v9505_v4 = vld [vmem:[%s11131_s14 + $0x2e8] sm:$0xff] }
 0x356   : > { %3655 = vrot.lane.b32.xlu0 %v3565_v27, %s11013_s24  ;;  %v13162_v27 = vpack.c.bf16 %v9476_v15, %v9475_v14  ;;  %v9503_v15 = vld [vmem:[%s11131_s14 + $0x2d8] sm:$0xff] }
 0x357   : > { %v3351_v45 = vpop.permute.xlu1 %3350 }
 0x358   : > { %3444 = vst.msk [vmem:[#allocation2 + $0x18] sm:$0xff] %vm3440_vm12, %v3351_v45  ;;  %v3349_v49 = vpop.permute.xlu0 %3348 }
 0x359   : > { %3443 = vst.msk [vmem:[#allocation2 + $0x10] sm:$0xff] %vm3440_vm12, %v3349_v49  ;;  %3661 = vrot.lane.b32.xlu1 %v3568_v12, %s11013_s24  ;;  %v13172_v12 = vpack.c.bf16 %v9482_v38, %v9481_v48 }
 0x35a   : > { %3659 = vrot.lane.b32.xlu0 %v3567_v9, %s11013_s24  ;;  %v13176_v9 = vpack.c.bf16 %v9480_v42, %v9479_v37  ;;  %v9509_v37 = vld [vmem:[%s11131_s14 + $0x308] sm:$0xff]  ;;  %v9510_v42 = vld [vmem:[%s11131_s14 + $0x310] sm:$0xff] }
 0x35b   : > { %v3355_v43 = vpop.permute.xlu1 %3354 }
 0x35c   : > { %3446 = vst.msk [vmem:[#allocation2 + $0x28] sm:$0xff] %vm3440_vm12, %v3355_v43  ;;  %v3353_v33 = vpop.permute.xlu0 %3352 }
 0x35d   : > { %3445 = vst.msk [vmem:[#allocation2 + $0x20] sm:$0xff] %vm3440_vm12, %v3353_v33  ;;  %3665 = vrot.lane.b32.xlu1 %v3570_v55, %s11013_s24  ;;  %v13186_v55 = vpack.c.bf16 %v9486_v35, %v9485_v58  ;;  %v9507_v58 = vld [vmem:[%s11131_s14 + $0x2f8] sm:$0xff]  ;;  %v9508_v35 = vld [vmem:[%s11131_s14 + $0x300] sm:$0xff] }
 0x35e   : > { %3663 = vrot.lane.b32.xlu0 %v3569_v30, %s11013_s24  ;;  %v13190_v30 = vpack.c.bf16 %v9484_v54, %v9483_v44  ;;  %v13270_v44 = vpack.c.bf16 %v9510_v42, %v9509_v37  ;;  %v13274_v54 = vpack.c.bf16 %v9508_v35, %v9507_v58  ;;  %v9591_v58 = vld [vmem:[%s11131_s14 + $0x199] sm:$0xff]  ;;  %v9592_v35 = vld [vmem:[%s11131_s14 + $0x1a1] sm:$0xff]  ;;  %s11024_s24 = smov 96  }
 0x35f   : > { %v3359_v39 = vpop.permute.xlu1 %3358 }
 0x360   : > { %3448 = vst.msk [vmem:[#allocation2 + $0x38] sm:$0xff] %vm3440_vm12, %v3359_v39  ;;  %v3357_v29 = vpop.permute.xlu0 %3356  ;;  %v9494_v39 = vld [vmem:[%s11131_s14 + $0x290] sm:$0xff] }
 0x361   : > { %3447 = vst.msk [vmem:[#allocation2 + $0x30] sm:$0xff] %vm3440_vm12, %v3357_v29  ;;  %3864 = vrot.lane.b32.xlu1 %v13092_v47, %s11014_s27  ;;  %v9492_v29 = vld [vmem:[%s11131_s14 + $0x280] sm:$0xff]  ;;  %v13214_v60 = vpack.c.bf16 %v9494_v39, %v9493_v32  ;;  %v9517_v39 = vld [vmem:[%s11131_s14 + $0x348] sm:$0xff] }
 0x362   : > { %3862 = vrot.lane.b32.xlu0 %v3798_v62, %s11014_s27  ;;  %v13200_v62 = vpack.c.bf16 %v9490_v36, %v9489_v17  ;;  %v9514_v17 = vld [vmem:[%s11131_s14 + $0x330] sm:$0xff] }
 0x363   : > { %v3363_v10 = vpop.permute.xlu1 %3362 }
 0x364   : > { %3450 = vst.msk [vmem:[#allocation2 + $0x48] sm:$0xff] %vm3440_vm12, %v3363_v10  ;;  %v3361_v6 = vpop.permute.xlu0 %3360  ;;  %v13218_v10 = vpack.c.bf16 %v9492_v29, %v9491_v56  ;;  %v9515_v29 = vld [vmem:[%s11131_s14 + $0x338] sm:$0xff] }
 0x365   : > { %3449 = vst.msk [vmem:[#allocation2 + $0x40] sm:$0xff] %vm3440_vm12, %v3361_v6  ;;  %3868 = vrot.lane.b32.xlu1 %v13103_v28, %s11014_s27 }
 0x366   : > { %3866 = vrot.lane.b32.xlu0 %v13106_v40, %s11014_s27 }
 0x367   : > { %v3367_v18 = vpop.permute.xlu1 %3366 }
 0x368   : > { %3452 = vst.msk [vmem:[#allocation2 + $0x58] sm:$0xff] %vm3440_vm12, %v3367_v18  ;;  %v3365_v7 = vpop.permute.xlu0 %3364 }
 0x369   : > { %3451 = vst.msk [vmem:[#allocation2 + $0x50] sm:$0xff] %vm3440_vm12, %v3365_v7  ;;  %3872 = vrot.lane.b32.xlu1 %v13116_v20, %s11014_s27  ;;  %v9501_v7 = vld [vmem:[%s11131_s14 + $0x2c8] sm:$0xff] }
 0x36a   : > { %3870 = vrot.lane.b32.xlu0 %v13120_v19, %s11014_s27 }
 0x36b   : > { %v3371_v23 = vpop.permute.xlu1 %3370 }
 0x36c   : > { %3454 = vst.msk [vmem:[#allocation2 + $0x68] sm:$0xff] %vm3440_vm12, %v3371_v23  ;;  %v3369_v0 = vpop.permute.xlu0 %3368  ;;  %v9499_v23 = vld [vmem:[%s11131_s14 + $0x2b8] sm:$0xff] }
 0x36d   : > { %3453 = vst.msk [vmem:[#allocation2 + $0x60] sm:$0xff] %vm3440_vm12, %v3369_v0  ;;  %3876 = vrot.lane.b32.xlu1 %v13130_v53, %s11014_s27  ;;  %v13242_v0 = vpack.c.bf16 %v9502_v8, %v9501_v7  ;;  %v13246_v3 = vpack.c.bf16 %v9500_v41, %v9499_v23 }
 0x36e   : > { %3874 = vrot.lane.b32.xlu0 %v13134_v52, %s11014_s27 }
 0x36f   : > { %v3375_v5 = vpop.permute.xlu1 %3374 }
 0x370   : > { %3456 = vst.msk [vmem:[#allocation2 + $0x78] sm:$0xff] %vm3440_vm12, %v3375_v5  ;;  %v3373_v21 = vpop.permute.xlu0 %3372  ;;  %v9506_v5 = vld [vmem:[%s11131_s14 + $0x2f0] sm:$0xff] }
 0x371   : > { %3455 = vst.msk [vmem:[#allocation2 + $0x70] sm:$0xff] %vm3440_vm12, %v3373_v21  ;;  %3880 = vrot.lane.b32.xlu1 %v13144_v1, %s11014_s27  ;;  %v9504_v21 = vld [vmem:[%s11131_s14 + $0x2e0] sm:$0xff]  ;;  %v13256_v38 = vpack.c.bf16 %v9506_v5, %v9505_v4 }
 0x372   : > { %3878 = vrot.lane.b32.xlu0 %v13148_v2, %s11014_s27 }
 0x373   : > { %v3379_v51 = vpop.permute.xlu1 %3378 }
 0x374   : > { %3458 = vst.msk [vmem:[#allocation2 + $0x88] sm:$0xff] %vm3440_vm12, %v3379_v51  ;;  %v3377_v61 = vpop.permute.xlu0 %3376  ;;  %v13260_v51 = vpack.c.bf16 %v9504_v21, %v9503_v15  ;;  %v9587_v15 = vld [vmem:[%s11131_s14 + $0x179] sm:$0xff]  ;;  %v9588_v21 = vld [vmem:[%s11131_s14 + $0x181] sm:$0xff] }
 0x375   : > { %3457 = vst.msk [vmem:[#allocation2 + $0x80] sm:$0xff] %vm3440_vm12, %v3377_v61  ;;  %3884 = vrot.lane.b32.xlu1 %v13158_v26, %s11014_s27  ;;  %v4317_v42 = vpack.c.bf16 %v9588_v21, %v9587_v15  ;;  %v9619_v21 = vld [vmem:[%s11131_s14 + $0x279] sm:$0xff] }
 0x376   : > { %3882 = vrot.lane.b32.xlu0 %v13162_v27, %s11014_s27 }
 0x377   : > { %v3383_v45 = vpop.permute.xlu1 %3382 }
 0x378   : > { %3460 = vst.msk [vmem:[#allocation2 + $0x98] sm:$0xff] %vm3440_vm12, %v3383_v45  ;;  %v3381_v49 = vpop.permute.xlu0 %3380 }
 0x379   : > { %3459 = vst.msk [vmem:[#allocation2 + $0x90] sm:$0xff] %vm3440_vm12, %v3381_v49  ;;  %3888 = vrot.lane.b32.xlu1 %v13172_v12, %s11014_s27  ;;  %v9513_v49 = vld [vmem:[%s11131_s14 + $0x328] sm:$0xff] }
 0x37a   : > { %3886 = vrot.lane.b32.xlu0 %v13176_v9, %s11014_s27 }
 0x37b   : > { %v3387_v43 = vpop.permute.xlu1 %3386 }
 0x37c   : > { %3462 = vst.msk [vmem:[#allocation2 + $0xa8] sm:$0xff] %vm3440_vm12, %v3387_v43  ;;  %v3385_v33 = vpop.permute.xlu0 %3384  ;;  %v9511_v43 = vld [vmem:[%s11131_s14 + $0x318] sm:$0xff] }
 0x37d   : > { %3461 = vst.msk [vmem:[#allocation2 + $0xa0] sm:$0xff] %vm3440_vm12, %v3385_v33  ;;  %3892 = vrot.lane.b32.xlu1 %v13186_v55, %s11014_s27  ;;  %v13284_v33 = vpack.c.bf16 %v9514_v17, %v9513_v49  ;;  %v13288_v32 = vpack.c.bf16 %v9512_v24, %v9511_v43  ;;  %v4319_v17 = vpack.c.bf16 %v9592_v35, %v9591_v58  ;;  %v9595_v43 = vld [vmem:[%s11131_s14 + $0x1b9] sm:$0xff]  ;;  %v9596_v24 = vld [vmem:[%s11131_s14 + $0x1c1] sm:$0xff] }
 0x37e   : > { %3890 = vrot.lane.b32.xlu0 %v13190_v30, %s11014_s27  ;;  %v9623_v35 = vld [vmem:[%s11131_s14 + $0x299] sm:$0xff] }
 0x37f   : > { %v3391_v22 = vpop.permute.xlu1 %3390 }
 0x380   : > { %3464 = vst.msk [vmem:[#allocation2 + $0xb8] sm:$0xff] %vm3440_vm12, %v3391_v22  ;;  %v3389_v57 = vpop.permute.xlu0 %3388  ;;  %v9518_v22 = vld [vmem:[%s11131_s14 + $0x350] sm:$0xff] }
 0x381   : > { %3463 = vst.msk [vmem:[#allocation2 + $0xb0] sm:$0xff] %vm3440_vm12, %v3389_v57  ;;  %3896 = vrot.lane.b32.xlu1 %v13200_v62, %s11014_s27  ;;  %v9516_v57 = vld [vmem:[%s11131_s14 + $0x340] sm:$0xff]  ;;  %v13298_v34 = vpack.c.bf16 %v9518_v22, %v9517_v39  ;;  %v4321_v22 = vpack.c.bf16 %v9596_v24, %v9595_v43 }
 0x382   : > { %3894 = vrot.lane.b32.xlu0 %v13204_v50, %s11014_s27  ;;  %v9627_v24 = vld [vmem:[%s11131_s14 + $0x2b9] sm:$0xff] }
 0x383   : > { %v3395_v6 = vpop.permute.xlu1 %3394 }
 0x384   : > { %3466 = vst.msk [vmem:[#allocation2 + $0xc8] sm:$0xff] %vm3440_vm12, %v3395_v6  ;;  %v3393_v18 = vpop.permute.xlu0 %3392  ;;  %v13302_v6 = vpack.c.bf16 %v9516_v57, %v9515_v29  ;;  %v9599_v29 = vld [vmem:[%s11131_s14 + $0x1d9] sm:$0xff]  ;;  %v9600_v57 = vld [vmem:[%s11131_s14 + $0x1e1] sm:$0xff] }
 0x385   : > { %3465 = vst.msk [vmem:[#allocation2 + $0xc0] sm:$0xff] %vm3440_vm12, %v3393_v18  ;;  %3900 = vrot.lane.b32.xlu1 %v13214_v60, %s11014_s27 }
 0x386   : > { %3898 = vrot.lane.b32.xlu0 %v13218_v10, %s11014_s27 }
 0x387   : > { %v3399_v13 = vpop.permute.xlu1 %3398 }
 0x388   : > { %3468 = vst.msk [vmem:[#allocation2 + $0xd8] sm:$0xff] %vm3440_vm12, %v3399_v13  ;;  %v3397_v46 = vpop.permute.xlu0 %3396 }
 0x389   : > { %3467 = vst.msk [vmem:[#allocation2 + $0xd0] sm:$0xff] %vm3440_vm12, %v3397_v46  ;;  %3904 = vrot.lane.b32.xlu1 %v13228_v31, %s11014_s27 }
 0x38a   : > { %3902 = vrot.lane.b32.xlu0 %v13232_v59, %s11014_s27 }
 0x38b   : > { %v3403_v14 = vpop.permute.xlu1 %3402 }
 0x38c   : > { %3470 = vst.msk [vmem:[#allocation2 + $0xe8] sm:$0xff] %vm3440_vm12, %v3403_v14  ;;  %v3401_v48 = vpop.permute.xlu0 %3400 }
 0x38d   : > { %3469 = vst.msk [vmem:[#allocation2 + $0xe0] sm:$0xff] %vm3440_vm12, %v3401_v48  ;;  %3908 = vrot.lane.b32.xlu1 %v13242_v0, %s11014_s27 }
 0x38e   : > { %3906 = vrot.lane.b32.xlu0 %v13246_v3, %s11014_s27 }
 0x38f   : > { %v3407_v61 = vpop.permute.xlu1 %3406 }
 0x390   : > { %3472 = vst.msk [vmem:[#allocation2 + $0xf8] sm:$0xff] %vm3440_vm12, %v3407_v61  ;;  %v3405_v45 = vpop.permute.xlu0 %3404 }
 0x391   : > { %3471 = vst.msk [vmem:[#allocation2 + $0xf0] sm:$0xff] %vm3440_vm12, %v3405_v45  ;;  %3912 = vrot.lane.b32.xlu1 %v13256_v38, %s11014_s27  ;;  %vm7193_vm12 = vcmask 883712  }
 0x392   : > { %3910 = vrot.lane.b32.xlu0 %v13260_v51, %s11014_s27 }
 0x393   : > { %v3606_v36 = vpop.permute.xlu1 %3605 }
 0x394   : > { %3701 = vst.msk [vmem:[#allocation2 + $0x8] sm:$0xff] %vm3699_vm13, %v3606_v36  ;;  %v3604_v25 = vpop.permute.xlu0 %3603 }
 0x395   : > { %3700 = vst.msk [vmem:[#allocation2] sm:$0xff] %vm3699_vm13, %v3604_v25  ;;  %3916 = vrot.lane.b32.xlu1 %v13270_v44, %s11014_s27 }
 0x396   : > { %3914 = vrot.lane.b32.xlu0 %v13274_v54, %s11014_s27 }
 0x397   : > { %v3610_v56 = vpop.permute.xlu1 %3609 }
 0x398   : > { %3703 = vst.msk [vmem:[#allocation2 + $0x18] sm:$0xff] %vm3699_vm13, %v3610_v56  ;;  %v3608_v11 = vpop.permute.xlu0 %3607 }
 0x399   : > { %3702 = vst.msk [vmem:[#allocation2 + $0x10] sm:$0xff] %vm3699_vm13, %v3608_v11  ;;  %3920 = vrot.lane.b32.xlu1 %v13284_v33, %s11014_s27 }
 0x39a   : > { %3918 = vrot.lane.b32.xlu0 %v13288_v32, %s11014_s27 }
 0x39b   : > { %v3614_v63 = vpop.permute.xlu1 %3613 }
 0x39c   : > { %3705 = vst.msk [vmem:[#allocation2 + $0x28] sm:$0xff] %vm3699_vm13, %v3614_v63  ;;  %v3612_v16 = vpop.permute.xlu0 %3611 }
 0x39d   : > { %3704 = vst.msk [vmem:[#allocation2 + $0x20] sm:$0xff] %vm3699_vm13, %v3612_v16  ;;  %3924 = vrot.lane.b32.xlu1 %v13298_v34, %s11014_s27  ;;  %v4323_v16 = vpack.c.bf16 %v9600_v57, %v9599_v29  ;;  %v9631_v57 = vld [vmem:[%s11131_s14 + $0x2d9] sm:$0xff] }
 0x39e   : > { %3922 = vrot.lane.b32.xlu0 %v13302_v6, %s11014_s27  ;;  %s11025_s27 = smov 100  }
 0x39f   : > { %v3618_v18 = vpop.permute.xlu1 %3617 }
 0x3a0   : > { %3707 = vst.msk [vmem:[#allocation2 + $0x38] sm:$0xff] %vm3699_vm13, %v3618_v18  ;;  %v3616_v7 = vpop.permute.xlu0 %3615 }
 0x3a1   : > { %3706 = vst.msk [vmem:[#allocation2 + $0x30] sm:$0xff] %vm3699_vm13, %v3616_v7  ;;  %4123 = vrot.lane.b32.xlu1 %v13106_v40, %s11015_s30  ;;  %v9603_v7 = vld [vmem:[%s11131_s14 + $0x1f9] sm:$0xff] }
 0x3a2   : > { %4121 = vrot.lane.b32.xlu0 %v13092_v47, %s11015_s30 }
 0x3a3   : > { %v3622_v8 = vpop.permute.xlu1 %3621 }
 0x3a4   : > { %3709 = vst.msk [vmem:[#allocation2 + $0x48] sm:$0xff] %vm3699_vm13, %v3622_v8  ;;  %v3620_v13 = vpop.permute.xlu0 %3619  ;;  %v9604_v8 = vld [vmem:[%s11131_s14 + $0x201] sm:$0xff] }
 0x3a5   : > { %3708 = vst.msk [vmem:[#allocation2 + $0x40] sm:$0xff] %vm3699_vm13, %v3620_v13  ;;  %4127 = vrot.lane.b32.xlu1 %v13120_v19, %s11015_s30 }
 0x3a6   : > { %4125 = vrot.lane.b32.xlu0 %v13103_v28, %s11015_s30 }
 0x3a7   : > { %v3626_v23 = vpop.permute.xlu1 %3625 }
 0x3a8   : > { %3711 = vst.msk [vmem:[#allocation2 + $0x58] sm:$0xff] %vm3699_vm13, %v3626_v23  ;;  %v3624_v41 = vpop.permute.xlu0 %3623  ;;  %v9601_v23 = vld [vmem:[%s11131_s14 + $0x1e9] sm:$0xff] }
 0x3a9   : > { %3710 = vst.msk [vmem:[#allocation2 + $0x50] sm:$0xff] %vm3699_vm13, %v3624_v41  ;;  %4131 = vrot.lane.b32.xlu1 %v13134_v52, %s11015_s30  ;;  %v9602_v41 = vld [vmem:[%s11131_s14 + $0x1f1] sm:$0xff] }
 0x3aa   : > { %4129 = vrot.lane.b32.xlu0 %v13116_v20, %s11015_s30 }
 0x3ab   : > { %v3630_v47 = vpop.permute.xlu1 %3629 }
 0x3ac   : > { %3713 = vst.msk [vmem:[#allocation2 + $0x68] sm:$0xff] %vm3699_vm13, %v3630_v47  ;;  %v3628_v40 = vpop.permute.xlu0 %3627 }
 0x3ad   : > { %3712 = vst.msk [vmem:[#allocation2 + $0x60] sm:$0xff] %vm3699_vm13, %v3628_v40  ;;  %4135 = vrot.lane.b32.xlu1 %v13148_v2, %s11015_s30  ;;  %v4325_v40 = vpack.c.bf16 %v9604_v8, %v9603_v7  ;;  %v9635_v8 = vld [vmem:[%s11131_s14 + $0x2f9] sm:$0xff] }
 0x3ae   : > { %4133 = vrot.lane.b32.xlu0 %v13130_v53, %s11015_s30 }
 0x3af   : > { %v3634_v28 = vpop.permute.xlu1 %3633 }
 0x3b0   : > { %3715 = vst.msk [vmem:[#allocation2 + $0x78] sm:$0xff] %vm3699_vm13, %v3634_v28  ;;  %v3632_v19 = vpop.permute.xlu0 %3631  ;;  %v4324_v28 = vpack.c.bf16 %v9602_v41, %v9601_v23  ;;  %v9633_v41 = vld [vmem:[%s11131_s14 + $0x2e9] sm:$0xff] }
 0x3b1   : > { %3714 = vst.msk [vmem:[#allocation2 + $0x70] sm:$0xff] %vm3699_vm13, %v3632_v19  ;;  %4139 = vrot.lane.b32.xlu1 %v13162_v27, %s11015_s30  ;;  %v9607_v19 = vld [vmem:[%s11131_s14 + $0x219] sm:$0xff] }
 0x3b2   : > { %4137 = vrot.lane.b32.xlu0 %v13144_v1, %s11015_s30 }
 0x3b3   : > { %v3638_v20 = vpop.permute.xlu1 %3637 }
 0x3b4   : > { %3717 = vst.msk [vmem:[#allocation2 + $0x88] sm:$0xff] %vm3699_vm13, %v3638_v20  ;;  %v3636_v52 = vpop.permute.xlu0 %3635  ;;  %v9608_v20 = vld [vmem:[%s11131_s14 + $0x221] sm:$0xff] }
 0x3b5   : > { %3716 = vst.msk [vmem:[#allocation2 + $0x80] sm:$0xff] %vm3699_vm13, %v3636_v52  ;;  %4143 = vrot.lane.b32.xlu1 %v13176_v9, %s11015_s30 }
 0x3b6   : > { %4141 = vrot.lane.b32.xlu0 %v13158_v26, %s11015_s30 }
 0x3b7   : > { %v3642_v53 = vpop.permute.xlu1 %3641 }
 0x3b8   : > { %3719 = vst.msk [vmem:[#allocation2 + $0x98] sm:$0xff] %vm3699_vm13, %v3642_v53  ;;  %v3640_v2 = vpop.permute.xlu0 %3639  ;;  %v9605_v53 = vld [vmem:[%s11131_s14 + $0x209] sm:$0xff] }
 0x3b9   : > { %3718 = vst.msk [vmem:[#allocation2 + $0x90] sm:$0xff] %vm3699_vm13, %v3640_v2  ;;  %4147 = vrot.lane.b32.xlu1 %v13190_v30, %s11015_s30  ;;  %v9606_v2 = vld [vmem:[%s11131_s14 + $0x211] sm:$0xff] }
 0x3ba   : > { %4145 = vrot.lane.b32.xlu0 %v13172_v12, %s11015_s30 }
 0x3bb   : > { %v3646_v1 = vpop.permute.xlu1 %3645 }
 0x3bc   : > { %3721 = vst.msk [vmem:[#allocation2 + $0xa8] sm:$0xff] %vm3699_vm13, %v3646_v1  ;;  %v3644_v27 = vpop.permute.xlu0 %3643 }
 0x3bd   : > { %3720 = vst.msk [vmem:[#allocation2 + $0xa0] sm:$0xff] %vm3699_vm13, %v3644_v27  ;;  %4151 = vrot.lane.b32.xlu1 %v13204_v50, %s11015_s30  ;;  %v4327_v27 = vpack.c.bf16 %v9608_v20, %v9607_v19  ;;  %v9639_v20 = vld [vmem:[%s11131_s14 + $0x319] sm:$0xff] }
 0x3be   : > { %4149 = vrot.lane.b32.xlu0 %v13186_v55, %s11015_s30 }
 0x3bf   : > { %v3650_v26 = vpop.permute.xlu1 %3649 }
 0x3c0   : > { %3723 = vst.msk [vmem:[#allocation2 + $0xb8] sm:$0xff] %vm3699_vm13, %v3650_v26  ;;  %v3648_v9 = vpop.permute.xlu0 %3647  ;;  %v4326_v26 = vpack.c.bf16 %v9606_v2, %v9605_v53  ;;  %v9637_v2 = vld [vmem:[%s11131_s14 + $0x309] sm:$0xff] }
 0x3c1   : > { %3722 = vst.msk [vmem:[#allocation2 + $0xb0] sm:$0xff] %vm3699_vm13, %v3648_v9  ;;  %4155 = vrot.lane.b32.xlu1 %v13218_v10, %s11015_s30  ;;  %v9611_v9 = vld [vmem:[%s11131_s14 + $0x239] sm:$0xff] }
 0x3c2   : > { %4153 = vrot.lane.b32.xlu0 %v13200_v62, %s11015_s30 }
 0x3c3   : > { %v3654_v12 = vpop.permute.xlu1 %3653 }
 0x3c4   : > { %3725 = vst.msk [vmem:[#allocation2 + $0xc8] sm:$0xff] %vm3699_vm13, %v3654_v12  ;;  %v3652_v30 = vpop.permute.xlu0 %3651  ;;  %v9612_v12 = vld [vmem:[%s11131_s14 + $0x241] sm:$0xff] }
 0x3c5   : > { %3724 = vst.msk [vmem:[#allocation2 + $0xc0] sm:$0xff] %vm3699_vm13, %v3652_v30  ;;  %4159 = vrot.lane.b32.xlu1 %v13232_v59, %s11015_s30 }
 0x3c6   : > { %4157 = vrot.lane.b32.xlu0 %v13214_v60, %s11015_s30 }
 0x3c7   : > { %v3658_v55 = vpop.permute.xlu1 %3657 }
 0x3c8   : > { %3727 = vst.msk [vmem:[#allocation2 + $0xd8] sm:$0xff] %vm3699_vm13, %v3658_v55  ;;  %v3656_v50 = vpop.permute.xlu0 %3655  ;;  %v9609_v55 = vld [vmem:[%s11131_s14 + $0x229] sm:$0xff] }
 0x3c9   : > { %3726 = vst.msk [vmem:[#allocation2 + $0xd0] sm:$0xff] %vm3699_vm13, %v3656_v50  ;;  %4163 = vrot.lane.b32.xlu1 %v13246_v3, %s11015_s30  ;;  %v9583_v3 = vld [vmem:[%s11131_s14 + $0x360] sm:$0xff]  ;;  %v9610_v50 = vld [vmem:[%s11131_s14 + $0x231] sm:$0xff] }
 0x3ca   : > { %4161 = vrot.lane.b32.xlu0 %v13228_v31, %s11015_s30 }
 0x3cb   : > { %v3662_v62 = vpop.permute.xlu1 %3661 }
 0x3cc   : > { %3729 = vst.msk [vmem:[#allocation2 + $0xe8] sm:$0xff] %vm3699_vm13, %v3662_v62  ;;  %v3660_v10 = vpop.permute.xlu0 %3659 }
 0x3cd   : > { %3728 = vst.msk [vmem:[#allocation2 + $0xe0] sm:$0xff] %vm3699_vm13, %v3660_v10  ;;  %4167 = vrot.lane.b32.xlu1 %v13260_v51, %s11015_s30  ;;  %v9586_v51 = vld [vmem:[%s11131_s14 + $0x171] sm:$0xff]  ;;  %v4329_v10 = vpack.c.bf16 %v9612_v12, %v9611_v9  ;;  %v9643_v12 = vld [vmem:[%s11131_s14 + $0x339] sm:$0xff] }
 0x3ce   : > { %4165 = vrot.lane.b32.xlu0 %v13242_v0, %s11015_s30  ;;  %v9582_v0 = vld [vmem:[%s11131_s14 + $0x358] sm:$0xff] }
 0x3cf   : > { %v3666_v60 = vpop.permute.xlu1 %3665  ;;  %v13400_v14 = vpack.c.bf16 %v9583_v3, %v9582_v0  ;;  %v9613_v0 = vld [vmem:[%s11131_s14 + $0x249] sm:$0xff]  ;;  %v9614_v3 = vld [vmem:[%s11131_s14 + $0x251] sm:$0xff] }
 0x3d0   : > { %3731 = vst.msk [vmem:[#allocation2 + $0xf8] sm:$0xff] %vm3699_vm13, %v3666_v60  ;;  %v3664_v59 = vpop.permute.xlu0 %3663  ;;  %v4328_v60 = vpack.c.bf16 %v9610_v50, %v9609_v55  ;;  %v4330_v15 = vpack.c.bf16 %v9614_v3, %v9613_v0  ;;  %v9641_v50 = vld [vmem:[%s11131_s14 + $0x329] sm:$0xff] }
 0x3d1   : > { %3730 = vst.msk [vmem:[#allocation2 + $0xf0] sm:$0xff] %vm3699_vm13, %v3664_v59  ;;  %4171 = vrot.lane.b32.xlu1 %v13274_v54, %s11015_s30  ;;  %v9590_v54 = vld [vmem:[%s11131_s14 + $0x191] sm:$0xff]  ;;  %v9615_v59 = vld [vmem:[%s11131_s14 + $0x259] sm:$0xff]  ;;  %v9645_v3 = vld [vmem:[%s11131_s14 + $0x349] sm:$0xff] }
 0x3d2   : > { %4169 = vrot.lane.b32.xlu0 %v13256_v38, %s11015_s30  ;;  %v9585_v38 = vld [vmem:[%s11131_s14 + $0x169] sm:$0xff] }
 0x3d3   : > { %v3865_v31 = vpop.permute.xlu1 %3864  ;;  %v4316_v61 = vpack.c.bf16 %v9586_v51, %v9585_v38  ;;  %v9617_v51 = vld [vmem:[%s11131_s14 + $0x269] sm:$0xff] }
 0x3d4   : > { %3960 = vst.msk [vmem:[#allocation2 + $0x8] sm:$0xff] %vm3958_vm14, %v3865_v31  ;;  %v3863_v46 = vpop.permute.xlu0 %3862  ;;  %v9616_v31 = vld [vmem:[%s11131_s14 + $0x261] sm:$0xff] }
 0x3d5   : > { %3959 = vst.msk [vmem:[#allocation2] sm:$0xff] %vm3958_vm14, %v3863_v46  ;;  %4175 = vrot.lane.b32.xlu1 %v13288_v32, %s11015_s30  ;;  %v9594_v32 = vld [vmem:[%s11131_s14 + $0x1b1] sm:$0xff] }
 0x3d6   : > { %4173 = vrot.lane.b32.xlu0 %v13270_v44, %s11015_s30  ;;  %v9589_v44 = vld [vmem:[%s11131_s14 + $0x189] sm:$0xff] }
 0x3d7   : > { %v3869_v4 = vpop.permute.xlu1 %3868  ;;  %v4318_v36 = vpack.c.bf16 %v9590_v54, %v9589_v44  ;;  %v9621_v54 = vld [vmem:[%s11131_s14 + $0x289] sm:$0xff] }
 0x3d8   : > { %3962 = vst.msk [vmem:[#allocation2 + $0x18] sm:$0xff] %vm3958_vm14, %v3869_v4  ;;  %v3867_v5 = vpop.permute.xlu0 %3866 }
 0x3d9   : > { %3961 = vst.msk [vmem:[#allocation2 + $0x10] sm:$0xff] %vm3958_vm14, %v3867_v5  ;;  %4179 = vrot.lane.b32.xlu1 %v13302_v6, %s11015_s30  ;;  %v9598_v6 = vld [vmem:[%s11131_s14 + $0x1d1] sm:$0xff]  ;;  %v4331_v5 = vpack.c.bf16 %v9616_v31, %v9615_v59  ;;  %v9647_v31 = vld [vmem:[%s11131_s14 + $0x359] sm:$0xff] }
 0x3da   : > { %4177 = vrot.lane.b32.xlu0 %v13284_v33, %s11015_s30  ;;  %v9593_v33 = vld [vmem:[%s11131_s14 + $0x1a9] sm:$0xff] }
 0x3db   : > { %v3873_v48 = vpop.permute.xlu1 %3872  ;;  %v4320_v56 = vpack.c.bf16 %v9594_v32, %v9593_v33  ;;  %v9625_v32 = vld [vmem:[%s11131_s14 + $0x2a9] sm:$0xff] }
 0x3dc   : > { %3964 = vst.msk [vmem:[#allocation2 + $0x28] sm:$0xff] %vm3958_vm14, %v3873_v48  ;;  %v3871_v37 = vpop.permute.xlu0 %3870  ;;  %v9620_v48 = vld [vmem:[%s11131_s14 + $0x281] sm:$0xff] }
 0x3dd   : > { %3963 = vst.msk [vmem:[#allocation2 + $0x20] sm:$0xff] %vm3958_vm14, %v3871_v37  ;;  %4183 = vrot.lane.b32.xlu1 %v13400_v14, %s11015_s30  ;;  %v9618_v37 = vld [vmem:[%s11131_s14 + $0x271] sm:$0xff] }
 0x3de   : > { %4181 = vrot.lane.b32.xlu0 %v13298_v34, %s11015_s30  ;;  %v9597_v34 = vld [vmem:[%s11131_s14 + $0x1c9] sm:$0xff]  ;;  %v4332_v58 = vpack.c.bf16 %v9618_v37, %v9617_v51 }
 0x3df   : > { %v3877_v45 = vpop.permute.xlu1 %3876  ;;  %v4322_v18 = vpack.c.bf16 %v9598_v6, %v9597_v34  ;;  %v9629_v6 = vld [vmem:[%s11131_s14 + $0x2c9] sm:$0xff] }
 0x3e0   : > { %3966 = vst.msk [vmem:[#allocation2 + $0x38] sm:$0xff] %vm3958_vm14, %v3877_v45  ;;  %v3875_v49 = vpop.permute.xlu0 %3874  ;;  %v9624_v45 = vld [vmem:[%s11131_s14 + $0x2a1] sm:$0xff]  ;;  %v9650_v37 = vld [vmem:[%s11131_s14 + $0x16a] sm:$0xff] }
 0x3e1   : > { %3965 = vst.msk [vmem:[#allocation2 + $0x30] sm:$0xff] %vm3958_vm14, %v3875_v49  ;;  %4382 = vrot.lane.b32.xlu1 %v4317_v42, %s11016_s5  ;;  %v9622_v49 = vld [vmem:[%s11131_s14 + $0x291] sm:$0xff] }
 0x3e2   : > { %4380 = vrot.lane.b32.xlu0 %v4316_v61, %s11016_s5  ;;  %v4333_v61 = vpack.c.bf16 %v9620_v48, %v9619_v21  ;;  %v13488_v43 = vpack.c.bf16 %v9622_v49, %v9621_v54  ;;  %v9652_v48 = vld [vmem:[%s11131_s14 + $0x17a] sm:$0xff]  ;;  %v9654_v49 = vld [vmem:[%s11131_s14 + $0x18a] sm:$0xff] }
 0x3e3   : > { %v3881_v25 = vpop.permute.xlu1 %3880 }
 0x3e4   : > { %3968 = vst.msk [vmem:[#allocation2 + $0x48] sm:$0xff] %vm3958_vm14, %v3881_v25  ;;  %v3879_v39 = vpop.permute.xlu0 %3878  ;;  %v9628_v25 = vld [vmem:[%s11131_s14 + $0x2c1] sm:$0xff] }
 0x3e5   : > { %3967 = vst.msk [vmem:[#allocation2 + $0x40] sm:$0xff] %vm3958_vm14, %v3879_v39  ;;  %4386 = vrot.lane.b32.xlu1 %v4319_v17, %s11016_s5  ;;  %v9626_v39 = vld [vmem:[%s11131_s14 + $0x2b1] sm:$0xff] }
 0x3e6   : > { %4384 = vrot.lane.b32.xlu0 %v4318_v36, %s11016_s5  ;;  %v13485_v36 = vpack.c.bf16 %v9624_v45, %v9623_v35  ;;  %v13502_v29 = vpack.c.bf16 %v9626_v39, %v9625_v32  ;;  %v9656_v45 = vld [vmem:[%s11131_s14 + $0x19a] sm:$0xff]  ;;  %v9661_v39 = vld [vmem:[%s11131_s14 + $0x1c2] sm:$0xff] }
 0x3e7   : > { %v3885_v11 = vpop.permute.xlu1 %3884  ;;  %v9660_v32 = vld [vmem:[%s11131_s14 + $0x1ba] sm:$0xff] }
 0x3e8   : > { %3970 = vst.msk [vmem:[#allocation2 + $0x58] sm:$0xff] %vm3958_vm14, %v3885_v11  ;;  %v3883_v63 = vpop.permute.xlu0 %3882  ;;  %v9632_v11 = vld [vmem:[%s11131_s14 + $0x2e1] sm:$0xff] }
 0x3e9   : > { %3969 = vst.msk [vmem:[#allocation2 + $0x50] sm:$0xff] %vm3958_vm14, %v3883_v63  ;;  %4390 = vrot.lane.b32.xlu1 %v4321_v22, %s11016_s5  ;;  %v9630_v63 = vld [vmem:[%s11131_s14 + $0x2d1] sm:$0xff] }
 0x3ea   : > { %4388 = vrot.lane.b32.xlu0 %v4320_v56, %s11016_s5  ;;  %v13498_v56 = vpack.c.bf16 %v9628_v25, %v9627_v24  ;;  %v13516_v7 = vpack.c.bf16 %v9630_v63, %v9629_v6  ;;  %v4580_v6 = vpack.c.bf16 %v9661_v39, %v9660_v32  ;;  %v9685_v32 = vld [vmem:[%s11131_s14 + $0x282] sm:$0xff] }
 0x3eb   : > { %v3889_v13 = vpop.permute.xlu1 %3888 }
 0x3ec   : > { %3972 = vst.msk [vmem:[#allocation2 + $0x68] sm:$0xff] %vm3958_vm14, %v3889_v13  ;;  %v3887_v47 = vpop.permute.xlu0 %3886  ;;  %v9636_v13 = vld [vmem:[%s11131_s14 + $0x301] sm:$0xff] }
 0x3ed   : > { %3971 = vst.msk [vmem:[#allocation2 + $0x60] sm:$0xff] %vm3958_vm14, %v3887_v47  ;;  %4394 = vrot.lane.b32.xlu1 %v4323_v16, %s11016_s5  ;;  %v9634_v47 = vld [vmem:[%s11131_s14 + $0x2f1] sm:$0xff] }
 0x3ee   : > { %4392 = vrot.lane.b32.xlu0 %v4322_v18, %s11016_s5  ;;  %v13512_v18 = vpack.c.bf16 %v9632_v11, %v9631_v57  ;;  %v13530_v19 = vpack.c.bf16 %v9634_v47, %v9633_v41  ;;  %v9658_v57 = vld [vmem:[%s11131_s14 + $0x1aa] sm:$0xff]  ;;  %v9659_v11 = vld [vmem:[%s11131_s14 + $0x1b2] sm:$0xff] }
 0x3ef   : > { %v3893_v52 = vpop.permute.xlu1 %3892  ;;  %v4579_v63 = vpack.c.bf16 %v9659_v11, %v9658_v57  ;;  %v9663_v41 = vld [vmem:[%s11131_s14 + $0x1d2] sm:$0xff] }
 0x3f0   : > { %3974 = vst.msk [vmem:[#allocation2 + $0x78] sm:$0xff] %vm3958_vm14, %v3893_v52  ;;  %v3891_v1 = vpop.permute.xlu0 %3890  ;;  %v9640_v52 = vld [vmem:[%s11131_s14 + $0x321] sm:$0xff]  ;;  %v9683_v57 = vld [vmem:[%s11131_s14 + $0x272] sm:$0xff] }
 0x3f1   : > { %3973 = vst.msk [vmem:[#allocation2 + $0x70] sm:$0xff] %vm3958_vm14, %v3891_v1  ;;  %4398 = vrot.lane.b32.xlu1 %v4325_v40, %s11016_s5  ;;  %v9638_v1 = vld [vmem:[%s11131_s14 + $0x311] sm:$0xff] }
 0x3f2   : > { %4396 = vrot.lane.b32.xlu0 %v4324_v28, %s11016_s5  ;;  %v13526_v28 = vpack.c.bf16 %v9636_v13, %v9635_v8  ;;  %v13544_v9 = vpack.c.bf16 %v9638_v1, %v9637_v2  ;;  %v9665_v8 = vld [vmem:[%s11131_s14 + $0x1e2] sm:$0xff]  ;;  %v9666_v1 = vld [vmem:[%s11131_s14 + $0x1ea] sm:$0xff] }
 0x3f3   : > { %v3897_v30 = vpop.permute.xlu1 %3896 }
 0x3f4   : > { %3976 = vst.msk [vmem:[#allocation2 + $0x88] sm:$0xff] %vm3958_vm14, %v3897_v30  ;;  %v3895_v62 = vpop.permute.xlu0 %3894  ;;  %v9644_v30 = vld [vmem:[%s11131_s14 + $0x341] sm:$0xff] }
 0x3f5   : > { %3975 = vst.msk [vmem:[#allocation2 + $0x80] sm:$0xff] %vm3958_vm14, %v3895_v62  ;;  %4402 = vrot.lane.b32.xlu1 %v4327_v27, %s11016_s5  ;;  %v9642_v62 = vld [vmem:[%s11131_s14 + $0x331] sm:$0xff] }
 0x3f6   : > { %4400 = vrot.lane.b32.xlu0 %v4326_v26, %s11016_s5  ;;  %v13540_v26 = vpack.c.bf16 %v9640_v52, %v9639_v20  ;;  %v13558_v59 = vpack.c.bf16 %v9642_v62, %v9641_v50  ;;  %v9668_v52 = vld [vmem:[%s11131_s14 + $0x1fa] sm:$0xff]  ;;  %v9673_v62 = vld [vmem:[%s11131_s14 + $0x222] sm:$0xff] }
 0x3f7   : > { %v3901_v46 = vpop.permute.xlu1 %3900  ;;  %v9672_v50 = vld [vmem:[%s11131_s14 + $0x21a] sm:$0xff] }
 0x3f8   : > { %3978 = vst.msk [vmem:[#allocation2 + $0x98] sm:$0xff] %vm3958_vm14, %v3901_v46  ;;  %v3899_v4 = vpop.permute.xlu0 %3898  ;;  %v9648_v46 = vld [vmem:[%s11131_s14 + $0x361] sm:$0xff] }
 0x3f9   : > { %3977 = vst.msk [vmem:[#allocation2 + $0x90] sm:$0xff] %vm3958_vm14, %v3899_v4  ;;  %4406 = vrot.lane.b32.xlu1 %v4329_v10, %s11016_s5  ;;  %v9646_v4 = vld [vmem:[%s11131_s14 + $0x351] sm:$0xff] }
 0x3fa   : > { %4404 = vrot.lane.b32.xlu0 %v4328_v60, %s11016_s5  ;;  %v13554_v60 = vpack.c.bf16 %v9644_v30, %v9643_v12  ;;  %v13572_v21 = vpack.c.bf16 %v9646_v4, %v9645_v3  ;;  %v4586_v3 = vpack.c.bf16 %v9673_v62, %v9672_v50  ;;  %v9697_v50 = vld [vmem:[%s11131_s14 + $0x2e2] sm:$0xff] }
 0x3fb   : > { %v3905_v38 = vpop.permute.xlu1 %3904 }
 0x3fc   : > { %3980 = vst.msk [vmem:[#allocation2 + $0xa8] sm:$0xff] %vm3958_vm14, %v3905_v38  ;;  %v3903_v42 = vpop.permute.xlu0 %3902  ;;  %v9653_v38 = vld [vmem:[%s11131_s14 + $0x182] sm:$0xff] }
 0x3fd   : > { %3979 = vst.msk [vmem:[#allocation2 + $0xa0] sm:$0xff] %vm3958_vm14, %v3903_v42  ;;  %4410 = vrot.lane.b32.xlu1 %v4331_v5, %s11016_s5  ;;  %v9651_v42 = vld [vmem:[%s11131_s14 + $0x172] sm:$0xff] }
 0x3fe   : > { %4408 = vrot.lane.b32.xlu0 %v4330_v15, %s11016_s5  ;;  %v13568_v15 = vpack.c.bf16 %v9648_v46, %v9647_v31  ;;  %v4575_v35 = vpack.c.bf16 %v9651_v42, %v9650_v37  ;;  %v9670_v31 = vld [vmem:[%s11131_s14 + $0x20a] sm:$0xff]  ;;  %v9671_v46 = vld [vmem:[%s11131_s14 + $0x212] sm:$0xff] }
 0x3ff   : > { %v3909_v44 = vpop.permute.xlu1 %3908  ;;  %v4585_v4 = vpack.c.bf16 %v9671_v46, %v9670_v31  ;;  %v9675_v37 = vld [vmem:[%s11131_s14 + $0x232] sm:$0xff] }
 0x400   : > { %3982 = vst.msk [vmem:[#allocation2 + $0xb8] sm:$0xff] %vm3958_vm14, %v3909_v44  ;;  %v3907_v17 = vpop.permute.xlu0 %3906  ;;  %v9657_v44 = vld [vmem:[%s11131_s14 + $0x1a2] sm:$0xff]  ;;  %v9695_v31 = vld [vmem:[%s11131_s14 + $0x2d2] sm:$0xff] }
 0x401   : > { %3981 = vst.msk [vmem:[#allocation2 + $0xb0] sm:$0xff] %vm3958_vm14, %v3907_v17  ;;  %4414 = vrot.lane.b32.xlu1 %v4333_v61, %s11016_s5  ;;  %v9655_v17 = vld [vmem:[%s11131_s14 + $0x192] sm:$0xff]  ;;  %v4578_v25 = vpack.c.bf16 %v9657_v44, %v9656_v45  ;;  %v9681_v45 = vld [vmem:[%s11131_s14 + $0x262] sm:$0xff] }
 0x402   : > { %4412 = vrot.lane.b32.xlu0 %v4332_v58, %s11016_s5  ;;  %v4576_v58 = vpack.c.bf16 %v9653_v38, %v9652_v48  ;;  %v9677_v48 = vld [vmem:[%s11131_s14 + $0x242] sm:$0xff] }
 0x403   : > { %v3913_v33 = vpop.permute.xlu1 %3912 }
 0x404   : > { %3984 = vst.msk [vmem:[#allocation2 + $0xc8] sm:$0xff] %vm3958_vm14, %v3913_v33  ;;  %v3911_v22 = vpop.permute.xlu0 %3910  ;;  %v4577_v33 = vpack.c.bf16 %v9655_v17, %v9654_v49  ;;  %v9679_v49 = vld [vmem:[%s11131_s14 + $0x252] sm:$0xff] }
 0x405   : > { %3983 = vst.msk [vmem:[#allocation2 + $0xc0] sm:$0xff] %vm3958_vm14, %v3911_v22  ;;  %4418 = vrot.lane.b32.xlu1 %v13485_v36, %s11016_s5 }
 0x406   : > { %4416 = vrot.lane.b32.xlu0 %v13488_v43, %s11016_s5 }
 0x407   : > { %v3917_v34 = vpop.permute.xlu1 %3916 }
 0x408   : > { %3986 = vst.msk [vmem:[#allocation2 + $0xd8] sm:$0xff] %vm3958_vm14, %v3917_v34  ;;  %v3915_v16 = vpop.permute.xlu0 %3914 }
 0x409   : > { %3985 = vst.msk [vmem:[#allocation2 + $0xd0] sm:$0xff] %vm3958_vm14, %v3915_v16  ;;  %4422 = vrot.lane.b32.xlu1 %v13498_v56, %s11016_s5  ;;  %v9664_v16 = vld [vmem:[%s11131_s14 + $0x1da] sm:$0xff] }
 0x40a   : > { %4420 = vrot.lane.b32.xlu0 %v13502_v29, %s11016_s5 }
 0x40b   : > { %v3921_v23 = vpop.permute.xlu1 %3920 }
 0x40c   : > { %3988 = vst.msk [vmem:[#allocation2 + $0xe8] sm:$0xff] %vm3958_vm14, %v3921_v23  ;;  %v3919_v40 = vpop.permute.xlu0 %3918  ;;  %v9662_v23 = vld [vmem:[%s11131_s14 + $0x1ca] sm:$0xff] }
 0x40d   : > { %3987 = vst.msk [vmem:[#allocation2 + $0xe0] sm:$0xff] %vm3958_vm14, %v3919_v40  ;;  %4426 = vrot.lane.b32.xlu1 %v13512_v18, %s11016_s5  ;;  %v4582_v40 = vpack.c.bf16 %v9665_v8, %v9664_v16  ;;  %v4581_v20 = vpack.c.bf16 %v9663_v41, %v9662_v23  ;;  %v9689_v16 = vld [vmem:[%s11131_s14 + $0x2a2] sm:$0xff]  ;;  %v9687_v23 = vld [vmem:[%s11131_s14 + $0x292] sm:$0xff] }
 0x40e   : > { %4424 = vrot.lane.b32.xlu0 %v13516_v7, %s11016_s5 }
 0x40f   : > { %v3925_v53 = vpop.permute.xlu1 %3924 }
 0x410   : > { %3990 = vst.msk [vmem:[#allocation2 + $0xf8] sm:$0xff] %vm3958_vm14, %v3925_v53  ;;  %v3923_v27 = vpop.permute.xlu0 %3922  ;;  %v9669_v53 = vld [vmem:[%s11131_s14 + $0x202] sm:$0xff] }
 0x411   : > { %3989 = vst.msk [vmem:[#allocation2 + $0xf0] sm:$0xff] %vm3958_vm14, %v3923_v27  ;;  %4430 = vrot.lane.b32.xlu1 %v13526_v28, %s11016_s5  ;;  %v9667_v27 = vld [vmem:[%s11131_s14 + $0x1f2] sm:$0xff]  ;;  %v4584_v30 = vpack.c.bf16 %v9669_v53, %v9668_v52  ;;  %v9693_v52 = vld [vmem:[%s11131_s14 + $0x2c2] sm:$0xff] }
 0x412   : > { %4428 = vrot.lane.b32.xlu0 %v13530_v19, %s11016_s5 }
 0x413   : > { %v4124_v55 = vpop.permute.xlu1 %4123 }
 0x414   : > { %4219 = vst.msk [vmem:[#allocation2 + $0x8] sm:$0xff] %vm4217_vm15, %v4124_v55  ;;  %v4122_v10 = vpop.permute.xlu0 %4121  ;;  %v4583_v55 = vpack.c.bf16 %v9667_v27, %v9666_v1  ;;  %v9691_v1 = vld [vmem:[%s11131_s14 + $0x2b2] sm:$0xff] }
 0x415   : > { %4218 = vst.msk [vmem:[#allocation2] sm:$0xff] %vm4217_vm15, %v4122_v10  ;;  %4434 = vrot.lane.b32.xlu1 %v13540_v26, %s11016_s5 }
 0x416   : > { %4432 = vrot.lane.b32.xlu0 %v13544_v9, %s11016_s5 }
 0x417   : > { %v4128_v0 = vpop.permute.xlu1 %4127 }
 0x418   : > { %4221 = vst.msk [vmem:[#allocation2 + $0x18] sm:$0xff] %vm4217_vm15, %v4128_v0  ;;  %v4126_v5 = vpop.permute.xlu0 %4125 }
 0x419   : > { %4220 = vst.msk [vmem:[#allocation2 + $0x10] sm:$0xff] %vm4217_vm15, %v4126_v5  ;;  %4438 = vrot.lane.b32.xlu1 %v13554_v60, %s11016_s5  ;;  %v9676_v5 = vld [vmem:[%s11131_s14 + $0x23a] sm:$0xff] }
 0x41a   : > { %4436 = vrot.lane.b32.xlu0 %v13558_v59, %s11016_s5 }
 0x41b   : > { %v4132_v51 = vpop.permute.xlu1 %4131 }
 0x41c   : > { %4223 = vst.msk [vmem:[#allocation2 + $0x28] sm:$0xff] %vm4217_vm15, %v4132_v51  ;;  %v4130_v61 = vpop.permute.xlu0 %4129  ;;  %v9674_v51 = vld [vmem:[%s11131_s14 + $0x22a] sm:$0xff] }
 0x41d   : > { %4222 = vst.msk [vmem:[#allocation2 + $0x20] sm:$0xff] %vm4217_vm15, %v4130_v61  ;;  %4442 = vrot.lane.b32.xlu1 %v13568_v15, %s11016_s5  ;;  %v4588_v61 = vpack.c.bf16 %v9677_v48, %v9676_v5  ;;  %v9701_v5 = vld [vmem:[%s11131_s14 + $0x302] sm:$0xff] }
 0x41e   : > { %4440 = vrot.lane.b32.xlu0 %v13572_v21, %s11016_s5 }
 0x41f   : > { %v4136_v54 = vpop.permute.xlu1 %4135 }
 0x420   : > { %4225 = vst.msk [vmem:[#allocation2 + $0x38] sm:$0xff] %vm4217_vm15, %v4136_v54  ;;  %v4134_v24 = vpop.permute.xlu0 %4133  ;;  %v9678_v54 = vld [vmem:[%s11131_s14 + $0x24a] sm:$0xff] }
 0x421   : > { %4224 = vst.msk [vmem:[#allocation2 + $0x30] sm:$0xff] %vm4217_vm15, %v4134_v24  ;;  %4641 = vrot.lane.b32.xlu1 %v4576_v58, %s11017_s6  ;;  %v4587_v58 = vpack.c.bf16 %v9675_v37, %v9674_v51  ;;  %v9699_v51 = vld [vmem:[%s11131_s14 + $0x2f2] sm:$0xff] }
 0x422   : > { %4639 = vrot.lane.b32.xlu0 %v4575_v35, %s11017_s6  ;;  %v9680_v35 = vld [vmem:[%s11131_s14 + $0x25a] sm:$0xff] }
 0x423   : > { %v4140_v22 = vpop.permute.xlu1 %4139  ;;  %v4590_v24 = vpack.c.bf16 %v9681_v45, %v9680_v35  ;;  %v9705_v35 = vld [vmem:[%s11131_s14 + $0x322] sm:$0xff] }
 0x424   : > { %4227 = vst.msk [vmem:[#allocation2 + $0x48] sm:$0xff] %vm4217_vm15, %v4140_v22  ;;  %v4138_v34 = vpop.permute.xlu0 %4137  ;;  %v9682_v22 = vld [vmem:[%s11131_s14 + $0x26a] sm:$0xff] }
 0x425   : > { %4226 = vst.msk [vmem:[#allocation2 + $0x40] sm:$0xff] %vm4217_vm15, %v4138_v34  ;;  %4645 = vrot.lane.b32.xlu1 %v4578_v25, %s11017_s6  ;;  %v4589_v25 = vpack.c.bf16 %v9679_v49, %v9678_v54  ;;  %v9703_v54 = vld [vmem:[%s11131_s14 + $0x312] sm:$0xff] }
 0x426   : > { %4643 = vrot.lane.b32.xlu0 %v4577_v33, %s11017_s6  ;;  %v9684_v33 = vld [vmem:[%s11131_s14 + $0x27a] sm:$0xff] }
 0x427   : > { %v4144_v13 = vpop.permute.xlu1 %4143  ;;  %v4592_v34 = vpack.c.bf16 %v9685_v32, %v9684_v33  ;;  %v9709_v33 = vld [vmem:[%s11131_s14 + $0x342] sm:$0xff] }
 0x428   : > { %4229 = vst.msk [vmem:[#allocation2 + $0x58] sm:$0xff] %vm4217_vm15, %v4144_v13  ;;  %v4142_v47 = vpop.permute.xlu0 %4141  ;;  %v9686_v13 = vld [vmem:[%s11131_s14 + $0x28a] sm:$0xff] }
 0x429   : > { %4228 = vst.msk [vmem:[#allocation2 + $0x50] sm:$0xff] %vm4217_vm15, %v4142_v47  ;;  %4649 = vrot.lane.b32.xlu1 %v4580_v6, %s11017_s6  ;;  %v4591_v6 = vpack.c.bf16 %v9683_v57, %v9682_v22  ;;  %v9707_v22 = vld [vmem:[%s11131_s14 + $0x332] sm:$0xff] }
 0x42a   : > { %4647 = vrot.lane.b32.xlu0 %v4579_v63, %s11017_s6  ;;  %v9688_v63 = vld [vmem:[%s11131_s14 + $0x29a] sm:$0xff] }
 0x42b   : > { %v4148_v2 = vpop.permute.xlu1 %4147  ;;  %v13655_v47 = vpack.c.bf16 %v9689_v16, %v9688_v63  ;;  %v9713_v63 = vld [vmem:[%s11131_s14 + $0x362] sm:$0xff] }
 0x42c   : > { %4231 = vst.msk [vmem:[#allocation2 + $0x68] sm:$0xff] %vm4217_vm15, %v4148_v2  ;;  %v4146_v12 = vpop.permute.xlu0 %4145  ;;  %v9690_v2 = vld [vmem:[%s11131_s14 + $0x2aa] sm:$0xff] }
 0x42d   : > { %4230 = vst.msk [vmem:[#allocation2 + $0x60] sm:$0xff] %vm4217_vm15, %v4146_v12  ;;  %4653 = vrot.lane.b32.xlu1 %v4582_v40, %s11017_s6  ;;  %v13658_v40 = vpack.c.bf16 %v9687_v23, %v9686_v13  ;;  %v9711_v13 = vld [vmem:[%s11131_s14 + $0x352] sm:$0xff] }
 0x42e   : > { %4651 = vrot.lane.b32.xlu0 %v4581_v20, %s11017_s6  ;;  %v9692_v20 = vld [vmem:[%s11131_s14 + $0x2ba] sm:$0xff] }
 0x42f   : > { %v4152_v10 = vpop.permute.xlu1 %4151  ;;  %v13668_v12 = vpack.c.bf16 %v9693_v52, %v9692_v20  ;;  %v9717_v52 = vld [vmem:[%s11131_s14 + $0x298] sm:$0xff] }
 0x430   : > { %4233 = vst.msk [vmem:[#allocation2 + $0x78] sm:$0xff] %vm4217_vm15, %v4152_v10  ;;  %v4150_v0 = vpop.permute.xlu0 %4149  ;;  %v9694_v10 = vld [vmem:[%s11131_s14 + $0x2ca] sm:$0xff] }
 0x431   : > { %4232 = vst.msk [vmem:[#allocation2 + $0x70] sm:$0xff] %vm4217_vm15, %v4150_v0  ;;  %4657 = vrot.lane.b32.xlu1 %v4584_v30, %s11017_s6  ;;  %v13672_v30 = vpack.c.bf16 %v9691_v1, %v9690_v2  ;;  %v9715_v1 = vld [vmem:[%s11131_s14 + $0x288] sm:$0xff] }
 0x432   : > { %4655 = vrot.lane.b32.xlu0 %v4583_v55, %s11017_s6  ;;  %v9696_v55 = vld [vmem:[%s11131_s14 + $0x2da] sm:$0xff] }
 0x433   : > { %v4156_v38 = vpop.permute.xlu1 %4155  ;;  %v13682_v0 = vpack.c.bf16 %v9697_v50, %v9696_v55 }
 0x434   : > { %4235 = vst.msk [vmem:[#allocation2 + $0x88] sm:$0xff] %vm4217_vm15, %v4156_v38  ;;  %v4154_v42 = vpop.permute.xlu0 %4153  ;;  %v9698_v38 = vld [vmem:[%s11131_s14 + $0x2ea] sm:$0xff] }
 0x435   : > { %4234 = vst.msk [vmem:[#allocation2 + $0x80] sm:$0xff] %vm4217_vm15, %v4154_v42  ;;  %4661 = vrot.lane.b32.xlu1 %v4586_v3, %s11017_s6  ;;  %v13686_v3 = vpack.c.bf16 %v9695_v31, %v9694_v10  ;;  %v9721_v10 = vld [vmem:[%s11131_s14 + $0x2b8] sm:$0xff]  ;;  %v9722_v31 = vld [vmem:[%s11131_s14 + $0x2c0] sm:$0xff] }
 0x436   : > { %4659 = vrot.lane.b32.xlu0 %v4585_v4, %s11017_s6  ;;  %v9700_v4 = vld [vmem:[%s11131_s14 + $0x2fa] sm:$0xff] }
 0x437   : > { %v4160_v44 = vpop.permute.xlu1 %4159  ;;  %v13696_v42 = vpack.c.bf16 %v9701_v5, %v9700_v4  ;;  %v9719_v4 = vld [vmem:[%s11131_s14 + $0x2a8] sm:$0xff]  ;;  %v9720_v5 = vld [vmem:[%s11131_s14 + $0x2b0] sm:$0xff] }
 0x438   : > { %4237 = vst.msk [vmem:[#allocation2 + $0x98] sm:$0xff] %vm4217_vm15, %v4160_v44  ;;  %v4158_v17 = vpop.permute.xlu0 %4157  ;;  %v9702_v44 = vld [vmem:[%s11131_s14 + $0x30a] sm:$0xff] }
 0x439   : > { %4236 = vst.msk [vmem:[#allocation2 + $0x90] sm:$0xff] %vm4217_vm15, %v4158_v17  ;;  %4665 = vrot.lane.b32.xlu1 %v4588_v61, %s11017_s6  ;;  %v13700_v61 = vpack.c.bf16 %v9699_v51, %v9698_v38  ;;  %v4837_v38 = vpack.c.bf16 %v9722_v31, %v9721_v10  ;;  %v4836_v51 = vpack.c.bf16 %v9720_v5, %v9719_v4  ;;  %v9735_v10 = vld [vmem:[%s11131_s14 + $0x328] sm:$0xff]  ;;  %v9736_v31 = vld [vmem:[%s11131_s14 + $0x330] sm:$0xff] }
 0x43a   : > { %4663 = vrot.lane.b32.xlu0 %v4587_v58, %s11017_s6  ;;  %v9704_v58 = vld [vmem:[%s11131_s14 + $0x31a] sm:$0xff]  ;;  %v4844_v5 = vpack.c.bf16 %v9736_v31, %v9735_v10  ;;  %v9755_v31 = vld [vmem:[%s11131_s14 + $0x3c8] sm:$0xff] }
 0x43b   : > { %v4164_v39 = vpop.permute.xlu1 %4163  ;;  %v13710_v17 = vpack.c.bf16 %v9705_v35, %v9704_v58  ;;  %v9726_v58 = vld [vmem:[%s11131_s14 + $0x2e0] sm:$0xff] }
 0x43c   : > { %4239 = vst.msk [vmem:[#allocation2 + $0xa8] sm:$0xff] %vm4217_vm15, %v4164_v39  ;;  %v4162_v11 = vpop.permute.xlu0 %4161  ;;  %v9706_v39 = vld [vmem:[%s11131_s14 + $0x32a] sm:$0xff] }
 0x43d   : > { %4238 = vst.msk [vmem:[#allocation2 + $0xa0] sm:$0xff] %vm4217_vm15, %v4162_v11  ;;  %4669 = vrot.lane.b32.xlu1 %v4590_v24, %s11017_s6  ;;  %v13714_v24 = vpack.c.bf16 %v9703_v54, %v9702_v44  ;;  %v9724_v44 = vld [vmem:[%s11131_s14 + $0x2d0] sm:$0xff] }
 0x43e   : > { %4667 = vrot.lane.b32.xlu0 %v4589_v25, %s11017_s6  ;;  %v9708_v25 = vld [vmem:[%s11131_s14 + $0x33a] sm:$0xff] }
 0x43f   : > { %v4168_v8 = vpop.permute.xlu1 %4167  ;;  %v13724_v11 = vpack.c.bf16 %v9709_v33, %v9708_v25  ;;  %v9729_v33 = vld [vmem:[%s11131_s14 + $0x2f8] sm:$0xff] }
 0x440   : > { %4241 = vst.msk [vmem:[#allocation2 + $0xb8] sm:$0xff] %vm4217_vm15, %v4168_v8  ;;  %v4166_v41 = vpop.permute.xlu0 %4165  ;;  %v9710_v8 = vld [vmem:[%s11131_s14 + $0x34a] sm:$0xff] }
 0x441   : > { %4240 = vst.msk [vmem:[#allocation2 + $0xb0] sm:$0xff] %vm4217_vm15, %v4166_v41  ;;  %4673 = vrot.lane.b32.xlu1 %v4592_v34, %s11017_s6  ;;  %v13728_v34 = vpack.c.bf16 %v9707_v22, %v9706_v39  ;;  %v13742_v20 = vpack.c.bf16 %v9711_v13, %v9710_v8  ;;  %v9727_v22 = vld [vmem:[%s11131_s14 + $0x2e8] sm:$0xff]  ;;  %v9733_v8 = vld [vmem:[%s11131_s14 + $0x318] sm:$0xff]  ;;  %v9734_v13 = vld [vmem:[%s11131_s14 + $0x320] sm:$0xff] }
 0x442   : > { %4671 = vrot.lane.b32.xlu0 %v4591_v6, %s11017_s6  ;;  %v9712_v6 = vld [vmem:[%s11131_s14 + $0x35a] sm:$0xff] }
 0x443   : > { %v4172_v53 = vpop.permute.xlu1 %4171  ;;  %v13738_v41 = vpack.c.bf16 %v9713_v63, %v9712_v6 }
 0x444   : > { %4243 = vst.msk [vmem:[#allocation2 + $0xc8] sm:$0xff] %vm4217_vm15, %v4172_v53  ;;  %v4170_v27 = vpop.permute.xlu0 %4169  ;;  %v9718_v53 = vld [vmem:[%s11131_s14 + $0x2a0] sm:$0xff] }
 0x445   : > { %4242 = vst.msk [vmem:[#allocation2 + $0xc0] sm:$0xff] %vm4217_vm15, %v4170_v27  ;;  %4677 = vrot.lane.b32.xlu1 %v13655_v47, %s11017_s6  ;;  %v9716_v27 = vld [vmem:[%s11131_s14 + $0x290] sm:$0xff]  ;;  %v4835_v50 = vpack.c.bf16 %v9718_v53, %v9717_v52  ;;  %v9731_v52 = vld [vmem:[%s11131_s14 + $0x308] sm:$0xff] }
 0x446   : > { %4675 = vrot.lane.b32.xlu0 %v13658_v40, %s11017_s6  ;;  %v9732_v53 = vld [vmem:[%s11131_s14 + $0x310] sm:$0xff] }
 0x447   : > { %v4176_v62 = vpop.permute.xlu1 %4175 }
 0x448   : > { %4245 = vst.msk [vmem:[#allocation2 + $0xd8] sm:$0xff] %vm4217_vm15, %v4176_v62  ;;  %v4174_v46 = vpop.permute.xlu0 %4173  ;;  %v4834_v62 = vpack.c.bf16 %v9716_v27, %v9715_v1  ;;  %v4843_v1 = vpack.c.bf16 %v9734_v13, %v9733_v8  ;;  %v4842_v27 = vpack.c.bf16 %v9732_v53, %v9731_v52  ;;  %v9753_v13 = vld [vmem:[%s11131_s14 + $0x3b8] sm:$0xff]  ;;  %v9751_v53 = vld [vmem:[%s11131_s14 + $0x3a8] sm:$0xff] }
 0x449   : > { %4244 = vst.msk [vmem:[#allocation2 + $0xd0] sm:$0xff] %vm4217_vm15, %v4174_v46  ;;  %4681 = vrot.lane.b32.xlu1 %v13668_v12, %s11017_s6 }
 0x44a   : > { %4679 = vrot.lane.b32.xlu0 %v13672_v30, %s11017_s6 }
 0x44b   : > { %v4180_v48 = vpop.permute.xlu1 %4179 }
 0x44c   : > { %4247 = vst.msk [vmem:[#allocation2 + $0xe8] sm:$0xff] %vm4217_vm15, %v4180_v48  ;;  %v4178_v37 = vpop.permute.xlu0 %4177 }
 0x44d   : > { %4246 = vst.msk [vmem:[#allocation2 + $0xe0] sm:$0xff] %vm4217_vm15, %v4178_v37  ;;  %4685 = vrot.lane.b32.xlu1 %v13682_v0, %s11017_s6  ;;  %v9725_v37 = vld [vmem:[%s11131_s14 + $0x2d8] sm:$0xff] }
 0x44e   : > { %4683 = vrot.lane.b32.xlu0 %v13686_v3, %s11017_s6 }
 0x44f   : > { %v4184_v45 = vpop.permute.xlu1 %4183 }
 0x450   : > { %4249 = vst.msk [vmem:[#allocation2 + $0xf8] sm:$0xff] %vm4217_vm15, %v4184_v45  ;;  %v4182_v49 = vpop.permute.xlu0 %4181  ;;  %v9723_v45 = vld [vmem:[%s11131_s14 + $0x2c8] sm:$0xff] }
 0x451   : > { %4248 = vst.msk [vmem:[#allocation2 + $0xf0] sm:$0xff] %vm4217_vm15, %v4182_v49  ;;  %4689 = vrot.lane.b32.xlu1 %v13696_v42, %s11017_s6  ;;  %v4839_v49 = vpack.c.bf16 %v9726_v58, %v9725_v37  ;;  %v4838_v25 = vpack.c.bf16 %v9724_v44, %v9723_v45  ;;  %v9746_v45 = vld [vmem:[%s11131_s14 + $0x380] sm:$0xff] }
 0x452   : > { %4687 = vrot.lane.b32.xlu0 %v13700_v61, %s11017_s6 }
 0x453   : > { %v4383_v32 = vpop.permute.xlu1 %4382 }
 0x454   : > { %4478 = vst.msk [vmem:[#allocation2 + $0x8] sm:$0xff] %vm4476_vm0, %v4383_v32  ;;  %v4381_v57 = vpop.permute.xlu0 %4380  ;;  %v9730_v32 = vld [vmem:[%s11131_s14 + $0x300] sm:$0xff] }
 0x455   : > { %4477 = vst.msk [vmem:[#allocation2] sm:$0xff] %vm4476_vm0, %v4381_v57  ;;  %4693 = vrot.lane.b32.xlu1 %v13710_v17, %s11017_s6  ;;  %v9728_v57 = vld [vmem:[%s11131_s14 + $0x2f0] sm:$0xff]  ;;  %v4841_v63 = vpack.c.bf16 %v9730_v32, %v9729_v33 }
 0x456   : > { %4691 = vrot.lane.b32.xlu0 %v13714_v24, %s11017_s6 }
 0x457   : > { %v4387_v16 = vpop.permute.xlu1 %4386 }
 0x458   : > { %4480 = vst.msk [vmem:[#allocation2 + $0x18] sm:$0xff] %vm4476_vm0, %v4387_v16  ;;  %v4385_v23 = vpop.permute.xlu0 %4384  ;;  %v4840_v16 = vpack.c.bf16 %v9728_v57, %v9727_v22  ;;  %v9750_v22 = vld [vmem:[%s11131_s14 + $0x3a0] sm:$0xff] }
 0x459   : > { %4479 = vst.msk [vmem:[#allocation2 + $0x10] sm:$0xff] %vm4476_vm0, %v4385_v23  ;;  %4697 = vrot.lane.b32.xlu1 %v13724_v11, %s11017_s6 }
 0x45a   : > { %4695 = vrot.lane.b32.xlu0 %v13728_v34, %s11017_s6 }
 0x45b   : > { %v4391_v2 = vpop.permute.xlu1 %4390 }
 0x45c   : > { %4482 = vst.msk [vmem:[#allocation2 + $0x28] sm:$0xff] %vm4476_vm0, %v4391_v2  ;;  %v4389_v55 = vpop.permute.xlu0 %4388 }
 0x45d   : > { %4481 = vst.msk [vmem:[#allocation2 + $0x20] sm:$0xff] %vm4476_vm0, %v4389_v55  ;;  %4701 = vrot.lane.b32.xlu1 %v13738_v41, %s11017_s6  ;;  %v9737_v55 = vld [vmem:[%s11131_s14 + $0x338] sm:$0xff] }
 0x45e   : > { %4699 = vrot.lane.b32.xlu0 %v13742_v20, %s11017_s6  ;;  %s11028_s6 = smov [#allocation3]  }
 0x45f   : > { %v4395_v46 = vpop.permute.xlu1 %4394 }
 0x460   : > { %4484 = vst.msk [vmem:[#allocation2 + $0x38] sm:$0xff] %vm4476_vm0, %v4395_v46  ;;  %v4393_v48 = vpop.permute.xlu0 %4392 }
 0x461   : > { %4483 = vst.msk [vmem:[#allocation2 + $0x30] sm:$0xff] %vm4476_vm0, %v4393_v48  ;;  %4900 = vrot.lane.b32.xlu1 %v4835_v50, %s11018_s8  ;;  %v9738_v50 = vld [vmem:[%s11131_s14 + $0x340] sm:$0xff] }
 0x462   : > { %4898 = vrot.lane.b32.xlu0 %v4834_v62, %s11018_s8  ;;  %v4845_v4 = vpack.c.bf16 %v9738_v50, %v9737_v55  ;;  %v9757_v50 = vld [vmem:[%s11131_s14 + $0x3d8] sm:$0xff] }
 0x463   : > { %v4399_v35 = vpop.permute.xlu1 %4398 }
 0x464   : > { %4486 = vst.msk [vmem:[#allocation2 + $0x48] sm:$0xff] %vm4476_vm0, %v4399_v35  ;;  %v4397_v54 = vpop.permute.xlu0 %4396  ;;  %v9745_v35 = vld [vmem:[%s11131_s14 + $0x378] sm:$0xff] }
 0x465   : > { %4485 = vst.msk [vmem:[#allocation2 + $0x40] sm:$0xff] %vm4476_vm0, %v4397_v54  ;;  %4904 = vrot.lane.b32.xlu1 %v4837_v38, %s11018_s8  ;;  %v9739_v38 = vld [vmem:[%s11131_s14 + $0x348] sm:$0xff]  ;;  %v4849_v33 = vpack.c.bf16 %v9746_v45, %v9745_v35  ;;  %v9760_v35 = vld [vmem:[%s11131_s14 + $0x3f0] sm:$0xff] }
 0x466   : > { %4902 = vrot.lane.b32.xlu0 %v4836_v51, %s11018_s8  ;;  %v9740_v51 = vld [vmem:[%s11131_s14 + $0x350] sm:$0xff]  ;;  %v9743_v54 = vld [vmem:[%s11131_s14 + $0x368] sm:$0xff] }
 0x467   : > { %v4403_v39 = vpop.permute.xlu1 %4402  ;;  %v4846_v58 = vpack.c.bf16 %v9740_v51, %v9739_v38  ;;  %v9761_v38 = vld [vmem:[%s11131_s14 + $0x3f8] sm:$0xff]  ;;  %v9762_v51 = vld [vmem:[%s11131_s14 + $0x400] sm:$0xff] }
 0x468   : > { %4488 = vst.msk [vmem:[#allocation2 + $0x58] sm:$0xff] %vm4476_vm0, %v4403_v39  ;;  %v4401_v6 = vpop.permute.xlu0 %4400  ;;  %v9749_v39 = vld [vmem:[%s11131_s14 + $0x398] sm:$0xff] }
 0x469   : > { %4487 = vst.msk [vmem:[#allocation2 + $0x50] sm:$0xff] %vm4476_vm0, %v4401_v6  ;;  %4908 = vrot.lane.b32.xlu1 %v4839_v49, %s11018_s8  ;;  %v9744_v49 = vld [vmem:[%s11131_s14 + $0x370] sm:$0xff]  ;;  %v9747_v6 = vld [vmem:[%s11131_s14 + $0x388] sm:$0xff] }
 0x46a   : > { %4906 = vrot.lane.b32.xlu0 %v4838_v25, %s11018_s8  ;;  %v4848_v32 = vpack.c.bf16 %v9744_v49, %v9743_v54  ;;  %v9765_v49 = vld [vmem:[%s11131_s14 + $0x418] sm:$0xff] }
 0x46b   : > { %v4407_v23 = vpop.permute.xlu1 %4406 }
 0x46c   : > { %4490 = vst.msk [vmem:[#allocation2 + $0x68] sm:$0xff] %vm4476_vm0, %v4407_v23  ;;  %v4405_v2 = vpop.permute.xlu0 %4404  ;;  %v9754_v23 = vld [vmem:[%s11131_s14 + $0x3c0] sm:$0xff] }
 0x46d   : > { %4489 = vst.msk [vmem:[#allocation2 + $0x60] sm:$0xff] %vm4476_vm0, %v4405_v2  ;;  %4912 = vrot.lane.b32.xlu1 %v4841_v63, %s11018_s8  ;;  %v9748_v63 = vld [vmem:[%s11131_s14 + $0x390] sm:$0xff] }
 0x46e   : > { %4910 = vrot.lane.b32.xlu0 %v4840_v16, %s11018_s8  ;;  %v4850_v8 = vpack.c.bf16 %v9748_v63, %v9747_v6  ;;  %v9752_v2 = vld [vmem:[%s11131_s14 + $0x3b0] sm:$0xff]  ;;  %v9769_v63 = vld [vmem:[%s11131_s14 + $0x438] sm:$0xff] }
 0x46f   : > { %v4411_v62 = vpop.permute.xlu1 %4410  ;;  %v4852_v55 = vpack.c.bf16 %v9752_v2, %v9751_v53  ;;  %v9773_v2 = vld [vmem:[%s11131_s14 + $0x458] sm:$0xff] }
 0x470   : > { %4492 = vst.msk [vmem:[#allocation2 + $0x78] sm:$0xff] %vm4476_vm0, %v4411_v62  ;;  %v4409_v46 = vpop.permute.xlu0 %4408  ;;  %v9758_v62 = vld [vmem:[%s11131_s14 + $0x3e0] sm:$0xff] }
 0x471   : > { %4491 = vst.msk [vmem:[#allocation2 + $0x70] sm:$0xff] %vm4476_vm0, %v4409_v46  ;;  %4916 = vrot.lane.b32.xlu1 %v4843_v1, %s11018_s8  ;;  %v9756_v46 = vld [vmem:[%s11131_s14 + $0x3d0] sm:$0xff] }
 0x472   : > { %4914 = vrot.lane.b32.xlu0 %v4842_v27, %s11018_s8  ;;  %v4853_v27 = vpack.c.bf16 %v9754_v23, %v9753_v13  ;;  %v9768_v13 = vld [vmem:[%s11131_s14 + $0x430] sm:$0xff] }
 0x473   : > { %v4415_v48 = vpop.permute.xlu1 %4414 }
 0x474   : > { %4494 = vst.msk [vmem:[#allocation2 + $0x88] sm:$0xff] %vm4476_vm0, %v4415_v48  ;;  %v4413_v37 = vpop.permute.xlu0 %4412  ;;  %v4854_v48 = vpack.c.bf16 %v9756_v46, %v9755_v31  ;;  %v9777_v46 = vld [vmem:[%s11131_s14 + $0x478] sm:$0xff] }
 0x475   : > { %4493 = vst.msk [vmem:[#allocation2 + $0x80] sm:$0xff] %vm4476_vm0, %v4413_v37  ;;  %4920 = vrot.lane.b32.xlu1 %v4845_v4, %s11018_s8 }
 0x476   : > { %4918 = vrot.lane.b32.xlu0 %v4844_v5, %s11018_s8  ;;  %v4855_v5 = vpack.c.bf16 %v9758_v62, %v9757_v50  ;;  %v9772_v50 = vld [vmem:[%s11131_s14 + $0x450] sm:$0xff] }
 0x477   : > { %v4419_v44 = vpop.permute.xlu1 %4418 }
 0x478   : > { %4496 = vst.msk [vmem:[#allocation2 + $0x98] sm:$0xff] %vm4476_vm0, %v4419_v44  ;;  %v4417_v25 = vpop.permute.xlu0 %4416  ;;  %v4857_v44 = vpack.c.bf16 %v9762_v51, %v9761_v38  ;;  %v9776_v38 = vld [vmem:[%s11131_s14 + $0x470] sm:$0xff] }
 0x479   : > { %4495 = vst.msk [vmem:[#allocation2 + $0x90] sm:$0xff] %vm4476_vm0, %v4417_v25  ;;  %4924 = vrot.lane.b32.xlu1 %v13400_v14, %s11018_s8  ;;  %v4851_v14 = vpack.c.bf16 %v9750_v22, %v9749_v39  ;;  %v9766_v25 = vld [vmem:[%s11131_s14 + $0x420] sm:$0xff]  ;;  %v9764_v39 = vld [vmem:[%s11131_s14 + $0x410] sm:$0xff] }
 0x47a   : > { %4922 = vrot.lane.b32.xlu0 %v4846_v58, %s11018_s8  ;;  %v9759_v58 = vld [vmem:[%s11131_s14 + $0x3e8] sm:$0xff] }
 0x47b   : > { %v4423_v57 = vpop.permute.xlu1 %4422  ;;  %v4856_v54 = vpack.c.bf16 %v9760_v35, %v9759_v58 }
 0x47c   : > { %4498 = vst.msk [vmem:[#allocation2 + $0xa8] sm:$0xff] %vm4476_vm0, %v4423_v57  ;;  %v4421_v16 = vpop.permute.xlu0 %4420  ;;  %v4859_v57 = vpack.c.bf16 %v9766_v25, %v9765_v49 }
 0x47d   : > { %4497 = vst.msk [vmem:[#allocation2 + $0xa0] sm:$0xff] %vm4476_vm0, %v4421_v16  ;;  %4928 = vrot.lane.b32.xlu1 %v4849_v33, %s11018_s8  ;;  %v9770_v16 = vld [vmem:[%s11131_s14 + $0x440] sm:$0xff] }
 0x47e   : > { %4926 = vrot.lane.b32.xlu0 %v4848_v32, %s11018_s8  ;;  %v9763_v32 = vld [vmem:[%s11131_s14 + $0x408] sm:$0xff] }
 0x47f   : > { %v4427_v52 = vpop.permute.xlu1 %4426  ;;  %v4858_v6 = vpack.c.bf16 %v9764_v39, %v9763_v32  ;;  %v9809_v39 = vld [vmem:[%s11131_s14 + $0x371] sm:$0xff] }
 0x480   : > { %4500 = vst.msk [vmem:[#allocation2 + $0xb8] sm:$0xff] %vm4476_vm0, %v4427_v52  ;;  %v4425_v1 = vpop.permute.xlu0 %4424  ;;  %v4861_v52 = vpack.c.bf16 %v9770_v16, %v9769_v63  ;;  %v9812_v16 = vld [vmem:[%s11131_s14 + $0x389] sm:$0xff] }
 0x481   : > { %4499 = vst.msk [vmem:[#allocation2 + $0xb0] sm:$0xff] %vm4476_vm0, %v4425_v1  ;;  %4932 = vrot.lane.b32.xlu1 %v4851_v14, %s11018_s8  ;;  %v9774_v1 = vld [vmem:[%s11131_s14 + $0x460] sm:$0xff] }
 0x482   : > { %4930 = vrot.lane.b32.xlu0 %v4850_v8, %s11018_s8  ;;  %v9767_v8 = vld [vmem:[%s11131_s14 + $0x428] sm:$0xff] }
 0x483   : > { %v4431_v10 = vpop.permute.xlu1 %4430  ;;  %v4860_v53 = vpack.c.bf16 %v9768_v13, %v9767_v8  ;;  %v9818_v13 = vld [vmem:[%s11131_s14 + $0x3b9] sm:$0xff] }
 0x484   : > { %4502 = vst.msk [vmem:[#allocation2 + $0xc8] sm:$0xff] %vm4476_vm0, %v4431_v10  ;;  %v4429_v4 = vpop.permute.xlu0 %4428  ;;  %v4863_v10 = vpack.c.bf16 %v9774_v1, %v9773_v2  ;;  %v9817_v2 = vld [vmem:[%s11131_s14 + $0x3b1] sm:$0xff] }
 0x485   : > { %4501 = vst.msk [vmem:[#allocation2 + $0xc0] sm:$0xff] %vm4476_vm0, %v4429_v4  ;;  %4936 = vrot.lane.b32.xlu1 %v4853_v27, %s11018_s8  ;;  %v9778_v4 = vld [vmem:[%s11131_s14 + $0x480] sm:$0xff] }
 0x486   : > { %4934 = vrot.lane.b32.xlu0 %v4852_v55, %s11018_s8  ;;  %v9771_v55 = vld [vmem:[%s11131_s14 + $0x448] sm:$0xff] }
 0x487   : > { %v4435_v37 = vpop.permute.xlu1 %4434  ;;  %v4862_v31 = vpack.c.bf16 %v9772_v50, %v9771_v55  ;;  %v9822_v50 = vld [vmem:[%s11131_s14 + $0x3d9] sm:$0xff] }
 0x488   : > { %4504 = vst.msk [vmem:[#allocation2 + $0xd8] sm:$0xff] %vm4476_vm0, %v4435_v37  ;;  %v4433_v45 = vpop.permute.xlu0 %4432  ;;  %v4865_v37 = vpack.c.bf16 %v9778_v4, %v9777_v46  ;;  %v9821_v46 = vld [vmem:[%s11131_s14 + $0x3d1] sm:$0xff] }
 0x489   : > { %4503 = vst.msk [vmem:[#allocation2 + $0xd0] sm:$0xff] %vm4476_vm0, %v4433_v45  ;;  %4940 = vrot.lane.b32.xlu1 %v4855_v5, %s11018_s8 }
 0x48a   : > { %4938 = vrot.lane.b32.xlu0 %v4854_v48, %s11018_s8  ;;  %v9775_v48 = vld [vmem:[%s11131_s14 + $0x468] sm:$0xff] }
 0x48b   : > { %v4439_v33 = vpop.permute.xlu1 %4438  ;;  %v4864_v58 = vpack.c.bf16 %v9776_v38, %v9775_v48  ;;  %v9826_v38 = vld [vmem:[%s11131_s14 + $0x3f9] sm:$0xff] }
 0x48c   : > { %4506 = vst.msk [vmem:[#allocation2 + $0xe8] sm:$0xff] %vm4476_vm0, %v4439_v33  ;;  %v4437_v22 = vpop.permute.xlu0 %4436 }
 0x48d   : > { %4505 = vst.msk [vmem:[#allocation2 + $0xe0] sm:$0xff] %vm4476_vm0, %v4437_v22  ;;  %4944 = vrot.lane.b32.xlu1 %v4857_v44, %s11018_s8 }
 0x48e   : > { %4942 = vrot.lane.b32.xlu0 %v4856_v54, %s11018_s8 }
 0x48f   : > { %v4443_v14 = vpop.permute.xlu1 %4442 }
 0x490   : > { %4508 = vst.msk [vmem:[#allocation2 + $0xf8] sm:$0xff] %vm4476_vm0, %v4443_v14  ;;  %v4441_v23 = vpop.permute.xlu0 %4440  ;;  %v9813_v14 = vld [vmem:[%s11131_s14 + $0x391] sm:$0xff] }
 0x491   : > { %4507 = vst.msk [vmem:[#allocation2 + $0xf0] sm:$0xff] %vm4476_vm0, %v4441_v23  ;;  %4948 = vrot.lane.b32.xlu1 %v4859_v57, %s11018_s8  ;;  %v9814_v57 = vld [vmem:[%s11131_s14 + $0x399] sm:$0xff]  ;;  %v9819_v23 = vld [vmem:[%s11131_s14 + $0x3c1] sm:$0xff] }
 0x492   : > { %4946 = vrot.lane.b32.xlu0 %v4858_v6, %s11018_s8  ;;  %v9815_v6 = vld [vmem:[%s11131_s14 + $0x3a1] sm:$0xff] }
 0x493   : > { %v4642_v27 = vpop.permute.xlu1 %4641 }
 0x494   : > { %4737 = vst.msk [vmem:[#allocation2 + $0x8] sm:$0xff] %vm4735_vm1, %v4642_v27  ;;  %v4640_v62 = vpop.permute.xlu0 %4639  ;;  %v5112_v27 = vpack.c.bf16 %v9819_v23, %v9818_v13  ;;  %v9840_v23 = vld [vmem:[%s11131_s14 + $0x469] sm:$0xff] }
 0x495   : > { %4736 = vst.msk [vmem:[#allocation2] sm:$0xff] %vm4735_vm1, %v4640_v62  ;;  %4952 = vrot.lane.b32.xlu1 %v4861_v52, %s11018_s8  ;;  %v9823_v62 = vld [vmem:[%s11131_s14 + $0x3e1] sm:$0xff] }
 0x496   : > { %4950 = vrot.lane.b32.xlu0 %v4860_v53, %s11018_s8  ;;  %v9816_v53 = vld [vmem:[%s11131_s14 + $0x3a9] sm:$0xff] }
 0x497   : > { %v4646_v5 = vpop.permute.xlu1 %4645  ;;  %v5111_v55 = vpack.c.bf16 %v9817_v2, %v9816_v53 }
 0x498   : > { %4739 = vst.msk [vmem:[#allocation2 + $0x18] sm:$0xff] %vm4735_vm1, %v4646_v5  ;;  %v4644_v51 = vpop.permute.xlu0 %4643  ;;  %v5114_v5 = vpack.c.bf16 %v9823_v62, %v9822_v50 }
 0x499   : > { %4738 = vst.msk [vmem:[#allocation2 + $0x10] sm:$0xff] %vm4735_vm1, %v4644_v51  ;;  %4956 = vrot.lane.b32.xlu1 %v4863_v10, %s11018_s8  ;;  %v9827_v51 = vld [vmem:[%s11131_s14 + $0x401] sm:$0xff] }
 0x49a   : > { %4954 = vrot.lane.b32.xlu0 %v4862_v31, %s11018_s8  ;;  %v9820_v31 = vld [vmem:[%s11131_s14 + $0x3c9] sm:$0xff] }
 0x49b   : > { %v4650_v35 = vpop.permute.xlu1 %4649  ;;  %v5113_v48 = vpack.c.bf16 %v9821_v46, %v9820_v31 }
 0x49c   : > { %4741 = vst.msk [vmem:[#allocation2 + $0x28] sm:$0xff] %vm4735_vm1, %v4650_v35  ;;  %v4648_v45 = vpop.permute.xlu0 %4647  ;;  %v9825_v35 = vld [vmem:[%s11131_s14 + $0x3f1] sm:$0xff] }
 0x49d   : > { %4740 = vst.msk [vmem:[#allocation2 + $0x20] sm:$0xff] %vm4735_vm1, %v4648_v45  ;;  %4960 = vrot.lane.b32.xlu1 %v4865_v37, %s11018_s8 }
 0x49e   : > { %4958 = vrot.lane.b32.xlu0 %v4864_v58, %s11018_s8  ;;  %v9824_v58 = vld [vmem:[%s11131_s14 + $0x3e9] sm:$0xff]  ;;  %s218_s8 = sand.u32 1, %s10975_s16  }
 0x49f   : > { %v4654_v44 = vpop.permute.xlu1 %4653 }
 0x4a0   : > { %4743 = vst.msk [vmem:[#allocation2 + $0x38] sm:$0xff] %vm4735_vm1, %v4654_v44  ;;  %v4652_v54 = vpop.permute.xlu0 %4651  ;;  %v5116_v44 = vpack.c.bf16 %v9827_v51, %v9826_v38  ;;  %v9879_v38 = vld [vmem:[%s11131_s14 + $0x39a] sm:$0xff]  ;;  %v9880_v51 = vld [vmem:[%s11131_s14 + $0x3a2] sm:$0xff] }
 0x4a1   : > { %4742 = vst.msk [vmem:[#allocation2 + $0x30] sm:$0xff] %vm4735_vm1, %v4652_v54  ;;  %5159 = vrot.lane.b32.xlu1 %v13485_v36, %s11019_s9  ;;  %v5115_v54 = vpack.c.bf16 %v9825_v35, %v9824_v58  ;;  %v9877_v58 = vld [vmem:[%s11131_s14 + $0x38a] sm:$0xff]  ;;  %v9878_v35 = vld [vmem:[%s11131_s14 + $0x392] sm:$0xff] }
 0x4a2   : > { %5157 = vrot.lane.b32.xlu0 %v13488_v43, %s11019_s9 }
 0x4a3   : > { %v4658_v49 = vpop.permute.xlu1 %4657 }
 0x4a4   : > { %4745 = vst.msk [vmem:[#allocation2 + $0x48] sm:$0xff] %vm4735_vm1, %v4658_v49  ;;  %v4656_v25 = vpop.permute.xlu0 %4655  ;;  %v9830_v49 = vld [vmem:[%s11131_s14 + $0x419] sm:$0xff] }
 0x4a5   : > { %4744 = vst.msk [vmem:[#allocation2 + $0x40] sm:$0xff] %vm4735_vm1, %v4656_v25  ;;  %5163 = vrot.lane.b32.xlu1 %v13498_v56, %s11019_s9  ;;  %v9831_v25 = vld [vmem:[%s11131_s14 + $0x421] sm:$0xff] }
 0x4a6   : > { %5161 = vrot.lane.b32.xlu0 %v13502_v29, %s11019_s9 }
 0x4a7   : > { %v4662_v33 = vpop.permute.xlu1 %4661 }
 0x4a8   : > { %4747 = vst.msk [vmem:[#allocation2 + $0x58] sm:$0xff] %vm4735_vm1, %v4662_v33  ;;  %v4660_v32 = vpop.permute.xlu0 %4659 }
 0x4a9   : > { %4746 = vst.msk [vmem:[#allocation2 + $0x50] sm:$0xff] %vm4735_vm1, %v4660_v32  ;;  %5167 = vrot.lane.b32.xlu1 %v13512_v18, %s11019_s9  ;;  %v9828_v32 = vld [vmem:[%s11131_s14 + $0x409] sm:$0xff] }
 0x4aa   : > { %5165 = vrot.lane.b32.xlu0 %v13516_v7, %s11019_s9 }
 0x4ab   : > { %v4666_v36 = vpop.permute.xlu1 %4665 }
 0x4ac   : > { %4749 = vst.msk [vmem:[#allocation2 + $0x68] sm:$0xff] %vm4735_vm1, %v4666_v36  ;;  %v4664_v43 = vpop.permute.xlu0 %4663  ;;  %v9829_v36 = vld [vmem:[%s11131_s14 + $0x411] sm:$0xff] }
 0x4ad   : > { %4748 = vst.msk [vmem:[#allocation2 + $0x60] sm:$0xff] %vm4735_vm1, %v4664_v43  ;;  %5171 = vrot.lane.b32.xlu1 %v13526_v28, %s11019_s9  ;;  %v9810_v28 = vld [vmem:[%s11131_s14 + $0x379] sm:$0xff] }
 0x4ae   : > { %5169 = vrot.lane.b32.xlu0 %v13530_v19, %s11019_s9  ;;  %v9811_v19 = vld [vmem:[%s11131_s14 + $0x381] sm:$0xff] }
 0x4af   : > { %v4670_v56 = vpop.permute.xlu1 %4669 }
 0x4b0   : > { %4751 = vst.msk [vmem:[#allocation2 + $0x78] sm:$0xff] %vm4735_vm1, %v4670_v56  ;;  %v4668_v29 = vpop.permute.xlu0 %4667  ;;  %v5118_v56 = vpack.c.bf16 %v9831_v25, %v9830_v49  ;;  %v9881_v25 = vld [vmem:[%s11131_s14 + $0x3aa] sm:$0xff] }
 0x4b1   : > { %4750 = vst.msk [vmem:[#allocation2 + $0x70] sm:$0xff] %vm4735_vm1, %v4668_v29  ;;  %5175 = vrot.lane.b32.xlu1 %v13540_v26, %s11019_s9  ;;  %v5117_v29 = vpack.c.bf16 %v9829_v36, %v9828_v32 }
 0x4b2   : > { %5173 = vrot.lane.b32.xlu0 %v13544_v9, %s11019_s9  ;;  %v9808_v9 = vld [vmem:[%s11131_s14 + $0x369] sm:$0xff] }
 0x4b3   : > { %v4674_v18 = vpop.permute.xlu1 %4673 }
 0x4b4   : > { %4753 = vst.msk [vmem:[#allocation2 + $0x88] sm:$0xff] %vm4735_vm1, %v4674_v18  ;;  %v4672_v7 = vpop.permute.xlu0 %4671  ;;  %v9834_v18 = vld [vmem:[%s11131_s14 + $0x439] sm:$0xff] }
 0x4b5   : > { %4752 = vst.msk [vmem:[#allocation2 + $0x80] sm:$0xff] %vm4735_vm1, %v4672_v7  ;;  %5179 = vrot.lane.b32.xlu1 %v13554_v60, %s11019_s9  ;;  %v5108_v60 = vpack.c.bf16 %v9811_v19, %v9810_v28  ;;  %v9835_v7 = vld [vmem:[%s11131_s14 + $0x441] sm:$0xff]  ;;  %v9832_v19 = vld [vmem:[%s11131_s14 + $0x429] sm:$0xff] }
 0x4b6   : > { %5177 = vrot.lane.b32.xlu0 %v13558_v59, %s11019_s9  ;;  %v5107_v59 = vpack.c.bf16 %v9809_v39, %v9808_v9  ;;  %v5120_v39 = vpack.c.bf16 %v9835_v7, %v9834_v18  ;;  %v9885_v7 = vld [vmem:[%s11131_s14 + $0x3ca] sm:$0xff] }
 0x4b7   : > { %v4678_v26 = vpop.permute.xlu1 %4677 }
 0x4b8   : > { %4755 = vst.msk [vmem:[#allocation2 + $0x98] sm:$0xff] %vm4735_vm1, %v4678_v26  ;;  %v4676_v22 = vpop.permute.xlu0 %4675  ;;  %v9833_v26 = vld [vmem:[%s11131_s14 + $0x431] sm:$0xff] }
 0x4b9   : > { %4754 = vst.msk [vmem:[#allocation2 + $0x90] sm:$0xff] %vm4735_vm1, %v4676_v22  ;;  %5183 = vrot.lane.b32.xlu1 %v13568_v15, %s11019_s9  ;;  %v5110_v15 = vpack.c.bf16 %v9815_v6, %v9814_v57  ;;  %v5119_v22 = vpack.c.bf16 %v9833_v26, %v9832_v19  ;;  %v9836_v6 = vld [vmem:[%s11131_s14 + $0x449] sm:$0xff] }
 0x4ba   : > { %5181 = vrot.lane.b32.xlu0 %v13572_v21, %s11019_s9  ;;  %v5109_v21 = vpack.c.bf16 %v9813_v14, %v9812_v16 }
 0x4bb   : > { %v4682_v63 = vpop.permute.xlu1 %4681 }
 0x4bc   : > { %4757 = vst.msk [vmem:[#allocation2 + $0xa8] sm:$0xff] %vm4735_vm1, %v4682_v63  ;;  %v4680_v8 = vpop.permute.xlu0 %4679  ;;  %v9837_v63 = vld [vmem:[%s11131_s14 + $0x451] sm:$0xff] }
 0x4bd   : > { %4756 = vst.msk [vmem:[#allocation2 + $0xa0] sm:$0xff] %vm4735_vm1, %v4680_v8  ;;  %5187 = vrot.lane.b32.xlu1 %v5108_v60, %s11019_s9  ;;  %v9838_v60 = vld [vmem:[%s11131_s14 + $0x459] sm:$0xff]  ;;  %v5121_v8 = vpack.c.bf16 %v9837_v63, %v9836_v6 }
 0x4be   : > { %5185 = vrot.lane.b32.xlu0 %v5107_v59, %s11019_s9  ;;  %v9839_v59 = vld [vmem:[%s11131_s14 + $0x461] sm:$0xff] }
 0x4bf   : > { %v4686_v52 = vpop.permute.xlu1 %4685  ;;  %v5122_v14 = vpack.c.bf16 %v9839_v59, %v9838_v60  ;;  %v9889_v59 = vld [vmem:[%s11131_s14 + $0x3ea] sm:$0xff] }
 0x4c0   : > { %4759 = vst.msk [vmem:[#allocation2 + $0xb8] sm:$0xff] %vm4735_vm1, %v4686_v52  ;;  %v4684_v1 = vpop.permute.xlu0 %4683  ;;  %v9841_v52 = vld [vmem:[%s11131_s14 + $0x471] sm:$0xff] }
 0x4c1   : > { %4758 = vst.msk [vmem:[#allocation2 + $0xb0] sm:$0xff] %vm4735_vm1, %v4684_v1  ;;  %5191 = vrot.lane.b32.xlu1 %v5110_v15, %s11019_s9  ;;  %v9842_v15 = vld [vmem:[%s11131_s14 + $0x479] sm:$0xff]  ;;  %v5123_v1 = vpack.c.bf16 %v9841_v52, %v9840_v23 }
 0x4c2   : > { %5189 = vrot.lane.b32.xlu0 %v5109_v21, %s11019_s9  ;;  %v9843_v21 = vld [vmem:[%s11131_s14 + $0x481] sm:$0xff] }
 0x4c3   : > { %v4690_v10 = vpop.permute.xlu1 %4689  ;;  %v5124_v2 = vpack.c.bf16 %v9843_v21, %v9842_v15  ;;  %v9893_v21 = vld [vmem:[%s11131_s14 + $0x40a] sm:$0xff] }
 0x4c4   : > { %4761 = vst.msk [vmem:[#allocation2 + $0xc8] sm:$0xff] %vm4735_vm1, %v4690_v10  ;;  %v4688_v4 = vpop.permute.xlu0 %4687 }
 0x4c5   : > { %4760 = vst.msk [vmem:[#allocation2 + $0xc0] sm:$0xff] %vm4735_vm1, %v4688_v4  ;;  %5195 = vrot.lane.b32.xlu1 %v5112_v27, %s11019_s9 }
 0x4c6   : > { %5193 = vrot.lane.b32.xlu0 %v5111_v55, %s11019_s9 }
 0x4c7   : > { %v4694_v37 = vpop.permute.xlu1 %4693 }
 0x4c8   : > { %4763 = vst.msk [vmem:[#allocation2 + $0xd8] sm:$0xff] %vm4735_vm1, %v4694_v37  ;;  %v4692_v45 = vpop.permute.xlu0 %4691 }
 0x4c9   : > { %4762 = vst.msk [vmem:[#allocation2 + $0xd0] sm:$0xff] %vm4735_vm1, %v4692_v45  ;;  %5199 = vrot.lane.b32.xlu1 %v5114_v5, %s11019_s9  ;;  %v9874_v5 = vld [vmem:[%s11131_s14 + $0x372] sm:$0xff] }
 0x4ca   : > { %5197 = vrot.lane.b32.xlu0 %v5113_v48, %s11019_s9 }
 0x4cb   : > { %v4698_v33 = vpop.permute.xlu1 %4697 }
 0x4cc   : > { %4765 = vst.msk [vmem:[#allocation2 + $0xe8] sm:$0xff] %vm4735_vm1, %v4698_v33  ;;  %v4696_v43 = vpop.permute.xlu0 %4695  ;;  %v9882_v33 = vld [vmem:[%s11131_s14 + $0x3b2] sm:$0xff] }
 0x4cd   : > { %4764 = vst.msk [vmem:[#allocation2 + $0xe0] sm:$0xff] %vm4735_vm1, %v4696_v43  ;;  %5203 = vrot.lane.b32.xlu1 %v5116_v44, %s11019_s9  ;;  %v9883_v44 = vld [vmem:[%s11131_s14 + $0x3ba] sm:$0xff]  ;;  %v14067_v43 = vpack.c.bf16 %v9882_v33, %v9881_v25  ;;  %v9916_v33 = vld [vmem:[%s11131_s14 + $0x2ca] sm:$0xff] }
 0x4ce   : > { %5201 = vrot.lane.b32.xlu0 %v5115_v54, %s11019_s9  ;;  %v9884_v54 = vld [vmem:[%s11131_s14 + $0x3c2] sm:$0xff] }
 0x4cf   : > { %v4702_v28 = vpop.permute.xlu1 %4701  ;;  %v14063_v36 = vpack.c.bf16 %v9884_v54, %v9883_v44  ;;  %v9911_v44 = vld [vmem:[%s11131_s14 + $0x2a2] sm:$0xff] }
 0x4d0   : > { %4767 = vst.msk [vmem:[#allocation2 + $0xf8] sm:$0xff] %vm4735_vm1, %v4702_v28  ;;  %v4700_v9 = vpop.permute.xlu0 %4699  ;;  %v9886_v28 = vld [vmem:[%s11131_s14 + $0x3d2] sm:$0xff] }
 0x4d1   : > { %4766 = vst.msk [vmem:[#allocation2 + $0xf0] sm:$0xff] %vm4735_vm1, %v4700_v9  ;;  %5207 = vrot.lane.b32.xlu1 %v5118_v56, %s11019_s9  ;;  %v9887_v56 = vld [vmem:[%s11131_s14 + $0x3da] sm:$0xff]  ;;  %v14081_v9 = vpack.c.bf16 %v9886_v28, %v9885_v7 }
 0x4d2   : > { %5205 = vrot.lane.b32.xlu0 %v5117_v29, %s11019_s9  ;;  %v9888_v29 = vld [vmem:[%s11131_s14 + $0x3e2] sm:$0xff] }
 0x4d3   : > { %v4901_v57 = vpop.permute.xlu1 %4900  ;;  %v14077_v26 = vpack.c.bf16 %v9888_v29, %v9887_v56  ;;  %v9914_v29 = vld [vmem:[%s11131_s14 + $0x2ba] sm:$0xff] }
 0x4d4   : > { %4996 = vst.msk [vmem:[#allocation2 + $0x8] sm:$0xff] %vm4994_vm2, %v4901_v57  ;;  %v4899_v16 = vpop.permute.xlu0 %4898  ;;  %v9890_v57 = vld [vmem:[%s11131_s14 + $0x3f2] sm:$0xff] }
 0x4d5   : > { %4995 = vst.msk [vmem:[#allocation2] sm:$0xff] %vm4994_vm2, %v4899_v16  ;;  %5211 = vrot.lane.b32.xlu1 %v5120_v39, %s11019_s9  ;;  %v9891_v39 = vld [vmem:[%s11131_s14 + $0x3fa] sm:$0xff]  ;;  %v14095_v16 = vpack.c.bf16 %v9890_v57, %v9889_v59  ;;  %v9919_v57 = vld [vmem:[%s11131_s14 + $0x2e2] sm:$0xff] }
 0x4d6   : > { %5209 = vrot.lane.b32.xlu0 %v5119_v22, %s11019_s9  ;;  %v9892_v22 = vld [vmem:[%s11131_s14 + $0x402] sm:$0xff]  ;;  %v9918_v59 = vld [vmem:[%s11131_s14 + $0x2da] sm:$0xff] }
 0x4d7   : > { %v4905_v13 = vpop.permute.xlu1 %4904  ;;  %v14091_v63 = vpack.c.bf16 %v9892_v22, %v9891_v39  ;;  %v9920_v39 = vld [vmem:[%s11131_s14 + $0x2ea] sm:$0xff]  ;;  %v9921_v22 = vld [vmem:[%s11131_s14 + $0x2f2] sm:$0xff] }
 0x4d8   : > { %4998 = vst.msk [vmem:[#allocation2 + $0x18] sm:$0xff] %vm4994_vm2, %v4905_v13  ;;  %v4903_v53 = vpop.permute.xlu0 %4902  ;;  %v9894_v13 = vld [vmem:[%s11131_s14 + $0x412] sm:$0xff] }
 0x4d9   : > { %4997 = vst.msk [vmem:[#allocation2 + $0x10] sm:$0xff] %vm4994_vm2, %v4903_v53  ;;  %5215 = vrot.lane.b32.xlu1 %v5122_v14, %s11019_s9  ;;  %v9895_v14 = vld [vmem:[%s11131_s14 + $0x41a] sm:$0xff]  ;;  %v14109_v53 = vpack.c.bf16 %v9894_v13, %v9893_v21  ;;  %v9925_v21 = vld [vmem:[%s11131_s14 + $0x312] sm:$0xff] }
 0x4da   : > { %5213 = vrot.lane.b32.xlu0 %v5121_v8, %s11019_s9  ;;  %v9896_v8 = vld [vmem:[%s11131_s14 + $0x422] sm:$0xff] }
 0x4db   : > { %v4909_v27 = vpop.permute.xlu1 %4908  ;;  %v14105_v52 = vpack.c.bf16 %v9896_v8, %v9895_v14  ;;  %v5616_v14 = vpack.c.bf16 %v9921_v22, %v9920_v39  ;;  %v5615_v8 = vpack.c.bf16 %v9919_v57, %v9918_v59  ;;  %v9975_v39 = vld [vmem:[%s11131_s14 + $0x29b] sm:$0xff]  ;;  %v9976_v22 = vld [vmem:[%s11131_s14 + $0x2a3] sm:$0xff]  ;;  %v9981_v59 = vld [vmem:[%s11131_s14 + $0x2cb] sm:$0xff] }
 0x4dc   : > { %5000 = vst.msk [vmem:[#allocation2 + $0x28] sm:$0xff] %vm4994_vm2, %v4909_v27  ;;  %v4907_v55 = vpop.permute.xlu0 %4906  ;;  %v9982_v57 = vld [vmem:[%s11131_s14 + $0x2d3] sm:$0xff] }
 0x4dd   : > { %4999 = vst.msk [vmem:[#allocation2 + $0x20] sm:$0xff] %vm4994_vm2, %v4907_v55  ;;  %5219 = vrot.lane.b32.xlu1 %v5124_v2, %s11019_s9  ;;  %v9899_v2 = vld [vmem:[%s11131_s14 + $0x43a] sm:$0xff]  ;;  %v9897_v55 = vld [vmem:[%s11131_s14 + $0x42a] sm:$0xff] }
 0x4de   : > { %5217 = vrot.lane.b32.xlu0 %v5123_v1, %s11019_s9  ;;  %v9900_v1 = vld [vmem:[%s11131_s14 + $0x442] sm:$0xff]  ;;  %s8604_s9 = sshll.u32 %s218_s8, 8 }
 0x4df   : > { %v4913_v50 = vpop.permute.xlu1 %4912 }
 0x4e0   : > { %5002 = vst.msk [vmem:[#allocation2 + $0x38] sm:$0xff] %vm4994_vm2, %v4913_v50  ;;  %v4911_v62 = vpop.permute.xlu0 %4910  ;;  %v9898_v50 = vld [vmem:[%s11131_s14 + $0x432] sm:$0xff] }
 0x4e1   : > { %5001 = vst.msk [vmem:[#allocation2 + $0x30] sm:$0xff] %vm4994_vm2, %v4911_v62  ;;  %5418 = vrot.lane.b32.xlu1 %v13655_v47, %s11020_s10 }
 0x4e2   : > { %5416 = vrot.lane.b32.xlu0 %v13658_v40, %s11020_s10 }
 0x4e3   : > { %v4917_v10 = vpop.permute.xlu1 %4916 }
 0x4e4   : > { %5004 = vst.msk [vmem:[#allocation2 + $0x48] sm:$0xff] %vm4994_vm2, %v4917_v10  ;;  %v4915_v31 = vpop.permute.xlu0 %4914  ;;  %v14119_v10 = vpack.c.bf16 %v9900_v1, %v9899_v2  ;;  %v9923_v2 = vld [vmem:[%s11131_s14 + $0x302] sm:$0xff] }
 0x4e5   : > { %5003 = vst.msk [vmem:[#allocation2 + $0x40] sm:$0xff] %vm4994_vm2, %v4915_v31  ;;  %5422 = vrot.lane.b32.xlu1 %v13668_v12, %s11020_s10  ;;  %v14123_v31 = vpack.c.bf16 %v9898_v50, %v9897_v55  ;;  %v9928_v50 = vld [vmem:[%s11131_s14 + $0x32a] sm:$0xff] }
 0x4e6   : > { %5420 = vrot.lane.b32.xlu0 %v13672_v30, %s11020_s10 }
 0x4e7   : > { %v4921_v46 = vpop.permute.xlu1 %4920 }
 0x4e8   : > { %5006 = vst.msk [vmem:[#allocation2 + $0x58] sm:$0xff] %vm4994_vm2, %v4921_v46  ;;  %v4919_v4 = vpop.permute.xlu0 %4918  ;;  %v9903_v46 = vld [vmem:[%s11131_s14 + $0x45a] sm:$0xff] }
 0x4e9   : > { %5005 = vst.msk [vmem:[#allocation2 + $0x50] sm:$0xff] %vm4994_vm2, %v4919_v4  ;;  %5426 = vrot.lane.b32.xlu1 %v13682_v0, %s11020_s10  ;;  %v9904_v4 = vld [vmem:[%s11131_s14 + $0x462] sm:$0xff] }
 0x4ea   : > { %5424 = vrot.lane.b32.xlu0 %v13686_v3, %s11020_s10 }
 0x4eb   : > { %v4925_v47 = vpop.permute.xlu1 %4924 }
 0x4ec   : > { %5008 = vst.msk [vmem:[#allocation2 + $0x68] sm:$0xff] %vm4994_vm2, %v4925_v47  ;;  %v4923_v40 = vpop.permute.xlu0 %4922 }
 0x4ed   : > { %5007 = vst.msk [vmem:[#allocation2 + $0x60] sm:$0xff] %vm4994_vm2, %v4923_v40  ;;  %5430 = vrot.lane.b32.xlu1 %v13696_v42, %s11020_s10  ;;  %v9875_v42 = vld [vmem:[%s11131_s14 + $0x37a] sm:$0xff]  ;;  %v9901_v40 = vld [vmem:[%s11131_s14 + $0x44a] sm:$0xff] }
 0x4ee   : > { %5428 = vrot.lane.b32.xlu0 %v13700_v61, %s11020_s10  ;;  %v9876_v61 = vld [vmem:[%s11131_s14 + $0x382] sm:$0xff] }
 0x4ef   : > { %v4929_v12 = vpop.permute.xlu1 %4928 }
 0x4f0   : > { %5010 = vst.msk [vmem:[#allocation2 + $0x78] sm:$0xff] %vm4994_vm2, %v4929_v12  ;;  %v4927_v30 = vpop.permute.xlu0 %4926  ;;  %v9902_v12 = vld [vmem:[%s11131_s14 + $0x452] sm:$0xff] }
 0x4f1   : > { %5009 = vst.msk [vmem:[#allocation2 + $0x70] sm:$0xff] %vm4994_vm2, %v4927_v30  ;;  %5434 = vrot.lane.b32.xlu1 %v13710_v17, %s11020_s10 }
 0x4f2   : > { %5432 = vrot.lane.b32.xlu0 %v13714_v24, %s11020_s10  ;;  %v9873_v24 = vld [vmem:[%s11131_s14 + $0x36a] sm:$0xff] }
 0x4f3   : > { %v4933_v0 = vpop.permute.xlu1 %4932 }
 0x4f4   : > { %5012 = vst.msk [vmem:[#allocation2 + $0x88] sm:$0xff] %vm4994_vm2, %v4933_v0  ;;  %v4931_v3 = vpop.permute.xlu0 %4930  ;;  %v14133_v0 = vpack.c.bf16 %v9904_v4, %v9903_v46  ;;  %v9926_v4 = vld [vmem:[%s11131_s14 + $0x31a] sm:$0xff] }
 0x4f5   : > { %5011 = vst.msk [vmem:[#allocation2 + $0x80] sm:$0xff] %vm4994_vm2, %v4931_v3  ;;  %5438 = vrot.lane.b32.xlu1 %v13724_v11, %s11020_s10  ;;  %v14035_v11 = vpack.c.bf16 %v9876_v61, %v9875_v42  ;;  %v14137_v3 = vpack.c.bf16 %v9902_v12, %v9901_v40  ;;  %v9907_v42 = vld [vmem:[%s11131_s14 + $0x47a] sm:$0xff]  ;;  %v9908_v61 = vld [vmem:[%s11131_s14 + $0x482] sm:$0xff] }
 0x4f6   : > { %5436 = vrot.lane.b32.xlu0 %v13728_v34, %s11020_s10  ;;  %v14039_v34 = vpack.c.bf16 %v9874_v5, %v9873_v24  ;;  %v9905_v24 = vld [vmem:[%s11131_s14 + $0x46a] sm:$0xff]  ;;  %v9906_v5 = vld [vmem:[%s11131_s14 + $0x472] sm:$0xff] }
 0x4f7   : > { %v4937_v17 = vpop.permute.xlu1 %4936 }
 0x4f8   : > { %5014 = vst.msk [vmem:[#allocation2 + $0x98] sm:$0xff] %vm4994_vm2, %v4937_v17  ;;  %v4935_v48 = vpop.permute.xlu0 %4934 }
 0x4f9   : > { %5013 = vst.msk [vmem:[#allocation2 + $0x90] sm:$0xff] %vm4994_vm2, %v4935_v48  ;;  %5442 = vrot.lane.b32.xlu1 %v13738_v41, %s11020_s10  ;;  %v14049_v41 = vpack.c.bf16 %v9880_v51, %v9879_v38  ;;  %v14147_v38 = vpack.c.bf16 %v9908_v61, %v9907_v42  ;;  %v14151_v51 = vpack.c.bf16 %v9906_v5, %v9905_v24  ;;  %v9932_v42 = vld [vmem:[%s11131_s14 + $0x34a] sm:$0xff]  ;;  %v9933_v61 = vld [vmem:[%s11131_s14 + $0x352] sm:$0xff]  ;;  %v9930_v24 = vld [vmem:[%s11131_s14 + $0x33a] sm:$0xff] }
 0x4fa   : > { %5440 = vrot.lane.b32.xlu0 %v13742_v20, %s11020_s10  ;;  %v14053_v20 = vpack.c.bf16 %v9878_v35, %v9877_v58  ;;  %v9913_v58 = vld [vmem:[%s11131_s14 + $0x2b2] sm:$0xff]  ;;  %v9931_v5 = vld [vmem:[%s11131_s14 + $0x342] sm:$0xff] }
 0x4fb   : > { %v4941_v37 = vpop.permute.xlu1 %4940 }
 0x4fc   : > { %5016 = vst.msk [vmem:[#allocation2 + $0xa8] sm:$0xff] %vm4994_vm2, %v4941_v37  ;;  %v4939_v45 = vpop.permute.xlu0 %4938  ;;  %v9912_v37 = vld [vmem:[%s11131_s14 + $0x2aa] sm:$0xff] }
 0x4fd   : > { %5015 = vst.msk [vmem:[#allocation2 + $0xa0] sm:$0xff] %vm4994_vm2, %v4939_v45  ;;  %5446 = vrot.lane.b32.xlu1 %v14035_v11, %s11020_s10  ;;  %v9910_v45 = vld [vmem:[%s11131_s14 + $0x29a] sm:$0xff] }
 0x4fe   : > { %5444 = vrot.lane.b32.xlu0 %v14039_v34, %s11020_s10  ;;  %v5611_v25 = vpack.c.bf16 %v9911_v44, %v9910_v45  ;;  %v9934_v45 = vld [vmem:[%s11131_s14 + $0x35a] sm:$0xff]  ;;  %v9935_v44 = vld [vmem:[%s11131_s14 + $0x362] sm:$0xff] }
 0x4ff   : > { %v4945_v49 = vpop.permute.xlu1 %4944 }
 0x500   : > { %5018 = vst.msk [vmem:[#allocation2 + $0xb8] sm:$0xff] %vm4994_vm2, %v4945_v49  ;;  %v4943_v32 = vpop.permute.xlu0 %4942  ;;  %v5612_v49 = vpack.c.bf16 %v9913_v58, %v9912_v37  ;;  %v5622_v37 = vpack.c.bf16 %v9933_v61, %v9932_v42  ;;  %v5621_v58 = vpack.c.bf16 %v9931_v5, %v9930_v24  ;;  %v9994_v24 = vld [vmem:[%s11131_s14 + $0x333] sm:$0xff] }
 0x501   : > { %5017 = vst.msk [vmem:[#allocation2 + $0xb0] sm:$0xff] %vm4994_vm2, %v4943_v32  ;;  %5450 = vrot.lane.b32.xlu1 %v14049_v41, %s11020_s10  ;;  %v9917_v32 = vld [vmem:[%s11131_s14 + $0x2d2] sm:$0xff] }
 0x502   : > { %5448 = vrot.lane.b32.xlu0 %v14053_v20, %s11020_s10  ;;  %v5614_v28 = vpack.c.bf16 %v9917_v32, %v9916_v33 }
 0x503   : > { %v4949_v18 = vpop.permute.xlu1 %4948 }
 0x504   : > { %5020 = vst.msk [vmem:[#allocation2 + $0xc8] sm:$0xff] %vm4994_vm2, %v4949_v18  ;;  %v4947_v19 = vpop.permute.xlu0 %4946  ;;  %v9915_v18 = vld [vmem:[%s11131_s14 + $0x2c2] sm:$0xff] }
 0x505   : > { %5019 = vst.msk [vmem:[#allocation2 + $0xc0] sm:$0xff] %vm4994_vm2, %v4947_v19  ;;  %5454 = vrot.lane.b32.xlu1 %v14063_v36, %s11020_s10  ;;  %v5613_v19 = vpack.c.bf16 %v9915_v18, %v9914_v29 }
 0x506   : > { %5452 = vrot.lane.b32.xlu0 %v14067_v43, %s11020_s10 }
 0x507   : > { %v4953_v60 = vpop.permute.xlu1 %4952 }
 0x508   : > { %5022 = vst.msk [vmem:[#allocation2 + $0xd8] sm:$0xff] %vm4994_vm2, %v4953_v60  ;;  %v4951_v6 = vpop.permute.xlu0 %4950 }
 0x509   : > { %5021 = vst.msk [vmem:[#allocation2 + $0xd0] sm:$0xff] %vm4994_vm2, %v4951_v6  ;;  %5458 = vrot.lane.b32.xlu1 %v14077_v26, %s11020_s10 }
 0x50a   : > { %5456 = vrot.lane.b32.xlu0 %v14081_v9, %s11020_s10 }
 0x50b   : > { %v4957_v15 = vpop.permute.xlu1 %4956 }
 0x50c   : > { %5024 = vst.msk [vmem:[#allocation2 + $0xe8] sm:$0xff] %vm4994_vm2, %v4957_v15  ;;  %v4955_v23 = vpop.permute.xlu0 %4954  ;;  %v9924_v15 = vld [vmem:[%s11131_s14 + $0x30a] sm:$0xff] }
 0x50d   : > { %5023 = vst.msk [vmem:[#allocation2 + $0xe0] sm:$0xff] %vm4994_vm2, %v4955_v23  ;;  %5462 = vrot.lane.b32.xlu1 %v14091_v63, %s11020_s10  ;;  %v9922_v23 = vld [vmem:[%s11131_s14 + $0x2fa] sm:$0xff] }
 0x50e   : > { %5460 = vrot.lane.b32.xlu0 %v14095_v16, %s11020_s10  ;;  %v5617_v55 = vpack.c.bf16 %v9923_v2, %v9922_v23  ;;  %v9986_v23 = vld [vmem:[%s11131_s14 + $0x2f3] sm:$0xff] }
 0x50f   : > { %v4961_v27 = vpop.permute.xlu1 %4960 }
 0x510   : > { %5026 = vst.msk [vmem:[#allocation2 + $0xf8] sm:$0xff] %vm4994_vm2, %v4961_v27  ;;  %v4959_v62 = vpop.permute.xlu0 %4958  ;;  %v5618_v27 = vpack.c.bf16 %v9925_v21, %v9924_v15  ;;  %v5873_v21 = vpack.c.bf16 %v9982_v57, %v9981_v59  ;;  %v10013_v59 = vld [vmem:[%s11131_s14 + $0x3cb] sm:$0xff]  ;;  %v10014_v57 = vld [vmem:[%s11131_s14 + $0x3d3] sm:$0xff] }
 0x511   : > { %5025 = vst.msk [vmem:[#allocation2 + $0xf0] sm:$0xff] %vm4994_vm2, %v4959_v62  ;;  %5466 = vrot.lane.b32.xlu1 %v14105_v52, %s11020_s10  ;;  %v9929_v62 = vld [vmem:[%s11131_s14 + $0x332] sm:$0xff] }
 0x512   : > { %5464 = vrot.lane.b32.xlu0 %v14109_v53, %s11020_s10  ;;  %v5620_v12 = vpack.c.bf16 %v9929_v62, %v9928_v50 }
 0x513   : > { %v5160_v47 = vpop.permute.xlu1 %5159 }
 0x514   : > { %5255 = vst.msk [vmem:[#allocation2 + $0x8] sm:$0xff] %vm5253_vm3, %v5160_v47  ;;  %v5158_v30 = vpop.permute.xlu0 %5157  ;;  %v9927_v47 = vld [vmem:[%s11131_s14 + $0x322] sm:$0xff] }
 0x515   : > { %5254 = vst.msk [vmem:[#allocation2] sm:$0xff] %vm5253_vm3, %v5158_v30  ;;  %5470 = vrot.lane.b32.xlu1 %v14119_v10, %s11020_s10  ;;  %v5619_v30 = vpack.c.bf16 %v9927_v47, %v9926_v4  ;;  %v9990_v4 = vld [vmem:[%s11131_s14 + $0x313] sm:$0xff] }
 0x516   : > { %5468 = vrot.lane.b32.xlu0 %v14123_v31, %s11020_s10 }
 0x517   : > { %v5164_v17 = vpop.permute.xlu1 %5163 }
 0x518   : > { %5257 = vst.msk [vmem:[#allocation2 + $0x18] sm:$0xff] %vm5253_vm3, %v5164_v17  ;;  %v5162_v48 = vpop.permute.xlu0 %5161 }
 0x519   : > { %5256 = vst.msk [vmem:[#allocation2 + $0x10] sm:$0xff] %vm5253_vm3, %v5162_v48  ;;  %5474 = vrot.lane.b32.xlu1 %v14133_v0, %s11020_s10 }
 0x51a   : > { %5472 = vrot.lane.b32.xlu0 %v14137_v3, %s11020_s10 }
 0x51b   : > { %v5168_v35 = vpop.permute.xlu1 %5167 }
 0x51c   : > { %5259 = vst.msk [vmem:[#allocation2 + $0x28] sm:$0xff] %vm5253_vm3, %v5168_v35  ;;  %v5166_v54 = vpop.permute.xlu0 %5165 }
 0x51d   : > { %5258 = vst.msk [vmem:[#allocation2 + $0x20] sm:$0xff] %vm5253_vm3, %v5166_v54  ;;  %5478 = vrot.lane.b32.xlu1 %v14147_v38, %s11020_s10 }
 0x51e   : > { %5476 = vrot.lane.b32.xlu0 %v14151_v51, %s11020_s10  ;;  %s15230_s10 = scalar_lea.vmem [#allocation3], %s8604_s9  ;;  %s10909_s9 = sshll.u32 %s11028_s6, 4  ;;  %s10910_s9 = int_to_ptr.vmem [resolvable:$false] %s10909_s9 }
 0x51f   : > { %v5172_v56 = vpop.permute.xlu1 %5171 }
 0x520   : > { %5261 = vst.msk [vmem:[#allocation2 + $0x38] sm:$0xff] %vm5253_vm3, %v5172_v56  ;;  %v5170_v7 = vpop.permute.xlu0 %5169 }
 0x521   : > { %5260 = vst.msk [vmem:[#allocation2 + $0x30] sm:$0xff] %vm5253_vm3, %v5170_v7  ;;  %5677 = vrot.lane.b32.xlu1 %v5612_v49, %s11021_s11  ;;  %v5623_v49 = vpack.c.bf16 %v9935_v44, %v9934_v45  ;;  %v9997_v44 = vld [vmem:[%s11131_s14 + $0x34b] sm:$0xff] }
 0x522   : > { %5675 = vrot.lane.b32.xlu0 %v5611_v25, %s11021_s11 }
 0x523   : > { %v5176_v60 = vpop.permute.xlu1 %5175 }
 0x524   : > { %5263 = vst.msk [vmem:[#allocation2 + $0x48] sm:$0xff] %vm5253_vm3, %v5176_v60  ;;  %v5174_v6 = vpop.permute.xlu0 %5173 }
 0x525   : > { %5262 = vst.msk [vmem:[#allocation2 + $0x40] sm:$0xff] %vm5253_vm3, %v5174_v6  ;;  %5681 = vrot.lane.b32.xlu1 %v5614_v28, %s11021_s11 }
 0x526   : > { %5679 = vrot.lane.b32.xlu0 %v5613_v19, %s11021_s11 }
 0x527   : > { %v5180_v13 = vpop.permute.xlu1 %5179 }
 0x528   : > { %5265 = vst.msk [vmem:[#allocation2 + $0x58] sm:$0xff] %vm5253_vm3, %v5180_v13  ;;  %v5178_v1 = vpop.permute.xlu0 %5177  ;;  %v9985_v13 = vld [vmem:[%s11131_s14 + $0x2eb] sm:$0xff] }
 0x529   : > { %5264 = vst.msk [vmem:[#allocation2 + $0x50] sm:$0xff] %vm5253_vm3, %v5178_v1  ;;  %5685 = vrot.lane.b32.xlu1 %v5616_v14, %s11021_s11  ;;  %v9979_v14 = vld [vmem:[%s11131_s14 + $0x2bb] sm:$0xff]  ;;  %v5875_v50 = vpack.c.bf16 %v9986_v23, %v9985_v13  ;;  %v10017_v13 = vld [vmem:[%s11131_s14 + $0x3eb] sm:$0xff]  ;;  %v10018_v23 = vld [vmem:[%s11131_s14 + $0x3f3] sm:$0xff] }
 0x52a   : > { %5683 = vrot.lane.b32.xlu0 %v5615_v8, %s11021_s11  ;;  %v9980_v8 = vld [vmem:[%s11131_s14 + $0x2c3] sm:$0xff]  ;;  %v9983_v1 = vld [vmem:[%s11131_s14 + $0x2db] sm:$0xff] }
 0x52b   : > { %v5184_v46 = vpop.permute.xlu1 %5183 }
 0x52c   : > { %5267 = vst.msk [vmem:[#allocation2 + $0x68] sm:$0xff] %vm5253_vm3, %v5184_v46  ;;  %v5182_v40 = vpop.permute.xlu0 %5181  ;;  %v9989_v46 = vld [vmem:[%s11131_s14 + $0x30b] sm:$0xff] }
 0x52d   : > { %5266 = vst.msk [vmem:[#allocation2 + $0x60] sm:$0xff] %vm5253_vm3, %v5182_v40  ;;  %5689 = vrot.lane.b32.xlu1 %v5618_v27, %s11021_s11  ;;  %v9984_v27 = vld [vmem:[%s11131_s14 + $0x2e3] sm:$0xff]  ;;  %v9987_v40 = vld [vmem:[%s11131_s14 + $0x2fb] sm:$0xff]  ;;  %v5877_v42 = vpack.c.bf16 %v9990_v4, %v9989_v46  ;;  %v10021_v46 = vld [vmem:[%s11131_s14 + $0x40b] sm:$0xff] }
 0x52e   : > { %5687 = vrot.lane.b32.xlu0 %v5617_v55, %s11021_s11  ;;  %v5874_v62 = vpack.c.bf16 %v9984_v27, %v9983_v1  ;;  %v10015_v1 = vld [vmem:[%s11131_s14 + $0x3db] sm:$0xff]  ;;  %v10016_v27 = vld [vmem:[%s11131_s14 + $0x3e3] sm:$0xff]  ;;  %v10022_v4 = vld [vmem:[%s11131_s14 + $0x413] sm:$0xff] }
 0x52f   : > { %v5188_v17 = vpop.permute.xlu1 %5187 }
 0x530   : > { %5269 = vst.msk [vmem:[#allocation2 + $0x78] sm:$0xff] %vm5253_vm3, %v5188_v17  ;;  %v5186_v48 = vpop.permute.xlu0 %5185  ;;  %v9993_v17 = vld [vmem:[%s11131_s14 + $0x32b] sm:$0xff] }
 0x531   : > { %5268 = vst.msk [vmem:[#allocation2 + $0x70] sm:$0xff] %vm5253_vm3, %v5186_v48  ;;  %5693 = vrot.lane.b32.xlu1 %v5620_v12, %s11021_s11  ;;  %v9988_v12 = vld [vmem:[%s11131_s14 + $0x303] sm:$0xff]  ;;  %v9991_v48 = vld [vmem:[%s11131_s14 + $0x31b] sm:$0xff] }
 0x532   : > { %5691 = vrot.lane.b32.xlu0 %v5619_v30, %s11021_s11  ;;  %v5876_v61 = vpack.c.bf16 %v9988_v12, %v9987_v40  ;;  %v10019_v40 = vld [vmem:[%s11131_s14 + $0x3fb] sm:$0xff]  ;;  %v10020_v12 = vld [vmem:[%s11131_s14 + $0x403] sm:$0xff] }
 0x533   : > { %v5192_v35 = vpop.permute.xlu1 %5191 }
 0x534   : > { %5271 = vst.msk [vmem:[#allocation2 + $0x88] sm:$0xff] %vm5253_vm3, %v5192_v35  ;;  %v5190_v54 = vpop.permute.xlu0 %5189  ;;  %v5879_v35 = vpack.c.bf16 %v9994_v24, %v9993_v17  ;;  %v10025_v17 = vld [vmem:[%s11131_s14 + $0x42b] sm:$0xff]  ;;  %v10026_v24 = vld [vmem:[%s11131_s14 + $0x433] sm:$0xff] }
 0x535   : > { %5270 = vst.msk [vmem:[#allocation2 + $0x80] sm:$0xff] %vm5253_vm3, %v5190_v54  ;;  %5697 = vrot.lane.b32.xlu1 %v5622_v37, %s11021_s11  ;;  %v9992_v37 = vld [vmem:[%s11131_s14 + $0x323] sm:$0xff]  ;;  %v9998_v54 = vld [vmem:[%s11131_s14 + $0x353] sm:$0xff] }
 0x536   : > { %5695 = vrot.lane.b32.xlu0 %v5621_v58, %s11021_s11  ;;  %v5878_v45 = vpack.c.bf16 %v9992_v37, %v9991_v48  ;;  %v10023_v48 = vld [vmem:[%s11131_s14 + $0x41b] sm:$0xff]  ;;  %v10024_v37 = vld [vmem:[%s11131_s14 + $0x423] sm:$0xff] }
 0x537   : > { %v5196_v25 = vpop.permute.xlu1 %5195 }
 0x538   : > { %5273 = vst.msk [vmem:[#allocation2 + $0x98] sm:$0xff] %vm5253_vm3, %v5196_v25  ;;  %v5194_v33 = vpop.permute.xlu0 %5193  ;;  %v9995_v25 = vld [vmem:[%s11131_s14 + $0x33b] sm:$0xff] }
 0x539   : > { %5272 = vst.msk [vmem:[#allocation2 + $0x90] sm:$0xff] %vm5253_vm3, %v5194_v33  ;;  %5701 = vrot.lane.b32.xlu1 %v14039_v34, %s11021_s11  ;;  %v9996_v33 = vld [vmem:[%s11131_s14 + $0x343] sm:$0xff] }
 0x53a   : > { %5699 = vrot.lane.b32.xlu0 %v5623_v49, %s11021_s11 }
 0x53b   : > { %v5200_v32 = vpop.permute.xlu1 %5199 }
 0x53c   : > { %5275 = vst.msk [vmem:[#allocation2 + $0xa8] sm:$0xff] %vm5253_vm3, %v5200_v32  ;;  %v5198_v56 = vpop.permute.xlu0 %5197 }
 0x53d   : > { %5274 = vst.msk [vmem:[#allocation2 + $0xa0] sm:$0xff] %vm5253_vm3, %v5198_v56  ;;  %5705 = vrot.lane.b32.xlu1 %v14053_v20, %s11021_s11  ;;  %v5881_v56 = vpack.c.bf16 %v9998_v54, %v9997_v44  ;;  %v10029_v44 = vld [vmem:[%s11131_s14 + $0x44b] sm:$0xff]  ;;  %v10030_v54 = vld [vmem:[%s11131_s14 + $0x453] sm:$0xff] }
 0x53e   : > { %5703 = vrot.lane.b32.xlu0 %v14035_v11, %s11021_s11 }
 0x53f   : > { %v5204_v29 = vpop.permute.xlu1 %5203 }
 0x540   : > { %5277 = vst.msk [vmem:[#allocation2 + $0xb8] sm:$0xff] %vm5253_vm3, %v5204_v29  ;;  %v5202_v18 = vpop.permute.xlu0 %5201  ;;  %v5880_v29 = vpack.c.bf16 %v9996_v33, %v9995_v25  ;;  %v10027_v25 = vld [vmem:[%s11131_s14 + $0x43b] sm:$0xff]  ;;  %v10028_v33 = vld [vmem:[%s11131_s14 + $0x443] sm:$0xff] }
 0x541   : > { %5276 = vst.msk [vmem:[#allocation2 + $0xb0] sm:$0xff] %vm5253_vm3, %v5202_v18  ;;  %5709 = vrot.lane.b32.xlu1 %v14067_v43, %s11021_s11  ;;  %v10001_v18 = vld [vmem:[%s11131_s14 + $0x36b] sm:$0xff] }
 0x542   : > { %5707 = vrot.lane.b32.xlu0 %v14049_v41, %s11021_s11 }
 0x543   : > { %v5208_v34 = vpop.permute.xlu1 %5207 }
 0x544   : > { %5279 = vst.msk [vmem:[#allocation2 + $0xc8] sm:$0xff] %vm5253_vm3, %v5208_v34  ;;  %v5206_v7 = vpop.permute.xlu0 %5205  ;;  %v10002_v34 = vld [vmem:[%s11131_s14 + $0x373] sm:$0xff] }
 0x545   : > { %5278 = vst.msk [vmem:[#allocation2 + $0xc0] sm:$0xff] %vm5253_vm3, %v5206_v7  ;;  %5713 = vrot.lane.b32.xlu1 %v14081_v9, %s11021_s11 }
 0x546   : > { %5711 = vrot.lane.b32.xlu0 %v14063_v36, %s11021_s11 }
 0x547   : > { %v5212_v11 = vpop.permute.xlu1 %5211 }
 0x548   : > { %5281 = vst.msk [vmem:[#allocation2 + $0xd8] sm:$0xff] %vm5253_vm3, %v5212_v11  ;;  %v5210_v20 = vpop.permute.xlu0 %5209  ;;  %v9999_v11 = vld [vmem:[%s11131_s14 + $0x35b] sm:$0xff] }
 0x549   : > { %5280 = vst.msk [vmem:[#allocation2 + $0xd0] sm:$0xff] %vm5253_vm3, %v5210_v20  ;;  %5717 = vrot.lane.b32.xlu1 %v14095_v16, %s11021_s11  ;;  %v10000_v20 = vld [vmem:[%s11131_s14 + $0x363] sm:$0xff] }
 0x54a   : > { %5715 = vrot.lane.b32.xlu0 %v14077_v26, %s11021_s11 }
 0x54b   : > { %v5216_v41 = vpop.permute.xlu1 %5215 }
 0x54c   : > { %5283 = vst.msk [vmem:[#allocation2 + $0xe8] sm:$0xff] %vm5253_vm3, %v5216_v41  ;;  %v5214_v43 = vpop.permute.xlu0 %5213 }
 0x54d   : > { %5282 = vst.msk [vmem:[#allocation2 + $0xe0] sm:$0xff] %vm5253_vm3, %v5214_v43  ;;  %5721 = vrot.lane.b32.xlu1 %v14109_v53, %s11021_s11  ;;  %v9973_v53 = vld [vmem:[%s11131_s14 + $0x492] sm:$0xff]  ;;  %v5883_v43 = vpack.c.bf16 %v10002_v34, %v10001_v18 }
 0x54e   : > { %5719 = vrot.lane.b32.xlu0 %v14091_v63, %s11021_s11  ;;  %v9972_v63 = vld [vmem:[%s11131_s14 + $0x48a] sm:$0xff]  ;;  %v10034_v34 = vld [vmem:[%s11131_s14 + $0x473] sm:$0xff] }
 0x54f   : > { %v5220_v36 = vpop.permute.xlu1 %5219  ;;  %v5642_v28 = vpack.c.bf16 %v9973_v53, %v9972_v63  ;;  %v10003_v63 = vld [vmem:[%s11131_s14 + $0x37b] sm:$0xff]  ;;  %v10004_v53 = vld [vmem:[%s11131_s14 + $0x383] sm:$0xff]  ;;  %v10033_v18 = vld [vmem:[%s11131_s14 + $0x46b] sm:$0xff] }
 0x550   : > { %5285 = vst.msk [vmem:[#allocation2 + $0xf8] sm:$0xff] %vm5253_vm3, %v5220_v36  ;;  %v5218_v9 = vpop.permute.xlu0 %5217  ;;  %v5882_v36 = vpack.c.bf16 %v10000_v20, %v9999_v11  ;;  %v10031_v11 = vld [vmem:[%s11131_s14 + $0x45b] sm:$0xff]  ;;  %v10032_v20 = vld [vmem:[%s11131_s14 + $0x463] sm:$0xff] }
 0x551   : > { %5284 = vst.msk [vmem:[#allocation2 + $0xf0] sm:$0xff] %vm5253_vm3, %v5218_v9  ;;  %5725 = vrot.lane.b32.xlu1 %v14123_v31, %s11021_s11  ;;  %v10005_v9 = vld [vmem:[%s11131_s14 + $0x38b] sm:$0xff] }
 0x552   : > { %5723 = vrot.lane.b32.xlu0 %v14105_v52, %s11021_s11 }
 0x553   : > { %v5419_v26 = vpop.permute.xlu1 %5418 }
 0x554   : > { %5514 = vst.msk [vmem:[#allocation2 + $0x8] sm:$0xff] %vm5512_vm4, %v5419_v26  ;;  %v5417_v16 = vpop.permute.xlu0 %5416  ;;  %v10006_v26 = vld [vmem:[%s11131_s14 + $0x393] sm:$0xff] }
 0x555   : > { %5513 = vst.msk [vmem:[#allocation2] sm:$0xff] %vm5512_vm4, %v5417_v16  ;;  %5729 = vrot.lane.b32.xlu1 %v14137_v3, %s11021_s11  ;;  %v9977_v3 = vld [vmem:[%s11131_s14 + $0x2ab] sm:$0xff] }
 0x556   : > { %5727 = vrot.lane.b32.xlu0 %v14119_v10, %s11021_s11  ;;  %v9978_v10 = vld [vmem:[%s11131_s14 + $0x2b3] sm:$0xff] }
 0x557   : > { %v5423_v31 = vpop.permute.xlu1 %5422 }
 0x558   : > { %5516 = vst.msk [vmem:[#allocation2 + $0x18] sm:$0xff] %vm5512_vm4, %v5423_v31  ;;  %v5421_v52 = vpop.permute.xlu0 %5420 }
 0x559   : > { %5515 = vst.msk [vmem:[#allocation2 + $0x10] sm:$0xff] %vm5512_vm4, %v5421_v52  ;;  %5733 = vrot.lane.b32.xlu1 %v14151_v51, %s11021_s11  ;;  %v5871_v51 = vpack.c.bf16 %v9978_v10, %v9977_v3  ;;  %v5885_v52 = vpack.c.bf16 %v10006_v26, %v10005_v9  ;;  %v10009_v3 = vld [vmem:[%s11131_s14 + $0x3ab] sm:$0xff]  ;;  %v10010_v10 = vld [vmem:[%s11131_s14 + $0x3b3] sm:$0xff] }
 0x55a   : > { %5731 = vrot.lane.b32.xlu0 %v14133_v0, %s11021_s11  ;;  %v5870_v0 = vpack.c.bf16 %v9976_v22, %v9975_v39  ;;  %v10007_v39 = vld [vmem:[%s11131_s14 + $0x39b] sm:$0xff]  ;;  %v10008_v22 = vld [vmem:[%s11131_s14 + $0x3a3] sm:$0xff]  ;;  %v10037_v9 = vld [vmem:[%s11131_s14 + $0x48b] sm:$0xff] }
 0x55b   : > { %v5427_v19 = vpop.permute.xlu1 %5426  ;;  %v10038_v26 = vld [vmem:[%s11131_s14 + $0x493] sm:$0xff] }
 0x55c   : > { %5518 = vst.msk [vmem:[#allocation2 + $0x28] sm:$0xff] %vm5512_vm4, %v5427_v19  ;;  %v5425_v60 = vpop.permute.xlu0 %5424 }
 0x55d   : > { %5517 = vst.msk [vmem:[#allocation2 + $0x20] sm:$0xff] %vm5512_vm4, %v5425_v60  ;;  %5737 = vrot.lane.b32.xlu1 %v5642_v28, %s11021_s11  ;;  %v5884_v28 = vpack.c.bf16 %v10004_v53, %v10003_v63  ;;  %v10035_v63 = vld [vmem:[%s11131_s14 + $0x47b] sm:$0xff]  ;;  %v10036_v53 = vld [vmem:[%s11131_s14 + $0x483] sm:$0xff] }
 0x55e   : > { %5735 = vrot.lane.b32.xlu0 %v14147_v38, %s11021_s11  ;;  %v5872_v38 = vpack.c.bf16 %v9980_v8, %v9979_v14  ;;  %v10011_v14 = vld [vmem:[%s11131_s14 + $0x3bb] sm:$0xff]  ;;  %v10012_v8 = vld [vmem:[%s11131_s14 + $0x3c3] sm:$0xff]  ;;  %s11027_s11 = smov 104  }
 0x55f   : > { %v5431_v6 = vpop.permute.xlu1 %5430 }
 0x560   : > { %5520 = vst.msk [vmem:[#allocation2 + $0x38] sm:$0xff] %vm5512_vm4, %v5431_v6  ;;  %v5429_v15 = vpop.permute.xlu0 %5428 }
 0x561   : > { %5519 = vst.msk [vmem:[#allocation2 + $0x30] sm:$0xff] %vm5512_vm4, %v5429_v15  ;;  %5936 = vrot.lane.b32.xlu1 %v5871_v51, %s11022_s12  ;;  %v5887_v51 = vpack.c.bf16 %v10010_v10, %v10009_v3  ;;  %v10042_v3 = vld [vmem:[%s11131_s14 + $0x2ac] sm:$0xff]  ;;  %v10043_v10 = vld [vmem:[%s11131_s14 + $0x2b4] sm:$0xff] }
 0x562   : > { %5934 = vrot.lane.b32.xlu0 %v5870_v0, %s11022_s12  ;;  %v5886_v0 = vpack.c.bf16 %v10008_v22, %v10007_v39  ;;  %v10040_v39 = vld [vmem:[%s11131_s14 + $0x29c] sm:$0xff]  ;;  %v10041_v22 = vld [vmem:[%s11131_s14 + $0x2a4] sm:$0xff] }
 0x563   : > { %v5435_v2 = vpop.permute.xlu1 %5434 }
 0x564   : > { %5522 = vst.msk [vmem:[#allocation2 + $0x48] sm:$0xff] %vm5512_vm4, %v5435_v2  ;;  %v5433_v55 = vpop.permute.xlu0 %5432 }
 0x565   : > { %5521 = vst.msk [vmem:[#allocation2 + $0x40] sm:$0xff] %vm5512_vm4, %v5433_v55  ;;  %5940 = vrot.lane.b32.xlu1 %v5873_v21, %s11022_s12  ;;  %v5889_v21 = vpack.c.bf16 %v10014_v57, %v10013_v59  ;;  %v10046_v59 = vld [vmem:[%s11131_s14 + $0x2cc] sm:$0xff]  ;;  %v10047_v57 = vld [vmem:[%s11131_s14 + $0x2d4] sm:$0xff] }
 0x566   : > { %5938 = vrot.lane.b32.xlu0 %v5872_v38, %s11022_s12  ;;  %v5888_v38 = vpack.c.bf16 %v10012_v8, %v10011_v14  ;;  %v10044_v14 = vld [vmem:[%s11131_s14 + $0x2bc] sm:$0xff]  ;;  %v10045_v8 = vld [vmem:[%s11131_s14 + $0x2c4] sm:$0xff] }
 0x567   : > { %v5439_v47 = vpop.permute.xlu1 %5438 }
 0x568   : > { %5524 = vst.msk [vmem:[#allocation2 + $0x58] sm:$0xff] %vm5512_vm4, %v5439_v47  ;;  %v5437_v30 = vpop.permute.xlu0 %5436 }
 0x569   : > { %5523 = vst.msk [vmem:[#allocation2 + $0x50] sm:$0xff] %vm5512_vm4, %v5437_v30  ;;  %5944 = vrot.lane.b32.xlu1 %v5875_v50, %s11022_s12  ;;  %v5891_v50 = vpack.c.bf16 %v10018_v23, %v10017_v13  ;;  %v10050_v13 = vld [vmem:[%s11131_s14 + $0x2ec] sm:$0xff]  ;;  %v10051_v23 = vld [vmem:[%s11131_s14 + $0x2f4] sm:$0xff] }
 0x56a   : > { %5942 = vrot.lane.b32.xlu0 %v5874_v62, %s11022_s12  ;;  %v5890_v62 = vpack.c.bf16 %v10016_v27, %v10015_v1  ;;  %v10048_v1 = vld [vmem:[%s11131_s14 + $0x2dc] sm:$0xff]  ;;  %v10049_v27 = vld [vmem:[%s11131_s14 + $0x2e4] sm:$0xff] }
 0x56b   : > { %v5443_v5 = vpop.permute.xlu1 %5442 }
 0x56c   : > { %5526 = vst.msk [vmem:[#allocation2 + $0x68] sm:$0xff] %vm5512_vm4, %v5443_v5  ;;  %v5441_v58 = vpop.permute.xlu0 %5440 }
 0x56d   : > { %5525 = vst.msk [vmem:[#allocation2 + $0x60] sm:$0xff] %vm5512_vm4, %v5441_v58  ;;  %5948 = vrot.lane.b32.xlu1 %v5877_v42, %s11022_s12  ;;  %v5893_v42 = vpack.c.bf16 %v10022_v4, %v10021_v46  ;;  %v10054_v46 = vld [vmem:[%s11131_s14 + $0x30c] sm:$0xff]  ;;  %v10055_v4 = vld [vmem:[%s11131_s14 + $0x314] sm:$0xff] }
 0x56e   : > { %5946 = vrot.lane.b32.xlu0 %v5876_v61, %s11022_s12  ;;  %v5892_v61 = vpack.c.bf16 %v10020_v12, %v10019_v40  ;;  %v10052_v40 = vld [vmem:[%s11131_s14 + $0x2fc] sm:$0xff]  ;;  %v10053_v12 = vld [vmem:[%s11131_s14 + $0x304] sm:$0xff] }
 0x56f   : > { %v5447_v49 = vpop.permute.xlu1 %5446 }
 0x570   : > { %5528 = vst.msk [vmem:[#allocation2 + $0x78] sm:$0xff] %vm5512_vm4, %v5447_v49  ;;  %v5445_v32 = vpop.permute.xlu0 %5444 }
 0x571   : > { %5527 = vst.msk [vmem:[#allocation2 + $0x70] sm:$0xff] %vm5512_vm4, %v5445_v32  ;;  %5952 = vrot.lane.b32.xlu1 %v5879_v35, %s11022_s12  ;;  %v5895_v35 = vpack.c.bf16 %v10026_v24, %v10025_v17  ;;  %v10058_v17 = vld [vmem:[%s11131_s14 + $0x32c] sm:$0xff]  ;;  %v10059_v24 = vld [vmem:[%s11131_s14 + $0x334] sm:$0xff] }
 0x572   : > { %5950 = vrot.lane.b32.xlu0 %v5878_v45, %s11022_s12  ;;  %v5894_v45 = vpack.c.bf16 %v10024_v37, %v10023_v48  ;;  %v10056_v48 = vld [vmem:[%s11131_s14 + $0x31c] sm:$0xff]  ;;  %v10057_v37 = vld [vmem:[%s11131_s14 + $0x324] sm:$0xff] }
 0x573   : > { %v5451_v7 = vpop.permute.xlu1 %5450 }
 0x574   : > { %5530 = vst.msk [vmem:[#allocation2 + $0x88] sm:$0xff] %vm5512_vm4, %v5451_v7  ;;  %v5449_v41 = vpop.permute.xlu0 %5448 }
 0x575   : > { %5529 = vst.msk [vmem:[#allocation2 + $0x80] sm:$0xff] %vm5512_vm4, %v5449_v41  ;;  %5956 = vrot.lane.b32.xlu1 %v5881_v56, %s11022_s12  ;;  %v5897_v56 = vpack.c.bf16 %v10030_v54, %v10029_v44  ;;  %v10062_v44 = vld [vmem:[%s11131_s14 + $0x34c] sm:$0xff]  ;;  %v10063_v54 = vld [vmem:[%s11131_s14 + $0x354] sm:$0xff] }
 0x576   : > { %5954 = vrot.lane.b32.xlu0 %v5880_v29, %s11022_s12  ;;  %v5896_v29 = vpack.c.bf16 %v10028_v33, %v10027_v25  ;;  %v10060_v25 = vld [vmem:[%s11131_s14 + $0x33c] sm:$0xff]  ;;  %v10061_v33 = vld [vmem:[%s11131_s14 + $0x344] sm:$0xff] }
 0x577   : > { %v5455_v16 = vpop.permute.xlu1 %5454 }
 0x578   : > { %5532 = vst.msk [vmem:[#allocation2 + $0x98] sm:$0xff] %vm5512_vm4, %v5455_v16  ;;  %v5453_v31 = vpop.permute.xlu0 %5452 }
 0x579   : > { %5531 = vst.msk [vmem:[#allocation2 + $0x90] sm:$0xff] %vm5512_vm4, %v5453_v31  ;;  %5960 = vrot.lane.b32.xlu1 %v5883_v43, %s11022_s12  ;;  %v5899_v43 = vpack.c.bf16 %v10034_v34, %v10033_v18  ;;  %v10066_v18 = vld [vmem:[%s11131_s14 + $0x36c] sm:$0xff]  ;;  %v10067_v34 = vld [vmem:[%s11131_s14 + $0x374] sm:$0xff] }
 0x57a   : > { %5958 = vrot.lane.b32.xlu0 %v5882_v36, %s11022_s12  ;;  %v5898_v36 = vpack.c.bf16 %v10032_v20, %v10031_v11  ;;  %v10064_v11 = vld [vmem:[%s11131_s14 + $0x35c] sm:$0xff]  ;;  %v10065_v20 = vld [vmem:[%s11131_s14 + $0x364] sm:$0xff] }
 0x57b   : > { %v5459_v19 = vpop.permute.xlu1 %5458 }
 0x57c   : > { %5534 = vst.msk [vmem:[#allocation2 + $0xa8] sm:$0xff] %vm5512_vm4, %v5459_v19  ;;  %v5457_v60 = vpop.permute.xlu0 %5456 }
 0x57d   : > { %5533 = vst.msk [vmem:[#allocation2 + $0xa0] sm:$0xff] %vm5512_vm4, %v5457_v60  ;;  %5964 = vrot.lane.b32.xlu1 %v5885_v52, %s11022_s12  ;;  %v5901_v52 = vpack.c.bf16 %v10038_v26, %v10037_v9  ;;  %v10070_v9 = vld [vmem:[%s11131_s14 + $0x38c] sm:$0xff]  ;;  %v10071_v26 = vld [vmem:[%s11131_s14 + $0x394] sm:$0xff] }
 0x57e   : > { %5962 = vrot.lane.b32.xlu0 %v5884_v28, %s11022_s12  ;;  %v5900_v28 = vpack.c.bf16 %v10036_v53, %v10035_v63  ;;  %v10068_v63 = vld [vmem:[%s11131_s14 + $0x37c] sm:$0xff]  ;;  %v10069_v53 = vld [vmem:[%s11131_s14 + $0x384] sm:$0xff] }
 0x57f   : > { %v5463_v6 = vpop.permute.xlu1 %5462 }
 0x580   : > { %5536 = vst.msk [vmem:[#allocation2 + $0xb8] sm:$0xff] %vm5512_vm4, %v5463_v6  ;;  %v5461_v15 = vpop.permute.xlu0 %5460 }
 0x581   : > { %5535 = vst.msk [vmem:[#allocation2 + $0xb0] sm:$0xff] %vm5512_vm4, %v5461_v15  ;;  %5968 = vrot.lane.b32.xlu1 %v5887_v51, %s11022_s12  ;;  %v14400_v51 = vpack.c.bf16 %v10043_v10, %v10042_v3  ;;  %v10074_v3 = vld [vmem:[%s11131_s14 + $0x3ac] sm:$0xff]  ;;  %v10075_v10 = vld [vmem:[%s11131_s14 + $0x3b4] sm:$0xff] }
 0x582   : > { %5966 = vrot.lane.b32.xlu0 %v5886_v0, %s11022_s12  ;;  %v6129_v0 = vpack.c.bf16 %v10041_v22, %v10040_v39  ;;  %v10072_v39 = vld [vmem:[%s11131_s14 + $0x39c] sm:$0xff]  ;;  %v10073_v22 = vld [vmem:[%s11131_s14 + $0x3a4] sm:$0xff] }
 0x583   : > { %v5467_v2 = vpop.permute.xlu1 %5466 }
 0x584   : > { %5538 = vst.msk [vmem:[#allocation2 + $0xc8] sm:$0xff] %vm5512_vm4, %v5467_v2  ;;  %v5465_v55 = vpop.permute.xlu0 %5464 }
 0x585   : > { %5537 = vst.msk [vmem:[#allocation2 + $0xc0] sm:$0xff] %vm5512_vm4, %v5465_v55  ;;  %5972 = vrot.lane.b32.xlu1 %v5889_v21, %s11022_s12  ;;  %v14411_v21 = vpack.c.bf16 %v10047_v57, %v10046_v59  ;;  %v14512_v59 = vpack.c.bf16 %v10073_v22, %v10072_v39  ;;  %v10078_v57 = vld [vmem:[%s11131_s14 + $0x3cc] sm:$0xff]  ;;  %v10097_v39 = vld [vmem:[%s11131_s14 + $0x464] sm:$0xff] }
 0x586   : > { %5970 = vrot.lane.b32.xlu0 %v5888_v38, %s11022_s12  ;;  %v14414_v38 = vpack.c.bf16 %v10045_v8, %v10044_v14  ;;  %v10076_v8 = vld [vmem:[%s11131_s14 + $0x3bc] sm:$0xff] }
 0x587   : > { %v5471_v47 = vpop.permute.xlu1 %5470 }
 0x588   : > { %5540 = vst.msk [vmem:[#allocation2 + $0xd8] sm:$0xff] %vm5512_vm4, %v5471_v47  ;;  %v5469_v30 = vpop.permute.xlu0 %5468 }
 0x589   : > { %5539 = vst.msk [vmem:[#allocation2 + $0xd0] sm:$0xff] %vm5512_vm4, %v5469_v30  ;;  %5976 = vrot.lane.b32.xlu1 %v5891_v50, %s11022_s12  ;;  %v14424_v50 = vpack.c.bf16 %v10051_v23, %v10050_v13 }
 0x58a   : > { %5974 = vrot.lane.b32.xlu0 %v5890_v62, %s11022_s12  ;;  %v14428_v62 = vpack.c.bf16 %v10049_v27, %v10048_v1  ;;  %v10082_v1 = vld [vmem:[%s11131_s14 + $0x3ec] sm:$0xff]  ;;  %v10083_v27 = vld [vmem:[%s11131_s14 + $0x3f4] sm:$0xff] }
 0x58b   : > { %v5475_v5 = vpop.permute.xlu1 %5474 }
 0x58c   : > { %5542 = vst.msk [vmem:[#allocation2 + $0xe8] sm:$0xff] %vm5512_vm4, %v5475_v5  ;;  %v5473_v58 = vpop.permute.xlu0 %5472 }
 0x58d   : > { %5541 = vst.msk [vmem:[#allocation2 + $0xe0] sm:$0xff] %vm5512_vm4, %v5473_v58  ;;  %5980 = vrot.lane.b32.xlu1 %v5893_v42, %s11022_s12  ;;  %v14438_v42 = vpack.c.bf16 %v10055_v4, %v10054_v46  ;;  %v10080_v46 = vld [vmem:[%s11131_s14 + $0x3dc] sm:$0xff]  ;;  %v10081_v4 = vld [vmem:[%s11131_s14 + $0x3e4] sm:$0xff] }
 0x58e   : > { %5978 = vrot.lane.b32.xlu0 %v5892_v61, %s11022_s12  ;;  %v14442_v61 = vpack.c.bf16 %v10053_v12, %v10052_v40  ;;  %v14536_v40 = vpack.c.bf16 %v10083_v27, %v10082_v1  ;;  %v14540_v12 = vpack.c.bf16 %v10081_v4, %v10080_v46 }
 0x58f   : > { %v5479_v49 = vpop.permute.xlu1 %5478 }
 0x590   : > { %5544 = vst.msk [vmem:[#allocation2 + $0xf8] sm:$0xff] %vm5512_vm4, %v5479_v49  ;;  %v5477_v32 = vpop.permute.xlu0 %5476 }
 0x591   : > { %5543 = vst.msk [vmem:[#allocation2 + $0xf0] sm:$0xff] %vm5512_vm4, %v5477_v32  ;;  %5984 = vrot.lane.b32.xlu1 %v5895_v35, %s11022_s12  ;;  %v14452_v35 = vpack.c.bf16 %v10059_v24, %v10058_v17  ;;  %v10087_v17 = vld [vmem:[%s11131_s14 + $0x414] sm:$0xff] }
 0x592   : > { %5982 = vrot.lane.b32.xlu0 %v5894_v45, %s11022_s12  ;;  %v14456_v45 = vpack.c.bf16 %v10057_v37, %v10056_v48  ;;  %v10085_v48 = vld [vmem:[%s11131_s14 + $0x404] sm:$0xff] }
 0x593   : > { %v5678_v7 = vpop.permute.xlu1 %5677 }
 0x594   : > { %5773 = vst.msk [vmem:[#allocation2 + $0x8] sm:$0xff] %vm5771_vm5, %v5678_v7  ;;  %v5676_v41 = vpop.permute.xlu0 %5675 }
 0x595   : > { %5772 = vst.msk [vmem:[#allocation2] sm:$0xff] %vm5771_vm5, %v5676_v41  ;;  %5988 = vrot.lane.b32.xlu1 %v5897_v56, %s11022_s12  ;;  %v14466_v56 = vpack.c.bf16 %v10063_v54, %v10062_v44  ;;  %v10090_v54 = vld [vmem:[%s11131_s14 + $0x42c] sm:$0xff] }
 0x596   : > { %5986 = vrot.lane.b32.xlu0 %v5896_v29, %s11022_s12  ;;  %v14470_v29 = vpack.c.bf16 %v10061_v33, %v10060_v25  ;;  %v10088_v33 = vld [vmem:[%s11131_s14 + $0x41c] sm:$0xff] }
 0x597   : > { %v5682_v16 = vpop.permute.xlu1 %5681 }
 0x598   : > { %5775 = vst.msk [vmem:[#allocation2 + $0x18] sm:$0xff] %vm5771_vm5, %v5682_v16  ;;  %v5680_v31 = vpop.permute.xlu0 %5679 }
 0x599   : > { %5774 = vst.msk [vmem:[#allocation2 + $0x10] sm:$0xff] %vm5771_vm5, %v5680_v31  ;;  %5992 = vrot.lane.b32.xlu1 %v5899_v43, %s11022_s12  ;;  %v14480_v43 = vpack.c.bf16 %v10067_v34, %v10066_v18 }
 0x59a   : > { %5990 = vrot.lane.b32.xlu0 %v5898_v36, %s11022_s12  ;;  %v14484_v36 = vpack.c.bf16 %v10065_v20, %v10064_v11  ;;  %v10094_v11 = vld [vmem:[%s11131_s14 + $0x44c] sm:$0xff]  ;;  %v10095_v20 = vld [vmem:[%s11131_s14 + $0x454] sm:$0xff] }
 0x59b   : > { %v5686_v19 = vpop.permute.xlu1 %5685 }
 0x59c   : > { %5777 = vst.msk [vmem:[#allocation2 + $0x28] sm:$0xff] %vm5771_vm5, %v5686_v19  ;;  %v5684_v60 = vpop.permute.xlu0 %5683 }
 0x59d   : > { %5776 = vst.msk [vmem:[#allocation2 + $0x20] sm:$0xff] %vm5771_vm5, %v5684_v60  ;;  %5996 = vrot.lane.b32.xlu1 %v5901_v52, %s11022_s12  ;;  %v14494_v52 = vpack.c.bf16 %v10071_v26, %v10070_v9  ;;  %v10092_v9 = vld [vmem:[%s11131_s14 + $0x43c] sm:$0xff]  ;;  %v10093_v26 = vld [vmem:[%s11131_s14 + $0x444] sm:$0xff] }
 0x59e   : > { %5994 = vrot.lane.b32.xlu0 %v5900_v28, %s11022_s12  ;;  %v14498_v28 = vpack.c.bf16 %v10069_v53, %v10068_v63  ;;  %v14578_v63 = vpack.c.bf16 %v10095_v20, %v10094_v11  ;;  %v14582_v53 = vpack.c.bf16 %v10093_v26, %v10092_v9  ;;  %v10176_v9 = vld [vmem:[%s11131_s14 + $0x2dd] sm:$0xff]  ;;  %v10177_v26 = vld [vmem:[%s11131_s14 + $0x2e5] sm:$0xff]  ;;  %s14964_s12 = sshll.u32 %s10983_s18, 6 }
 0x59f   : > { %v5690_v6 = vpop.permute.xlu1 %5689  ;;  %p227_p13 = scmp.lt.s32.totalorder %s14964_s12, 703 }
 0x5a0   : > { %5779 = vst.msk [vmem:[#allocation2 + $0x38] sm:$0xff] %vm5771_vm5, %v5690_v6  ;;  %v5688_v15 = vpop.permute.xlu0 %5687  ;;  %v10079_v6 = vld [vmem:[%s11131_s14 + $0x3d4] sm:$0xff] }
 0x5a1   : > { %5778 = vst.msk [vmem:[#allocation2 + $0x30] sm:$0xff] %vm5771_vm5, %v5688_v15  ;;  %6195 = vrot.lane.b32.xlu1 %v14400_v51, %s11023_s13  ;;  %v10077_v15 = vld [vmem:[%s11131_s14 + $0x3c4] sm:$0xff]  ;;  %v14522_v23 = vpack.c.bf16 %v10079_v6, %v10078_v57  ;;  %v10102_v6 = vld [vmem:[%s11131_s14 + $0x48c] sm:$0xff]  ;;  %s228_s18 = scalar_select %p227_p13, %s14964_s12, 703 }
 0x5a2   : > { %6193 = vrot.lane.b32.xlu0 %v6129_v0, %s11023_s13  ;;  %v14508_v0 = vpack.c.bf16 %v10075_v10, %v10074_v3  ;;  %v10099_v3 = vld [vmem:[%s11131_s14 + $0x474] sm:$0xff] }
 0x5a3   : > { %v5694_v2 = vpop.permute.xlu1 %5693 }
 0x5a4   : > { %5781 = vst.msk [vmem:[#allocation2 + $0x48] sm:$0xff] %vm5771_vm5, %v5694_v2  ;;  %v5692_v55 = vpop.permute.xlu0 %5691  ;;  %v14526_v2 = vpack.c.bf16 %v10077_v15, %v10076_v8  ;;  %v10100_v15 = vld [vmem:[%s11131_s14 + $0x47c] sm:$0xff] }
 0x5a5   : > { %5780 = vst.msk [vmem:[#allocation2 + $0x40] sm:$0xff] %vm5771_vm5, %v5692_v55  ;;  %6199 = vrot.lane.b32.xlu1 %v14411_v21, %s11023_s13 }
 0x5a6   : > { %6197 = vrot.lane.b32.xlu0 %v14414_v38, %s11023_s13 }
 0x5a7   : > { %v5698_v47 = vpop.permute.xlu1 %5697 }
 0x5a8   : > { %5783 = vst.msk [vmem:[#allocation2 + $0x58] sm:$0xff] %vm5771_vm5, %v5698_v47  ;;  %v5696_v30 = vpop.permute.xlu0 %5695 }
 0x5a9   : > { %5782 = vst.msk [vmem:[#allocation2 + $0x50] sm:$0xff] %vm5771_vm5, %v5696_v30  ;;  %6203 = vrot.lane.b32.xlu1 %v14424_v50, %s11023_s13  ;;  %v10086_v30 = vld [vmem:[%s11131_s14 + $0x40c] sm:$0xff] }
 0x5aa   : > { %6201 = vrot.lane.b32.xlu0 %v14428_v62, %s11023_s13 }
 0x5ab   : > { %v5702_v5 = vpop.permute.xlu1 %5701 }
 0x5ac   : > { %5785 = vst.msk [vmem:[#allocation2 + $0x68] sm:$0xff] %vm5771_vm5, %v5702_v5  ;;  %v5700_v58 = vpop.permute.xlu0 %5699  ;;  %v10084_v5 = vld [vmem:[%s11131_s14 + $0x3fc] sm:$0xff] }
 0x5ad   : > { %5784 = vst.msk [vmem:[#allocation2 + $0x60] sm:$0xff] %vm5771_vm5, %v5700_v58  ;;  %6207 = vrot.lane.b32.xlu1 %v14438_v42, %s11023_s13  ;;  %v14550_v58 = vpack.c.bf16 %v10087_v17, %v10086_v30  ;;  %v14554_v44 = vpack.c.bf16 %v10085_v48, %v10084_v5 }
 0x5ae   : > { %6205 = vrot.lane.b32.xlu0 %v14442_v61, %s11023_s13 }
 0x5af   : > { %v5706_v49 = vpop.permute.xlu1 %5705 }
 0x5b0   : > { %5787 = vst.msk [vmem:[#allocation2 + $0x78] sm:$0xff] %vm5771_vm5, %v5706_v49  ;;  %v5704_v32 = vpop.permute.xlu0 %5703  ;;  %v10091_v49 = vld [vmem:[%s11131_s14 + $0x434] sm:$0xff] }
 0x5b1   : > { %5786 = vst.msk [vmem:[#allocation2 + $0x70] sm:$0xff] %vm5771_vm5, %v5704_v32  ;;  %6211 = vrot.lane.b32.xlu1 %v14452_v35, %s11023_s13  ;;  %v10089_v32 = vld [vmem:[%s11131_s14 + $0x424] sm:$0xff]  ;;  %v14564_v34 = vpack.c.bf16 %v10091_v49, %v10090_v54 }
 0x5b2   : > { %6209 = vrot.lane.b32.xlu0 %v14456_v45, %s11023_s13 }
 0x5b3   : > { %v5710_v7 = vpop.permute.xlu1 %5709 }
 0x5b4   : > { %5789 = vst.msk [vmem:[#allocation2 + $0x88] sm:$0xff] %vm5771_vm5, %v5710_v7  ;;  %v5708_v41 = vpop.permute.xlu0 %5707  ;;  %v14568_v7 = vpack.c.bf16 %v10089_v32, %v10088_v33  ;;  %v10172_v33 = vld [vmem:[%s11131_s14 + $0x2bd] sm:$0xff]  ;;  %v10173_v32 = vld [vmem:[%s11131_s14 + $0x2c5] sm:$0xff] }
 0x5b5   : > { %5788 = vst.msk [vmem:[#allocation2 + $0x80] sm:$0xff] %vm5771_vm5, %v5708_v41  ;;  %6215 = vrot.lane.b32.xlu1 %v14466_v56, %s11023_s13  ;;  %v6648_v20 = vpack.c.bf16 %v10173_v32, %v10172_v33  ;;  %v10198_v33 = vld [vmem:[%s11131_s14 + $0x38d] sm:$0xff]  ;;  %v10199_v32 = vld [vmem:[%s11131_s14 + $0x395] sm:$0xff] }
 0x5b6   : > { %6213 = vrot.lane.b32.xlu0 %v14470_v29, %s11023_s13 }
 0x5b7   : > { %v5714_v16 = vpop.permute.xlu1 %5713 }
 0x5b8   : > { %5791 = vst.msk [vmem:[#allocation2 + $0x98] sm:$0xff] %vm5771_vm5, %v5714_v16  ;;  %v5712_v31 = vpop.permute.xlu0 %5711 }
 0x5b9   : > { %5790 = vst.msk [vmem:[#allocation2 + $0x90] sm:$0xff] %vm5771_vm5, %v5712_v31  ;;  %6219 = vrot.lane.b32.xlu1 %v14480_v43, %s11023_s13  ;;  %v10098_v31 = vld [vmem:[%s11131_s14 + $0x46c] sm:$0xff] }
 0x5ba   : > { %6217 = vrot.lane.b32.xlu0 %v14484_v36, %s11023_s13 }
 0x5bb   : > { %v5718_v19 = vpop.permute.xlu1 %5717 }
 0x5bc   : > { %5793 = vst.msk [vmem:[#allocation2 + $0xa8] sm:$0xff] %vm5771_vm5, %v5718_v19  ;;  %v5716_v60 = vpop.permute.xlu0 %5715  ;;  %v10096_v19 = vld [vmem:[%s11131_s14 + $0x45c] sm:$0xff] }
 0x5bd   : > { %5792 = vst.msk [vmem:[#allocation2 + $0xa0] sm:$0xff] %vm5771_vm5, %v5716_v60  ;;  %6223 = vrot.lane.b32.xlu1 %v14494_v52, %s11023_s13  ;;  %v14592_v60 = vpack.c.bf16 %v10099_v3, %v10098_v31  ;;  %v14596_v57 = vpack.c.bf16 %v10097_v39, %v10096_v19  ;;  %v6650_v3 = vpack.c.bf16 %v10177_v26, %v10176_v9  ;;  %v10180_v39 = vld [vmem:[%s11131_s14 + $0x2fd] sm:$0xff]  ;;  %v10202_v26 = vld [vmem:[%s11131_s14 + $0x3ad] sm:$0xff] }
 0x5be   : > { %6221 = vrot.lane.b32.xlu0 %v14498_v28, %s11023_s13 }
 0x5bf   : > { %v5722_v14 = vpop.permute.xlu1 %5721 }
 0x5c0   : > { %5795 = vst.msk [vmem:[#allocation2 + $0xb8] sm:$0xff] %vm5771_vm5, %v5722_v14  ;;  %v5720_v13 = vpop.permute.xlu0 %5719  ;;  %v10103_v14 = vld [vmem:[%s11131_s14 + $0x494] sm:$0xff] }
 0x5c1   : > { %5794 = vst.msk [vmem:[#allocation2 + $0xb0] sm:$0xff] %vm5771_vm5, %v5720_v13  ;;  %6227 = vrot.lane.b32.xlu1 %v14508_v0, %s11023_s13  ;;  %v10101_v13 = vld [vmem:[%s11131_s14 + $0x484] sm:$0xff]  ;;  %v14606_v27 = vpack.c.bf16 %v10103_v14, %v10102_v6  ;;  %v10179_v6 = vld [vmem:[%s11131_s14 + $0x2f5] sm:$0xff] }
 0x5c2   : > { %6225 = vrot.lane.b32.xlu0 %v14512_v59, %s11023_s13 }
 0x5c3   : > { %v5726_v55 = vpop.permute.xlu1 %5725 }
 0x5c4   : > { %5797 = vst.msk [vmem:[#allocation2 + $0xc8] sm:$0xff] %vm5771_vm5, %v5726_v55  ;;  %v5724_v47 = vpop.permute.xlu0 %5723  ;;  %v14610_v55 = vpack.c.bf16 %v10101_v13, %v10100_v15  ;;  %v10184_v13 = vld [vmem:[%s11131_s14 + $0x31d] sm:$0xff] }
 0x5c5   : > { %5796 = vst.msk [vmem:[#allocation2 + $0xc0] sm:$0xff] %vm5771_vm5, %v5724_v47  ;;  %6231 = vrot.lane.b32.xlu1 %v14522_v23, %s11023_s13 }
 0x5c6   : > { %6229 = vrot.lane.b32.xlu0 %v14526_v2, %s11023_s13 }
 0x5c7   : > { %v5730_v24 = vpop.permute.xlu1 %5729 }
 0x5c8   : > { %5799 = vst.msk [vmem:[#allocation2 + $0xd8] sm:$0xff] %vm5771_vm5, %v5730_v24  ;;  %v5728_v37 = vpop.permute.xlu0 %5727 }
 0x5c9   : > { %5798 = vst.msk [vmem:[#allocation2 + $0xd0] sm:$0xff] %vm5771_vm5, %v5728_v37  ;;  %6235 = vrot.lane.b32.xlu1 %v14536_v40, %s11023_s13 }
 0x5ca   : > { %6233 = vrot.lane.b32.xlu0 %v14540_v12, %s11023_s13 }
 0x5cb   : > { %v5734_v25 = vpop.permute.xlu1 %5733 }
 0x5cc   : > { %5801 = vst.msk [vmem:[#allocation2 + $0xe8] sm:$0xff] %vm5771_vm5, %v5734_v25  ;;  %v5732_v18 = vpop.permute.xlu0 %5731 }
 0x5cd   : > { %5800 = vst.msk [vmem:[#allocation2 + $0xe0] sm:$0xff] %vm5771_vm5, %v5732_v18  ;;  %6239 = vrot.lane.b32.xlu1 %v14550_v58, %s11023_s13 }
 0x5ce   : > { %6237 = vrot.lane.b32.xlu0 %v14554_v44, %s11023_s13 }
 0x5cf   : > { %v5738_v41 = vpop.permute.xlu1 %5737 }
 0x5d0   : > { %5803 = vst.msk [vmem:[#allocation2 + $0xf8] sm:$0xff] %vm5771_vm5, %v5738_v41  ;;  %v5736_v16 = vpop.permute.xlu0 %5735 }
 0x5d1   : > { %5802 = vst.msk [vmem:[#allocation2 + $0xf0] sm:$0xff] %vm5771_vm5, %v5736_v16  ;;  %6243 = vrot.lane.b32.xlu1 %v14564_v34, %s11023_s13 }
 0x5d2   : > { %6241 = vrot.lane.b32.xlu0 %v14568_v7, %s11023_s13 }
 0x5d3   : > { %v5937_v10 = vpop.permute.xlu1 %5936 }
 0x5d4   : > { %6032 = vst.msk [vmem:[#allocation2 + $0x8] sm:$0xff] %vm6030_vm6, %v5937_v10  ;;  %v5935_v22 = vpop.permute.xlu0 %5934  ;;  %v11026_v10 = vmov 0  }
 0x5d5   : > { %6031 = vst.msk [vmem:[#allocation2] sm:$0xff] %vm6030_vm6, %v5935_v22  ;;  %6247 = vrot.lane.b32.xlu1 %v14578_v63, %s11023_s13  ;;  %10896 = vset.pattern.permute.xlu0 %v11026_v10  ;;  %v10181_v22 = vld [vmem:[%s11131_s14 + $0x305] sm:$0xff] }
 0x5d6   : > { %6245 = vrot.lane.b32.xlu0 %v14582_v53, %s11023_s13  ;;  %10897 = vset.pattern.permute.xlu1 %v11026_v10  ;;  %v10235_v10 = vld [vmem:[%s11131_s14 + $0x2ae] sm:$0xff] }
 0x5d7   : > { %v5941_v8 = vpop.permute.xlu1 %5940 }
 0x5d8   : > { %6034 = vst.msk [vmem:[#allocation2 + $0x18] sm:$0xff] %vm6030_vm6, %v5941_v8  ;;  %v5939_v1 = vpop.permute.xlu0 %5938  ;;  %v6652_v8 = vpack.c.bf16 %v10181_v22, %v10180_v39  ;;  %v10206_v22 = vld [vmem:[%s11131_s14 + $0x3cd] sm:$0xff] }
 0x5d9   : > { %6033 = vst.msk [vmem:[#allocation2 + $0x10] sm:$0xff] %vm6030_vm6, %v5939_v1  ;;  %6251 = vrot.lane.b32.xlu1 %v14592_v60, %s11023_s13  ;;  %v10185_v1 = vld [vmem:[%s11131_s14 + $0x325] sm:$0xff] }
 0x5da   : > { %6249 = vrot.lane.b32.xlu0 %v14596_v57, %s11023_s13 }
 0x5db   : > { %v5945_v46 = vpop.permute.xlu1 %5944 }
 0x5dc   : > { %6036 = vst.msk [vmem:[#allocation2 + $0x28] sm:$0xff] %vm6030_vm6, %v5945_v46  ;;  %v5943_v4 = vpop.permute.xlu0 %5942  ;;  %v10183_v46 = vld [vmem:[%s11131_s14 + $0x315] sm:$0xff] }
 0x5dd   : > { %6035 = vst.msk [vmem:[#allocation2 + $0x20] sm:$0xff] %vm6030_vm6, %v5943_v4  ;;  %6255 = vrot.lane.b32.xlu1 %v14606_v27, %s11023_s13  ;;  %v10898_v4 = vld [vmem:[%s15416_s1] sm:$0xff]  }
 0x5de   : > { %6253 = vrot.lane.b32.xlu0 %v14610_v55, %s11023_s13  ;;  %10702 = vmatprep.subr.bf16.mxu0 %v10898_v4  ;;  %s8607_s13 = sshll.u32 %s228_s18, 3 }
 0x5df   : > { %v5949_v47 = vpop.permute.xlu1 %5948  ;;  %10703 = vmatpush3.bf16.msra.mxu0 %v10898_v4  ;;  %10780 = vmatprep.subr.bf16.mxu1 %v10898_v4  ;;  %s14998_s30 = scalar_lea.vmem %s15418_s3, %s8607_s13 }
 0x5e0   : > { %6038 = vst.msk [vmem:[#allocation2 + $0x38] sm:$0xff] %vm6030_vm6, %v5949_v47  ;;  %v5947_v30 = vpop.permute.xlu0 %5946  ;;  %10787 = vmatpush3.bf16.msra.mxu1 %v10898_v4 }
 0x5e1   : > { %6037 = vst.msk [vmem:[#allocation2 + $0x30] sm:$0xff] %vm6030_vm6, %v5947_v30  ;;  %6454 = vrot.lane.b32.xlu1 %v14414_v38, %s11024_s24  ;;  %v6654_v30 = vpack.c.bf16 %v10185_v1, %v10184_v13  ;;  %v10237_v13 = vld [vmem:[%s11131_s14 + $0x2be] sm:$0xff]  ;;  %v10238_v1 = vld [vmem:[%s11131_s14 + $0x2c6] sm:$0xff] }
 0x5e2   : > { %6452 = vrot.lane.b32.xlu0 %v14400_v51, %s11024_s24 }
 0x5e3   : > { %v5953_v17 = vpop.permute.xlu1 %5952 }
 0x5e4   : > { %6040 = vst.msk [vmem:[#allocation2 + $0x48] sm:$0xff] %vm6030_vm6, %v5953_v17  ;;  %v5951_v24 = vpop.permute.xlu0 %5950 }
 0x5e5   : > { %6039 = vst.msk [vmem:[#allocation2 + $0x40] sm:$0xff] %vm6030_vm6, %v5951_v24  ;;  %6458 = vrot.lane.b32.xlu1 %v14428_v62, %s11024_s24  ;;  %v10188_v24 = vld [vmem:[%s11131_s14 + $0x33d] sm:$0xff] }
 0x5e6   : > { %6456 = vrot.lane.b32.xlu0 %v14411_v21, %s11024_s24 }
 0x5e7   : > { %v5957_v5 = vpop.permute.xlu1 %5956 }
 0x5e8   : > { %6042 = vst.msk [vmem:[#allocation2 + $0x58] sm:$0xff] %vm6030_vm6, %v5957_v5  ;;  %v5955_v48 = vpop.permute.xlu0 %5954  ;;  %v10189_v5 = vld [vmem:[%s11131_s14 + $0x345] sm:$0xff] }
 0x5e9   : > { %6041 = vst.msk [vmem:[#allocation2 + $0x50] sm:$0xff] %vm6030_vm6, %v5955_v48  ;;  %6462 = vrot.lane.b32.xlu1 %v14442_v61, %s11024_s24 }
 0x5ea   : > { %6460 = vrot.lane.b32.xlu0 %v14424_v50, %s11024_s24 }
 0x5eb   : > { %v5961_v51 = vpop.permute.xlu1 %5960 }
 0x5ec   : > { %6044 = vst.msk [vmem:[#allocation2 + $0x68] sm:$0xff] %vm6030_vm6, %v5961_v51  ;;  %v5959_v38 = vpop.permute.xlu0 %5958  ;;  %v10186_v51 = vld [vmem:[%s11131_s14 + $0x32d] sm:$0xff] }
 0x5ed   : > { %6043 = vst.msk [vmem:[#allocation2 + $0x60] sm:$0xff] %vm6030_vm6, %v5959_v38  ;;  %6466 = vrot.lane.b32.xlu1 %v14456_v45, %s11024_s24  ;;  %v10187_v38 = vld [vmem:[%s11131_s14 + $0x335] sm:$0xff] }
 0x5ee   : > { %6464 = vrot.lane.b32.xlu0 %v14438_v42, %s11024_s24 }
 0x5ef   : > { %v5965_v21 = vpop.permute.xlu1 %5964 }
 0x5f0   : > { %6046 = vst.msk [vmem:[#allocation2 + $0x78] sm:$0xff] %vm6030_vm6, %v5965_v21  ;;  %v5963_v62 = vpop.permute.xlu0 %5962  ;;  %v10899_v21 = vld [vmem:[%s15416_s1 + $0x8] sm:$0xff]  }
 0x5f1   : > { %6045 = vst.msk [vmem:[#allocation2 + $0x70] sm:$0xff] %vm6030_vm6, %v5963_v62  ;;  %6470 = vrot.lane.b32.xlu1 %v14470_v29, %s11024_s24  ;;  %10704 = vmatprep.subr.bf16.mxu0 %v10899_v21 }
 0x5f2   : > { %6468 = vrot.lane.b32.xlu0 %v14452_v35, %s11024_s24  ;;  %10705 = vmatpush3.bf16.msra.mxu0 %v10899_v21 }
 0x5f3   : > { %v5969_v50 = vpop.permute.xlu1 %5968  ;;  %10781 = vmatprep.subr.bf16.mxu1 %v10899_v21 }
 0x5f4   : > { %6048 = vst.msk [vmem:[#allocation2 + $0x88] sm:$0xff] %vm6030_vm6, %v5969_v50  ;;  %v5967_v61 = vpop.permute.xlu0 %5966  ;;  %v6656_v50 = vpack.c.bf16 %v10189_v5, %v10188_v24  ;;  %10788 = vmatpush3.bf16.msra.mxu1 %v10899_v21  ;;  %v10209_v24 = vld [vmem:[%s11131_s14 + $0x3e5] sm:$0xff] }
 0x5f5   : > { %6047 = vst.msk [vmem:[#allocation2 + $0x80] sm:$0xff] %vm6030_vm6, %v5967_v61  ;;  %6474 = vrot.lane.b32.xlu1 %v14484_v36, %s11024_s24  ;;  %v6655_v61 = vpack.c.bf16 %v10187_v38, %v10186_v51  ;;  %v10270_v51 = vld [vmem:[%s11131_s14 + $0x3c6] sm:$0xff] }
 0x5f6   : > { %6472 = vrot.lane.b32.xlu0 %v14466_v56, %s11024_s24 }
 0x5f7   : > { %v5973_v42 = vpop.permute.xlu1 %5972 }
 0x5f8   : > { %6050 = vst.msk [vmem:[#allocation2 + $0x98] sm:$0xff] %vm6030_vm6, %v5973_v42  ;;  %v5971_v45 = vpop.permute.xlu0 %5970  ;;  %v10192_v42 = vld [vmem:[%s11131_s14 + $0x35d] sm:$0xff] }
 0x5f9   : > { %6049 = vst.msk [vmem:[#allocation2 + $0x90] sm:$0xff] %vm6030_vm6, %v5971_v45  ;;  %6478 = vrot.lane.b32.xlu1 %v14498_v28, %s11024_s24  ;;  %v10193_v45 = vld [vmem:[%s11131_s14 + $0x365] sm:$0xff] }
 0x5fa   : > { %6476 = vrot.lane.b32.xlu0 %v14480_v43, %s11024_s24 }
 0x5fb   : > { %v5977_v35 = vpop.permute.xlu1 %5976 }
 0x5fc   : > { %6052 = vst.msk [vmem:[#allocation2 + $0xa8] sm:$0xff] %vm6030_vm6, %v5977_v35  ;;  %v5975_v29 = vpop.permute.xlu0 %5974 }
 0x5fd   : > { %6051 = vst.msk [vmem:[#allocation2 + $0xa0] sm:$0xff] %vm6030_vm6, %v5975_v29  ;;  %6482 = vrot.lane.b32.xlu1 %v14512_v59, %s11024_s24  ;;  %v10190_v29 = vld [vmem:[%s11131_s14 + $0x34d] sm:$0xff] }
 0x5fe   : > { %6480 = vrot.lane.b32.xlu0 %v14494_v52, %s11024_s24 }
 0x5ff   : > { %v5981_v56 = vpop.permute.xlu1 %5980 }
 0x600   : > { %6054 = vst.msk [vmem:[#allocation2 + $0xb8] sm:$0xff] %vm6030_vm6, %v5981_v56  ;;  %v5979_v36 = vpop.permute.xlu0 %5978  ;;  %v10191_v56 = vld [vmem:[%s11131_s14 + $0x355] sm:$0xff] }
 0x601   : > { %6053 = vst.msk [vmem:[#allocation2 + $0xb0] sm:$0xff] %vm6030_vm6, %v5979_v36  ;;  %6486 = vrot.lane.b32.xlu1 %v14526_v2, %s11024_s24  ;;  %v10900_v36 = vld [vmem:[%s15416_s1 + $0x10] sm:$0xff]  }
 0x602   : > { %6484 = vrot.lane.b32.xlu0 %v14508_v0, %s11024_s24  ;;  %10706 = vmatprep.subr.bf16.mxu0 %v10900_v36 }
 0x603   : > { %v5985_v43 = vpop.permute.xlu1 %5984  ;;  %10707 = vmatpush3.bf16.msra.mxu0 %v10900_v36  ;;  %10782 = vmatprep.subr.bf16.mxu1 %v10900_v36 }
 0x604   : > { %6056 = vst.msk [vmem:[#allocation2 + $0xc8] sm:$0xff] %vm6030_vm6, %v5985_v43  ;;  %v5983_v28 = vpop.permute.xlu0 %5982  ;;  %10789 = vmatpush3.bf16.msra.mxu1 %v10900_v36 }
 0x605   : > { %6055 = vst.msk [vmem:[#allocation2 + $0xc0] sm:$0xff] %vm6030_vm6, %v5983_v28  ;;  %6490 = vrot.lane.b32.xlu1 %v14540_v12, %s11024_s24  ;;  %v6658_v28 = vpack.c.bf16 %v10193_v45, %v10192_v42  ;;  %v10239_v45 = vld [vmem:[%s11131_s14 + $0x2ce] sm:$0xff] }
 0x606   : > { %6488 = vrot.lane.b32.xlu0 %v14522_v23, %s11024_s24 }
 0x607   : > { %v5989_v52 = vpop.permute.xlu1 %5988 }
 0x608   : > { %6058 = vst.msk [vmem:[#allocation2 + $0xd8] sm:$0xff] %vm6030_vm6, %v5989_v52  ;;  %v5987_v59 = vpop.permute.xlu0 %5986  ;;  %v6657_v52 = vpack.c.bf16 %v10191_v56, %v10190_v29 }
 0x609   : > { %6057 = vst.msk [vmem:[#allocation2 + $0xd0] sm:$0xff] %vm6030_vm6, %v5987_v59  ;;  %6494 = vrot.lane.b32.xlu1 %v14554_v44, %s11024_s24  ;;  %v10168_v44 = vld [vmem:[%s11131_s14 + $0x4a4] sm:$0xff] }
 0x60a   : > { %6492 = vrot.lane.b32.xlu0 %v14536_v40, %s11024_s24  ;;  %v10196_v59 = vld [vmem:[%s11131_s14 + $0x37d] sm:$0xff] }
 0x60b   : > { %v5993_v0 = vpop.permute.xlu1 %5992 }
 0x60c   : > { %6060 = vst.msk [vmem:[#allocation2 + $0xe8] sm:$0xff] %vm6030_vm6, %v5993_v0  ;;  %v5991_v2 = vpop.permute.xlu0 %5990  ;;  %v10197_v0 = vld [vmem:[%s11131_s14 + $0x385] sm:$0xff] }
 0x60d   : > { %6059 = vst.msk [vmem:[#allocation2 + $0xe0] sm:$0xff] %vm6030_vm6, %v5991_v2  ;;  %6498 = vrot.lane.b32.xlu1 %v14568_v7, %s11024_s24  ;;  %v10171_v7 = vld [vmem:[%s11131_s14 + $0x2b5] sm:$0xff] }
 0x60e   : > { %6496 = vrot.lane.b32.xlu0 %v14550_v58, %s11024_s24  ;;  %v10167_v58 = vld [vmem:[%s11131_s14 + $0x49c] sm:$0xff] }
 0x60f   : > { %v5997_v23 = vpop.permute.xlu1 %5996  ;;  %v6419_v25 = vpack.c.bf16 %v10168_v44, %v10167_v58  ;;  %v6660_v58 = vpack.c.bf16 %v10197_v0, %v10196_v59  ;;  %v10241_v59 = vld [vmem:[%s11131_s14 + $0x2de] sm:$0xff]  ;;  %v10242_v0 = vld [vmem:[%s11131_s14 + $0x2e6] sm:$0xff] }
 0x610   : > { %6062 = vst.msk [vmem:[#allocation2 + $0xf8] sm:$0xff] %vm6030_vm6, %v5997_v23  ;;  %v5995_v12 = vpop.permute.xlu0 %5994  ;;  %v10194_v23 = vld [vmem:[%s11131_s14 + $0x36d] sm:$0xff] }
 0x611   : > { %6061 = vst.msk [vmem:[#allocation2 + $0xf0] sm:$0xff] %vm6030_vm6, %v5995_v12  ;;  %6502 = vrot.lane.b32.xlu1 %v14582_v53, %s11024_s24  ;;  %v10175_v53 = vld [vmem:[%s11131_s14 + $0x2d5] sm:$0xff] }
 0x612   : > { %6500 = vrot.lane.b32.xlu0 %v14564_v34, %s11024_s24  ;;  %v10170_v34 = vld [vmem:[%s11131_s14 + $0x2ad] sm:$0xff]  ;;  %v10195_v12 = vld [vmem:[%s11131_s14 + $0x375] sm:$0xff] }
 0x613   : > { %v6196_v40 = vpop.permute.xlu1 %6195  ;;  %v6647_v41 = vpack.c.bf16 %v10171_v7, %v10170_v34  ;;  %v6659_v44 = vpack.c.bf16 %v10195_v12, %v10194_v23  ;;  %v6909_v12 = vpack.c.bf16 %v10242_v0, %v10241_v59  ;;  %v10251_v59 = vld [vmem:[%s11131_s14 + $0x32e] sm:$0xff]  ;;  %v10252_v0 = vld [vmem:[%s11131_s14 + $0x336] sm:$0xff] }
 0x614   : > { %6291 = vst.msk [vmem:[#allocation2 + $0x8] sm:$0xff] %vm6289_vm7, %v6196_v40  ;;  %v6194_v37 = vpop.permute.xlu0 %6193  ;;  %v10901_v40 = vld [vmem:[%s15416_s1 + $0x18] sm:$0xff]  }
 0x615   : > { %6290 = vst.msk [vmem:[#allocation2] sm:$0xff] %vm6289_vm7, %v6194_v37  ;;  %6506 = vrot.lane.b32.xlu1 %v14596_v57, %s11024_s24  ;;  %v10178_v57 = vld [vmem:[%s11131_s14 + $0x2ed] sm:$0xff]  ;;  %10708 = vmatprep.subr.bf16.mxu0 %v10901_v40 }
 0x616   : > { %6504 = vrot.lane.b32.xlu0 %v14578_v63, %s11024_s24  ;;  %v10174_v63 = vld [vmem:[%s11131_s14 + $0x2cd] sm:$0xff]  ;;  %v6651_v15 = vpack.c.bf16 %v10179_v6, %v10178_v57  ;;  %10709 = vmatpush3.bf16.msra.mxu0 %v10901_v40 }
 0x617   : > { %v6200_v54 = vpop.permute.xlu1 %6199  ;;  %v6649_v19 = vpack.c.bf16 %v10175_v53, %v10174_v63  ;;  %10783 = vmatprep.subr.bf16.mxu1 %v10901_v40  ;;  %v10903_v63 = vld [vmem:[%s15416_s1 + $0x28] sm:$0xff]   ;;  %v10904_v57 = vld [vmem:[%s15416_s1 + $0x30] sm:$0x3f]  }
 0x618   : > { %6293 = vst.msk [vmem:[#allocation2 + $0x18] sm:$0xff] %vm6289_vm7, %v6200_v54  ;;  %v6198_v49 = vpop.permute.xlu0 %6197  ;;  %v10200_v54 = vld [vmem:[%s11131_s14 + $0x39d] sm:$0xff]  ;;  %10790 = vmatpush3.bf16.msra.mxu1 %v10901_v40 }
 0x619   : > { %6292 = vst.msk [vmem:[#allocation2 + $0x10] sm:$0xff] %vm6289_vm7, %v6198_v49  ;;  %6510 = vrot.lane.b32.xlu1 %v14610_v55, %s11024_s24  ;;  %v10182_v55 = vld [vmem:[%s11131_s14 + $0x30d] sm:$0xff]  ;;  %v10201_v49 = vld [vmem:[%s11131_s14 + $0x3a5] sm:$0xff]  ;;  %v10212_v40 = vld [vmem:[%s11131_s14 + $0x3fd] sm:$0xff] }
 0x61a   : > { %6508 = vrot.lane.b32.xlu0 %v14592_v60, %s11024_s24  ;;  %v6653_v17 = vpack.c.bf16 %v10183_v46, %v10182_v55  ;;  %v6662_v7 = vpack.c.bf16 %v10201_v49, %v10200_v54  ;;  %v10267_v55 = vld [vmem:[%s11131_s14 + $0x3ae] sm:$0xff]  ;;  %v10268_v46 = vld [vmem:[%s11131_s14 + $0x3b6] sm:$0xff] }
 0x61b   : > { %v6204_v18 = vpop.permute.xlu1 %6203  ;;  %v10211_v54 = vld [vmem:[%s11131_s14 + $0x3f5] sm:$0xff] }
 0x61c   : > { %6295 = vst.msk [vmem:[#allocation2 + $0x28] sm:$0xff] %vm6289_vm7, %v6204_v18  ;;  %v6202_v11 = vpop.permute.xlu0 %6201  ;;  %v10902_v18 = vld [vmem:[%s15416_s1 + $0x20] sm:$0xff]  }
 0x61d   : > { %6294 = vst.msk [vmem:[#allocation2 + $0x20] sm:$0xff] %vm6289_vm7, %v6202_v11  ;;  %6514 = vrot.lane.b32.xlu1 %v6419_v25, %s11024_s24  ;;  %10710 = vmatprep.subr.bf16.mxu0 %v10902_v18  ;;  %v6661_v11 = vpack.c.bf16 %v10199_v32, %v10198_v33  ;;  %v10275_v32 = vld [vmem:[%s11131_s14 + $0x3ee] sm:$0xff] }
 0x61e   : > { %6512 = vrot.lane.b32.xlu0 %v14606_v27, %s11024_s24  ;;  %10711 = vmatpush3.bf16.msra.mxu0 %v10902_v18 }
 0x61f   : > { %v6208_v16 = vpop.permute.xlu1 %6207  ;;  %10784 = vmatprep.subr.bf16.mxu1 %v10902_v18  ;;  %10712 = vmatprep.subr.bf16.mxu0 %v10903_v63 }
 0x620   : > { %6297 = vst.msk [vmem:[#allocation2 + $0x38] sm:$0xff] %vm6289_vm7, %v6208_v16  ;;  %v6206_v31 = vpop.permute.xlu0 %6205  ;;  %v10203_v16 = vld [vmem:[%s11131_s14 + $0x3b5] sm:$0xff]  ;;  %10791 = vmatpush3.bf16.msra.mxu1 %v10902_v18 }
 0x621   : > { %6296 = vst.msk [vmem:[#allocation2 + $0x30] sm:$0xff] %vm6289_vm7, %v6206_v31  ;;  %6713 = vrot.lane.b32.xlu1 %v6648_v20, %s11025_s27  ;;  %v10204_v20 = vld [vmem:[%s11131_s14 + $0x3bd] sm:$0xff]  ;;  %10785 = vmatprep.subr.bf16.mxu1 %v10903_v63 }
 0x622   : > { %6711 = vrot.lane.b32.xlu0 %v6647_v41, %s11025_s27  ;;  %v10205_v41 = vld [vmem:[%s11131_s14 + $0x3c5] sm:$0xff]  ;;  %10713 = vmatpush3.bf16.msra.mxu0 %v10903_v63  ;;  %v10276_v18 = vld [vmem:[%s11131_s14 + $0x3f6] sm:$0xff] }
 0x623   : > { %v6212_v60 = vpop.permute.xlu1 %6211  ;;  %v6664_v31 = vpack.c.bf16 %v10205_v41, %v10204_v20  ;;  %10794 = vmatprep.subr.msk.bf16.mxu0 %vm7290_vm8, %v10904_v57  ;;  %v6926_v41 = vpack.c.bf16 %v10276_v18, %v10275_v32  ;;  %v10224_v32 = vld [vmem:[%s11131_s14 + $0x45d] sm:$0xff]  ;;  %v10225_v18 = vld [vmem:[%s11131_s14 + $0x465] sm:$0xff] }
 0x624   : > { %6299 = vst.msk [vmem:[#allocation2 + $0x48] sm:$0xff] %vm6289_vm7, %v6212_v60  ;;  %v6210_v14 = vpop.permute.xlu0 %6209  ;;  %v10207_v60 = vld [vmem:[%s11131_s14 + $0x3d5] sm:$0xff]  ;;  %10792 = vmatpush3.bf16.msra.mxu1 %v10903_v63 }
 0x625   : > { %6298 = vst.msk [vmem:[#allocation2 + $0x40] sm:$0xff] %vm6289_vm7, %v6210_v14  ;;  %6717 = vrot.lane.b32.xlu1 %v6650_v3, %s11025_s27  ;;  %v6663_v3 = vpack.c.bf16 %v10203_v16, %v10202_v26  ;;  %10795 = vmatprep.subr.msk.bf16.mxu1 %vm7290_vm8, %v10904_v57  ;;  %v10277_v26 = vld [vmem:[%s11131_s14 + $0x3fe] sm:$0xff]  ;;  %v10278_v16 = vld [vmem:[%s11131_s14 + $0x406] sm:$0xff] }
 0x626   : > { %6715 = vrot.lane.b32.xlu0 %v6649_v19, %s11025_s27  ;;  %v10236_v19 = vld [vmem:[%s11131_s14 + $0x2b6] sm:$0xff] }
 0x627   : > { %v6216_v27 = vpop.permute.xlu1 %6215  ;;  %v6906_v14 = vpack.c.bf16 %v10236_v19, %v10235_v10  ;;  %v6927_v10 = vpack.c.bf16 %v10278_v16, %v10277_v26  ;;  %v10287_v26 = vld [vmem:[%s11131_s14 + $0x44e] sm:$0xff]  ;;  %v10288_v16 = vld [vmem:[%s11131_s14 + $0x456] sm:$0xff] }
 0x628   : > { %6301 = vst.msk [vmem:[#allocation2 + $0x58] sm:$0xff] %vm6289_vm7, %v6216_v27  ;;  %v6214_v47 = vpop.permute.xlu0 %6213 }
 0x629   : > { %6300 = vst.msk [vmem:[#allocation2 + $0x50] sm:$0xff] %vm6289_vm7, %v6214_v47  ;;  %6721 = vrot.lane.b32.xlu1 %v6652_v8, %s11025_s27  ;;  %v7292_v8 = vsel %vm7290_vm8, %v10904_v57, 0  ;;  %v6907_v47 = vpack.c.bf16 %v10238_v1, %v10237_v13  ;;  %v10214_v57 = vld [vmem:[%s11131_s14 + $0x40d] sm:$0xff]  ;;  %v10280_v1 = vld [vmem:[%s11131_s14 + $0x416] sm:$0xff] }
 0x62a   : > { %6719 = vrot.lane.b32.xlu0 %v6651_v15, %s11025_s27  ;;  %v6665_v15 = vpack.c.bf16 %v10207_v60, %v10206_v22  ;;  %10715 = vmatpush3.bf16.msra.mxu0 %v7292_v8  ;;  %v10217_v22 = vld [vmem:[%s11131_s14 + $0x425] sm:$0xff]  ;;  %v10279_v13 = vld [vmem:[%s11131_s14 + $0x40e] sm:$0xff] }
 0x62b   : > { %v6220_v48 = vpop.permute.xlu1 %6219  ;;  %10793 = vmatpush3.bf16.msra.mxu1 %v7292_v8 }
 0x62c   : > { %6303 = vst.msk [vmem:[#allocation2 + $0x68] sm:$0xff] %vm6289_vm7, %v6220_v48  ;;  %v6218_v62 = vpop.permute.xlu0 %6217  ;;  %v10269_v48 = vld [vmem:[%s11131_s14 + $0x3be] sm:$0xff] }
 0x62d   : > { %6302 = vst.msk [vmem:[#allocation2 + $0x60] sm:$0xff] %vm6289_vm7, %v6218_v62  ;;  %6725 = vrot.lane.b32.xlu1 %v6654_v30, %s11025_s27  ;;  %v6922_v30 = vpack.c.bf16 %v10268_v46, %v10267_v55  ;;  %v6923_v62 = vpack.c.bf16 %v10270_v51, %v10269_v48  ;;  %v10247_v55 = vld [vmem:[%s11131_s14 + $0x30e] sm:$0xff]  ;;  %v10248_v46 = vld [vmem:[%s11131_s14 + $0x316] sm:$0xff]  ;;  %v10249_v48 = vld [vmem:[%s11131_s14 + $0x31e] sm:$0xff] }
 0x62e   : > { %6723 = vrot.lane.b32.xlu0 %v6653_v17, %s11025_s27  ;;  %v10208_v17 = vld [vmem:[%s11131_s14 + $0x3dd] sm:$0xff]  ;;  %v10250_v51 = vld [vmem:[%s11131_s14 + $0x326] sm:$0xff] }
 0x62f   : > { %v6224_v35 = vpop.permute.xlu1 %6223  ;;  %v6666_v21 = vpack.c.bf16 %v10209_v24, %v10208_v17  ;;  %v10281_v17 = vld [vmem:[%s11131_s14 + $0x41e] sm:$0xff]  ;;  %v10282_v24 = vld [vmem:[%s11131_s14 + $0x426] sm:$0xff] }
 0x630   : > { %6305 = vst.msk [vmem:[#allocation2 + $0x78] sm:$0xff] %vm6289_vm7, %v6224_v35  ;;  %v6222_v43 = vpop.permute.xlu0 %6221  ;;  %v10240_v35 = vld [vmem:[%s11131_s14 + $0x2d6] sm:$0xff] }
 0x631   : > { %6304 = vst.msk [vmem:[#allocation2 + $0x70] sm:$0xff] %vm6289_vm7, %v6222_v43  ;;  %6729 = vrot.lane.b32.xlu1 %v6656_v50, %s11025_s27  ;;  %v10271_v50 = vld [vmem:[%s11131_s14 + $0x3ce] sm:$0xff]  ;;  %v6908_v36 = vpack.c.bf16 %v10240_v35, %v10239_v45  ;;  %v10273_v43 = vld [vmem:[%s11131_s14 + $0x3de] sm:$0xff] }
 0x632   : > { %6727 = vrot.lane.b32.xlu0 %v6655_v61, %s11025_s27  ;;  %v10272_v61 = vld [vmem:[%s11131_s14 + $0x3d6] sm:$0xff]  ;;  %v10218_v45 = vld [vmem:[%s11131_s14 + $0x42d] sm:$0xff] }
 0x633   : > { %v6228_v2 = vpop.permute.xlu1 %6227  ;;  %v6924_v56 = vpack.c.bf16 %v10272_v61, %v10271_v50  ;;  %v10220_v50 = vld [vmem:[%s11131_s14 + $0x43d] sm:$0xff]  ;;  %v10221_v61 = vld [vmem:[%s11131_s14 + $0x445] sm:$0xff]  ;;  %v10219_v35 = vld [vmem:[%s11131_s14 + $0x435] sm:$0xff] }
 0x634   : > { %6307 = vst.msk [vmem:[#allocation2 + $0x88] sm:$0xff] %vm6289_vm7, %v6228_v2  ;;  %v6226_v37 = vpop.permute.xlu0 %6225 }
 0x635   : > { %6306 = vst.msk [vmem:[#allocation2 + $0x80] sm:$0xff] %vm6289_vm7, %v6226_v37  ;;  %6733 = vrot.lane.b32.xlu1 %v6658_v28, %s11025_s27  ;;  %v10274_v28 = vld [vmem:[%s11131_s14 + $0x3e6] sm:$0xff] }
 0x636   : > { %6731 = vrot.lane.b32.xlu0 %v6657_v52, %s11025_s27  ;;  %v6925_v23 = vpack.c.bf16 %v10274_v28, %v10273_v43  ;;  %v10213_v37 = vld [vmem:[%s11131_s14 + $0x405] sm:$0xff]  ;;  %v10283_v43 = vld [vmem:[%s11131_s14 + $0x42e] sm:$0xff]  ;;  %v10284_v28 = vld [vmem:[%s11131_s14 + $0x436] sm:$0xff] }
 0x637   : > { %v6232_v25 = vpop.permute.xlu1 %6231 }
 0x638   : > { %6309 = vst.msk [vmem:[#allocation2 + $0x98] sm:$0xff] %vm6289_vm7, %v6232_v25  ;;  %v6230_v34 = vpop.permute.xlu0 %6229  ;;  %v6668_v25 = vpack.c.bf16 %v10213_v37, %v10212_v40  ;;  %v10285_v40 = vld [vmem:[%s11131_s14 + $0x43e] sm:$0xff]  ;;  %v10286_v37 = vld [vmem:[%s11131_s14 + $0x446] sm:$0xff] }
 0x639   : > { %6308 = vst.msk [vmem:[#allocation2 + $0x90] sm:$0xff] %vm6289_vm7, %v6230_v34  ;;  %6737 = vrot.lane.b32.xlu1 %v6660_v58, %s11025_s27 }
 0x63a   : > { %6735 = vrot.lane.b32.xlu0 %v6659_v44, %s11025_s27  ;;  %v10210_v44 = vld [vmem:[%s11131_s14 + $0x3ed] sm:$0xff] }
 0x63b   : > { %v6236_v9 = vpop.permute.xlu1 %6235  ;;  %v6667_v33 = vpack.c.bf16 %v10211_v54, %v10210_v44  ;;  %v10253_v44 = vld [vmem:[%s11131_s14 + $0x33e] sm:$0xff]  ;;  %v10254_v54 = vld [vmem:[%s11131_s14 + $0x346] sm:$0xff] }
 0x63c   : > { %6311 = vst.msk [vmem:[#allocation2 + $0xa8] sm:$0xff] %vm6289_vm7, %v6236_v9  ;;  %v6234_v53 = vpop.permute.xlu0 %6233 }
 0x63d   : > { %6310 = vst.msk [vmem:[#allocation2 + $0xa0] sm:$0xff] %vm6289_vm7, %v6234_v53  ;;  %6741 = vrot.lane.b32.xlu1 %v6662_v7, %s11025_s27  ;;  %v10243_v7 = vld [vmem:[%s11131_s14 + $0x2ee] sm:$0xff]  ;;  %v10245_v53 = vld [vmem:[%s11131_s14 + $0x2fe] sm:$0xff] }
 0x63e   : > { %6739 = vrot.lane.b32.xlu0 %v6661_v11, %s11025_s27  ;;  %v10244_v11 = vld [vmem:[%s11131_s14 + $0x2f6] sm:$0xff] }
 0x63f   : > { %v6240_v39 = vpop.permute.xlu1 %6239  ;;  %v6910_v9 = vpack.c.bf16 %v10244_v11, %v10243_v7  ;;  %v10222_v7 = vld [vmem:[%s11131_s14 + $0x44d] sm:$0xff]  ;;  %v10223_v11 = vld [vmem:[%s11131_s14 + $0x455] sm:$0xff] }
 0x640   : > { %6313 = vst.msk [vmem:[#allocation2 + $0xb8] sm:$0xff] %vm6289_vm7, %v6240_v39  ;;  %v6238_v6 = vpop.permute.xlu0 %6237  ;;  %v10216_v39 = vld [vmem:[%s11131_s14 + $0x41d] sm:$0xff] }
 0x641   : > { %6312 = vst.msk [vmem:[#allocation2 + $0xb0] sm:$0xff] %vm6289_vm7, %v6238_v6  ;;  %6745 = vrot.lane.b32.xlu1 %v6664_v31, %s11025_s27  ;;  %v10246_v31 = vld [vmem:[%s11131_s14 + $0x306] sm:$0xff]  ;;  %v10215_v6 = vld [vmem:[%s11131_s14 + $0x415] sm:$0xff]  ;;  %v6670_v8 = vpack.c.bf16 %v10217_v22, %v10216_v39  ;;  %v10289_v39 = vld [vmem:[%s11131_s14 + $0x45e] sm:$0xff] }
 0x642   : > { %6743 = vrot.lane.b32.xlu0 %v6663_v3, %s11025_s27  ;;  %v6911_v19 = vpack.c.bf16 %v10246_v31, %v10245_v53  ;;  %v10255_v53 = vld [vmem:[%s11131_s14 + $0x34e] sm:$0xff]  ;;  %v10256_v31 = vld [vmem:[%s11131_s14 + $0x356] sm:$0xff]  ;;  %v10290_v22 = vld [vmem:[%s11131_s14 + $0x466] sm:$0xff] }
 0x643   : > { %v6244_v27 = vpop.permute.xlu1 %6243 }
 0x644   : > { %6315 = vst.msk [vmem:[#allocation2 + $0xc8] sm:$0xff] %vm6289_vm7, %v6244_v27  ;;  %v6242_v4 = vpop.permute.xlu0 %6241 }
 0x645   : > { %6314 = vst.msk [vmem:[#allocation2 + $0xc0] sm:$0xff] %vm6289_vm7, %v6242_v4  ;;  %6970 = vrot.lane.b32.xlu1 %v6906_v14, %s11027_s11 }
 0x646   : > { %6747 = vrot.lane.b32.xlu0 %v6665_v15, %s11025_s27  ;;  %v6669_v15 = vpack.c.bf16 %v10215_v6, %v10214_v57  ;;  %v10257_v57 = vld [vmem:[%s11131_s14 + $0x35e] sm:$0xff]  ;;  %v10258_v6 = vld [vmem:[%s11131_s14 + $0x366] sm:$0xff] }
 0x647   : > { %v6248_v5 = vpop.permute.xlu1 %6247 }
 0x648   : > { %6317 = vst.msk [vmem:[#allocation2 + $0xd8] sm:$0xff] %vm6289_vm7, %v6248_v5  ;;  %v6246_v38 = vpop.permute.xlu0 %6245 }
 0x649   : > { %6316 = vst.msk [vmem:[#allocation2 + $0xd0] sm:$0xff] %vm6289_vm7, %v6246_v38  ;;  %6972 = vrot.lane.b32.xlu1 %v6907_v47, %s11027_s11  ;;  %v6928_v47 = vpack.c.bf16 %v10280_v1, %v10279_v13  ;;  %v10228_v13 = vld [vmem:[%s11131_s14 + $0x47d] sm:$0xff]  ;;  %v10229_v1 = vld [vmem:[%s11131_s14 + $0x485] sm:$0xff] }
 0x64a   : > { %7002 = vrot.lane.b32.xlu0 %v6922_v30, %s11027_s11  ;;  %v6912_v30 = vpack.c.bf16 %v10248_v46, %v10247_v55  ;;  %v10226_v55 = vld [vmem:[%s11131_s14 + $0x46d] sm:$0xff]  ;;  %v10227_v46 = vld [vmem:[%s11131_s14 + $0x475] sm:$0xff] }
 0x64b   : > { %v6252_v42 = vpop.permute.xlu1 %6251 }
 0x64c   : > { %6319 = vst.msk [vmem:[#allocation2 + $0xe8] sm:$0xff] %vm6289_vm7, %v6252_v42  ;;  %v6250_v29 = vpop.permute.xlu0 %6249 }
 0x64d   : > { %6318 = vst.msk [vmem:[#allocation2 + $0xe0] sm:$0xff] %vm6289_vm7, %v6250_v29  ;;  %6749 = vrot.lane.b32.xlu1 %v6666_v21, %s11025_s27  ;;  %v6929_v21 = vpack.c.bf16 %v10282_v24, %v10281_v17  ;;  %v10291_v17 = vld [vmem:[%s11131_s14 + $0x46e] sm:$0xff]  ;;  %v10292_v24 = vld [vmem:[%s11131_s14 + $0x476] sm:$0xff] }
 0x64e   : > { %7004 = vrot.lane.b32.xlu0 %v6923_v62, %s11027_s11  ;;  %v6913_v62 = vpack.c.bf16 %v10250_v51, %v10249_v48  ;;  %v10259_v48 = vld [vmem:[%s11131_s14 + $0x36e] sm:$0xff]  ;;  %v10260_v51 = vld [vmem:[%s11131_s14 + $0x376] sm:$0xff] }
 0x64f   : > { %v6256_v52 = vpop.permute.xlu1 %6255 }
 0x650   : > { %6321 = vst.msk [vmem:[#allocation2 + $0xf8] sm:$0xff] %vm6289_vm7, %v6256_v52  ;;  %v6254_v2 = vpop.permute.xlu0 %6253 }
 0x651   : > { %6320 = vst.msk [vmem:[#allocation2 + $0xf0] sm:$0xff] %vm6289_vm7, %v6254_v2  ;;  %7006 = vrot.lane.b32.xlu1 %v6924_v56, %s11027_s11  ;;  %v6672_v56 = vpack.c.bf16 %v10221_v61, %v10220_v50  ;;  %v10293_v50 = vld [vmem:[%s11131_s14 + $0x47e] sm:$0xff]  ;;  %v10294_v61 = vld [vmem:[%s11131_s14 + $0x486] sm:$0xff] }
 0x652   : > { %6974 = vrot.lane.b32.xlu0 %v6908_v36, %s11027_s11  ;;  %v6671_v36 = vpack.c.bf16 %v10219_v35, %v10218_v45  ;;  %v10261_v45 = vld [vmem:[%s11131_s14 + $0x37e] sm:$0xff]  ;;  %v10262_v35 = vld [vmem:[%s11131_s14 + $0x386] sm:$0xff] }
 0x653   : > { %v6455_v58 = vpop.permute.xlu1 %6454 }
 0x654   : > { %6550 = vst.msk [vmem:[#allocation2 + $0x8] sm:$0xff] %vm6548_vm9, %v6455_v58  ;;  %v6453_v49 = vpop.permute.xlu0 %6452 }
 0x655   : > { %6549 = vst.msk [vmem:[#allocation2] sm:$0xff] %vm6548_vm9, %v6453_v49  ;;  %7008 = vrot.lane.b32.xlu1 %v6925_v23, %s11027_s11  ;;  %v6930_v23 = vpack.c.bf16 %v10284_v28, %v10283_v43  ;;  %v10232_v43 = vld [vmem:[%s11131_s14 + $0x49d] sm:$0xff]  ;;  %v10233_v28 = vld [vmem:[%s11131_s14 + $0x4a5] sm:$0xff] }
 0x656   : > { %6976 = vrot.lane.b32.xlu0 %v6909_v12, %s11027_s11  ;;  %v6914_v12 = vpack.c.bf16 %v10252_v0, %v10251_v59  ;;  %v10230_v59 = vld [vmem:[%s11131_s14 + $0x48d] sm:$0xff]  ;;  %v10231_v0 = vld [vmem:[%s11131_s14 + $0x495] sm:$0xff] }
 0x657   : > { %v6459_v34 = vpop.permute.xlu1 %6458 }
 0x658   : > { %6552 = vst.msk [vmem:[#allocation2 + $0x18] sm:$0xff] %vm6548_vm9, %v6459_v34  ;;  %v6457_v20 = vpop.permute.xlu0 %6456 }
 0x659   : > { %6551 = vst.msk [vmem:[#allocation2 + $0x10] sm:$0xff] %vm6548_vm9, %v6457_v20  ;;  %6753 = vrot.lane.b32.xlu1 %v6668_v25, %s11025_s27  ;;  %v6931_v25 = vpack.c.bf16 %v10286_v37, %v10285_v40  ;;  %v10295_v40 = vld [vmem:[%s11131_s14 + $0x48e] sm:$0xff]  ;;  %v10296_v37 = vld [vmem:[%s11131_s14 + $0x496] sm:$0xff] }
 0x65a   : > { %6751 = vrot.lane.b32.xlu0 %v6667_v33, %s11025_s27  ;;  %v6915_v33 = vpack.c.bf16 %v10254_v54, %v10253_v44  ;;  %v10263_v44 = vld [vmem:[%s11131_s14 + $0x38e] sm:$0xff]  ;;  %v10264_v54 = vld [vmem:[%s11131_s14 + $0x396] sm:$0xff] }
 0x65b   : > { %v6463_v63 = vpop.permute.xlu1 %6462 }
 0x65c   : > { %6554 = vst.msk [vmem:[#allocation2 + $0x28] sm:$0xff] %vm6548_vm9, %v6463_v63  ;;  %v6461_v3 = vpop.permute.xlu0 %6460 }
 0x65d   : > { %6553 = vst.msk [vmem:[#allocation2 + $0x20] sm:$0xff] %vm6548_vm9, %v6461_v3  ;;  %7010 = vrot.lane.b32.xlu1 %v6926_v41, %s11027_s11  ;;  %v6674_v41 = vpack.c.bf16 %v10225_v18, %v10224_v32  ;;  %v10297_v32 = vld [vmem:[%s11131_s14 + $0x49e] sm:$0xff]  ;;  %v10298_v18 = vld [vmem:[%s11131_s14 + $0x4a6] sm:$0xff] }
 0x65e   : > { %6978 = vrot.lane.b32.xlu0 %v6910_v9, %s11027_s11  ;;  %v6673_v9 = vpack.c.bf16 %v10223_v11, %v10222_v7  ;;  %v10265_v7 = vld [vmem:[%s11131_s14 + $0x39e] sm:$0xff]  ;;  %v10266_v11 = vld [vmem:[%s11131_s14 + $0x3a6] sm:$0xff] }
 0x65f   : > { %v6467_v60 = vpop.permute.xlu1 %6466 }
 0x660   : > { %6556 = vst.msk [vmem:[#allocation2 + $0x38] sm:$0xff] %vm6548_vm9, %v6467_v60  ;;  %v6465_v14 = vpop.permute.xlu0 %6464 }
 0x661   : > { %6555 = vst.msk [vmem:[#allocation2 + $0x30] sm:$0xff] %vm6548_vm9, %v6465_v14  ;;  %7012 = vrot.lane.b32.xlu1 %v6927_v10, %s11027_s11  ;;  %v6932_v10 = vpack.c.bf16 %v10288_v16, %v10287_v26 }
 0x662   : > { %6980 = vrot.lane.b32.xlu0 %v6911_v19, %s11027_s11  ;;  %v6916_v19 = vpack.c.bf16 %v10256_v31, %v10255_v53  ;;  %v7647_v31 = vld [vmem:[%s14998_s30] sm:$0xff] }
 0x663   : > { %v6471_v27 = vpop.permute.xlu1 %6470 }
 0x664   : > { %6558 = vst.msk [vmem:[#allocation2 + $0x48] sm:$0xff] %vm6548_vm9, %v6471_v27  ;;  %v6469_v4 = vpop.permute.xlu0 %6468 }
 0x665   : > { %6557 = vst.msk [vmem:[#allocation2 + $0x40] sm:$0xff] %vm6548_vm9, %v6469_v4  ;;  %6757 = vrot.lane.b32.xlu1 %v6670_v8, %s11025_s27  ;;  %v6933_v8 = vpack.c.bf16 %v10290_v22, %v10289_v39  ;;  %v7650_v39 = vld [vmem:[%s14998_s30 + $0x18] sm:$0xff] }
 0x666   : > { %6755 = vrot.lane.b32.xlu0 %v6669_v15, %s11025_s27  ;;  %v6917_v15 = vpack.c.bf16 %v10258_v6, %v10257_v57  ;;  %v7652_v6 = vld [vmem:[%s14998_s30 + $0x28] sm:$0xff] }
 0x667   : > { %v6475_v5 = vpop.permute.xlu1 %6474 }
 0x668   : > { %6560 = vst.msk [vmem:[#allocation2 + $0x58] sm:$0xff] %vm6548_vm9, %v6475_v5  ;;  %v6473_v38 = vpop.permute.xlu0 %6472 }
 0x669   : > { %6559 = vst.msk [vmem:[#allocation2 + $0x50] sm:$0xff] %vm6548_vm9, %v6473_v38  ;;  %7014 = vrot.lane.b32.xlu1 %v6928_v47, %s11027_s11  ;;  %v6676_v47 = vpack.c.bf16 %v10229_v1, %v10228_v13  ;;  %v7654_v13 = vld [vmem:[%s14998_s30 + $0x38] sm:$0xff] }
 0x66a   : > { %6982 = vrot.lane.b32.xlu0 %v6912_v30, %s11027_s11  ;;  %v6675_v30 = vpack.c.bf16 %v10227_v46, %v10226_v55  ;;  %v7656_v46 = vld [vmem:[%s14998_s30 + $0x48] sm:$0xff] }
 0x66b   : > { %v6479_v42 = vpop.permute.xlu1 %6478 }
 0x66c   : > { %6562 = vst.msk [vmem:[#allocation2 + $0x68] sm:$0xff] %vm6548_vm9, %v6479_v42  ;;  %v6477_v29 = vpop.permute.xlu0 %6476 }
 0x66d   : > { %6561 = vst.msk [vmem:[#allocation2 + $0x60] sm:$0xff] %vm6548_vm9, %v6477_v29  ;;  %7016 = vrot.lane.b32.xlu1 %v6929_v21, %s11027_s11  ;;  %v6934_v21 = vpack.c.bf16 %v10292_v24, %v10291_v17  ;;  %v7658_v17 = vld [vmem:[%s14998_s30 + $0x58] sm:$0xff] }
 0x66e   : > { %6984 = vrot.lane.b32.xlu0 %v6913_v62, %s11027_s11  ;;  %v6918_v62 = vpack.c.bf16 %v10260_v51, %v10259_v48  ;;  %v7660_v51 = vld [vmem:[%s14998_s30 + $0x68] sm:$0xff] }
 0x66f   : > { %v6483_v52 = vpop.permute.xlu1 %6482 }
 0x670   : > { %6564 = vst.msk [vmem:[#allocation2 + $0x78] sm:$0xff] %vm6548_vm9, %v6483_v52  ;;  %v6481_v2 = vpop.permute.xlu0 %6480 }
 0x671   : > { %6563 = vst.msk [vmem:[#allocation2 + $0x70] sm:$0xff] %vm6548_vm9, %v6481_v2  ;;  %6761 = vrot.lane.b32.xlu1 %v6672_v56, %s11025_s27  ;;  %v6935_v56 = vpack.c.bf16 %v10294_v61, %v10293_v50  ;;  %v7662_v50 = vld [vmem:[%s14998_s30 + $0x78] sm:$0xff] }
 0x672   : > { %6759 = vrot.lane.b32.xlu0 %v6671_v36, %s11025_s27  ;;  %v6919_v36 = vpack.c.bf16 %v10262_v35, %v10261_v45 }
 0x673   : > { %v6487_v58 = vpop.permute.xlu1 %6486 }
 0x674   : > { %6566 = vst.msk [vmem:[#allocation2 + $0x88] sm:$0xff] %vm6548_vm9, %v6487_v58  ;;  %v6485_v49 = vpop.permute.xlu0 %6484 }
 0x675   : > { %6565 = vst.msk [vmem:[#allocation2 + $0x80] sm:$0xff] %vm6548_vm9, %v6485_v49  ;;  %7018 = vrot.lane.b32.xlu1 %v6930_v23, %s11027_s11  ;;  %v6678_v23 = vpack.c.bf16 %v10233_v28, %v10232_v43 }
 0x676   : > { %6986 = vrot.lane.b32.xlu0 %v6914_v12, %s11027_s11  ;;  %v6677_v12 = vpack.c.bf16 %v10231_v0, %v10230_v59 }
 0x677   : > { %v6491_v34 = vpop.permute.xlu1 %6490 }
 0x678   : > { %6568 = vst.msk [vmem:[#allocation2 + $0x98] sm:$0xff] %vm6548_vm9, %v6491_v34  ;;  %v6489_v20 = vpop.permute.xlu0 %6488 }
 0x679   : > { %6567 = vst.msk [vmem:[#allocation2 + $0x90] sm:$0xff] %vm6548_vm9, %v6489_v20  ;;  %7020 = vrot.lane.b32.xlu1 %v6931_v25, %s11027_s11  ;;  %v6936_v25 = vpack.c.bf16 %v10296_v37, %v10295_v40 }
 0x67a   : > { %6988 = vrot.lane.b32.xlu0 %v6915_v33, %s11027_s11  ;;  %v6920_v33 = vpack.c.bf16 %v10264_v54, %v10263_v44 }
 0x67b   : > { %v6495_v63 = vpop.permute.xlu1 %6494 }
 0x67c   : > { %6570 = vst.msk [vmem:[#allocation2 + $0xa8] sm:$0xff] %vm6548_vm9, %v6495_v63  ;;  %v6493_v3 = vpop.permute.xlu0 %6492  ;;  %v7648_v63 = vld [vmem:[%s14998_s30 + $0x8] sm:$0xff] }
 0x67d   : > { %6569 = vst.msk [vmem:[#allocation2 + $0xa0] sm:$0xff] %vm6548_vm9, %v6493_v3  ;;  %6765 = vrot.lane.b32.xlu1 %v6674_v41, %s11025_s27  ;;  %v6937_v41 = vpack.c.bf16 %v10298_v18, %v10297_v32 }
 0x67e   : > { %6763 = vrot.lane.b32.xlu0 %v6673_v9, %s11025_s27  ;;  %v6921_v9 = vpack.c.bf16 %v10266_v11, %v10265_v7  ;;  %v7672_v7 = vld [vmem:[%s14998_s30 + $0xc8] sm:$0xff] }
 0x67f   : > { %v6499_v60 = vpop.permute.xlu1 %6498 }
 0x680   : > { %6572 = vst.msk [vmem:[#allocation2 + $0xb8] sm:$0xff] %vm6548_vm9, %v6499_v60  ;;  %v6497_v14 = vpop.permute.xlu0 %6496  ;;  %v7651_v60 = vld [vmem:[%s14998_s30 + $0x20] sm:$0xff] }
 0x681   : > { %6571 = vst.msk [vmem:[#allocation2 + $0xb0] sm:$0xff] %vm6548_vm9, %v6497_v14  ;;  %7022 = vrot.lane.b32.xlu1 %v6932_v10, %s11027_s11  ;;  %v7649_v10 = vld [vmem:[%s14998_s30 + $0x10] sm:$0xff] }
 0x682   : > { %6990 = vrot.lane.b32.xlu0 %v6916_v19, %s11027_s11 }
 0x683   : > { %v6503_v27 = vpop.permute.xlu1 %6502 }
 0x684   : > { %6574 = vst.msk [vmem:[#allocation2 + $0xc8] sm:$0xff] %vm6548_vm9, %v6503_v27  ;;  %v6501_v4 = vpop.permute.xlu0 %6500  ;;  %v7655_v27 = vld [vmem:[%s14998_s30 + $0x40] sm:$0xff] }
 0x685   : > { %6573 = vst.msk [vmem:[#allocation2 + $0xc0] sm:$0xff] %vm6548_vm9, %v6501_v4  ;;  %7024 = vrot.lane.b32.xlu1 %v6933_v8, %s11027_s11  ;;  %v7653_v8 = vld [vmem:[%s14998_s30 + $0x30] sm:$0xff] }
 0x686   : > { %6992 = vrot.lane.b32.xlu0 %v6917_v15, %s11027_s11 }
 0x687   : > { %v6507_v5 = vpop.permute.xlu1 %6506 }
 0x688   : > { %6576 = vst.msk [vmem:[#allocation2 + $0xd8] sm:$0xff] %vm6548_vm9, %v6507_v5  ;;  %v6505_v38 = vpop.permute.xlu0 %6504  ;;  %v7659_v5 = vld [vmem:[%s14998_s30 + $0x60] sm:$0xff] }
 0x689   : > { %6575 = vst.msk [vmem:[#allocation2 + $0xd0] sm:$0xff] %vm6548_vm9, %v6505_v38  ;;  %6769 = vrot.lane.b32.xlu1 %v6676_v47, %s11025_s27  ;;  %v7657_v47 = vld [vmem:[%s14998_s30 + $0x50] sm:$0xff] }
 0x68a   : > { %6767 = vrot.lane.b32.xlu0 %v6675_v30, %s11025_s27 }
 0x68b   : > { %v6511_v42 = vpop.permute.xlu1 %6510 }
 0x68c   : > { %6578 = vst.msk [vmem:[#allocation2 + $0xe8] sm:$0xff] %vm6548_vm9, %v6511_v42  ;;  %v6509_v29 = vpop.permute.xlu0 %6508  ;;  %v7663_v42 = vld [vmem:[%s14998_s30 + $0x80] sm:$0xff] }
 0x68d   : > { %6577 = vst.msk [vmem:[#allocation2 + $0xe0] sm:$0xff] %vm6548_vm9, %v6509_v29  ;;  %7026 = vrot.lane.b32.xlu1 %v6934_v21, %s11027_s11  ;;  %v7661_v21 = vld [vmem:[%s14998_s30 + $0x70] sm:$0xff]  ;;  %v7664_v29 = vld [vmem:[%s14998_s30 + $0x88] sm:$0xff] }
 0x68e   : > { %6994 = vrot.lane.b32.xlu0 %v6918_v62, %s11027_s11 }
 0x68f   : > { %v6515_v52 = vpop.permute.xlu1 %6514 }
 0x690   : > { %6580 = vst.msk [vmem:[#allocation2 + $0xf8] sm:$0xff] %vm6548_vm9, %v6515_v52  ;;  %v6513_v2 = vpop.permute.xlu0 %6512  ;;  %v7666_v52 = vld [vmem:[%s14998_s30 + $0x98] sm:$0xff] }
 0x691   : > { %6579 = vst.msk [vmem:[#allocation2 + $0xf0] sm:$0xff] %vm6548_vm9, %v6513_v2  ;;  %7028 = vrot.lane.b32.xlu1 %v6935_v56, %s11027_s11  ;;  %v7667_v2 = vld [vmem:[%s14998_s30 + $0xa0] sm:$0xff] }
 0x692   : > { %6996 = vrot.lane.b32.xlu0 %v6919_v36, %s11027_s11  ;;  %v7665_v36 = vld [vmem:[%s14998_s30 + $0x90] sm:$0xff] }
 0x693   : > { %v6714_v58 = vpop.permute.xlu1 %6713 }
 0x694   : > { %6809 = vst.msk [vmem:[#allocation2 + $0x8] sm:$0xff] %vm6807_vm10, %v6714_v58  ;;  %v6712_v49 = vpop.permute.xlu0 %6711  ;;  %v7669_v58 = vld [vmem:[%s14998_s30 + $0xb0] sm:$0xff] }
 0x695   : > { %6808 = vst.msk [vmem:[#allocation2] sm:$0xff] %vm6807_vm10, %v6712_v49  ;;  %6773 = vrot.lane.b32.xlu1 %v6678_v23, %s11025_s27  ;;  %v7670_v49 = vld [vmem:[%s14998_s30 + $0xb8] sm:$0xff] }
 0x696   : > { %6771 = vrot.lane.b32.xlu0 %v6677_v12, %s11025_s27  ;;  %v7668_v12 = vld [vmem:[%s14998_s30 + $0xa8] sm:$0xff] }
 0x697   : > { %v6718_v34 = vpop.permute.xlu1 %6717 }
 0x698   : > { %6811 = vst.msk [vmem:[#allocation2 + $0x18] sm:$0xff] %vm6807_vm10, %v6718_v34  ;;  %v6716_v20 = vpop.permute.xlu0 %6715  ;;  %v7671_v34 = vld [vmem:[%s14998_s30 + $0xc0] sm:$0xff] }
 0x699   : > { %6810 = vst.msk [vmem:[#allocation2 + $0x10] sm:$0xff] %vm6807_vm10, %v6716_v20  ;;  %7030 = vrot.lane.b32.xlu1 %v6936_v25, %s11027_s11 }
 0x69a   : > { %6998 = vrot.lane.b32.xlu0 %v6920_v33, %s11027_s11 }
 0x69b   : > { %v6722_v26 = vpop.permute.xlu1 %6721 }
 0x69c   : > { %6813 = vst.msk [vmem:[#allocation2 + $0x28] sm:$0xff] %vm6807_vm10, %v6722_v26  ;;  %v6720_v16 = vpop.permute.xlu0 %6719  ;;  %v7674_v26 = vld [vmem:[%s14998_s30 + $0xd8] sm:$0xff] }
 0x69d   : > { %6812 = vst.msk [vmem:[#allocation2 + $0x20] sm:$0xff] %vm6807_vm10, %v6720_v16  ;;  %7032 = vrot.lane.b32.xlu1 %v6937_v41, %s11027_s11 }
 0x69e   : > { %7000 = vrot.lane.b32.xlu0 %v6921_v9, %s11027_s11  ;;  %v7673_v9 = vld [vmem:[%s14998_s30 + $0xd0] sm:$0xff]  ;;  %s10797_s11 = smul.u32 704, %s10987_s19 }
 0x69f   : > { %v6726_v53 = vpop.permute.xlu1 %6725 }
 0x6a0   : > { %6815 = vst.msk [vmem:[#allocation2 + $0x38] sm:$0xff] %vm6807_vm10, %v6726_v53  ;;  %v6724_v3 = vpop.permute.xlu0 %6723  ;;  %s8428_s19 = sadd.s32 %s10797_s11, %s14964_s12  ;;  %s8431_s12 = sshll.u32 %s15230_s10, 4  ;;  %s15353_s12 = int_to_ptr.vmem [resolvable:$true] %s8431_s12 }
 0x6a1   : > { %6814 = vst.msk [vmem:[#allocation2 + $0x30] sm:$0xff] %vm6807_vm10, %v6724_v3  ;;  %7718 = vperm.xlu1 %10897, %v7648_v63   ;;  %v7676_v3 = vld [vmem:[%s14998_s30 + $0xe8] sm:$0xff]  ;;  %s10405_s18 = sshll.u32 %s8428_s19, 6  ;;  %s10905_s14 = scalar_lea.vmem %s15353_s12, 4096 }
 0x6a2   : > { %7713 = vperm.xlu0 %10896, %v7647_v31   ;;  %v7675_v31 = vld [vmem:[%s14998_s30 + $0xe0] sm:$0xff]  ;;  %s15351_s24 = scalar_lea.hbm %s15419_s4, %s10405_s18  ;;  %p10906_p0 = scmp.ne.s32.totalorder %s15353_s12, %s10905_s14 }
 0x6a3   : > { %v6730_v19 = vpop.permute.xlu1 %6729  ;;  %s10911_s11 = scalar_lea.vmem %s10910_s9, 8192  ;;  %p10912_p4 = scmp.lt.s32.totalorder %s15353_s12, %s10910_s9 }
 0x6a4   : > { %6817 = vst.msk [vmem:[#allocation2 + $0x48] sm:$0xff] %vm6807_vm10, %v6730_v19  ;;  %v6728_v22 = vpop.permute.xlu0 %6727  ;;  %p10907_p1 = pnand %p10906_p0, %p11105_p3  ;;  %p10913_p5 = scmp.lt.s32.totalorder %s10911_s11, %s10905_s14 }
 0x6a5   : > { %6816 = vst.msk [vmem:[#allocation2 + $0x40] sm:$0xff] %vm6807_vm10, %v6728_v22  ;;  %7723 = vperm.xlu1 %10897, %v7649_v10  }
 0x6a6   : > { %7728 = vperm.xlu0 %10896, %v7650_v39   ;;  %p10908_p2 = pneg %p10907_p1  ;;  %p10914_p6 = por %p10913_p5, %p10912_p4 }
 0x6a7   : > { %v6734_v57 = vpop.permute.xlu1 %6733 }
 0x6a8   : > { %6819 = vst.msk [vmem:[#allocation2 + $0x58] sm:$0xff] %vm6807_vm10, %v6734_v57  ;;  %v6732_v14 = vpop.permute.xlu0 %6731  ;;  %v7678_v57 = vld [vmem:[%s14998_s30 + $0xf8] sm:$0xff]  ;;  %p10915_p7 = pnand %p10914_p6, %p10908_p2 }
 0x6a9   : > { %6818 = vst.msk [vmem:[#allocation2 + $0x50] sm:$0xff] %vm6807_vm10, %v6732_v14  ;;  %7733 = vperm.xlu1 %10897, %v7651_v60   ;;  %v7677_v60 = vld [vmem:[%s14998_s30 + $0xf0] sm:$0xff] }
 0x6aa   : > { %7738 = vperm.xlu0 %10896, %v7652_v6  }
 0x6ab   : > { %v6738_v15 = vpop.permute.xlu1 %6737 }
 0x6ac   : > { %6821 = vst.msk [vmem:[#allocation2 + $0x68] sm:$0xff] %vm6807_vm10, %v6738_v15  ;;  %v6736_v1 = vpop.permute.xlu0 %6735  ;;  %v7679_v15 = vld [vmem:[%s14998_s30 + $0x100] sm:$0xff] }
 0x6ad   : > { %6820 = vst.msk [vmem:[#allocation2 + $0x60] sm:$0xff] %vm6807_vm10, %v6736_v1  ;;  %7743 = vperm.xlu1 %10897, %v7653_v8  }
 0x6ae   : > { %7748 = vperm.xlu0 %10896, %v7654_v13   ;;  %v7680_v13 = vld [vmem:[%s14998_s30 + $0x108] sm:$0xff] }
 0x6af   : > { %v6742_v55 = vpop.permute.xlu1 %6741 }
 0x6b0   : > { %6823 = vst.msk [vmem:[#allocation2 + $0x78] sm:$0xff] %vm6807_vm10, %v6742_v55  ;;  %v6740_v4 = vpop.permute.xlu0 %6739 }
 0x6b1   : > { %6822 = vst.msk [vmem:[#allocation2 + $0x70] sm:$0xff] %vm6807_vm10, %v6740_v4  ;;  %7753 = vperm.xlu1 %10897, %v7655_v27   ;;  %v7682_v4 = vld [vmem:[%s14998_s30 + $0x118] sm:$0xff] }
 0x6b2   : > { %7758 = vperm.xlu0 %10896, %v7656_v46   ;;  %v7681_v46 = vld [vmem:[%s14998_s30 + $0x110] sm:$0xff] }
 0x6b3   : > { %v6746_v30 = vpop.permute.xlu1 %6745 }
 0x6b4   : > { %6825 = vst.msk [vmem:[#allocation2 + $0x88] sm:$0xff] %vm6807_vm10, %v6746_v30  ;;  %v6744_v24 = vpop.permute.xlu0 %6743 }
 0x6b5   : > { %6824 = vst.msk [vmem:[#allocation2 + $0x80] sm:$0xff] %vm6807_vm10, %v6744_v24  ;;  %7763 = vperm.xlu1 %10897, %v7657_v47  }
 0x6b6   : > { %7768 = vperm.xlu0 %10896, %v7658_v17  }
 0x6b7   : > { %v6971_v48 = vpop.permute.xlu1 %6970 }
 0x6b8   : > { %7067 = vst.msk [vmem:[#allocation2] sm:$0xff] %vm7066_vm11, %v6971_v48  ;;  %v6748_v38 = vpop.permute.xlu0 %6747  ;;  %v7684_v48 = vld [vmem:[%s14998_s30 + $0x128] sm:$0xff] }
 0x6b9   : > { %6826 = vst.msk [vmem:[#allocation2 + $0x90] sm:$0xff] %vm6807_vm10, %v6748_v38  ;;  %7773 = vperm.xlu1 %10897, %v7659_v5   ;;  %v7683_v5 = vld [vmem:[%s14998_s30 + $0x120] sm:$0xff] }
 0x6ba   : > { %7778 = vperm.xlu0 %10896, %v7660_v51  }
 0x6bb   : > { %v6973_v62 = vpop.permute.xlu1 %6972 }
 0x6bc   : > { %7068 = vst.msk [vmem:[#allocation2 + $0x8] sm:$0xff] %vm7066_vm11, %v6973_v62  ;;  %v7003_v61 = vpop.permute.xlu0 %7002  ;;  %v7685_v62 = vld [vmem:[%s14998_s30 + $0x130] sm:$0xff] }
 0x6bd   : > { %7083 = vst.msk [vmem:[#allocation2 + $0x80] sm:$0xff] %vm7066_vm11, %v7003_v61  ;;  %7783 = vperm.xlu1 %10897, %v7661_v21  }
 0x6be   : > { %7788 = vperm.xlu0 %10896, %v7662_v50   ;;  %v7686_v50 = vld [vmem:[%s14998_s30 + $0x138] sm:$0xff] }
 0x6bf   : > { %v6750_v45 = vpop.permute.xlu1 %6749  ;;  %v7099_v35 = vld [vmem:[#allocation2] sm:$0xff] }
 0x6c0   : > { %6827 = vst.msk [vmem:[#allocation2 + $0x98] sm:$0xff] %vm6807_vm10, %v6750_v45  ;;  %v7005_v56 = vpop.permute.xlu0 %7004  ;;  %10716 = vmatprep.mubr.msk.bf16.mxu0 %vm7193_vm12, %v7099_v35  ;;  %v7687_v35 = vld [vmem:[%s14998_s30 + $0x140] sm:$0xff] }
 0x6c1   : > { %7084 = vst.msk [vmem:[#allocation2 + $0x88] sm:$0xff] %vm7066_vm11, %v7005_v56  ;;  %7793 = vperm.xlu1 %10897, %v7663_v42  }
 0x6c2   : > { %7798 = vperm.xlu0 %10896, %v7664_v29   ;;  %v7688_v29 = vld [vmem:[%s14998_s30 + $0x148] sm:$0xff] }
 0x6c3   : > { %v7007_v43 = vpop.permute.xlu1 %7006  ;;  %v7100_v28 = vld [vmem:[#allocation2 + $0x8] sm:$0xff] }
 0x6c4   : > { %7085 = vst.msk [vmem:[#allocation2 + $0x90] sm:$0xff] %vm7066_vm11, %v7007_v43  ;;  %v6975_v59 = vpop.permute.xlu0 %6974  ;;  %10717 = vmatmul.mubr.msk.bf16.vlgmr.msra.gmra.mrb[0].mxu0 %vm7193_vm12, %v7100_v28  ;;  %v7115_v0 = vld [vmem:[#allocation2 + $0x80] sm:$0xff] }
 0x6c5   : > { %7069 = vst.msk [vmem:[#allocation2 + $0x10] sm:$0xff] %vm7066_vm11, %v6975_v59  ;;  %10748 = vmatprep.mubr.msk.bf16.mxu1 %vm7193_vm12, %v7115_v0  ;;  %7803 = vperm.xlu1 %10897, %v7665_v36   ;;  %v7690_v59 = vld [vmem:[%s14998_s30 + $0x158] sm:$0xff] }
 0x6c6   : > { %7808 = vperm.xlu0 %10896, %v7666_v52   ;;  %v7689_v52 = vld [vmem:[%s14998_s30 + $0x150] sm:$0xff] }
 0x6c7   : > { %v7009_v23 = vpop.permute.xlu1 %7008 }
 0x6c8   : > { %7086 = vst.msk [vmem:[#allocation2 + $0x98] sm:$0xff] %vm7066_vm11, %v7009_v23  ;;  %v6977_v40 = vpop.permute.xlu0 %6976  ;;  %v7116_v37 = vld [vmem:[#allocation2 + $0x88] sm:$0xff] }
 0x6c9   : > { %7070 = vst.msk [vmem:[#allocation2 + $0x18] sm:$0xff] %vm7066_vm11, %v6977_v40  ;;  %10749 = vmatmul.mubr.msk.bf16.vlgmr.msra.gmra.mrb[0].mxu1 %vm7193_vm12, %v7116_v37  ;;  %7813 = vperm.xlu1 %10897, %v7667_v2   ;;  %v7692_v40 = vld [vmem:[%s14998_s30 + $0x168] sm:$0xff] }
 0x6ca   : > { %7818 = vperm.xlu0 %10896, %v7668_v12   ;;  %v7691_v12 = vld [vmem:[%s14998_s30 + $0x160] sm:$0xff] }
 0x6cb   : > { %v6754_v44 = vpop.permute.xlu1 %6753  ;;  %v7117_v54 = vld [vmem:[#allocation2 + $0x90] sm:$0xff] }
 0x6cc   : > { %6829 = vst.msk [vmem:[#allocation2 + $0xa8] sm:$0xff] %vm6807_vm10, %v6754_v44  ;;  %v6752_v25 = vpop.permute.xlu0 %6751  ;;  %v7101_v33 = vld [vmem:[#allocation2 + $0x10] sm:$0xff]  ;;  %10752 = vmatprep.mubr.msk.bf16.mxu1 %vm7193_vm12, %v7117_v54 }
 0x6cd   : > { %6828 = vst.msk [vmem:[#allocation2 + $0xa0] sm:$0xff] %vm6807_vm10, %v6752_v25  ;;  %10720 = vmatprep.mubr.msk.bf16.mxu0 %vm7193_vm12, %v7101_v33  ;;  %7823 = vperm.xlu1 %10897, %v7669_v58   ;;  %v7693_v54 = vld [vmem:[%s14998_s30 + $0x170] sm:$0xff] }
 0x6ce   : > { %7828 = vperm.xlu0 %10896, %v7670_v49   ;;  %v7694_v49 = vld [vmem:[%s14998_s30 + $0x178] sm:$0xff] }
 0x6cf   : > { %v7011_v32 = vpop.permute.xlu1 %7010  ;;  %v7118_v18 = vld [vmem:[#allocation2 + $0x98] sm:$0xff] }
 0x6d0   : > { %7087 = vst.msk [vmem:[#allocation2 + $0xa0] sm:$0xff] %vm7066_vm11, %v7011_v32  ;;  %v6979_v11 = vpop.permute.xlu0 %6978  ;;  %v7102_v20 = vld [vmem:[#allocation2 + $0x18] sm:$0xff] }
 0x6d1   : > { %7071 = vst.msk [vmem:[#allocation2 + $0x20] sm:$0xff] %vm7066_vm11, %v6979_v11  ;;  %10721 = vmatmul.mubr.msk.bf16.gmra.mrb[4].mxu0 %vm7193_vm12, %v7102_v20  ;;  %10753 = vmatmul.mubr.msk.bf16.gmra.mrb[4].mxu1 %vm7193_vm12, %v7118_v18 }
 0x6d2   : > { %7833 = vperm.xlu1 %10897, %v7671_v34   ;;  %7838 = vperm.xlu0 %10896, %v7672_v7   ;;  %v7695_v34 = vld [vmem:[%s14998_s30 + $0x180] sm:$0xff]  ;;  %v7696_v7 = vld [vmem:[%s14998_s30 + $0x188] sm:$0xff] }
 0x6d3   : > { %v7013_v41 = vpop.permute.xlu1 %7012 }
 0x6d4   : > { %7088 = vst.msk [vmem:[#allocation2 + $0xa8] sm:$0xff] %vm7066_vm11, %v7013_v41  ;;  %v6981_v16 = vpop.permute.xlu0 %6980 }
 0x6d5   : > { %7072 = vst.msk [vmem:[#allocation2 + $0x28] sm:$0xff] %vm7066_vm11, %v6981_v16 }
 0x6d6   : > { %7843 = vperm.xlu1 %10897, %v7673_v9   ;;  %7848 = vperm.xlu0 %10896, %v7674_v26   ;;  %v7697_v9 = vld [vmem:[%s14998_s30 + $0x190] sm:$0xff]  ;;  %v7698_v26 = vld [vmem:[%s14998_s30 + $0x198] sm:$0xff] }
 0x6d7   : > { %v6758_v63 = vpop.permute.xlu1 %6757  ;;  %v7119_v53 = vld [vmem:[#allocation2 + $0xa0] sm:$0xff] }
 0x6d8   : > { %6831 = vst.msk [vmem:[#allocation2 + $0xb8] sm:$0xff] %vm6807_vm10, %v6758_v63  ;;  %v6756_v10 = vpop.permute.xlu0 %6755  ;;  %v7103_v19 = vld [vmem:[#allocation2 + $0x20] sm:$0xff]  ;;  %10756 = vmatprep.mubr.msk.bf16.mxu1 %vm7193_vm12, %v7119_v53 }
 0x6d9   : > { %6830 = vst.msk [vmem:[#allocation2 + $0xb0] sm:$0xff] %vm6807_vm10, %v6756_v10  ;;  %10724 = vmatprep.mubr.msk.bf16.mxu0 %vm7193_vm12, %v7103_v19 }
 0x6da   : > { %7853 = vperm.xlu1 %10897, %v7675_v31   ;;  %7858 = vperm.xlu0 %10896, %v7676_v3   ;;  %v7699_v31 = vld [vmem:[%s14998_s30 + $0x1a0] sm:$0xff]  ;;  %v7700_v3 = vld [vmem:[%s14998_s30 + $0x1a8] sm:$0xff] }
 0x6db   : > { %v7015_v39 = vpop.permute.xlu1 %7014  ;;  %v7120_v22 = vld [vmem:[#allocation2 + $0xa8] sm:$0xff] }
 0x6dc   : > { %7089 = vst.msk [vmem:[#allocation2 + $0xb0] sm:$0xff] %vm7066_vm11, %v7015_v39  ;;  %v6983_v6 = vpop.permute.xlu0 %6982  ;;  %v7104_v14 = vld [vmem:[#allocation2 + $0x28] sm:$0xff]  ;;  %10757 = vmatmul.mubr.msk.bf16.gmra.mrb[8].mxu1 %vm7193_vm12, %v7120_v22 }
 0x6dd   : > { %7073 = vst.msk [vmem:[#allocation2 + $0x30] sm:$0xff] %vm7066_vm11, %v6983_v6  ;;  %10725 = vmatmul.mubr.msk.bf16.gmra.mrb[8].mxu0 %vm7193_vm12, %v7104_v14 }
 0x6de   : > { %7863 = vperm.xlu1 %10897, %v7677_v60   ;;  %7868 = vperm.xlu0 %10896, %v7678_v57   ;;  %v7701_v60 = vld [vmem:[%s14998_s30 + $0x1b0] sm:$0xff]  ;;  %v7702_v57 = vld [vmem:[%s14998_s30 + $0x1b8] sm:$0xff] }
 0x6df   : > { %v7017_v8 = vpop.permute.xlu1 %7016 }
 0x6e0   : > { %7090 = vst.msk [vmem:[#allocation2 + $0xb8] sm:$0xff] %vm7066_vm11, %v7017_v8  ;;  %v6985_v1 = vpop.permute.xlu0 %6984 }
 0x6e1   : > { %7074 = vst.msk [vmem:[#allocation2 + $0x38] sm:$0xff] %vm7066_vm11, %v6985_v1 }
 0x6e2   : > { %7873 = vperm.xlu1 %10897, %v7679_v15   ;;  %7878 = vperm.xlu0 %10896, %v7680_v13   ;;  %v7703_v15 = vld [vmem:[%s14998_s30 + $0x1c0] sm:$0xff]  ;;  %v7704_v13 = vld [vmem:[%s14998_s30 + $0x1c8] sm:$0xff] }
 0x6e3   : > { %v6762_v27 = vpop.permute.xlu1 %6761  ;;  %v7121_v55 = vld [vmem:[#allocation2 + $0xb0] sm:$0xff] }
 0x6e4   : > { %6833 = vst.msk [vmem:[#allocation2 + $0xc8] sm:$0xff] %vm6807_vm10, %v6762_v27  ;;  %v6760_v47 = vpop.permute.xlu0 %6759  ;;  %v7105_v30 = vld [vmem:[#allocation2 + $0x30] sm:$0xff]  ;;  %10760 = vmatprep.mubr.msk.bf16.mxu1 %vm7193_vm12, %v7121_v55 }
 0x6e5   : > { %6832 = vst.msk [vmem:[#allocation2 + $0xc0] sm:$0xff] %vm6807_vm10, %v6760_v47  ;;  %10728 = vmatprep.mubr.msk.bf16.mxu0 %vm7193_vm12, %v7105_v30  ;;  %v7705_v55 = vld [vmem:[%s14998_s30 + $0x1d0] sm:$0xff]  ;;  %v7707_v30 = vld [vmem:[%s14998_s30 + $0x1e0] sm:$0xff] }
 0x6e6   : > { %7883 = vperm.xlu1 %10897, %v7681_v46   ;;  %7888 = vperm.xlu0 %10896, %v7682_v4   ;;  %v7706_v46 = vld [vmem:[%s14998_s30 + $0x1d8] sm:$0xff] }
 0x6e7   : > { %v7019_v17 = vpop.permute.xlu1 %7018  ;;  %v7122_v24 = vld [vmem:[#allocation2 + $0xb8] sm:$0xff] }
 0x6e8   : > { %7091 = vst.msk [vmem:[#allocation2 + $0xc0] sm:$0xff] %vm7066_vm11, %v7019_v17  ;;  %v6987_v51 = vpop.permute.xlu0 %6986  ;;  %v7106_v38 = vld [vmem:[#allocation2 + $0x38] sm:$0xff]  ;;  %10761 = vmatmul.mubr.msk.bf16.gmra.mrb[12].mxu1 %vm7193_vm12, %v7122_v24  ;;  %v7708_v17 = vld [vmem:[%s14998_s30 + $0x1e8] sm:$0xff] }
 0x6e9   : > { %7075 = vst.msk [vmem:[#allocation2 + $0x40] sm:$0xff] %vm7066_vm11, %v6987_v51  ;;  %10729 = vmatmul.mubr.msk.bf16.gmra.mrb[12].mxu0 %vm7193_vm12, %v7106_v38 }
 0x6ea   : > { %7893 = vperm.xlu1 %10897, %v7683_v5   ;;  %7898 = vperm.xlu0 %10896, %v7684_v48   ;;  %v7709_v5 = vld [vmem:[%s14998_s30 + $0x1f0] sm:$0xff]  ;;  %v7710_v48 = vld [vmem:[%s14998_s30 + $0x1f8] sm:$0xff]  ;;  %s15360_s30 = scalar_lea.sflag [#allocation4], %s218_s8 }
 0x6eb   : > { %v7021_v21 = vpop.permute.xlu1 %7020 }
 0x6ec   : > { %7092 = vst.msk [vmem:[#allocation2 + $0xc8] sm:$0xff] %vm7066_vm11, %v7021_v21  ;;  %v6989_v61 = vpop.permute.xlu0 %6988 }
 0x6ed   : > { %7076 = vst.msk [vmem:[#allocation2 + $0x48] sm:$0xff] %vm7066_vm11, %v6989_v61 }
 0x6ee   : > { %7903 = vperm.xlu1 %10897, %v7685_v62   ;;  %7908 = vperm.xlu0 %10896, %v7686_v50  }
 0x6ef   : > { %v6766_v42 = vpop.permute.xlu1 %6765  ;;  %v7123_v45 = vld [vmem:[#allocation2 + $0xc0] sm:$0xff] }
 0x6f0   : > { %6835 = vst.msk [vmem:[#allocation2 + $0xd8] sm:$0xff] %vm6807_vm10, %v6766_v42  ;;  %v6764_v56 = vpop.permute.xlu0 %6763  ;;  %v7107_v36 = vld [vmem:[#allocation2 + $0x40] sm:$0xff]  ;;  %10764 = vmatprep.mubr.msk.bf16.mxu1 %vm7193_vm12, %v7123_v45 }
 0x6f1   : > { %6834 = vst.msk [vmem:[#allocation2 + $0xd0] sm:$0xff] %vm6807_vm10, %v6764_v56  ;;  %10732 = vmatprep.mubr.msk.bf16.mxu0 %vm7193_vm12, %v7107_v36 }
 0x6f2   : > { %7913 = vperm.xlu1 %10897, %v7687_v35   ;;  %7918 = vperm.xlu0 %10896, %v7688_v29  }
 0x6f3   : > { %v7023_v43 = vpop.permute.xlu1 %7022  ;;  %v7124_v28 = vld [vmem:[#allocation2 + $0xc8] sm:$0xff] }
 0x6f4   : > { %7093 = vst.msk [vmem:[#allocation2 + $0xd0] sm:$0xff] %vm7066_vm11, %v7023_v43  ;;  %v6991_v0 = vpop.permute.xlu0 %6990  ;;  %v7108_v2 = vld [vmem:[#allocation2 + $0x48] sm:$0xff]  ;;  %10765 = vmatmul.mubr.msk.bf16.gmra.mrb[16].mxu1 %vm7193_vm12, %v7124_v28 }
 0x6f5   : > { %7077 = vst.msk [vmem:[#allocation2 + $0x50] sm:$0xff] %vm7066_vm11, %v6991_v0  ;;  %10733 = vmatmul.mubr.msk.bf16.gmra.mrb[16].mxu0 %vm7193_vm12, %v7108_v2 }
 0x6f6   : > { %7923 = vperm.xlu1 %10897, %v7689_v52   ;;  %7928 = vperm.xlu0 %10896, %v7690_v59  }
 0x6f7   : > { %v7025_v23 = vpop.permute.xlu1 %7024 }
 0x6f8   : > { %7094 = vst.msk [vmem:[#allocation2 + $0xd8] sm:$0xff] %vm7066_vm11, %v7025_v23  ;;  %v6993_v37 = vpop.permute.xlu0 %6992 }
 0x6f9   : > { %7078 = vst.msk [vmem:[#allocation2 + $0x58] sm:$0xff] %vm7066_vm11, %v6993_v37 }
 0x6fa   : > { %7933 = vperm.xlu1 %10897, %v7691_v12   ;;  %7938 = vperm.xlu0 %10896, %v7692_v40  }
 0x6fb   : > { %v6770_v58 = vpop.permute.xlu1 %6769  ;;  %v7125_v44 = vld [vmem:[#allocation2 + $0xd0] sm:$0xff] }
 0x6fc   : > { %6837 = vst.msk [vmem:[#allocation2 + $0xe8] sm:$0xff] %vm6807_vm10, %v6770_v58  ;;  %v6768_v25 = vpop.permute.xlu0 %6767  ;;  %v7109_v33 = vld [vmem:[#allocation2 + $0x50] sm:$0xff]  ;;  %10768 = vmatprep.mubr.msk.bf16.mxu1 %vm7193_vm12, %v7125_v44 }
 0x6fd   : > { %6836 = vst.msk [vmem:[#allocation2 + $0xe0] sm:$0xff] %vm6807_vm10, %v6768_v25  ;;  %10736 = vmatprep.mubr.msk.bf16.mxu0 %vm7193_vm12, %v7109_v33 }
 0x6fe   : > { %7943 = vperm.xlu1 %10897, %v7693_v54   ;;  %7948 = vperm.xlu0 %10896, %v7694_v49  }
 0x6ff   : > { %v7027_v32 = vpop.permute.xlu1 %7026  ;;  %v7126_v18 = vld [vmem:[#allocation2 + $0xd8] sm:$0xff] }
 0x700   : > { %7095 = vst.msk [vmem:[#allocation2 + $0xe0] sm:$0xff] %vm7066_vm11, %v7027_v32  ;;  %v6995_v11 = vpop.permute.xlu0 %6994  ;;  %v7110_v20 = vld [vmem:[#allocation2 + $0x58] sm:$0xff]  ;;  %10769 = vmatmul.mubr.msk.bf16.gmra.mrb[20].mxu1 %vm7193_vm12, %v7126_v18 }
 0x701   : > { %7079 = vst.msk [vmem:[#allocation2 + $0x60] sm:$0xff] %vm7066_vm11, %v6995_v11  ;;  %10737 = vmatmul.mubr.msk.bf16.gmra.mrb[20].mxu0 %vm7193_vm12, %v7110_v20  ;;  %v15217_v11 = vld [vmem:[%s15417_s2] ss:$0 sm:$0xff] }
 0x702   : > { %7953 = vperm.xlu1 %10897, %v7695_v34   ;;  %7958 = vperm.xlu0 %10896, %v7696_v7  }
 0x703   : > { %v7029_v41 = vpop.permute.xlu1 %7028 }
 0x704   : > { %7096 = vst.msk [vmem:[#allocation2 + $0xe8] sm:$0xff] %vm7066_vm11, %v7029_v41  ;;  %v6997_v16 = vpop.permute.xlu0 %6996 }
 0x705   : > { %7080 = vst.msk [vmem:[#allocation2 + $0x68] sm:$0xff] %vm7066_vm11, %v6997_v16 }
 0x706   : > { %7963 = vperm.xlu1 %10897, %v7697_v9   ;;  %7968 = vperm.xlu0 %10896, %v7698_v26  }
 0x707   : > { %v6774_v63 = vpop.permute.xlu1 %6773  ;;  %v7127_v53 = vld [vmem:[#allocation2 + $0xe0] sm:$0xff] }
 0x708   : > { %6839 = vst.msk [vmem:[#allocation2 + $0xf8] sm:$0xff] %vm6807_vm10, %v6774_v63  ;;  %v6772_v10 = vpop.permute.xlu0 %6771  ;;  %v7111_v19 = vld [vmem:[#allocation2 + $0x60] sm:$0xff]  ;;  %10772 = vmatprep.mubr.msk.bf16.mxu1 %vm7193_vm12, %v7127_v53 }
 0x709   : > { %6838 = vst.msk [vmem:[#allocation2 + $0xf0] sm:$0xff] %vm6807_vm10, %v6772_v10  ;;  %10740 = vmatprep.mubr.msk.bf16.mxu0 %vm7193_vm12, %v7111_v19 }
 0x70a   : > { %7973 = vperm.xlu1 %10897, %v7699_v31   ;;  %7978 = vperm.xlu0 %10896, %v7700_v3  }
 0x70b   : > { %v7031_v39 = vpop.permute.xlu1 %7030  ;;  %v7128_v22 = vld [vmem:[#allocation2 + $0xe8] sm:$0xff] }
 0x70c   : > { %7097 = vst.msk [vmem:[#allocation2 + $0xf0] sm:$0xff] %vm7066_vm11, %v7031_v39  ;;  %v6999_v6 = vpop.permute.xlu0 %6998  ;;  %v7112_v14 = vld [vmem:[#allocation2 + $0x68] sm:$0xff]  ;;  %10773 = vmatmul.mubr.msk.bf16.gmra.mrb[24].mxu1 %vm7193_vm12, %v7128_v22 }
 0x70d   : > { %7081 = vst.msk [vmem:[#allocation2 + $0x70] sm:$0xff] %vm7066_vm11, %v6999_v6  ;;  %10741 = vmatmul.mubr.msk.bf16.gmra.mrb[24].mxu0 %vm7193_vm12, %v7112_v14 }
 0x70e   : > { %7983 = vperm.xlu1 %10897, %v7701_v60   ;;  %7988 = vperm.xlu0 %10896, %v7702_v57  }
 0x70f   : > { %v7033_v8 = vpop.permute.xlu1 %7032 }
 0x710   : > { %7098 = vst.msk [vmem:[#allocation2 + $0xf8] sm:$0xff] %vm7066_vm11, %v7033_v8  ;;  %v7001_v1 = vpop.permute.xlu0 %7000 }
 0x711   : > { %7082 = vst.msk [vmem:[#allocation2 + $0x78] sm:$0xff] %vm7066_vm11, %v7001_v1 }
 0x712   : > { %7993 = vperm.xlu1 %10897, %v7703_v15   ;;  %7998 = vperm.xlu0 %10896, %v7704_v13  }
 0x713   : > { %v7129_v27 = vld [vmem:[#allocation2 + $0xf0] sm:$0xff] }
 0x714   : > { %v7113_v4 = vld [vmem:[#allocation2 + $0x70] sm:$0xff]  ;;  %10776 = vmatprep.mubr.msk.bf16.mxu1 %vm7193_vm12, %v7129_v27 }
 0x715   : > { %10744 = vmatprep.mubr.msk.bf16.mxu0 %vm7193_vm12, %v7113_v4 }
 0x716   : > { %8003 = vperm.xlu1 %10897, %v7705_v55   ;;  %8008 = vperm.xlu0 %10896, %v7706_v46  }
 0x717   : > { %v7130_v47 = vld [vmem:[#allocation2 + $0xf8] sm:$0xff] }
 0x718   : > { %v7114_v24 = vld [vmem:[#allocation2 + $0x78] sm:$0xff]  ;;  %10777 = vmatmul.mubr.msk.bf16.gmra.mrb[28].mxu1 %vm7193_vm12, %v7130_v47 }
 0x719   : > { %10745 = vmatmul.mubr.msk.bf16.gmra.mrb[28].mxu0 %vm7193_vm12, %v7114_v24 }
 0x71a   : > { %8013 = vperm.xlu1 %10897, %v7707_v30   ;;  %8018 = vperm.xlu0 %10896, %v7708_v17  }
 0x71e   : > { %8023 = vperm.xlu1 %10897, %v7709_v5   ;;  %8028 = vperm.xlu0 %10896, %v7710_v48  }
 0x720   : > { %v7719_v51 = vpop.permute.xlu1 %7718 }
 0x721   : > { %v7714_v38 = vpop.permute.xlu0 %7713 }
 0x724   : > { %v7724_v21 = vpop.permute.xlu1 %7723 }
 0x725   : > { %v7729_v62 = vpop.permute.xlu0 %7728 }
 0x728   : > { %v15158_v50 = vpop.permute.xlu1 %7733 }
 0x729   : > { %v15160_v61 = vpop.permute.xlu0 %7738 }
 0x72c   : > { %v15162_v42 = vpop.permute.xlu1 %7743 }
 0x72d   : > { %v15164_v45 = vpop.permute.xlu0 %7748 }
 0x730   : > { %v15166_v35 = vpop.permute.xlu1 %7753 }
 0x731   : > { %v15168_v29 = vpop.permute.xlu0 %7758 }
 0x734   : > { %v15170_v56 = vpop.permute.xlu1 %7763 }
 0x735   : > { %v15172_v36 = vpop.permute.xlu0 %7768 }
 0x738   : > { %v15174_v43 = vpop.permute.xlu1 %7773 }
 0x739   : > { %v15176_v28 = vpop.permute.xlu0 %7778 }
 0x73c   : > { %v15178_v52 = vpop.permute.xlu1 %7783 }
 0x73d   : > { %v15180_v59 = vpop.permute.xlu0 %7788 }
 0x740   : > { %v15182_v0 = vpop.permute.xlu1 %7793 }
 0x741   : > { %v15184_v2 = vpop.permute.xlu0 %7798 }
 0x744   : > { %v15186_v23 = vpop.permute.xlu1 %7803 }
 0x745   : > { %v15188_v12 = vpop.permute.xlu0 %7808 }
 0x748   : > { %v15190_v40 = vpop.permute.xlu1 %7813 }
 0x749   : > { %v15192_v37 = vpop.permute.xlu0 %7818 }
 0x74c   : > { %v15194_v58 = vpop.permute.xlu1 %7823 }
 0x74d   : > { %v15196_v44 = vpop.permute.xlu0 %7828 }
 0x751   : > { %v15198_v54 = vpop.permute.xlu1 %7833  ;;  %v15200_v49 = vpop.permute.xlu0 %7838 }
 0x755   : > { %v15202_v25 = vpop.permute.xlu1 %7843  ;;  %v15204_v33 = vpop.permute.xlu0 %7848 }
 0x759   : > { %v15206_v32 = vpop.permute.xlu1 %7853  ;;  %v15208_v18 = vpop.permute.xlu0 %7858 }
 0x75d   : > { %v15210_v34 = vpop.permute.xlu1 %7863  ;;  %v15212_v7 = vpop.permute.xlu0 %7868 }
 0x761   : > { %v7874_v20 = vpop.permute.xlu1 %7873  ;;  %v7879_v41 = vpop.permute.xlu0 %7878 }
 0x765   : > { %v7884_v39 = vpop.permute.xlu1 %7883  ;;  %v7889_v57 = vpop.permute.xlu0 %7888 }
 0x797   : > { %v10718_v9 = vpop.f32.mrb[0].mxu0 }
 0x798   : > { %v7337_v26 = vadd.f32 %v10718_v9, %v15217_v11  ;;  %v7328_v16 = vpop.f32.mrb[1].mxu0 }
 0x799   : > { %v7329_v63 = vadd.f32 %v15217_v11, %v7328_v16  ;;  %v10719_v53 = vpop.f32.mrb[2].mxu0  ;;  %v7899_v16 = vpop.permute.xlu0 %7898 }
 0x79a   : > { %v7585_v31 = vmax.f32 %v7337_v26, 0.0  ;;  %v7340_v10 = vadd.f32 %v10719_v53, %v15217_v11  ;;  %v7331_v19 = vpop.f32.mrb[3].mxu0 }
 0x79b   : > { %v7583_v3 = vmax.f32 %v7329_v63, 0.0  ;;  %v7332_v22 = vadd.f32 %v15217_v11, %v7331_v19 }
 0x79c   : > { %v10750_v60 = vpop.f32.mrb[0].mxu1  ;;  %v7586_v14 = vmax.f32 %v7340_v10, 0.0  ;;  %v8033_v1 = vmul.f32 %v7724_v21, %v7585_v31 }
 0x79d   : > { %v8031_v6 = vmul.f32 %v7714_v38, %v7583_v3  ;;  %v7465_v8 = vadd.f32 %v10750_v60, %v15217_v11  ;;  %v7584_v15 = vmax.f32 %v7332_v22, 0.0  ;;  %v7456_v13 = vpop.f32.mrb[1].mxu1  ;;  %v7894_v38 = vpop.permute.xlu1 %7893 }
 0x79e   : > { %v8034_v27 = vmul.f32 %v7729_v62, %v7586_v14  ;;  %v7457_v55 = vadd.f32 %v15217_v11, %v7456_v13  ;;  %v10751_v46 = vpop.f32.mrb[2].mxu1 }
 0x79f   : > { %v8032_v4 = vmul.f32 %v7719_v51, %v7584_v15  ;;  %v7617_v47 = vmax.f32 %v7465_v8, 0.0  ;;  %v7468_v30 = vadd.f32 %v10751_v46, %v15217_v11  ;;  %v7459_v17 = vpop.f32.mrb[3].mxu1 }
 0x7a0   : > { %v10480_v24 = vpack.c.bf16 %v8034_v27, %v8033_v1  ;;  %v7615_v5 = vmax.f32 %v7457_v55, 0.0  ;;  %v7460_v48 = vadd.f32 %v15217_v11, %v7459_v17 }
 0x7a1   : > { %v10475_v9 = vpack.c.bf16 %v8032_v4, %v8031_v6  ;;  %v7618_v26 = vmax.f32 %v7468_v30, 0.0  ;;  %v8065_v51 = vmul.f32 %v7884_v39, %v7617_v47  ;;  %v7904_v27 = vpop.permute.xlu1 %7903  ;;  %v7909_v30 = vpop.permute.xlu0 %7908 }
 0x7a2   : > { %10632 = vst [vmem:[%s15230_s10 + $0x8] sm:$0xff] %v10480_v24   ;;  %v7616_v21 = vmax.f32 %v7460_v48, 0.0  ;;  %v8063_v31 = vmul.f32 %v7874_v20, %v7615_v5 }
 0x7a3   : > { %10476 = vst [vmem:[%s15230_s10] sm:$0xff] %v10475_v9   ;;  %v8066_v62 = vmul.f32 %v7889_v57, %v7618_v26 }
 0x7a4   : > { %v10722_v63 = vpop.f32.mrb[4].mxu0  ;;  %v10754_v53 = vpop.f32.mrb[4].mxu1  ;;  %v8064_v3 = vmul.f32 %v7879_v41, %v7616_v21 }
 0x7a5   : > { %v7353_v10 = vadd.f32 %v10722_v63, %v15217_v11  ;;  %v7481_v19 = vadd.f32 %v10754_v53, %v15217_v11  ;;  %v7344_v22 = vpop.f32.mrb[5].mxu0  ;;  %v7472_v60 = vpop.f32.mrb[5].mxu1  ;;  %v10560_v6 = vpack.c.bf16 %v8066_v62, %v8065_v51 }
 0x7a6   : > { %v7345_v14 = vadd.f32 %v15217_v11, %v7344_v22  ;;  %v7473_v8 = vadd.f32 %v15217_v11, %v7472_v60  ;;  %v10723_v15 = vpop.f32.mrb[6].mxu0  ;;  %v10755_v39 = vpop.f32.mrb[6].mxu1  ;;  %v10555_v57 = vpack.c.bf16 %v8064_v3, %v8063_v31 }
 0x7a7   : > { %v7589_v13 = vmax.f32 %v7353_v10, 0.0  ;;  %v7356_v20 = vadd.f32 %v10723_v15, %v15217_v11  ;;  %v7347_v41 = vpop.f32.mrb[7].mxu0  ;;  %v7475_v1 = vpop.f32.mrb[7].mxu1  ;;  %10648 = vst [vmem:[%s15230_s10 + $0x88] sm:$0xff] %v10560_v6   ;;  %v7621_v55 = vmax.f32 %v7481_v19, 0.0  ;;  %v7484_v4 = vadd.f32 %v10755_v39, %v15217_v11 }
 0x7a8   : > { %v7587_v46 = vmax.f32 %v7345_v14, 0.0  ;;  %v7348_v47 = vadd.f32 %v15217_v11, %v7347_v41  ;;  %10647 = vst [vmem:[%s15230_s10 + $0x80] sm:$0xff] %v10555_v57   ;;  %v7619_v17 = vmax.f32 %v7473_v8, 0.0  ;;  %v7476_v5 = vadd.f32 %v15217_v11, %v7475_v1  ;;  %v7914_v22 = vpop.permute.xlu1 %7913  ;;  %v7919_v14 = vpop.permute.xlu0 %7918 }
 0x7a9   : > { %v7590_v24 = vmax.f32 %v7356_v20, 0.0  ;;  %v7622_v48 = vmax.f32 %v7484_v4, 0.0  ;;  %v8037_v26 = vmul.f32 %v15162_v42, %v7589_v13  ;;  %v8069_v62 = vmul.f32 %v7904_v27, %v7621_v55 }
 0x7aa   : > { %v7588_v9 = vmax.f32 %v7348_v47, 0.0  ;;  %v7620_v51 = vmax.f32 %v7476_v5, 0.0  ;;  %v8035_v63 = vmul.f32 %v15158_v50, %v7587_v46  ;;  %v8067_v3 = vmul.f32 %v7894_v38, %v7619_v17 }
 0x7ab   : > { %v8038_v21 = vmul.f32 %v15164_v45, %v7590_v24  ;;  %v8070_v53 = vmul.f32 %v7909_v30, %v7622_v48 }
 0x7ac   : > { %v8036_v31 = vmul.f32 %v15160_v61, %v7588_v9  ;;  %v8068_v19 = vmul.f32 %v7899_v16, %v7620_v51  ;;  %v7924_v30 = vpop.permute.xlu1 %7923  ;;  %v7929_v48 = vpop.permute.xlu0 %7928 }
 0x7ad   : > { %v10490_v10 = vpack.c.bf16 %v8038_v21, %v8037_v26  ;;  %v10570_v60 = vpack.c.bf16 %v8070_v53, %v8069_v62 }
 0x7ae   : > { %v10485_v6 = vpack.c.bf16 %v8036_v31, %v8035_v63  ;;  %v10565_v42 = vpack.c.bf16 %v8068_v19, %v8067_v3 }
 0x7af   : > { %10634 = vst [vmem:[%s15230_s10 + $0x18] sm:$0xff] %v10490_v10   ;;  %v10758_v45 = vpop.f32.mrb[8].mxu1  ;;  %10650 = vst [vmem:[%s15230_s10 + $0x98] sm:$0xff] %v10570_v60  }
 0x7b0   : > { %10633 = vst [vmem:[%s15230_s10 + $0x10] sm:$0xff] %v10485_v6   ;;  %v10726_v8 = vpop.f32.mrb[8].mxu0  ;;  %v7497_v15 = vadd.f32 %v10758_v45, %v15217_v11  ;;  %v7488_v50 = vpop.f32.mrb[9].mxu1  ;;  %10649 = vst [vmem:[%s15230_s10 + $0x90] sm:$0xff] %v10565_v42  }
 0x7b1   : > { %v7369_v61 = vadd.f32 %v10726_v8, %v15217_v11  ;;  %v7360_v39 = vpop.f32.mrb[9].mxu0  ;;  %v7489_v38 = vadd.f32 %v15217_v11, %v7488_v50  ;;  %v10759_v16 = vpop.f32.mrb[10].mxu1 }
 0x7b2   : > { %v7625_v57 = vmax.f32 %v7497_v15, 0.0  ;;  %v7361_v13 = vadd.f32 %v15217_v11, %v7360_v39  ;;  %v10727_v20 = vpop.f32.mrb[10].mxu0  ;;  %v7500_v41 = vadd.f32 %v10759_v16, %v15217_v11  ;;  %v7491_v1 = vpop.f32.mrb[11].mxu1 }
 0x7b3   : > { %v7593_v27 = vmax.f32 %v7369_v61, 0.0  ;;  %v7623_v55 = vmax.f32 %v7489_v38, 0.0  ;;  %v7372_v46 = vadd.f32 %v10727_v20, %v15217_v11  ;;  %v7363_v4 = vpop.f32.mrb[11].mxu0  ;;  %v7492_v47 = vadd.f32 %v15217_v11, %v7491_v1  ;;  %v7939_v8 = vpop.permute.xlu0 %7938 }
 0x7b4   : > { %v7591_v17 = vmax.f32 %v7361_v13, 0.0  ;;  %v7626_v24 = vmax.f32 %v7500_v41, 0.0  ;;  %v7364_v5 = vadd.f32 %v15217_v11, %v7363_v4  ;;  %v8073_v51 = vmul.f32 %v7924_v30, %v7625_v57 }
 0x7b5   : > { %v8041_v9 = vmul.f32 %v15170_v56, %v7593_v27  ;;  %v7594_v26 = vmax.f32 %v7372_v46, 0.0  ;;  %v7624_v21 = vmax.f32 %v7492_v47, 0.0  ;;  %v8071_v53 = vmul.f32 %v7914_v22, %v7623_v55  ;;  %v7934_v56 = vpop.permute.xlu1 %7933 }
 0x7b6   : > { %v8074_v62 = vmul.f32 %v7929_v48, %v7626_v24  ;;  %v7592_v63 = vmax.f32 %v7364_v5, 0.0  ;;  %v8039_v10 = vmul.f32 %v15166_v35, %v7591_v17 }
 0x7b7   : > { %v8042_v31 = vmul.f32 %v15172_v36, %v7594_v26  ;;  %v8072_v3 = vmul.f32 %v7919_v14, %v7624_v21  ;;  %v7949_v17 = vpop.permute.xlu0 %7948 }
 0x7b8   : > { %v10580_v19 = vpack.c.bf16 %v8074_v62, %v8073_v51  ;;  %v8040_v60 = vmul.f32 %v15168_v29, %v7592_v63 }
 0x7b9   : > { %v10500_v6 = vpack.c.bf16 %v8042_v31, %v8041_v9  ;;  %v10575_v42 = vpack.c.bf16 %v8072_v3, %v8071_v53  ;;  %v7944_v46 = vpop.permute.xlu1 %7943 }
 0x7ba   : > { %10652 = vst [vmem:[%s15230_s10 + $0xa8] sm:$0xff] %v10580_v19   ;;  %v10495_v45 = vpack.c.bf16 %v8040_v60, %v8039_v10 }
 0x7bb   : > { %10636 = vst [vmem:[%s15230_s10 + $0x28] sm:$0xff] %v10500_v6   ;;  %10651 = vst [vmem:[%s15230_s10 + $0xa0] sm:$0xff] %v10575_v42   ;;  %v10762_v15 = vpop.f32.mrb[12].mxu1  ;;  %v7959_v42 = vpop.permute.xlu0 %7958 }
 0x7bc   : > { %10635 = vst [vmem:[%s15230_s10 + $0x20] sm:$0xff] %v10495_v45   ;;  %v10730_v50 = vpop.f32.mrb[12].mxu0  ;;  %v7513_v22 = vadd.f32 %v10762_v15, %v15217_v11  ;;  %v7504_v36 = vpop.f32.mrb[13].mxu1 }
 0x7bd   : > { %v7385_v14 = vadd.f32 %v10730_v50, %v15217_v11  ;;  %v7376_v35 = vpop.f32.mrb[13].mxu0  ;;  %v7505_v61 = vadd.f32 %v15217_v11, %v7504_v36  ;;  %v10763_v29 = vpop.f32.mrb[14].mxu1 }
 0x7be   : > { %v7629_v39 = vmax.f32 %v7513_v22, 0.0  ;;  %v7377_v38 = vadd.f32 %v15217_v11, %v7376_v35  ;;  %v10731_v16 = vpop.f32.mrb[14].mxu0  ;;  %v7516_v57 = vadd.f32 %v10763_v29, %v15217_v11  ;;  %v7507_v13 = vpop.f32.mrb[15].mxu1 }
 0x7bf   : > { %v7597_v20 = vmax.f32 %v7385_v14, 0.0  ;;  %v7627_v41 = vmax.f32 %v7505_v61, 0.0  ;;  %v7388_v1 = vadd.f32 %v10731_v16, %v15217_v11  ;;  %v7379_v27 = vpop.f32.mrb[15].mxu0  ;;  %v7508_v55 = vadd.f32 %v15217_v11, %v7507_v13  ;;  %v7954_v60 = vpop.permute.xlu1 %7953 }
 0x7c0   : > { %v7595_v4 = vmax.f32 %v7377_v38, 0.0  ;;  %v7630_v47 = vmax.f32 %v7516_v57, 0.0  ;;  %v7380_v30 = vadd.f32 %v15217_v11, %v7379_v27  ;;  %v8077_v48 = vmul.f32 %v7944_v46, %v7629_v39 }
 0x7c1   : > { %v7598_v24 = vmax.f32 %v7388_v1, 0.0  ;;  %v7628_v5 = vmax.f32 %v7508_v55, 0.0  ;;  %v8045_v21 = vmul.f32 %v15178_v52, %v7597_v20  ;;  %v8075_v51 = vmul.f32 %v7934_v56, %v7627_v41  ;;  %v7969_v1 = vpop.permute.xlu0 %7968 }
 0x7c2   : > { %v8078_v9 = vmul.f32 %v7949_v17, %v7630_v47  ;;  %v7596_v26 = vmax.f32 %v7380_v30, 0.0  ;;  %v8043_v53 = vmul.f32 %v15174_v43, %v7595_v4 }
 0x7c3   : > { %v8046_v62 = vmul.f32 %v15180_v59, %v7598_v24  ;;  %v8076_v63 = vmul.f32 %v7939_v8, %v7628_v5  ;;  %v7964_v57 = vpop.permute.xlu1 %7963 }
 0x7c4   : > { %v10590_v31 = vpack.c.bf16 %v8078_v9, %v8077_v48  ;;  %v8044_v3 = vmul.f32 %v15176_v28, %v7596_v26 }
 0x7c5   : > { %v10510_v10 = vpack.c.bf16 %v8046_v62, %v8045_v21  ;;  %v10585_v19 = vpack.c.bf16 %v8076_v63, %v8075_v51 }
 0x7c6   : > { %10654 = vst [vmem:[%s15230_s10 + $0xb8] sm:$0xff] %v10590_v31   ;;  %v10505_v6 = vpack.c.bf16 %v8044_v3, %v8043_v53  ;;  %v7979_v53 = vpop.permute.xlu0 %7978 }
 0x7c7   : > { %10638 = vst [vmem:[%s15230_s10 + $0x38] sm:$0xff] %v10510_v10   ;;  %10653 = vst [vmem:[%s15230_s10 + $0xb0] sm:$0xff] %v10585_v19   ;;  %v10766_v45 = vpop.f32.mrb[16].mxu1  ;;  %v7974_v62 = vpop.permute.xlu1 %7973 }
 0x7c8   : > { %10637 = vst [vmem:[%s15230_s10 + $0x30] sm:$0xff] %v10505_v6   ;;  %v10734_v52 = vpop.f32.mrb[16].mxu0  ;;  %v7529_v56 = vadd.f32 %v10766_v45, %v15217_v11  ;;  %v7520_v59 = vpop.f32.mrb[17].mxu1 }
 0x7c9   : > { %v7401_v8 = vadd.f32 %v10734_v52, %v15217_v11  ;;  %v7392_v43 = vpop.f32.mrb[17].mxu0  ;;  %v7521_v15 = vadd.f32 %v15217_v11, %v7520_v59  ;;  %v10767_v28 = vpop.f32.mrb[18].mxu1 }
 0x7ca   : > { %v7633_v50 = vmax.f32 %v7529_v56, 0.0  ;;  %v7393_v22 = vadd.f32 %v15217_v11, %v7392_v43  ;;  %v10735_v36 = vpop.f32.mrb[18].mxu0  ;;  %v7532_v14 = vadd.f32 %v10767_v28, %v15217_v11  ;;  %v7523_v35 = vpop.f32.mrb[19].mxu1 }
 0x7cb   : > { %v7601_v61 = vmax.f32 %v7401_v8, 0.0  ;;  %v7631_v29 = vmax.f32 %v7521_v15, 0.0  ;;  %v7404_v39 = vadd.f32 %v10735_v36, %v15217_v11  ;;  %v7395_v38 = vpop.f32.mrb[19].mxu0  ;;  %v7524_v16 = vadd.f32 %v15217_v11, %v7523_v35  ;;  %v7984_v28 = vpop.permute.xlu1 %7983 }
 0x7cc   : > { %v7599_v13 = vmax.f32 %v7393_v22, 0.0  ;;  %v7634_v20 = vmax.f32 %v7532_v14, 0.0  ;;  %v7396_v41 = vadd.f32 %v15217_v11, %v7395_v38  ;;  %v8081_v46 = vmul.f32 %v7964_v57, %v7633_v50  ;;  %v7989_v14 = vpop.permute.xlu0 %7988 }
 0x7cd   : > { %v7602_v27 = vmax.f32 %v7404_v39, 0.0  ;;  %v7632_v55 = vmax.f32 %v7524_v16, 0.0  ;;  %v8049_v30 = vmul.f32 %v15186_v23, %v7601_v61  ;;  %v8079_v17 = vmul.f32 %v7954_v60, %v7631_v29 }
 0x7ce   : > { %v8082_v4 = vmul.f32 %v7969_v1, %v7634_v20  ;;  %v7600_v47 = vmax.f32 %v7396_v41, 0.0  ;;  %v8047_v48 = vmul.f32 %v15182_v0, %v7599_v13 }
 0x7cf   : > { %v8050_v24 = vmul.f32 %v15188_v12, %v7602_v27  ;;  %v8080_v5 = vmul.f32 %v7959_v42, %v7632_v55 }
 0x7d0   : > { %v10600_v9 = vpack.c.bf16 %v8082_v4, %v8081_v46  ;;  %v8048_v26 = vmul.f32 %v15184_v2, %v7600_v47  ;;  %v7994_v4 = vpop.permute.xlu1 %7993 }
 0x7d1   : > { %v10520_v21 = vpack.c.bf16 %v8050_v24, %v8049_v30  ;;  %v10595_v51 = vpack.c.bf16 %v8080_v5, %v8079_v17  ;;  %v7999_v30 = vpop.permute.xlu0 %7998 }
 0x7d2   : > { %10656 = vst [vmem:[%s15230_s10 + $0xc8] sm:$0xff] %v10600_v9   ;;  %v10515_v63 = vpack.c.bf16 %v8048_v26, %v8047_v48 }
 0x7d3   : > { %10640 = vst [vmem:[%s15230_s10 + $0x48] sm:$0xff] %v10520_v21   ;;  %10655 = vst [vmem:[%s15230_s10 + $0xc0] sm:$0xff] %v10595_v51   ;;  %v10770_v31 = vpop.f32.mrb[20].mxu1 }
 0x7d4   : > { %10639 = vst [vmem:[%s15230_s10 + $0x40] sm:$0xff] %v10515_v63   ;;  %v10738_v23 = vpop.f32.mrb[20].mxu0  ;;  %v7545_v3 = vadd.f32 %v10770_v31, %v15217_v11  ;;  %v7536_v12 = vpop.f32.mrb[21].mxu1 }
 0x7d5   : > { %v7417_v10 = vadd.f32 %v10738_v23, %v15217_v11  ;;  %v7408_v0 = vpop.f32.mrb[21].mxu0  ;;  %v7537_v19 = vadd.f32 %v15217_v11, %v7536_v12  ;;  %v10771_v2 = vpop.f32.mrb[22].mxu1 }
 0x7d6   : > { %v7637_v60 = vmax.f32 %v7545_v3, 0.0  ;;  %v7409_v6 = vadd.f32 %v15217_v11, %v7408_v0  ;;  %v10739_v42 = vpop.f32.mrb[22].mxu0  ;;  %v7548_v45 = vadd.f32 %v10771_v2, %v15217_v11  ;;  %v7539_v52 = vpop.f32.mrb[23].mxu1 }
 0x7d7   : > { %v7605_v56 = vmax.f32 %v7417_v10, 0.0  ;;  %v7635_v59 = vmax.f32 %v7537_v19, 0.0  ;;  %v7420_v8 = vadd.f32 %v10739_v42, %v15217_v11  ;;  %v7411_v43 = vpop.f32.mrb[23].mxu0  ;;  %v7540_v15 = vadd.f32 %v15217_v11, %v7539_v52  ;;  %v8004_v12 = vpop.permute.xlu1 %8003 }
 0x7d8   : > { %v7603_v50 = vmax.f32 %v7409_v6, 0.0  ;;  %v7638_v22 = vmax.f32 %v7548_v45, 0.0  ;;  %v7412_v36 = vadd.f32 %v15217_v11, %v7411_v43  ;;  %v8085_v29 = vmul.f32 %v7984_v28, %v7637_v60  ;;  %v8009_v2 = vpop.permute.xlu0 %8008 }
 0x7d9   : > { %v7606_v35 = vmax.f32 %v7420_v8, 0.0  ;;  %v7636_v61 = vmax.f32 %v7540_v15, 0.0  ;;  %v8053_v16 = vmul.f32 %v15194_v58, %v7605_v56  ;;  %v8083_v57 = vmul.f32 %v7974_v62, %v7635_v59 }
 0x7da   : > { %v8086_v39 = vmul.f32 %v7989_v14, %v7638_v22  ;;  %v7604_v38 = vmax.f32 %v7412_v36, 0.0  ;;  %v8051_v41 = vmul.f32 %v15190_v40, %v7603_v50 }
 0x7db   : > { %v8054_v13 = vmul.f32 %v15196_v44, %v7606_v35  ;;  %v8084_v20 = vmul.f32 %v7979_v53, %v7636_v61  ;;  %v8014_v14 = vpop.permute.xlu1 %8013 }
 0x7dc   : > { %v10610_v1 = vpack.c.bf16 %v8086_v39, %v8085_v29  ;;  %v8052_v27 = vmul.f32 %v15192_v37, %v7604_v38  ;;  %v8019_v61 = vpop.permute.xlu0 %8018 }
 0x7dd   : > { %v10530_v55 = vpack.c.bf16 %v8054_v13, %v8053_v16  ;;  %v10605_v46 = vpack.c.bf16 %v8084_v20, %v8083_v57 }
 0x7de   : > { %10658 = vst [vmem:[%s15230_s10 + $0xd8] sm:$0xff] %v10610_v1   ;;  %v10525_v47 = vpack.c.bf16 %v8052_v27, %v8051_v41 }
 0x7df   : > { %10642 = vst [vmem:[%s15230_s10 + $0x58] sm:$0xff] %v10530_v55   ;;  %10657 = vst [vmem:[%s15230_s10 + $0xd0] sm:$0xff] %v10605_v46   ;;  %v10774_v17 = vpop.f32.mrb[24].mxu1 }
 0x7e0   : > { %10641 = vst [vmem:[%s15230_s10 + $0x50] sm:$0xff] %v10525_v47   ;;  %v10742_v58 = vpop.f32.mrb[24].mxu0  ;;  %v7561_v24 = vadd.f32 %v10774_v17, %v15217_v11  ;;  %v7552_v44 = vpop.f32.mrb[25].mxu1 }
 0x7e1   : > { %v7433_v5 = vadd.f32 %v10742_v58, %v15217_v11  ;;  %v7424_v40 = vpop.f32.mrb[25].mxu0  ;;  %v7553_v48 = vadd.f32 %v15217_v11, %v7552_v44  ;;  %v10775_v37 = vpop.f32.mrb[26].mxu1 }
 0x7e2   : > { %v7641_v9 = vmax.f32 %v7561_v24, 0.0  ;;  %v7425_v26 = vadd.f32 %v15217_v11, %v7424_v40  ;;  %v10743_v21 = vpop.f32.mrb[26].mxu0  ;;  %v7564_v51 = vadd.f32 %v10775_v37, %v15217_v11  ;;  %v7555_v62 = vpop.f32.mrb[27].mxu1 }
 0x7e3   : > { %v7609_v63 = vmax.f32 %v7433_v5, 0.0  ;;  %v7639_v53 = vmax.f32 %v7553_v48, 0.0  ;;  %v7436_v31 = vadd.f32 %v10743_v21, %v15217_v11  ;;  %v7427_v23 = vpop.f32.mrb[27].mxu0  ;;  %v7556_v3 = vadd.f32 %v15217_v11, %v7555_v62  ;;  %v8024_v24 = vpop.permute.xlu1 %8023 }
 0x7e4   : > { %v7607_v10 = vmax.f32 %v7425_v26, 0.0  ;;  %v7642_v0 = vmax.f32 %v7564_v51, 0.0  ;;  %v7428_v19 = vadd.f32 %v15217_v11, %v7427_v23  ;;  %v8089_v42 = vmul.f32 %v8004_v12, %v7641_v9  ;;  %v8029_v44 = vpop.permute.xlu0 %8028 }
 0x7e5   : > { %v7610_v60 = vmax.f32 %v7436_v31, 0.0  ;;  %v7640_v6 = vmax.f32 %v7556_v3, 0.0  ;;  %v8057_v56 = vmul.f32 %v15202_v25, %v7609_v63  ;;  %v8087_v59 = vmul.f32 %v7994_v4, %v7639_v53 }
 0x7e6   : > { %v8090_v45 = vmul.f32 %v8009_v2, %v7642_v0  ;;  %v7608_v52 = vmax.f32 %v7428_v19, 0.0  ;;  %v8055_v15 = vmul.f32 %v15198_v54, %v7607_v10 }
 0x7e7   : > { %v8058_v8 = vmul.f32 %v15204_v33, %v7610_v60  ;;  %v8088_v43 = vmul.f32 %v7999_v30, %v7640_v6 }
 0x7e8   : > { %v10620_v28 = vpack.c.bf16 %v8090_v45, %v8089_v42  ;;  %v8056_v50 = vmul.f32 %v15200_v49, %v7608_v52 }
 0x7e9   : > { %v10540_v22 = vpack.c.bf16 %v8058_v8, %v8057_v56  ;;  %v10615_v36 = vpack.c.bf16 %v8088_v43, %v8087_v59 }
 0x7ea   : > { %10660 = vst [vmem:[%s15230_s10 + $0xe8] sm:$0xff] %v10620_v28   ;;  %v10535_v35 = vpack.c.bf16 %v8056_v50, %v8055_v15 }
 0x7eb   : > { %10644 = vst [vmem:[%s15230_s10 + $0x68] sm:$0xff] %v10540_v22   ;;  %10659 = vst [vmem:[%s15230_s10 + $0xe0] sm:$0xff] %v10615_v36   ;;  %v10778_v25 = vpop.f32.mrb[28].mxu1 }
 0x7ec   : > { %10643 = vst [vmem:[%s15230_s10 + $0x60] sm:$0xff] %v10535_v35   ;;  %v10746_v29 = vpop.f32.mrb[28].mxu0  ;;  %v7577_v33 = vadd.f32 %v10778_v25, %v15217_v11  ;;  %v7568_v39 = vpop.f32.mrb[29].mxu1 }
 0x7ed   : > { %v7449_v54 = vadd.f32 %v10746_v29, %v15217_v11  ;;  %v7440_v38 = vpop.f32.mrb[29].mxu0  ;;  %v7569_v49 = vadd.f32 %v15217_v11, %v7568_v39  ;;  %v10779_v16 = vpop.f32.mrb[30].mxu1 }
 0x7ee   : > { %v7645_v57 = vmax.f32 %v7577_v33, 0.0  ;;  %v7441_v13 = vadd.f32 %v15217_v11, %v7440_v38  ;;  %v10747_v20 = vpop.f32.mrb[30].mxu0  ;;  %v7580_v41 = vadd.f32 %v10779_v16, %v15217_v11  ;;  %v7571_v1 = vpop.f32.mrb[31].mxu1 }
 0x7ef   : > { %v7613_v27 = vmax.f32 %v7449_v54, 0.0  ;;  %v7643_v55 = vmax.f32 %v7569_v49, 0.0  ;;  %v7452_v46 = vadd.f32 %v10747_v20, %v15217_v11  ;;  %v7443_v4 = vpop.f32.mrb[31].mxu0  ;;  %v7572_v47 = vadd.f32 %v15217_v11, %v7571_v1 }
 0x7f0   : > { %v7611_v30 = vmax.f32 %v7441_v13, 0.0  ;;  %v7646_v17 = vmax.f32 %v7580_v41, 0.0  ;;  %v7444_v58 = vadd.f32 %v15217_v11, %v7443_v4  ;;  %v8093_v48 = vmul.f32 %v8024_v24, %v7645_v57 }
 0x7f1   : > { %v7614_v5 = vmax.f32 %v7452_v46, 0.0  ;;  %v7644_v40 = vmax.f32 %v7572_v47, 0.0  ;;  %v8061_v26 = vmul.f32 %v15210_v34, %v7613_v27  ;;  %v8091_v21 = vmul.f32 %v8014_v14, %v7643_v55 }
 0x7f2   : > { %v8094_v37 = vmul.f32 %v8029_v44, %v7646_v17  ;;  %v7612_v9 = vmax.f32 %v7444_v58, 0.0  ;;  %v8059_v11 = vmul.f32 %v15206_v32, %v7611_v30 }
 0x7f3   : > { %v8062_v51 = vmul.f32 %v15212_v7, %v7614_v5  ;;  %v8092_v62 = vmul.f32 %v8019_v61, %v7644_v40 }
 0x7f4   : > { %v10630_v63 = vpack.c.bf16 %v8094_v37, %v8093_v48  ;;  %v8060_v53 = vmul.f32 %v15208_v18, %v7612_v9 }
 0x7f5   : > { %v10550_v31 = vpack.c.bf16 %v8062_v51, %v8061_v26  ;;  %v10625_v23 = vpack.c.bf16 %v8092_v62, %v8091_v21 }
 0x7f6   : > { %10662 = vst [vmem:[%s15230_s10 + $0xf8] sm:$0xff] %v10630_v63   ;;  %v10545_v3 = vpack.c.bf16 %v8060_v53, %v8059_v11 }
 0x7f7   : > { %10646 = vst [vmem:[%s15230_s10 + $0x78] sm:$0xff] %v10550_v31   ;;  %10661 = vst [vmem:[%s15230_s10 + $0xf0] sm:$0xff] %v10625_v23  }
 0x7f8   : > { %10645 = vst [vmem:[%s15230_s10 + $0x70] sm:$0xff] %v10545_v3  }
 0x7f9   : > { %10918 = shalt.err (!%p10915_p7)
}
 0x7fa   : > { %s10919_s8 = scalar_lea.hbm %s15351_s24, 4096  ;;  %s10923_s18 = scalar_lea.hbm %s15419_s4, 90112 }
 0x7fb   : > { %p10920_p9 = scmp.ne.s32.totalorder %s15351_s24, %s10919_s8  ;;  %p10924_p12 = scmp.lt.u32.totalorder %s15351_s24, %s15419_s4 }
 0x7fc   : > { %p10925_p13 = scmp.lt.u32.totalorder %s10923_s18, %s10919_s8  ;;  %p10927_p1 = scmp.lt.u32.totalorder %s10919_s8, %s15351_s24 }
 0x7fd   : > { %p10921_p10 = pnand %p10920_p9, %p11105_p3 }
 0x7fe   : > { %p10926_p0 = por %p10925_p13, %p10924_p12 }
 0x7ff   : > { %p10922_p11 = pneg %p10921_p10 }
 0x800   : > { %p10928_p2 = por %p10927_p1, %p10926_p0 }
 0x802   : > { %p10929_p4 = pnand %p10928_p2, %p10922_p11 }
 0x804   : > { %10932 = shalt.err (!%p10929_p4)
}
 0x805   : > { %10798 = dma.vmem_to_hbm [thread:$0]  (%p11105_p3), %s15353_s12, 4096, %s15351_s24, %s15360_s30, %s11016_s5, %s11016_s5, %s11001_s23  }
 0x806 PF: > { %p10804_p5 = scmp.ge.s32.totalorder %s10999_s22, 2  ;;  %s8446_s14 = sand.u32 1, %s10971_s15  }
 0x807   : > { %s8447_s6 = scalar_lea.sflag [#allocation4], %s8446_s14 }
 0x808   : > { %p10801_p6 = pnand %p10804_p5, %p11114_p8 }
 0x80a   : > { %10966 = dma.done.wait (!%p10801_p6), %s8447_s6, 4096  }
 0x80b   : > { %10968 = vsyncadd (!%p10801_p6), %s8447_s6, 4294963200  ;;  %s17_s22 = sadd.s32 1, %s10999_s22   ;;  %s15422_s15 = smov %s10975_s16 }
 0x80c   : > { %p14_p7 = scmp.ge.s32.totalorder %s17_s22, 24   ;;  %s15423_s16 = smov %s10979_s17 }
 0x80d   : > { %s15424_s17 = smov %s11123_s7  ;;  %s15425_s18 = smov %s10991_s20 }
 0x80e   : > { %s15426_s19 = smov %s10995_s21  ;;  %s15427_s20 = smov %s15430_s25 }
 0x80f   : > { %s15428_s21 = smov %s15434_s26  ;;  %16 = sbr.rel (!%p14_p7) target bundleno = 5 (0x5), region = 101 }
 0x816   :  { %8452 = vsyncpa [#allocation4], 1 }
 0x817   :  { %8454 = vsyncpa [#allocation4 + $0x1], 1 }

</bundles_post_ra>
